<compile_context>
chip_gen: v6e
topology: v6e:2x2x1
jax: 0.10.0
libtpu: 0.0.40
codegen_flags: <defaults>
</compile_context>

<pallas_src>
import jax
import jax.numpy as jnp
from jax.experimental import pallas as pl
from jax.experimental.pallas import tpu as pltpu


# ----------------------------------------------------------------------------
# Fused matmul kernels: bf16 MXU operands, f32 accumulate, fused epilogues
# ----------------------------------------------------------------------------
def _mm_kernel(a_ref, b_ref, o_ref):
    acc = jnp.dot(a_ref[...], b_ref[...], preferred_element_type=jnp.float32)
    o_ref[...] = acc.astype(o_ref.dtype)


def _mm_bn_relu_kernel(a_ref, b_ref, scale_ref, shift_ref, o_ref):
    acc = jnp.dot(a_ref[...], b_ref[...], preferred_element_type=jnp.float32)
    y = acc * scale_ref[...] + shift_ref[...]          # BN epilogue in f32
    o_ref[...] = jnp.maximum(y, 0.0).astype(o_ref.dtype)


def _mm_add_kernel(a_ref, b_ref, res_ref, o_ref):
    acc = jnp.dot(a_ref[...], b_ref[...], preferred_element_type=jnp.float32)
    o_ref[...] = (acc + res_ref[...]).astype(o_ref.dtype)


def fused_matmul(a, b, *, scale=None, shift=None, shortcut=None,
                 out_dtype=jnp.float32):
    """out = epilogue(A @ B).

    A: (M, K), B: (K, N).  Operands are cast to bf16 (MXU-native); accumulator
    and epilogue math stay f32.  K and N are full-extent blocks (K <= 2304,
    N <= 256 here -> < 1.5 MiB bf16 per B tile); only M is tiled, and that
    grid axis is 'parallel' so v7x's two TensorCores can split it.
    """
    M, K = a.shape
    K2, N = b.shape
    assert K == K2
    a = a.astype(jnp.bfloat16)
    b = b.astype(jnp.bfloat16)

    # Only the first conv has K (=27) not a multiple of 8; pad it (zeros are a
    # no-op for the accumulation).  Every other K/N already matches the tiles.
    if K % 8 != 0:
        Kp = ((K + 7) // 8) * 8
        a = jnp.pad(a, ((0, 0), (0, Kp - K)))
        b = jnp.pad(b, ((0, Kp - K), (0, 0)))
        K = Kp

    tm = 128 if M % 128 == 0 else M            # M is 512 / 128 / 32 here
    grid = (M // tm,)

    a_spec = pl.BlockSpec((tm, K), lambda i: (i, 0))
    b_spec = pl.BlockSpec((K, N), lambda i: (0, 0))
    o_spec = pl.BlockSpec((tm, N), lambda i: (i, 0))

    out_bytes = M * N * jnp.dtype(out_dtype).itemsize
    cost = pl.CostEstimate(flops=2 * M * N * K, transcendentals=0,
                           bytes_accessed=2 * (M * K + K * N) + out_bytes)
    cparams = pltpu.CompilerParams(dimension_semantics=("parallel",))

    if scale is not None:
        kernel = _mm_bn_relu_kernel
        extra = (scale.reshape(1, N).astype(jnp.float32),
                 shift.reshape(1, N).astype(jnp.float32))
        extra_specs = [pl.BlockSpec((1, N), lambda i: (0, 0)),
                       pl.BlockSpec((1, N), lambda i: (0, 0))]
    elif shortcut is not None:
        kernel = _mm_add_kernel
        extra = (shortcut.astype(jnp.float32),)
        extra_specs = [pl.BlockSpec((tm, N), lambda i: (i, 0))]
    else:
        kernel = _mm_kernel
        extra = ()
        extra_specs = []

    return pl.pallas_call(
        kernel,
        out_shape=jax.ShapeDtypeStruct((M, N), out_dtype),
        grid_spec=pltpu.PrefetchScalarGridSpec(
            num_scalar_prefetch=0,
            grid=grid,
            in_specs=[a_spec, b_spec] + extra_specs,
            out_specs=o_spec),
        compiler_params=cparams,
        cost_estimate=cost,
    )(a, b, *extra)


# ----------------------------------------------------------------------------
# Standalone pre-activation BN + ReLU (lane-dense layout, bf16 output)
# ----------------------------------------------------------------------------
def _bn_relu_kernel(x_ref, scale_ref, shift_ref, o_ref):
    y = x_ref[...] * scale_ref[...] + shift_ref[...]
    o_ref[...] = jnp.maximum(y, 0.0).astype(o_ref.dtype)


def bn_relu_nhwc(x, scale, shift, out_dtype=jnp.bfloat16):
    """Eval-mode BatchNorm2d + ReLU on NHWC, reshaped to a lane-dense
    (N*H, W*C) slab (W*C >= 256 for every layer here) to avoid masked stores."""
    N, H, W, C = x.shape
    x2 = x.astype(jnp.float32).reshape(N * H, W * C)
    sc = jnp.tile(scale, W).reshape(1, W * C)
    sh = jnp.tile(shift, W).reshape(1, W * C)
    out = pl.pallas_call(
        _bn_relu_kernel,
        out_shape=jax.ShapeDtypeStruct(x2.shape, out_dtype),
    )(x2, sc, sh)
    return out.reshape(N, H, W, C)


# ----------------------------------------------------------------------------
# Fused head: bn_last + ReLU + global average pool + fc (+ bias)
# ----------------------------------------------------------------------------
def _head_kernel(x_ref, scale_ref, shift_ref, w_ref, b_ref, o_ref):
    y = jnp.maximum(x_ref[...] * scale_ref[...] + shift_ref[...], 0.0)
    pooled = jnp.mean(y, axis=1)                              # (B, C), f32
    # fc: tiny (B=2, N=10) -> do it on the VPU/XLU via broadcast + lane-reduce.
    prod = pooled[:, None, :] * w_ref[...][None, :, :]        # (B, NC, C)
    o_ref[...] = jnp.sum(prod, axis=-1) + b_ref[...]


def head(x, scale, shift, fc_w, fc_b):
    N, H, W, C = x.shape
    num_classes = fc_w.shape[0]
    x3 = x.astype(jnp.float32).reshape(N, H * W, C)
    return pl.pallas_call(
        _head_kernel,
        out_shape=jax.ShapeDtypeStruct((N, num_classes), jnp.float32),
    )(x3, scale.reshape(1, 1, C), shift.reshape(1, 1, C),
      fc_w.astype(jnp.float32), fc_b.reshape(1, num_classes))


# ----------------------------------------------------------------------------
# Conv = im2col (glue) + fused Pallas matmul
# ----------------------------------------------------------------------------
def _im2col(x, kh, kw, stride, padding):
    """NHWC -> (N*Ho*Wo, kh*kw*C) patch matrix; K order = (tap, channel)."""
    N, H, W, C = x.shape
    if padding:
        x = jnp.pad(x, ((0, 0), (padding, padding), (padding, padding), (0, 0)))
    Ho = (H + 2 * padding - kh) // stride + 1
    Wo = (W + 2 * padding - kw) // stride + 1
    if kh == 1 and kw == 1:
        patches = x[:, :stride * Ho:stride, :stride * Wo:stride, :]
    else:
        cols = [x[:, dy:dy + stride * Ho:stride, dx:dx + stride * Wo:stride, :]
                for dy in range(kh) for dx in range(kw)]
        patches = jnp.concatenate(cols, axis=-1)
    return patches.reshape(N * Ho * Wo, kh * kw * C), Ho, Wo


def conv2d(x, w_gemm, kh, kw, *, stride=1, padding=0,
           scale=None, shift=None, shortcut=None, out_dtype=jnp.float32):
    """Bias-free Conv2d as im2col + fused Pallas matmul.

    w_gemm: pre-transformed weight of shape (kh*kw*Cin, Cout), bf16.
    Optional fused epilogues: BN(scale, shift)+ReLU, or residual `shortcut`.
    """
    # TODO(synk): stream the kh*kw taps through a K grid (pl.Element offsets)
    # instead of materializing the im2col patch matrix in HBM.
    Nb = x.shape[0]
    cout = w_gemm.shape[1]
    a, Ho, Wo = _im2col(x, kh, kw, stride, padding)
    sc2d = shortcut.reshape(Nb * Ho * Wo, cout) if shortcut is not None else None
    out = fused_matmul(a, w_gemm, scale=scale, shift=shift, shortcut=sc2d,
                       out_dtype=out_dtype)
    return out.reshape(Nb, Ho, Wo, cout)


# ----------------------------------------------------------------------------
# WideResNet blocks / forward
# ----------------------------------------------------------------------------
def wide_res_block(x, bp, stride):
    same_channel = "short_w" not in bp
    # Pre-activation BN1 + ReLU (bf16 output -> MXU-ready im2col patches).
    h_act = bn_relu_nhwc(x, bp["bn1_scale"], bp["bn1_shift"])
    shortcut = x if same_channel else None

    # conv1 (3x3, maybe strided) with BN2 + ReLU fused into the epilogue.
    h = conv2d(h_act, bp["conv1_w"], 3, 3, stride=stride, padding=1,
               scale=bp["bn2_scale"], shift=bp["bn2_shift"],
               out_dtype=jnp.bfloat16)

    # eval-mode forward: F.dropout(p=0.3, training=False) is the identity.

    if not same_channel:
        # 1x1 projection shortcut acts on the post-activation h_act.
        shortcut = conv2d(h_act, bp["short_w"], 1, 1, stride=stride, padding=0,
                          out_dtype=jnp.float32)

    # conv2 (3x3) with the residual add fused into the epilogue.
    return conv2d(h, bp["conv2_w"], 3, 3, stride=1, padding=1,
                  shortcut=shortcut, out_dtype=jnp.float32)


def forward(x_nchw, params):
    x = jnp.transpose(x_nchw, (0, 2, 3, 1)).astype(jnp.float32)   # -> NHWC
    x = conv2d(x, params["conv1_w"], 3, 3, stride=1, padding=1)
    group_strides = (1, 2, 2)
    for g_idx, group in enumerate(params["groups"]):
        for b_idx, bp in enumerate(group):
            stride = group_strides[g_idx] if b_idx == 0 else 1
            x = wide_res_block(x, bp, stride)
    return head(x, params["bn_last_scale"], params["bn_last_shift"],
                params["fc_w"], params["fc_b"])


# ----------------------------------------------------------------------------
# Parameter init (mirrors _initialize_weights) + one-time kernel-layout prep
# ----------------------------------------------------------------------------
def init_params(key, num_classes=10, N=4, k=4, base_channel=16):
    keys = iter(jax.random.split(key, 128))

    def conv_w(cout, cin, kh, kw):
        # kaiming_normal_, mode='fan_out', nonlinearity='relu'
        std = (2.0 / (kh * kw * cout)) ** 0.5
        return std * jax.random.normal(next(keys), (cout, cin, kh, kw),
                                       jnp.float32)

    def bn_p(c):
        return dict(gamma=jnp.ones((c,), jnp.float32),
                    beta=jnp.zeros((c,), jnp.float32),
                    mean=jnp.zeros((c,), jnp.float32),
                    var=jnp.ones((c,), jnp.float32))

    def make_block(cin, cout):
        bp = dict(bn1=bn_p(cin), conv1_w=conv_w(cout, cin, 3, 3),
                  bn2=bn_p(cout), conv2_w=conv_w(cout, cout, 3, 3))
        if cin != cout:
            bp["short_w"] = conv_w(cout, cin, 1, 1)
        return bp

    def make_group(cin, cout):
        return [make_block(cin, cout)] + [make_block(cout, cout)
                                          for _ in range(1, N)]

    c1, c2, c3 = base_channel * k, base_channel * 2 * k, base_channel * 4 * k
    return dict(
        conv1_w=conv_w(base_channel, 3, 3, 3),
        groups=[make_group(base_channel, c1),
                make_group(c1, c2),
                make_group(c2, c3)],
        bn_last=bn_p(c3),
        fc_w=0.01 * jax.random.normal(next(keys), (num_classes, c3),
                                      jnp.float32),
        fc_b=jnp.zeros((num_classes,), jnp.float32),
    )


def prepare_params(raw, eps=1e-5):
    """One-time conversion to kernel-ready layout:
       - conv weights -> (KH*KW*Cin, Cout) GEMM layout, bf16 (MXU operand)
       - eval-mode BatchNorm folded to per-channel (scale, shift), f32."""
    def conv_gemm(w):
        cout, cin, kh, kw = w.shape
        return (jnp.transpose(w, (2, 3, 1, 0))
                .reshape(kh * kw * cin, cout).astype(jnp.bfloat16))

    def bn_affine(bn):
        scale = bn["gamma"] / jnp.sqrt(bn["var"] + eps)
        shift = bn["beta"] - bn["mean"] * scale
        return scale.astype(jnp.float32), shift.astype(jnp.float32)

    groups = []
    for group in raw["groups"]:
        blocks = []
        for bp in group:
            s1, t1 = bn_affine(bp["bn1"])
            s2, t2 = bn_affine(bp["bn2"])
            nb = dict(bn1_scale=s1, bn1_shift=t1,
                      bn2_scale=s2, bn2_shift=t2,
                      conv1_w=conv_gemm(bp["conv1_w"]),
                      conv2_w=conv_gemm(bp["conv2_w"]))
            if "short_w" in bp:
                nb["short_w"] = conv_gemm(bp["short_w"])
            blocks.append(nb)
        groups.append(blocks)
    s_last, t_last = bn_affine(raw["bn_last"])
    return dict(conv1_w=conv_gemm(raw["conv1_w"]),
                groups=groups,
                bn_last_scale=s_last, bn_last_shift=t_last,
                fc_w=raw["fc_w"].astype(jnp.float32),     # (num_classes, C)
                fc_b=raw["fc_b"].astype(jnp.float32))


if __name__ == "__main__":
    key = jax.random.PRNGKey(0)
    pkey, xkey = jax.random.split(key)

    num_classes = 10
    raw_params = init_params(pkey, num_classes=num_classes, N=4, k=4,
                             base_channel=16)
    params = prepare_params(raw_params)           # one-time weight/BN prep

    # small CIFAR-like input, NCHW as in PyTorch
    x = jax.random.normal(xkey, (2, 3, 16, 16), jnp.float32)

    fwd = jax.jit(forward)
    out = jax.block_until_ready(fwd(x, params))
    assert out.shape == (2, num_classes), out.shape
    assert bool(jnp.all(jnp.isfinite(out)))
    print("KERNEL_OK")
</pallas_src>

<mosaic_0001>
module attributes {stable_mosaic.version = 11 : i64} {
  func.func @_mm_kernel(%arg0: i32, %arg1: memref<128x32xbf16, #tpu.memory_space<vmem>>, %arg2: memref<32x16xbf16, #tpu.memory_space<vmem>>, %arg3: memref<128x16xf32, #tpu.memory_space<vmem>>) attributes {dimension_semantics = [#tpu.dimension_semantics<parallel>], iteration_bounds = array<i64: 4>, scalar_prefetch = 0 : i64, scratch_operands = 0 : i64, tpu.core_type = #tpu.core_type<tc>, window_params = [{transform_indices = @transform_0, window_bounds = array<i64: 128, 32>}, {pipeline_mode = #tpu.pipeline_mode<synchronous>, transform_indices = @transform_1, window_bounds = array<i64: 32, 16>}, {transform_indices = @transform_2, window_bounds = array<i64: 128, 16>}]} {
    %c0 = arith.constant 0 : index
    %c0_0 = arith.constant 0 : index
    %0 = vector.load %arg1[%c0, %c0_0] : memref<128x32xbf16, #tpu.memory_space<vmem>>, vector<128x32xbf16>
    %c0_1 = arith.constant 0 : index
    %c0_2 = arith.constant 0 : index
    %1 = vector.load %arg2[%c0_1, %c0_2] : memref<32x16xbf16, #tpu.memory_space<vmem>>, vector<32x16xbf16>
    %cst = arith.constant dense<0.000000e+00> : vector<128x16xf32>
    %2 = tpu.matmul %0, %1, %cst {dimension_numbers = #tpu.dot_dimension_numbers<[1], [0], [0], [1], [0, 0, 1, 1], [], []>} : vector<128x32xbf16>, vector<32x16xbf16>, vector<128x16xf32> -> vector<128x16xf32>
    %c0_3 = arith.constant 0 : index
    %c0_4 = arith.constant 0 : index
    %3 = vector.load %arg3[%c0_3, %c0_4] : memref<128x16xf32, #tpu.memory_space<vmem>>, vector<128x16xf32>
    tpu.vector_store %arg3[%c0_3, %c0_4], %2 {strides = array<i32>} : memref<128x16xf32, #tpu.memory_space<vmem>>, vector<128x16xf32>,
    return
  }
  func.func @transform_0(%arg0: i32) -> (i32, i32) {
    %c0_i32 = arith.constant 0 : i32
    %c0_i32_0 = arith.constant 0 : i32
    return %arg0, %c0_i32 : i32, i32
  }
  func.func @transform_1(%arg0: i32) -> (i32, i32) {
    %c0_i32 = arith.constant 0 : i32
    %c0_i32_0 = arith.constant 0 : i32
    %c0_i32_1 = arith.constant 0 : i32
    return %c0_i32, %c0_i32_0 : i32, i32
  }
  func.func @transform_2(%arg0: i32) -> (i32, i32) {
    %c0_i32 = arith.constant 0 : i32
    %c0_i32_0 = arith.constant 0 : i32
    return %arg0, %c0_i32 : i32, i32
  }
}

module attributes {stable_mosaic.version = 11 : i64} {
  func.func @_bn_relu_kernel(%arg0: memref<32x256xf32, #tpu.memory_space<vmem>>, %arg1: memref<1x256xf32, #tpu.memory_space<vmem>>, %arg2: memref<1x256xf32, #tpu.memory_space<vmem>>, %arg3: memref<32x256xbf16, #tpu.memory_space<vmem>>) attributes {dimension_semantics = [], scalar_prefetch = 0 : i64, scratch_operands = 0 : i64, tpu.core_type = #tpu.core_type<tc>} {
    %c0 = arith.constant 0 : index
    %c0_0 = arith.constant 0 : index
    %0 = vector.load %arg0[%c0, %c0_0] : memref<32x256xf32, #tpu.memory_space<vmem>>, vector<32x256xf32>
    %c0_1 = arith.constant 0 : index
    %c0_2 = arith.constant 0 : index
    %1 = vector.load %arg1[%c0_1, %c0_2] : memref<1x256xf32, #tpu.memory_space<vmem>>, vector<1x256xf32>
    %2 = vector.broadcast %1 : vector<1x256xf32> to vector<32x256xf32>
    %3 = arith.mulf %0, %2 : vector<32x256xf32>
    %c0_3 = arith.constant 0 : index
    %c0_4 = arith.constant 0 : index
    %4 = vector.load %arg2[%c0_3, %c0_4] : memref<1x256xf32, #tpu.memory_space<vmem>>, vector<1x256xf32>
    %5 = vector.broadcast %4 : vector<1x256xf32> to vector<32x256xf32>
    %6 = arith.addf %3, %5 : vector<32x256xf32>
    %cst = arith.constant 0.000000e+00 : f32
    %7 = vector.broadcast %cst : f32 to vector<32x256xf32>
    %8 = arith.maximumf %6, %7 : vector<32x256xf32>
    %9 = arith.truncf %8 : vector<32x256xf32> to vector<32x256xbf16>
    %c0_5 = arith.constant 0 : index
    %c0_6 = arith.constant 0 : index
    %10 = vector.load %arg3[%c0_5, %c0_6] : memref<32x256xbf16, #tpu.memory_space<vmem>>, vector<32x256xbf16>
    tpu.vector_store %arg3[%c0_5, %c0_6], %9 {strides = array<i32>} : memref<32x256xbf16, #tpu.memory_space<vmem>>, vector<32x256xbf16>,
    return
  }
}

module attributes {stable_mosaic.version = 11 : i64} {
  func.func @_mm_bn_relu_kernel(%arg0: i32, %arg1: memref<128x144xbf16, #tpu.memory_space<vmem>>, %arg2: memref<144x64xbf16, #tpu.memory_space<vmem>>, %arg3: memref<1x64xf32, #tpu.memory_space<vmem>>, %arg4: memref<1x64xf32, #tpu.memory_space<vmem>>, %arg5: memref<128x64xbf16, #tpu.memory_space<vmem>>) attributes {dimension_semantics = [#tpu.dimension_semantics<parallel>], iteration_bounds = array<i64: 4>, scalar_prefetch = 0 : i64, scratch_operands = 0 : i64, tpu.core_type = #tpu.core_type<tc>, window_params = [{transform_indices = @transform_0, window_bounds = array<i64: 128, 144>}, {pipeline_mode = #tpu.pipeline_mode<synchronous>, transform_indices = @transform_1, window_bounds = array<i64: 144, 64>}, {pipeline_mode = #tpu.pipeline_mode<synchronous>, transform_indices = @transform_2, window_bounds = array<i64: 1, 64>}, {pipeline_mode = #tpu.pipeline_mode<synchronous>, transform_indices = @transform_3, window_bounds = array<i64: 1, 64>}, {transform_indices = @transform_4, window_bounds = array<i64: 128, 64>}]} {
    %c0 = arith.constant 0 : index
    %c0_0 = arith.constant 0 : index
    %0 = vector.load %arg1[%c0, %c0_0] : memref<128x144xbf16, #tpu.memory_space<vmem>>, vector<128x144xbf16>
    %c0_1 = arith.constant 0 : index
    %c0_2 = arith.constant 0 : index
    %1 = vector.load %arg2[%c0_1, %c0_2] : memref<144x64xbf16, #tpu.memory_space<vmem>>, vector<144x64xbf16>
    %cst = arith.constant dense<0.000000e+00> : vector<128x64xf32>
    %2 = tpu.matmul %0, %1, %cst {dimension_numbers = #tpu.dot_dimension_numbers<[1], [0], [0], [1], [0, 0, 1, 1], [], []>} : vector<128x144xbf16>, vector<144x64xbf16>, vector<128x64xf32> -> vector<128x64xf32>
    %c0_3 = arith.constant 0 : index
    %c0_4 = arith.constant 0 : index
    %3 = vector.load %arg3[%c0_3, %c0_4] : memref<1x64xf32, #tpu.memory_space<vmem>>, vector<1x64xf32>
    %4 = vector.broadcast %3 : vector<1x64xf32> to vector<128x64xf32>
    %5 = arith.mulf %2, %4 : vector<128x64xf32>
    %c0_5 = arith.constant 0 : index
    %c0_6 = arith.constant 0 : index
    %6 = vector.load %arg4[%c0_5, %c0_6] : memref<1x64xf32, #tpu.memory_space<vmem>>, vector<1x64xf32>
    %7 = vector.broadcast %6 : vector<1x64xf32> to vector<128x64xf32>
    %8 = arith.addf %5, %7 : vector<128x64xf32>
    %cst_7 = arith.constant 0.000000e+00 : f32
    %9 = vector.broadcast %cst_7 : f32 to vector<128x64xf32>
    %10 = arith.maximumf %8, %9 : vector<128x64xf32>
    %11 = arith.truncf %10 : vector<128x64xf32> to vector<128x64xbf16>
    %c0_8 = arith.constant 0 : index
    %c0_9 = arith.constant 0 : index
    %12 = vector.load %arg5[%c0_8, %c0_9] : memref<128x64xbf16, #tpu.memory_space<vmem>>, vector<128x64xbf16>
    tpu.vector_store %arg5[%c0_8, %c0_9], %11 {strides = array<i32>} : memref<128x64xbf16, #tpu.memory_space<vmem>>, vector<128x64xbf16>,
    return
  }
  func.func @transform_0(%arg0: i32) -> (i32, i32) {
    %c0_i32 = arith.constant 0 : i32
    %c0_i32_0 = arith.constant 0 : i32
    return %arg0, %c0_i32 : i32, i32
  }
  func.func @transform_1(%arg0: i32) -> (i32, i32) {
    %c0_i32 = arith.constant 0 : i32
    %c0_i32_0 = arith.constant 0 : i32
    %c0_i32_1 = arith.constant 0 : i32
    return %c0_i32, %c0_i32_0 : i32, i32
  }
  func.func @transform_2(%arg0: i32) -> (i32, i32) {
    %c0_i32 = arith.constant 0 : i32
    %c0_i32_0 = arith.constant 0 : i32
    %c0_i32_1 = arith.constant 0 : i32
    return %c0_i32, %c0_i32_0 : i32, i32
  }
  func.func @transform_3(%arg0: i32) -> (i32, i32) {
    %c0_i32 = arith.constant 0 : i32
    %c0_i32_0 = arith.constant 0 : i32
    %c0_i32_1 = arith.constant 0 : i32
    return %c0_i32, %c0_i32_0 : i32, i32
  }
  func.func @transform_4(%arg0: i32) -> (i32, i32) {
    %c0_i32 = arith.constant 0 : i32
    %c0_i32_0 = arith.constant 0 : i32
    return %arg0, %c0_i32 : i32, i32
  }
}

module attributes {stable_mosaic.version = 11 : i64} {
  func.func @_mm_kernel(%arg0: i32, %arg1: memref<128x16xbf16, #tpu.memory_space<vmem>>, %arg2: memref<16x64xbf16, #tpu.memory_space<vmem>>, %arg3: memref<128x64xf32, #tpu.memory_space<vmem>>) attributes {dimension_semantics = [#tpu.dimension_semantics<parallel>], iteration_bounds = array<i64: 4>, scalar_prefetch = 0 : i64, scratch_operands = 0 : i64, tpu.core_type = #tpu.core_type<tc>, window_params = [{transform_indices = @transform_0, window_bounds = array<i64: 128, 16>}, {pipeline_mode = #tpu.pipeline_mode<synchronous>, transform_indices = @transform_1, window_bounds = array<i64: 16, 64>}, {transform_indices = @transform_2, window_bounds = array<i64: 128, 64>}]} {
    %c0 = arith.constant 0 : index
    %c0_0 = arith.constant 0 : index
    %0 = vector.load %arg1[%c0, %c0_0] : memref<128x16xbf16, #tpu.memory_space<vmem>>, vector<128x16xbf16>
    %c0_1 = arith.constant 0 : index
    %c0_2 = arith.constant 0 : index
    %1 = vector.load %arg2[%c0_1, %c0_2] : memref<16x64xbf16, #tpu.memory_space<vmem>>, vector<16x64xbf16>
    %cst = arith.constant dense<0.000000e+00> : vector<128x64xf32>
    %2 = tpu.matmul %0, %1, %cst {dimension_numbers = #tpu.dot_dimension_numbers<[1], [0], [0], [1], [0, 0, 1, 1], [], []>} : vector<128x16xbf16>, vector<16x64xbf16>, vector<128x64xf32> -> vector<128x64xf32>
    %c0_3 = arith.constant 0 : index
    %c0_4 = arith.constant 0 : index
    %3 = vector.load %arg3[%c0_3, %c0_4] : memref<128x64xf32, #tpu.memory_space<vmem>>, vector<128x64xf32>
    tpu.vector_store %arg3[%c0_3, %c0_4], %2 {strides = array<i32>} : memref<128x64xf32, #tpu.memory_space<vmem>>, vector<128x64xf32>,
    return
  }
  func.func @transform_0(%arg0: i32) -> (i32, i32) {
    %c0_i32 = arith.constant 0 : i32
    %c0_i32_0 = arith.constant 0 : i32
    return %arg0, %c0_i32 : i32, i32
  }
  func.func @transform_1(%arg0: i32) -> (i32, i32) {
    %c0_i32 = arith.constant 0 : i32
    %c0_i32_0 = arith.constant 0 : i32
    %c0_i32_1 = arith.constant 0 : i32
    return %c0_i32, %c0_i32_0 : i32, i32
  }
  func.func @transform_2(%arg0: i32) -> (i32, i32) {
    %c0_i32 = arith.constant 0 : i32
    %c0_i32_0 = arith.constant 0 : i32
    return %arg0, %c0_i32 : i32, i32
  }
}

module attributes {stable_mosaic.version = 11 : i64} {
  func.func @_mm_add_kernel(%arg0: i32, %arg1: memref<128x576xbf16, #tpu.memory_space<vmem>>, %arg2: memref<576x64xbf16, #tpu.memory_space<vmem>>, %arg3: memref<128x64xf32, #tpu.memory_space<vmem>>, %arg4: memref<128x64xf32, #tpu.memory_space<vmem>>) attributes {dimension_semantics = [#tpu.dimension_semantics<parallel>], iteration_bounds = array<i64: 4>, scalar_prefetch = 0 : i64, scratch_operands = 0 : i64, tpu.core_type = #tpu.core_type<tc>, window_params = [{transform_indices = @transform_0, window_bounds = array<i64: 128, 576>}, {pipeline_mode = #tpu.pipeline_mode<synchronous>, transform_indices = @transform_1, window_bounds = array<i64: 576, 64>}, {transform_indices = @transform_2, window_bounds = array<i64: 128, 64>}, {transform_indices = @transform_3, window_bounds = array<i64: 128, 64>}]} {
    %c0 = arith.constant 0 : index
    %c0_0 = arith.constant 0 : index
    %0 = vector.load %arg1[%c0, %c0_0] : memref<128x576xbf16, #tpu.memory_space<vmem>>, vector<128x576xbf16>
    %c0_1 = arith.constant 0 : index
    %c0_2 = arith.constant 0 : index
    %1 = vector.load %arg2[%c0_1, %c0_2] : memref<576x64xbf16, #tpu.memory_space<vmem>>, vector<576x64xbf16>
    %cst = arith.constant dense<0.000000e+00> : vector<128x64xf32>
    %2 = tpu.matmul %0, %1, %cst {dimension_numbers = #tpu.dot_dimension_numbers<[1], [0], [0], [1], [0, 0, 1, 1], [], []>} : vector<128x576xbf16>, vector<576x64xbf16>, vector<128x64xf32> -> vector<128x64xf32>
    %c0_3 = arith.constant 0 : index
    %c0_4 = arith.constant 0 : index
    %3 = vector.load %arg3[%c0_3, %c0_4] : memref<128x64xf32, #tpu.memory_space<vmem>>, vector<128x64xf32>
    %4 = arith.addf %2, %3 : vector<128x64xf32>
    %c0_5 = arith.constant 0 : index
    %c0_6 = arith.constant 0 : index
    %5 = vector.load %arg4[%c0_5, %c0_6] : memref<128x64xf32, #tpu.memory_space<vmem>>, vector<128x64xf32>
    tpu.vector_store %arg4[%c0_5, %c0_6], %4 {strides = array<i32>} : memref<128x64xf32, #tpu.memory_space<vmem>>, vector<128x64xf32>,
    return
  }
  func.func @transform_0(%arg0: i32) -> (i32, i32) {
    %c0_i32 = arith.constant 0 : i32
    %c0_i32_0 = arith.constant 0 : i32
    return %arg0, %c0_i32 : i32, i32
  }
  func.func @transform_1(%arg0: i32) -> (i32, i32) {
    %c0_i32 = arith.constant 0 : i32
    %c0_i32_0 = arith.constant 0 : i32
    %c0_i32_1 = arith.constant 0 : i32
    return %c0_i32, %c0_i32_0 : i32, i32
  }
  func.func @transform_2(%arg0: i32) -> (i32, i32) {
    %c0_i32 = arith.constant 0 : i32
    %c0_i32_0 = arith.constant 0 : i32
    return %arg0, %c0_i32 : i32, i32
  }
  func.func @transform_3(%arg0: i32) -> (i32, i32) {
    %c0_i32 = arith.constant 0 : i32
    %c0_i32_0 = arith.constant 0 : i32
    return %arg0, %c0_i32 : i32, i32
  }
}

module attributes {stable_mosaic.version = 11 : i64} {
  func.func @_bn_relu_kernel(%arg0: memref<32x1024xf32, #tpu.memory_space<vmem>>, %arg1: memref<1x1024xf32, #tpu.memory_space<vmem>>, %arg2: memref<1x1024xf32, #tpu.memory_space<vmem>>, %arg3: memref<32x1024xbf16, #tpu.memory_space<vmem>>) attributes {dimension_semantics = [], scalar_prefetch = 0 : i64, scratch_operands = 0 : i64, tpu.core_type = #tpu.core_type<tc>} {
    %c0 = arith.constant 0 : index
    %c0_0 = arith.constant 0 : index
    %0 = vector.load %arg0[%c0, %c0_0] : memref<32x1024xf32, #tpu.memory_space<vmem>>, vector<32x1024xf32>
    %c0_1 = arith.constant 0 : index
    %c0_2 = arith.constant 0 : index
    %1 = vector.load %arg1[%c0_1, %c0_2] : memref<1x1024xf32, #tpu.memory_space<vmem>>, vector<1x1024xf32>
    %2 = vector.broadcast %1 : vector<1x1024xf32> to vector<32x1024xf32>
    %3 = arith.mulf %0, %2 : vector<32x1024xf32>
    %c0_3 = arith.constant 0 : index
    %c0_4 = arith.constant 0 : index
    %4 = vector.load %arg2[%c0_3, %c0_4] : memref<1x1024xf32, #tpu.memory_space<vmem>>, vector<1x1024xf32>
    %5 = vector.broadcast %4 : vector<1x1024xf32> to vector<32x1024xf32>
    %6 = arith.addf %3, %5 : vector<32x1024xf32>
    %cst = arith.constant 0.000000e+00 : f32
    %7 = vector.broadcast %cst : f32 to vector<32x1024xf32>
    %8 = arith.maximumf %6, %7 : vector<32x1024xf32>
    %9 = arith.truncf %8 : vector<32x1024xf32> to vector<32x1024xbf16>
    %c0_5 = arith.constant 0 : index
    %c0_6 = arith.constant 0 : index
    %10 = vector.load %arg3[%c0_5, %c0_6] : memref<32x1024xbf16, #tpu.memory_space<vmem>>, vector<32x1024xbf16>
    tpu.vector_store %arg3[%c0_5, %c0_6], %9 {strides = array<i32>} : memref<32x1024xbf16, #tpu.memory_space<vmem>>, vector<32x1024xbf16>,
    return
  }
}

module attributes {stable_mosaic.version = 11 : i64} {
  func.func @_mm_bn_relu_kernel(%arg0: i32, %arg1: memref<128x576xbf16, #tpu.memory_space<vmem>>, %arg2: memref<576x128xbf16, #tpu.memory_space<vmem>>, %arg3: memref<1x128xf32, #tpu.memory_space<vmem>>, %arg4: memref<1x128xf32, #tpu.memory_space<vmem>>, %arg5: memref<128x128xbf16, #tpu.memory_space<vmem>>) attributes {dimension_semantics = [#tpu.dimension_semantics<parallel>], iteration_bounds = array<i64: 1>, scalar_prefetch = 0 : i64, scratch_operands = 0 : i64, tpu.core_type = #tpu.core_type<tc>, window_params = [{transform_indices = @transform_0, window_bounds = array<i64: 128, 576>}, {pipeline_mode = #tpu.pipeline_mode<synchronous>, transform_indices = @transform_1, window_bounds = array<i64: 576, 128>}, {pipeline_mode = #tpu.pipeline_mode<synchronous>, transform_indices = @transform_2, window_bounds = array<i64: 1, 128>}, {pipeline_mode = #tpu.pipeline_mode<synchronous>, transform_indices = @transform_3, window_bounds = array<i64: 1, 128>}, {transform_indices = @transform_4, window_bounds = array<i64: 128, 128>}]} {
    %c0 = arith.constant 0 : index
    %c0_0 = arith.constant 0 : index
    %0 = vector.load %arg1[%c0, %c0_0] : memref<128x576xbf16, #tpu.memory_space<vmem>>, vector<128x576xbf16>
    %c0_1 = arith.constant 0 : index
    %c0_2 = arith.constant 0 : index
    %1 = vector.load %arg2[%c0_1, %c0_2] : memref<576x128xbf16, #tpu.memory_space<vmem>>, vector<576x128xbf16>
    %cst = arith.constant dense<0.000000e+00> : vector<128x128xf32>
    %2 = tpu.matmul %0, %1, %cst {dimension_numbers = #tpu.dot_dimension_numbers<[1], [0], [0], [1], [0, 0, 1, 1], [], []>} : vector<128x576xbf16>, vector<576x128xbf16>, vector<128x128xf32> -> vector<128x128xf32>
    %c0_3 = arith.constant 0 : index
    %c0_4 = arith.constant 0 : index
    %3 = vector.load %arg3[%c0_3, %c0_4] : memref<1x128xf32, #tpu.memory_space<vmem>>, vector<1x128xf32>
    %4 = vector.broadcast %3 : vector<1x128xf32> to vector<128x128xf32>
    %5 = arith.mulf %2, %4 : vector<128x128xf32>
    %c0_5 = arith.constant 0 : index
    %c0_6 = arith.constant 0 : index
    %6 = vector.load %arg4[%c0_5, %c0_6] : memref<1x128xf32, #tpu.memory_space<vmem>>, vector<1x128xf32>
    %7 = vector.broadcast %6 : vector<1x128xf32> to vector<128x128xf32>
    %8 = arith.addf %5, %7 : vector<128x128xf32>
    %cst_7 = arith.constant 0.000000e+00 : f32
    %9 = vector.broadcast %cst_7 : f32 to vector<128x128xf32>
    %10 = arith.maximumf %8, %9 : vector<128x128xf32>
    %11 = arith.truncf %10 : vector<128x128xf32> to vector<128x128xbf16>
    %c0_8 = arith.constant 0 : index
    %c0_9 = arith.constant 0 : index
    %12 = vector.load %arg5[%c0_8, %c0_9] : memref<128x128xbf16, #tpu.memory_space<vmem>>, vector<128x128xbf16>
    tpu.vector_store %arg5[%c0_8, %c0_9], %11 {strides = array<i32>} : memref<128x128xbf16, #tpu.memory_space<vmem>>, vector<128x128xbf16>,
    return
  }
  func.func @transform_0(%arg0: i32) -> (i32, i32) {
    %c0_i32 = arith.constant 0 : i32
    %c0_i32_0 = arith.constant 0 : i32
    return %arg0, %c0_i32 : i32, i32
  }
  func.func @transform_1(%arg0: i32) -> (i32, i32) {
    %c0_i32 = arith.constant 0 : i32
    %c0_i32_0 = arith.constant 0 : i32
    %c0_i32_1 = arith.constant 0 : i32
    return %c0_i32, %c0_i32_0 : i32, i32
  }
  func.func @transform_2(%arg0: i32) -> (i32, i32) {
    %c0_i32 = arith.constant 0 : i32
    %c0_i32_0 = arith.constant 0 : i32
    %c0_i32_1 = arith.constant 0 : i32
    return %c0_i32, %c0_i32_0 : i32, i32
  }
  func.func @transform_3(%arg0: i32) -> (i32, i32) {
    %c0_i32 = arith.constant 0 : i32
    %c0_i32_0 = arith.constant 0 : i32
    %c0_i32_1 = arith.constant 0 : i32
    return %c0_i32, %c0_i32_0 : i32, i32
  }
  func.func @transform_4(%arg0: i32) -> (i32, i32) {
    %c0_i32 = arith.constant 0 : i32
    %c0_i32_0 = arith.constant 0 : i32
    return %arg0, %c0_i32 : i32, i32
  }
}

module attributes {stable_mosaic.version = 11 : i64} {
  func.func @_mm_bn_relu_kernel(%arg0: i32, %arg1: memref<128x576xbf16, #tpu.memory_space<vmem>>, %arg2: memref<576x64xbf16, #tpu.memory_space<vmem>>, %arg3: memref<1x64xf32, #tpu.memory_space<vmem>>, %arg4: memref<1x64xf32, #tpu.memory_space<vmem>>, %arg5: memref<128x64xbf16, #tpu.memory_space<vmem>>) attributes {dimension_semantics = [#tpu.dimension_semantics<parallel>], iteration_bounds = array<i64: 4>, scalar_prefetch = 0 : i64, scratch_operands = 0 : i64, tpu.core_type = #tpu.core_type<tc>, window_params = [{transform_indices = @transform_0, window_bounds = array<i64: 128, 576>}, {pipeline_mode = #tpu.pipeline_mode<synchronous>, transform_indices = @transform_1, window_bounds = array<i64: 576, 64>}, {pipeline_mode = #tpu.pipeline_mode<synchronous>, transform_indices = @transform_2, window_bounds = array<i64: 1, 64>}, {pipeline_mode = #tpu.pipeline_mode<synchronous>, transform_indices = @transform_3, window_bounds = array<i64: 1, 64>}, {transform_indices = @transform_4, window_bounds = array<i64: 128, 64>}]} {
    %c0 = arith.constant 0 : index
    %c0_0 = arith.constant 0 : index
    %0 = vector.load %arg1[%c0, %c0_0] : memref<128x576xbf16, #tpu.memory_space<vmem>>, vector<128x576xbf16>
    %c0_1 = arith.constant 0 : index
    %c0_2 = arith.constant 0 : index
    %1 = vector.load %arg2[%c0_1, %c0_2] : memref<576x64xbf16, #tpu.memory_space<vmem>>, vector<576x64xbf16>
    %cst = arith.constant dense<0.000000e+00> : vector<128x64xf32>
    %2 = tpu.matmul %0, %1, %cst {dimension_numbers = #tpu.dot_dimension_numbers<[1], [0], [0], [1], [0, 0, 1, 1], [], []>} : vector<128x576xbf16>, vector<576x64xbf16>, vector<128x64xf32> -> vector<128x64xf32>
    %c0_3 = arith.constant 0 : index
    %c0_4 = arith.constant 0 : index
    %3 = vector.load %arg3[%c0_3, %c0_4] : memref<1x64xf32, #tpu.memory_space<vmem>>, vector<1x64xf32>
    %4 = vector.broadcast %3 : vector<1x64xf32> to vector<128x64xf32>
    %5 = arith.mulf %2, %4 : vector<128x64xf32>
    %c0_5 = arith.constant 0 : index
    %c0_6 = arith.constant 0 : index
    %6 = vector.load %arg4[%c0_5, %c0_6] : memref<1x64xf32, #tpu.memory_space<vmem>>, vector<1x64xf32>
    %7 = vector.broadcast %6 : vector<1x64xf32> to vector<128x64xf32>
    %8 = arith.addf %5, %7 : vector<128x64xf32>
    %cst_7 = arith.constant 0.000000e+00 : f32
    %9 = vector.broadcast %cst_7 : f32 to vector<128x64xf32>
    %10 = arith.maximumf %8, %9 : vector<128x64xf32>
    %11 = arith.truncf %10 : vector<128x64xf32> to vector<128x64xbf16>
    %c0_8 = arith.constant 0 : index
    %c0_9 = arith.constant 0 : index
    %12 = vector.load %arg5[%c0_8, %c0_9] : memref<128x64xbf16, #tpu.memory_space<vmem>>, vector<128x64xbf16>
    tpu.vector_store %arg5[%c0_8, %c0_9], %11 {strides = array<i32>} : memref<128x64xbf16, #tpu.memory_space<vmem>>, vector<128x64xbf16>,
    return
  }
  func.func @transform_0(%arg0: i32) -> (i32, i32) {
    %c0_i32 = arith.constant 0 : i32
    %c0_i32_0 = arith.constant 0 : i32
    return %arg0, %c0_i32 : i32, i32
  }
  func.func @transform_1(%arg0: i32) -> (i32, i32) {
    %c0_i32 = arith.constant 0 : i32
    %c0_i32_0 = arith.constant 0 : i32
    %c0_i32_1 = arith.constant 0 : i32
    return %c0_i32, %c0_i32_0 : i32, i32
  }
  func.func @transform_2(%arg0: i32) -> (i32, i32) {
    %c0_i32 = arith.constant 0 : i32
    %c0_i32_0 = arith.constant 0 : i32
    %c0_i32_1 = arith.constant 0 : i32
    return %c0_i32, %c0_i32_0 : i32, i32
  }
  func.func @transform_3(%arg0: i32) -> (i32, i32) {
    %c0_i32 = arith.constant 0 : i32
    %c0_i32_0 = arith.constant 0 : i32
    %c0_i32_1 = arith.constant 0 : i32
    return %c0_i32, %c0_i32_0 : i32, i32
  }
  func.func @transform_4(%arg0: i32) -> (i32, i32) {
    %c0_i32 = arith.constant 0 : i32
    %c0_i32_0 = arith.constant 0 : i32
    return %arg0, %c0_i32 : i32, i32
  }
}

module attributes {stable_mosaic.version = 11 : i64} {
  func.func @_mm_add_kernel(%arg0: i32, %arg1: memref<128x1152xbf16, #tpu.memory_space<vmem>>, %arg2: memref<1152x128xbf16, #tpu.memory_space<vmem>>, %arg3: memref<128x128xf32, #tpu.memory_space<vmem>>, %arg4: memref<128x128xf32, #tpu.memory_space<vmem>>) attributes {dimension_semantics = [#tpu.dimension_semantics<parallel>], iteration_bounds = array<i64: 1>, scalar_prefetch = 0 : i64, scratch_operands = 0 : i64, tpu.core_type = #tpu.core_type<tc>, window_params = [{transform_indices = @transform_0, window_bounds = array<i64: 128, 1152>}, {pipeline_mode = #tpu.pipeline_mode<synchronous>, transform_indices = @transform_1, window_bounds = array<i64: 1152, 128>}, {transform_indices = @transform_2, window_bounds = array<i64: 128, 128>}, {transform_indices = @transform_3, window_bounds = array<i64: 128, 128>}]} {
    %c0 = arith.constant 0 : index
    %c0_0 = arith.constant 0 : index
    %0 = vector.load %arg1[%c0, %c0_0] : memref<128x1152xbf16, #tpu.memory_space<vmem>>, vector<128x1152xbf16>
    %c0_1 = arith.constant 0 : index
    %c0_2 = arith.constant 0 : index
    %1 = vector.load %arg2[%c0_1, %c0_2] : memref<1152x128xbf16, #tpu.memory_space<vmem>>, vector<1152x128xbf16>
    %cst = arith.constant dense<0.000000e+00> : vector<128x128xf32>
    %2 = tpu.matmul %0, %1, %cst {dimension_numbers = #tpu.dot_dimension_numbers<[1], [0], [0], [1], [0, 0, 1, 1], [], []>} : vector<128x1152xbf16>, vector<1152x128xbf16>, vector<128x128xf32> -> vector<128x128xf32>
    %c0_3 = arith.constant 0 : index
    %c0_4 = arith.constant 0 : index
    %3 = vector.load %arg3[%c0_3, %c0_4] : memref<128x128xf32, #tpu.memory_space<vmem>>, vector<128x128xf32>
    %4 = arith.addf %2, %3 : vector<128x128xf32>
    %c0_5 = arith.constant 0 : index
    %c0_6 = arith.constant 0 : index
    %5 = vector.load %arg4[%c0_5, %c0_6] : memref<128x128xf32, #tpu.memory_space<vmem>>, vector<128x128xf32>
    tpu.vector_store %arg4[%c0_5, %c0_6], %4 {strides = array<i32>} : memref<128x128xf32, #tpu.memory_space<vmem>>, vector<128x128xf32>,
    return
  }
  func.func @transform_0(%arg0: i32) -> (i32, i32) {
    %c0_i32 = arith.constant 0 : i32
    %c0_i32_0 = arith.constant 0 : i32
    return %arg0, %c0_i32 : i32, i32
  }
  func.func @transform_1(%arg0: i32) -> (i32, i32) {
    %c0_i32 = arith.constant 0 : i32
    %c0_i32_0 = arith.constant 0 : i32
    %c0_i32_1 = arith.constant 0 : i32
    return %c0_i32, %c0_i32_0 : i32, i32
  }
  func.func @transform_2(%arg0: i32) -> (i32, i32) {
    %c0_i32 = arith.constant 0 : i32
    %c0_i32_0 = arith.constant 0 : i32
    return %arg0, %c0_i32 : i32, i32
  }
  func.func @transform_3(%arg0: i32) -> (i32, i32) {
    %c0_i32 = arith.constant 0 : i32
    %c0_i32_0 = arith.constant 0 : i32
    return %arg0, %c0_i32 : i32, i32
  }
}

module attributes {stable_mosaic.version = 11 : i64} {
  func.func @_mm_kernel(%arg0: i32, %arg1: memref<128x64xbf16, #tpu.memory_space<vmem>>, %arg2: memref<64x128xbf16, #tpu.memory_space<vmem>>, %arg3: memref<128x128xf32, #tpu.memory_space<vmem>>) attributes {dimension_semantics = [#tpu.dimension_semantics<parallel>], iteration_bounds = array<i64: 1>, scalar_prefetch = 0 : i64, scratch_operands = 0 : i64, tpu.core_type = #tpu.core_type<tc>, window_params = [{transform_indices = @transform_0, window_bounds = array<i64: 128, 64>}, {pipeline_mode = #tpu.pipeline_mode<synchronous>, transform_indices = @transform_1, window_bounds = array<i64: 64, 128>}, {transform_indices = @transform_2, window_bounds = array<i64: 128, 128>}]} {
    %c0 = arith.constant 0 : index
    %c0_0 = arith.constant 0 : index
    %0 = vector.load %arg1[%c0, %c0_0] : memref<128x64xbf16, #tpu.memory_space<vmem>>, vector<128x64xbf16>
    %c0_1 = arith.constant 0 : index
    %c0_2 = arith.constant 0 : index
    %1 = vector.load %arg2[%c0_1, %c0_2] : memref<64x128xbf16, #tpu.memory_space<vmem>>, vector<64x128xbf16>
    %cst = arith.constant dense<0.000000e+00> : vector<128x128xf32>
    %2 = tpu.matmul %0, %1, %cst {dimension_numbers = #tpu.dot_dimension_numbers<[1], [0], [0], [1], [0, 0, 1, 1], [], []>} : vector<128x64xbf16>, vector<64x128xbf16>, vector<128x128xf32> -> vector<128x128xf32>
    %c0_3 = arith.constant 0 : index
    %c0_4 = arith.constant 0 : index
    %3 = vector.load %arg3[%c0_3, %c0_4] : memref<128x128xf32, #tpu.memory_space<vmem>>, vector<128x128xf32>
    tpu.vector_store %arg3[%c0_3, %c0_4], %2 {strides = array<i32>} : memref<128x128xf32, #tpu.memory_space<vmem>>, vector<128x128xf32>,
    return
  }
  func.func @transform_0(%arg0: i32) -> (i32, i32) {
    %c0_i32 = arith.constant 0 : i32
    %c0_i32_0 = arith.constant 0 : i32
    return %arg0, %c0_i32 : i32, i32
  }
  func.func @transform_1(%arg0: i32) -> (i32, i32) {
    %c0_i32 = arith.constant 0 : i32
    %c0_i32_0 = arith.constant 0 : i32
    %c0_i32_1 = arith.constant 0 : i32
    return %c0_i32, %c0_i32_0 : i32, i32
  }
  func.func @transform_2(%arg0: i32) -> (i32, i32) {
    %c0_i32 = arith.constant 0 : i32
    %c0_i32_0 = arith.constant 0 : i32
    return %arg0, %c0_i32 : i32, i32
  }
}

module attributes {stable_mosaic.version = 11 : i64} {
  func.func @_bn_relu_kernel(%arg0: memref<16x1024xf32, #tpu.memory_space<vmem>>, %arg1: memref<1x1024xf32, #tpu.memory_space<vmem>>, %arg2: memref<1x1024xf32, #tpu.memory_space<vmem>>, %arg3: memref<16x1024xbf16, #tpu.memory_space<vmem>>) attributes {dimension_semantics = [], scalar_prefetch = 0 : i64, scratch_operands = 0 : i64, tpu.core_type = #tpu.core_type<tc>} {
    %c0 = arith.constant 0 : index
    %c0_0 = arith.constant 0 : index
    %0 = vector.load %arg0[%c0, %c0_0] : memref<16x1024xf32, #tpu.memory_space<vmem>>, vector<16x1024xf32>
    %c0_1 = arith.constant 0 : index
    %c0_2 = arith.constant 0 : index
    %1 = vector.load %arg1[%c0_1, %c0_2] : memref<1x1024xf32, #tpu.memory_space<vmem>>, vector<1x1024xf32>
    %2 = vector.broadcast %1 : vector<1x1024xf32> to vector<16x1024xf32>
    %3 = arith.mulf %0, %2 : vector<16x1024xf32>
    %c0_3 = arith.constant 0 : index
    %c0_4 = arith.constant 0 : index
    %4 = vector.load %arg2[%c0_3, %c0_4] : memref<1x1024xf32, #tpu.memory_space<vmem>>, vector<1x1024xf32>
    %5 = vector.broadcast %4 : vector<1x1024xf32> to vector<16x1024xf32>
    %6 = arith.addf %3, %5 : vector<16x1024xf32>
    %cst = arith.constant 0.000000e+00 : f32
    %7 = vector.broadcast %cst : f32 to vector<16x1024xf32>
    %8 = arith.maximumf %6, %7 : vector<16x1024xf32>
    %9 = arith.truncf %8 : vector<16x1024xf32> to vector<16x1024xbf16>
    %c0_5 = arith.constant 0 : index
    %c0_6 = arith.constant 0 : index
    %10 = vector.load %arg3[%c0_5, %c0_6] : memref<16x1024xbf16, #tpu.memory_space<vmem>>, vector<16x1024xbf16>
    tpu.vector_store %arg3[%c0_5, %c0_6], %9 {strides = array<i32>} : memref<16x1024xbf16, #tpu.memory_space<vmem>>, vector<16x1024xbf16>,
    return
  }
}

module attributes {stable_mosaic.version = 11 : i64} {
  func.func @_mm_bn_relu_kernel(%arg0: i32, %arg1: memref<128x1152xbf16, #tpu.memory_space<vmem>>, %arg2: memref<1152x128xbf16, #tpu.memory_space<vmem>>, %arg3: memref<1x128xf32, #tpu.memory_space<vmem>>, %arg4: memref<1x128xf32, #tpu.memory_space<vmem>>, %arg5: memref<128x128xbf16, #tpu.memory_space<vmem>>) attributes {dimension_semantics = [#tpu.dimension_semantics<parallel>], iteration_bounds = array<i64: 1>, scalar_prefetch = 0 : i64, scratch_operands = 0 : i64, tpu.core_type = #tpu.core_type<tc>, window_params = [{transform_indices = @transform_0, window_bounds = array<i64: 128, 1152>}, {pipeline_mode = #tpu.pipeline_mode<synchronous>, transform_indices = @transform_1, window_bounds = array<i64: 1152, 128>}, {pipeline_mode = #tpu.pipeline_mode<synchronous>, transform_indices = @transform_2, window_bounds = array<i64: 1, 128>}, {pipeline_mode = #tpu.pipeline_mode<synchronous>, transform_indices = @transform_3, window_bounds = array<i64: 1, 128>}, {transform_indices = @transform_4, window_bounds = array<i64: 128, 128>}]} {
    %c0 = arith.constant 0 : index
    %c0_0 = arith.constant 0 : index
    %0 = vector.load %arg1[%c0, %c0_0] : memref<128x1152xbf16, #tpu.memory_space<vmem>>, vector<128x1152xbf16>
    %c0_1 = arith.constant 0 : index
    %c0_2 = arith.constant 0 : index
    %1 = vector.load %arg2[%c0_1, %c0_2] : memref<1152x128xbf16, #tpu.memory_space<vmem>>, vector<1152x128xbf16>
    %cst = arith.constant dense<0.000000e+00> : vector<128x128xf32>
    %2 = tpu.matmul %0, %1, %cst {dimension_numbers = #tpu.dot_dimension_numbers<[1], [0], [0], [1], [0, 0, 1, 1], [], []>} : vector<128x1152xbf16>, vector<1152x128xbf16>, vector<128x128xf32> -> vector<128x128xf32>
    %c0_3 = arith.constant 0 : index
    %c0_4 = arith.constant 0 : index
    %3 = vector.load %arg3[%c0_3, %c0_4] : memref<1x128xf32, #tpu.memory_space<vmem>>, vector<1x128xf32>
    %4 = vector.broadcast %3 : vector<1x128xf32> to vector<128x128xf32>
    %5 = arith.mulf %2, %4 : vector<128x128xf32>
    %c0_5 = arith.constant 0 : index
    %c0_6 = arith.constant 0 : index
    %6 = vector.load %arg4[%c0_5, %c0_6] : memref<1x128xf32, #tpu.memory_space<vmem>>, vector<1x128xf32>
    %7 = vector.broadcast %6 : vector<1x128xf32> to vector<128x128xf32>
    %8 = arith.addf %5, %7 : vector<128x128xf32>
    %cst_7 = arith.constant 0.000000e+00 : f32
    %9 = vector.broadcast %cst_7 : f32 to vector<128x128xf32>
    %10 = arith.maximumf %8, %9 : vector<128x128xf32>
    %11 = arith.truncf %10 : vector<128x128xf32> to vector<128x128xbf16>
    %c0_8 = arith.constant 0 : index
    %c0_9 = arith.constant 0 : index
    %12 = vector.load %arg5[%c0_8, %c0_9] : memref<128x128xbf16, #tpu.memory_space<vmem>>, vector<128x128xbf16>
    tpu.vector_store %arg5[%c0_8, %c0_9], %11 {strides = array<i32>} : memref<128x128xbf16, #tpu.memory_space<vmem>>, vector<128x128xbf16>,
    return
  }
  func.func @transform_0(%arg0: i32) -> (i32, i32) {
    %c0_i32 = arith.constant 0 : i32
    %c0_i32_0 = arith.constant 0 : i32
    return %arg0, %c0_i32 : i32, i32
  }
  func.func @transform_1(%arg0: i32) -> (i32, i32) {
    %c0_i32 = arith.constant 0 : i32
    %c0_i32_0 = arith.constant 0 : i32
    %c0_i32_1 = arith.constant 0 : i32
    return %c0_i32, %c0_i32_0 : i32, i32
  }
  func.func @transform_2(%arg0: i32) -> (i32, i32) {
    %c0_i32 = arith.constant 0 : i32
    %c0_i32_0 = arith.constant 0 : i32
    %c0_i32_1 = arith.constant 0 : i32
    return %c0_i32, %c0_i32_0 : i32, i32
  }
  func.func @transform_3(%arg0: i32) -> (i32, i32) {
    %c0_i32 = arith.constant 0 : i32
    %c0_i32_0 = arith.constant 0 : i32
    %c0_i32_1 = arith.constant 0 : i32
    return %c0_i32, %c0_i32_0 : i32, i32
  }
  func.func @transform_4(%arg0: i32) -> (i32, i32) {
    %c0_i32 = arith.constant 0 : i32
    %c0_i32_0 = arith.constant 0 : i32
    return %arg0, %c0_i32 : i32, i32
  }
}

module attributes {stable_mosaic.version = 11 : i64} {
  func.func @_mm_bn_relu_kernel(%arg0: i32, %arg1: memref<32x1152xbf16, #tpu.memory_space<vmem>>, %arg2: memref<1152x256xbf16, #tpu.memory_space<vmem>>, %arg3: memref<1x256xf32, #tpu.memory_space<vmem>>, %arg4: memref<1x256xf32, #tpu.memory_space<vmem>>, %arg5: memref<32x256xbf16, #tpu.memory_space<vmem>>) attributes {dimension_semantics = [#tpu.dimension_semantics<parallel>], iteration_bounds = array<i64: 1>, scalar_prefetch = 0 : i64, scratch_operands = 0 : i64, tpu.core_type = #tpu.core_type<tc>, window_params = [{transform_indices = @transform_0, window_bounds = array<i64: 32, 1152>}, {pipeline_mode = #tpu.pipeline_mode<synchronous>, transform_indices = @transform_1, window_bounds = array<i64: 1152, 256>}, {pipeline_mode = #tpu.pipeline_mode<synchronous>, transform_indices = @transform_2, window_bounds = array<i64: 1, 256>}, {pipeline_mode = #tpu.pipeline_mode<synchronous>, transform_indices = @transform_3, window_bounds = array<i64: 1, 256>}, {transform_indices = @transform_4, window_bounds = array<i64: 32, 256>}]} {
    %c0 = arith.constant 0 : index
    %c0_0 = arith.constant 0 : index
    %0 = vector.load %arg1[%c0, %c0_0] : memref<32x1152xbf16, #tpu.memory_space<vmem>>, vector<32x1152xbf16>
    %c0_1 = arith.constant 0 : index
    %c0_2 = arith.constant 0 : index
    %1 = vector.load %arg2[%c0_1, %c0_2] : memref<1152x256xbf16, #tpu.memory_space<vmem>>, vector<1152x256xbf16>
    %cst = arith.constant dense<0.000000e+00> : vector<32x256xf32>
    %2 = tpu.matmul %0, %1, %cst {dimension_numbers = #tpu.dot_dimension_numbers<[1], [0], [0], [1], [0, 0, 1, 1], [], []>} : vector<32x1152xbf16>, vector<1152x256xbf16>, vector<32x256xf32> -> vector<32x256xf32>
    %c0_3 = arith.constant 0 : index
    %c0_4 = arith.constant 0 : index
    %3 = vector.load %arg3[%c0_3, %c0_4] : memref<1x256xf32, #tpu.memory_space<vmem>>, vector<1x256xf32>
    %4 = vector.broadcast %3 : vector<1x256xf32> to vector<32x256xf32>
    %5 = arith.mulf %2, %4 : vector<32x256xf32>
    %c0_5 = arith.constant 0 : index
    %c0_6 = arith.constant 0 : index
    %6 = vector.load %arg4[%c0_5, %c0_6] : memref<1x256xf32, #tpu.memory_space<vmem>>, vector<1x256xf32>
    %7 = vector.broadcast %6 : vector<1x256xf32> to vector<32x256xf32>
    %8 = arith.addf %5, %7 : vector<32x256xf32>
    %cst_7 = arith.constant 0.000000e+00 : f32
    %9 = vector.broadcast %cst_7 : f32 to vector<32x256xf32>
    %10 = arith.maximumf %8, %9 : vector<32x256xf32>
    %11 = arith.truncf %10 : vector<32x256xf32> to vector<32x256xbf16>
    %c0_8 = arith.constant 0 : index
    %c0_9 = arith.constant 0 : index
    %12 = vector.load %arg5[%c0_8, %c0_9] : memref<32x256xbf16, #tpu.memory_space<vmem>>, vector<32x256xbf16>
    tpu.vector_store %arg5[%c0_8, %c0_9], %11 {strides = array<i32>} : memref<32x256xbf16, #tpu.memory_space<vmem>>, vector<32x256xbf16>,
    return
  }
  func.func @transform_0(%arg0: i32) -> (i32, i32) {
    %c0_i32 = arith.constant 0 : i32
    %c0_i32_0 = arith.constant 0 : i32
    return %arg0, %c0_i32 : i32, i32
  }
  func.func @transform_1(%arg0: i32) -> (i32, i32) {
    %c0_i32 = arith.constant 0 : i32
    %c0_i32_0 = arith.constant 0 : i32
    %c0_i32_1 = arith.constant 0 : i32
    return %c0_i32, %c0_i32_0 : i32, i32
  }
  func.func @transform_2(%arg0: i32) -> (i32, i32) {
    %c0_i32 = arith.constant 0 : i32
    %c0_i32_0 = arith.constant 0 : i32
    %c0_i32_1 = arith.constant 0 : i32
    return %c0_i32, %c0_i32_0 : i32, i32
  }
  func.func @transform_3(%arg0: i32) -> (i32, i32) {
    %c0_i32 = arith.constant 0 : i32
    %c0_i32_0 = arith.constant 0 : i32
    %c0_i32_1 = arith.constant 0 : i32
    return %c0_i32, %c0_i32_0 : i32, i32
  }
  func.func @transform_4(%arg0: i32) -> (i32, i32) {
    %c0_i32 = arith.constant 0 : i32
    %c0_i32_0 = arith.constant 0 : i32
    return %arg0, %c0_i32 : i32, i32
  }
}

module attributes {stable_mosaic.version = 11 : i64} {
  func.func @_mm_kernel(%arg0: i32, %arg1: memref<32x128xbf16, #tpu.memory_space<vmem>>, %arg2: memref<128x256xbf16, #tpu.memory_space<vmem>>, %arg3: memref<32x256xf32, #tpu.memory_space<vmem>>) attributes {dimension_semantics = [#tpu.dimension_semantics<parallel>], iteration_bounds = array<i64: 1>, scalar_prefetch = 0 : i64, scratch_operands = 0 : i64, tpu.core_type = #tpu.core_type<tc>, window_params = [{transform_indices = @transform_0, window_bounds = array<i64: 32, 128>}, {pipeline_mode = #tpu.pipeline_mode<synchronous>, transform_indices = @transform_1, window_bounds = array<i64: 128, 256>}, {transform_indices = @transform_2, window_bounds = array<i64: 32, 256>}]} {
    %c0 = arith.constant 0 : index
    %c0_0 = arith.constant 0 : index
    %0 = vector.load %arg1[%c0, %c0_0] : memref<32x128xbf16, #tpu.memory_space<vmem>>, vector<32x128xbf16>
    %c0_1 = arith.constant 0 : index
    %c0_2 = arith.constant 0 : index
    %1 = vector.load %arg2[%c0_1, %c0_2] : memref<128x256xbf16, #tpu.memory_space<vmem>>, vector<128x256xbf16>
    %cst = arith.constant dense<0.000000e+00> : vector<32x256xf32>
    %2 = tpu.matmul %0, %1, %cst {dimension_numbers = #tpu.dot_dimension_numbers<[1], [0], [0], [1], [0, 0, 1, 1], [], []>} : vector<32x128xbf16>, vector<128x256xbf16>, vector<32x256xf32> -> vector<32x256xf32>
    %c0_3 = arith.constant 0 : index
    %c0_4 = arith.constant 0 : index
    %3 = vector.load %arg3[%c0_3, %c0_4] : memref<32x256xf32, #tpu.memory_space<vmem>>, vector<32x256xf32>
    tpu.vector_store %arg3[%c0_3, %c0_4], %2 {strides = array<i32>} : memref<32x256xf32, #tpu.memory_space<vmem>>, vector<32x256xf32>,
    return
  }
  func.func @transform_0(%arg0: i32) -> (i32, i32) {
    %c0_i32 = arith.constant 0 : i32
    %c0_i32_0 = arith.constant 0 : i32
    return %arg0, %c0_i32 : i32, i32
  }
  func.func @transform_1(%arg0: i32) -> (i32, i32) {
    %c0_i32 = arith.constant 0 : i32
    %c0_i32_0 = arith.constant 0 : i32
    %c0_i32_1 = arith.constant 0 : i32
    return %c0_i32, %c0_i32_0 : i32, i32
  }
  func.func @transform_2(%arg0: i32) -> (i32, i32) {
    %c0_i32 = arith.constant 0 : i32
    %c0_i32_0 = arith.constant 0 : i32
    return %arg0, %c0_i32 : i32, i32
  }
}

module attributes {stable_mosaic.version = 11 : i64} {
  func.func @_bn_relu_kernel(%arg0: memref<8x1024xf32, #tpu.memory_space<vmem>>, %arg1: memref<1x1024xf32, #tpu.memory_space<vmem>>, %arg2: memref<1x1024xf32, #tpu.memory_space<vmem>>, %arg3: memref<8x1024xbf16, #tpu.memory_space<vmem>>) attributes {dimension_semantics = [], scalar_prefetch = 0 : i64, scratch_operands = 0 : i64, tpu.core_type = #tpu.core_type<tc>} {
    %c0 = arith.constant 0 : index
    %c0_0 = arith.constant 0 : index
    %0 = vector.load %arg0[%c0, %c0_0] : memref<8x1024xf32, #tpu.memory_space<vmem>>, vector<8x1024xf32>
    %c0_1 = arith.constant 0 : index
    %c0_2 = arith.constant 0 : index
    %1 = vector.load %arg1[%c0_1, %c0_2] : memref<1x1024xf32, #tpu.memory_space<vmem>>, vector<1x1024xf32>
    %2 = vector.broadcast %1 : vector<1x1024xf32> to vector<8x1024xf32>
    %3 = arith.mulf %0, %2 : vector<8x1024xf32>
    %c0_3 = arith.constant 0 : index
    %c0_4 = arith.constant 0 : index
    %4 = vector.load %arg2[%c0_3, %c0_4] : memref<1x1024xf32, #tpu.memory_space<vmem>>, vector<1x1024xf32>
    %5 = vector.broadcast %4 : vector<1x1024xf32> to vector<8x1024xf32>
    %6 = arith.addf %3, %5 : vector<8x1024xf32>
    %cst = arith.constant 0.000000e+00 : f32
    %7 = vector.broadcast %cst : f32 to vector<8x1024xf32>
    %8 = arith.maximumf %6, %7 : vector<8x1024xf32>
    %9 = arith.truncf %8 : vector<8x1024xf32> to vector<8x1024xbf16>
    %c0_5 = arith.constant 0 : index
    %c0_6 = arith.constant 0 : index
    %10 = vector.load %arg3[%c0_5, %c0_6] : memref<8x1024xbf16, #tpu.memory_space<vmem>>, vector<8x1024xbf16>
    tpu.vector_store %arg3[%c0_5, %c0_6], %9 {strides = array<i32>} : memref<8x1024xbf16, #tpu.memory_space<vmem>>, vector<8x1024xbf16>,
    return
  }
}

module attributes {stable_mosaic.version = 11 : i64} {
  func.func @_mm_add_kernel(%arg0: i32, %arg1: memref<32x2304xbf16, #tpu.memory_space<vmem>>, %arg2: memref<2304x256xbf16, #tpu.memory_space<vmem>>, %arg3: memref<32x256xf32, #tpu.memory_space<vmem>>, %arg4: memref<32x256xf32, #tpu.memory_space<vmem>>) attributes {dimension_semantics = [#tpu.dimension_semantics<parallel>], iteration_bounds = array<i64: 1>, scalar_prefetch = 0 : i64, scratch_operands = 0 : i64, tpu.core_type = #tpu.core_type<tc>, window_params = [{transform_indices = @transform_0, window_bounds = array<i64: 32, 2304>}, {pipeline_mode = #tpu.pipeline_mode<synchronous>, transform_indices = @transform_1, window_bounds = array<i64: 2304, 256>}, {transform_indices = @transform_2, window_bounds = array<i64: 32, 256>}, {transform_indices = @transform_3, window_bounds = array<i64: 32, 256>}]} {
    %c0 = arith.constant 0 : index
    %c0_0 = arith.constant 0 : index
    %0 = vector.load %arg1[%c0, %c0_0] : memref<32x2304xbf16, #tpu.memory_space<vmem>>, vector<32x2304xbf16>
    %c0_1 = arith.constant 0 : index
    %c0_2 = arith.constant 0 : index
    %1 = vector.load %arg2[%c0_1, %c0_2] : memref<2304x256xbf16, #tpu.memory_space<vmem>>, vector<2304x256xbf16>
    %cst = arith.constant dense<0.000000e+00> : vector<32x256xf32>
    %2 = tpu.matmul %0, %1, %cst {dimension_numbers = #tpu.dot_dimension_numbers<[1], [0], [0], [1], [0, 0, 1, 1], [], []>} : vector<32x2304xbf16>, vector<2304x256xbf16>, vector<32x256xf32> -> vector<32x256xf32>
    %c0_3 = arith.constant 0 : index
    %c0_4 = arith.constant 0 : index
    %3 = vector.load %arg3[%c0_3, %c0_4] : memref<32x256xf32, #tpu.memory_space<vmem>>, vector<32x256xf32>
    %4 = arith.addf %2, %3 : vector<32x256xf32>
    %c0_5 = arith.constant 0 : index
    %c0_6 = arith.constant 0 : index
    %5 = vector.load %arg4[%c0_5, %c0_6] : memref<32x256xf32, #tpu.memory_space<vmem>>, vector<32x256xf32>
    tpu.vector_store %arg4[%c0_5, %c0_6], %4 {strides = array<i32>} : memref<32x256xf32, #tpu.memory_space<vmem>>, vector<32x256xf32>,
    return
  }
  func.func @transform_0(%arg0: i32) -> (i32, i32) {
    %c0_i32 = arith.constant 0 : i32
    %c0_i32_0 = arith.constant 0 : i32
    return %arg0, %c0_i32 : i32, i32
  }
  func.func @transform_1(%arg0: i32) -> (i32, i32) {
    %c0_i32 = arith.constant 0 : i32
    %c0_i32_0 = arith.constant 0 : i32
    %c0_i32_1 = arith.constant 0 : i32
    return %c0_i32, %c0_i32_0 : i32, i32
  }
  func.func @transform_2(%arg0: i32) -> (i32, i32) {
    %c0_i32 = arith.constant 0 : i32
    %c0_i32_0 = arith.constant 0 : i32
    return %arg0, %c0_i32 : i32, i32
  }
  func.func @transform_3(%arg0: i32) -> (i32, i32) {
    %c0_i32 = arith.constant 0 : i32
    %c0_i32_0 = arith.constant 0 : i32
    return %arg0, %c0_i32 : i32, i32
  }
}

module attributes {stable_mosaic.version = 11 : i64} {
  func.func @_mm_bn_relu_kernel(%arg0: i32, %arg1: memref<32x2304xbf16, #tpu.memory_space<vmem>>, %arg2: memref<2304x256xbf16, #tpu.memory_space<vmem>>, %arg3: memref<1x256xf32, #tpu.memory_space<vmem>>, %arg4: memref<1x256xf32, #tpu.memory_space<vmem>>, %arg5: memref<32x256xbf16, #tpu.memory_space<vmem>>) attributes {dimension_semantics = [#tpu.dimension_semantics<parallel>], iteration_bounds = array<i64: 1>, scalar_prefetch = 0 : i64, scratch_operands = 0 : i64, tpu.core_type = #tpu.core_type<tc>, window_params = [{transform_indices = @transform_0, window_bounds = array<i64: 32, 2304>}, {pipeline_mode = #tpu.pipeline_mode<synchronous>, transform_indices = @transform_1, window_bounds = array<i64: 2304, 256>}, {pipeline_mode = #tpu.pipeline_mode<synchronous>, transform_indices = @transform_2, window_bounds = array<i64: 1, 256>}, {pipeline_mode = #tpu.pipeline_mode<synchronous>, transform_indices = @transform_3, window_bounds = array<i64: 1, 256>}, {transform_indices = @transform_4, window_bounds = array<i64: 32, 256>}]} {
    %c0 = arith.constant 0 : index
    %c0_0 = arith.constant 0 : index
    %0 = vector.load %arg1[%c0, %c0_0] : memref<32x2304xbf16, #tpu.memory_space<vmem>>, vector<32x2304xbf16>
    %c0_1 = arith.constant 0 : index
    %c0_2 = arith.constant 0 : index
    %1 = vector.load %arg2[%c0_1, %c0_2] : memref<2304x256xbf16, #tpu.memory_space<vmem>>, vector<2304x256xbf16>
    %cst = arith.constant dense<0.000000e+00> : vector<32x256xf32>
    %2 = tpu.matmul %0, %1, %cst {dimension_numbers = #tpu.dot_dimension_numbers<[1], [0], [0], [1], [0, 0, 1, 1], [], []>} : vector<32x2304xbf16>, vector<2304x256xbf16>, vector<32x256xf32> -> vector<32x256xf32>
    %c0_3 = arith.constant 0 : index
    %c0_4 = arith.constant 0 : index
    %3 = vector.load %arg3[%c0_3, %c0_4] : memref<1x256xf32, #tpu.memory_space<vmem>>, vector<1x256xf32>
    %4 = vector.broadcast %3 : vector<1x256xf32> to vector<32x256xf32>
    %5 = arith.mulf %2, %4 : vector<32x256xf32>
    %c0_5 = arith.constant 0 : index
    %c0_6 = arith.constant 0 : index
    %6 = vector.load %arg4[%c0_5, %c0_6] : memref<1x256xf32, #tpu.memory_space<vmem>>, vector<1x256xf32>
    %7 = vector.broadcast %6 : vector<1x256xf32> to vector<32x256xf32>
    %8 = arith.addf %5, %7 : vector<32x256xf32>
    %cst_7 = arith.constant 0.000000e+00 : f32
    %9 = vector.broadcast %cst_7 : f32 to vector<32x256xf32>
    %10 = arith.maximumf %8, %9 : vector<32x256xf32>
    %11 = arith.truncf %10 : vector<32x256xf32> to vector<32x256xbf16>
    %c0_8 = arith.constant 0 : index
    %c0_9 = arith.constant 0 : index
    %12 = vector.load %arg5[%c0_8, %c0_9] : memref<32x256xbf16, #tpu.memory_space<vmem>>, vector<32x256xbf16>
    tpu.vector_store %arg5[%c0_8, %c0_9], %11 {strides = array<i32>} : memref<32x256xbf16, #tpu.memory_space<vmem>>, vector<32x256xbf16>,
    return
  }
  func.func @transform_0(%arg0: i32) -> (i32, i32) {
    %c0_i32 = arith.constant 0 : i32
    %c0_i32_0 = arith.constant 0 : i32
    return %arg0, %c0_i32 : i32, i32
  }
  func.func @transform_1(%arg0: i32) -> (i32, i32) {
    %c0_i32 = arith.constant 0 : i32
    %c0_i32_0 = arith.constant 0 : i32
    %c0_i32_1 = arith.constant 0 : i32
    return %c0_i32, %c0_i32_0 : i32, i32
  }
  func.func @transform_2(%arg0: i32) -> (i32, i32) {
    %c0_i32 = arith.constant 0 : i32
    %c0_i32_0 = arith.constant 0 : i32
    %c0_i32_1 = arith.constant 0 : i32
    return %c0_i32, %c0_i32_0 : i32, i32
  }
  func.func @transform_3(%arg0: i32) -> (i32, i32) {
    %c0_i32 = arith.constant 0 : i32
    %c0_i32_0 = arith.constant 0 : i32
    %c0_i32_1 = arith.constant 0 : i32
    return %c0_i32, %c0_i32_0 : i32, i32
  }
  func.func @transform_4(%arg0: i32) -> (i32, i32) {
    %c0_i32 = arith.constant 0 : i32
    %c0_i32_0 = arith.constant 0 : i32
    return %arg0, %c0_i32 : i32, i32
  }
}

module attributes {stable_mosaic.version = 11 : i64} {
  func.func @_head_kernel(%arg0: memref<2x16x256xf32, #tpu.memory_space<vmem>>, %arg1: memref<1x1x256xf32, #tpu.memory_space<vmem>>, %arg2: memref<1x1x256xf32, #tpu.memory_space<vmem>>, %arg3: memref<10x256xf32, #tpu.memory_space<vmem>>, %arg4: memref<1x10xf32, #tpu.memory_space<vmem>>, %arg5: memref<2x10xf32, #tpu.memory_space<vmem>>) attributes {dimension_semantics = [], scalar_prefetch = 0 : i64, scratch_operands = 0 : i64, tpu.core_type = #tpu.core_type<tc>} {
    %c0 = arith.constant 0 : index
    %c0_0 = arith.constant 0 : index
    %c0_1 = arith.constant 0 : index
    %0 = vector.load %arg0[%c0, %c0_0, %c0_1] : memref<2x16x256xf32, #tpu.memory_space<vmem>>, vector<2x16x256xf32>
    %c0_2 = arith.constant 0 : index
    %c0_3 = arith.constant 0 : index
    %c0_4 = arith.constant 0 : index
    %1 = vector.load %arg1[%c0_2, %c0_3, %c0_4] : memref<1x1x256xf32, #tpu.memory_space<vmem>>, vector<1x1x256xf32>
    %2 = vector.broadcast %1 : vector<1x1x256xf32> to vector<2x16x256xf32>
    %3 = arith.mulf %0, %2 : vector<2x16x256xf32>
    %c0_5 = arith.constant 0 : index
    %c0_6 = arith.constant 0 : index
    %c0_7 = arith.constant 0 : index
    %4 = vector.load %arg2[%c0_5, %c0_6, %c0_7] : memref<1x1x256xf32, #tpu.memory_space<vmem>>, vector<1x1x256xf32>
    %5 = vector.broadcast %4 : vector<1x1x256xf32> to vector<2x16x256xf32>
    %6 = arith.addf %3, %5 : vector<2x16x256xf32>
    %cst = arith.constant 0.000000e+00 : f32
    %7 = vector.broadcast %cst : f32 to vector<2x16x256xf32>
    %8 = arith.maximumf %6, %7 : vector<2x16x256xf32>
    %cst_8 = arith.constant dense<0.000000e+00> : vector<2x256xf32>
    %9 = vector.multi_reduction <add>, %8, %cst_8 [1] : vector<2x16x256xf32> to vector<2x256xf32>
    %cst_9 = arith.constant 1.600000e+01 : f32
    %10 = vector.broadcast %cst_9 : f32 to vector<2x256xf32>
    %11 = arith.divf %9, %10 : vector<2x256xf32>
    %12 = vector.shape_cast %11 : vector<2x256xf32> to vector<2x1x256xf32>
    %c0_10 = arith.constant 0 : index
    %c0_11 = arith.constant 0 : index
    %13 = vector.load %arg3[%c0_10, %c0_11] : memref<10x256xf32, #tpu.memory_space<vmem>>, vector<10x256xf32>
    %14 = vector.shape_cast %13 : vector<10x256xf32> to vector<1x10x256xf32>
    %15 = vector.broadcast %12 : vector<2x1x256xf32> to vector<2x10x256xf32>
    %16 = vector.broadcast %14 : vector<1x10x256xf32> to vector<2x10x256xf32>
    %17 = arith.mulf %15, %16 : vector<2x10x256xf32>
    %cst_12 = arith.constant dense<0.000000e+00> : vector<2x10xf32>
    %18 = vector.multi_reduction <add>, %17, %cst_12 [2] : vector<2x10x256xf32> to vector<2x10xf32>
    %c0_13 = arith.constant 0 : index
    %c0_14 = arith.constant 0 : index
    %19 = vector.load %arg4[%c0_13, %c0_14] : memref<1x10xf32, #tpu.memory_space<vmem>>, vector<1x10xf32>
    %20 = vector.broadcast %19 : vector<1x10xf32> to vector<2x10xf32>
    %21 = arith.addf %18, %20 : vector<2x10xf32>
    %c0_15 = arith.constant 0 : index
    %c0_16 = arith.constant 0 : index
    %22 = vector.load %arg5[%c0_15, %c0_16] : memref<2x10xf32, #tpu.memory_space<vmem>>, vector<2x10xf32>
    tpu.vector_store %arg5[%c0_15, %c0_16], %21 {strides = array<i32>} : memref<2x10xf32, #tpu.memory_space<vmem>>, vector<2x10xf32>,
    return
  }
}

</mosaic_0001>

<bundles_post_ra>
// kernel: tile.123
= control target key start
LH: loop header
LB: loop body
LE: loop exit
PB: predicated region body
PF: predicated region fallthrough
CT: control target
= control target key end

     0   :  { %s28_s0 = inlined_call_operand.vmem [shape: f32[16], index: 0, kind: input, shape index: {}]   ;;  %s29_s1 = inlined_call_operand.vmem [shape: f32[16,16], index: 1, kind: output, shape index: {}]  }
   0x1   :  { %v4_v0 = vld [vmem:[%s28_s0] ss:$0 sm:$0xff] }
   0x2   :  { %5 = vst [vmem:[%s29_s1] sm:$0xff] %v4_v0  ;;  %8 = vst [vmem:[%s29_s1 + $0x8] sm:$0xff] %v4_v0 }

// kernel: tile.124
= control target key start
LH: loop header
LB: loop body
LE: loop exit
PB: predicated region body
PF: predicated region fallthrough
CT: control target
= control target key end

     0   :  { %s7_s6 = smov 3  ;;  %s21_s9 = smov 3  ;;  %vm4_vm0 = vcmask 130048   ;;  %vm11_vm1 = vcmask 1048448   ;;  %vm18_vm2 = vcmask 917248   ;;  %vm25_vm3 = vcmask 786048   ;;  %s131_s0 = inlined_call_operand.vmem [shape: f32[16,16], index: 0, kind: input, shape index: {}]   ;;  %s132_s1 = inlined_call_operand.vmem [shape: f32[1,256], index: 1, kind: output, shape index: {}]  }
   0x1   :  { %v69_v0 = vld [vmem:[%s131_s0 + $0x7] ss:$8 sm:%s7_s6]   ;;  %s84_s10 = smov 112   ;;  %v71_v1 = vld [vmem:[%s131_s0 + $0x5] ss:$8 sm:%s21_s9]   ;;  %s14_s13 = smov 3 }
   0x2   :  { %9 = vrot.lane.b32.xlu0 %v69_v0, %s84_s10  ;;  %s85_s14 = smov 80   ;;  %v70_v2 = vld [vmem:[%s131_s0 + $0x6] ss:$8 sm:%s14_s13]   ;;  %s28_s17 = smov 3  ;;  %vm32_vm4 = vcmask 654848   ;;  %vm39_vm5 = vcmask 523648  }
   0x3   :  { %23 = vrot.lane.b32.xlu1 %v71_v1, %s85_s14  ;;  %v72_v3 = vld [vmem:[%s131_s0 + $0x4] ss:$8 sm:%s28_s17]   ;;  %s35_s20 = smov 3  ;;  %s42_s21 = smov 3  ;;  %vm46_vm6 = vcmask 392448   ;;  %vm53_vm7 = vcmask 261248  }
   0x4   :  { %s86_s22 = smov 96   ;;  %s87_s23 = smov 64   ;;  %v73_v4 = vld [vmem:[%s131_s0 + $0x3] ss:$8 sm:%s35_s20]   ;;  %v74_v5 = vld [vmem:[%s131_s0 + $0x2] ss:$8 sm:%s42_s21]  }
   0x5   :  { %s2_s26 = smov 3  ;;  %s49_s29 = smov 3 }
   0x6   :  { %16 = vrot.lane.b32.xlu0 %v70_v2, %s86_s22  ;;  %v3_v6 = vld [vmem:[%s131_s0] ss:$8 sm:%s2_s26]   ;;  %s88_s3 = smov 48   ;;  %s89_s4 = smov 32  }
   0x7   :  { %30 = vrot.lane.b32.xlu1 %v72_v3, %s87_s23  ;;  %5 = vst.msk [vmem:[#allocation0] ss:$8 sm:$0x3] %vm4_vm0, %v3_v6   ;;  %v75_v7 = vld [vmem:[%s131_s0 + $0x1] ss:$8 sm:%s49_s29]   ;;  %s90_s0 = smov 16  }
   0xa   :  { %37 = vrot.lane.b32.xlu0 %v73_v4, %s88_s3 }
   0xb   :  { %44 = vrot.lane.b32.xlu1 %v74_v5, %s89_s4 }
   0xe   :  { %51 = vrot.lane.b32.xlu0 %v75_v7, %s90_s0 }
  0x74   :  { %v10_v8 = vpop.permute.xlu0 %9  }
  0x75   :  { %12 = vst.msk [vmem:[#allocation0] ss:$8 sm:$0x3] %vm11_vm1, %v10_v8   ;;  %v24_v9 = vpop.permute.xlu1 %23  }
  0x78   :  { %v17_v10 = vpop.permute.xlu0 %16  }
  0x79   :  { %19 = vst.msk [vmem:[#allocation0] ss:$8 sm:$0x3] %vm18_vm2, %v17_v10   ;;  %v31_v11 = vpop.permute.xlu1 %30  }
  0x7a   :  { %26 = vst.msk [vmem:[#allocation0] ss:$8 sm:$0x3] %vm25_vm3, %v24_v9  }
  0x7b   :  { %33 = vst.msk [vmem:[#allocation0] ss:$8 sm:$0x3] %vm32_vm4, %v31_v11  }
  0x7c   :  { %v38_v12 = vpop.permute.xlu0 %37  }
  0x7d   :  { %40 = vst.msk [vmem:[#allocation0] ss:$8 sm:$0x3] %vm39_vm5, %v38_v12   ;;  %v45_v13 = vpop.permute.xlu1 %44  }
  0x7e   :  { %47 = vst.msk [vmem:[#allocation0] ss:$8 sm:$0x3] %vm46_vm6, %v45_v13  }
  0x80   :  { %v52_v14 = vpop.permute.xlu0 %51  }
  0x81   :  { %54 = vst.msk [vmem:[#allocation0] ss:$8 sm:$0x3] %vm53_vm7, %v52_v14  }
  0x88   :  { %v59_v15 = vld [vmem:[#allocation0] sm:$0x1]  ;;  %v64_v16 = vld [vmem:[#allocation0 + $0x8] sm:$0x1] }
  0x89   :  { %62 = vst [vmem:[%s132_s1] sm:$0x1] %v59_v15  ;;  %76 = vst [vmem:[%s132_s1 + $0x1] sm:$0x1] %v64_v16 }

// kernel: forward.42
= control target key start
LH: loop header
LB: loop body
LE: loop exit
PB: predicated region body
PF: predicated region fallthrough
CT: control target
= control target key end

     0   :  { %v24_v0 = vlaneseq  ;;  %s172_s1 = inlined_call_operand.vmem [shape: f32[1,256], index: 1, kind: input, shape index: {}]   ;;  %s173_s2 = inlined_call_operand.vmem [shape: f32[1,256], index: 2, kind: input, shape index: {}]   ;;  %s174_s0 = inlined_call_operand.vmem [shape: f32[32,256], index: 0, kind: input, shape index: {}]   ;;  %s175_s3 = inlined_call_operand.vmem [shape: bf16[32,256], index: 3, kind: output, shape index: {}]  }
   0x1   :  { %v22_v2 = vld [vmem:[%s172_s1] sm:$0x3]  ;;  %v15_v5 = vld [vmem:[%s174_s0 + $0x8] sm:$0xff]  ;;  %v16_v8 = vld [vmem:[%s174_s0 + $0x10] sm:$0xff] }
   0x2   :  { %v25_v1 = vshrl.u32 %v24_v0, 7  ;;  %v42_v3 = vld [vmem:[%s173_s2] sm:$0x3]  ;;  %v17_v9 = vld [vmem:[%s174_s0 + $0x18] sm:$0xff]  ;;  %v19_v15 = vld [vmem:[%s174_s0 + $0x28] sm:$0xff] }
   0x3   :  { %v14_v4 = vld [vmem:[%s174_s0] sm:$0xff]  ;;  %v20_v16 = vld [vmem:[%s174_s0 + $0x30] sm:$0xff]  ;;  %v21_v17 = vld [vmem:[%s174_s0 + $0x38] sm:$0xff] }
   0x4   :  { %v26_v6 = vsub.s32 0, %v25_v1  ;;  %v30_v7 = vsub.s32 1, %v25_v1  ;;  %v18_v10 = vld [vmem:[%s174_s0 + $0x20] sm:$0xff] }
   0x6   :  { %v27_v11 = vrot.slane %v22_v2, %v26_v6  ;;  %v31_v12 = vrot.slane %v22_v2, %v30_v7  ;;  %v47_v13 = vrot.slane %v42_v3, %v26_v6  ;;  %v51_v14 = vrot.slane %v42_v3, %v30_v7 }
   0x8   :  { %v34_v18 = vmul.f32 %v27_v11, %v14_v4  ;;  %v35_v19 = vmul.f32 %v31_v12, %v15_v5  ;;  %v36_v20 = vmul.f32 %v27_v11, %v16_v8  ;;  %v37_v21 = vmul.f32 %v31_v12, %v17_v9 }
   0x9   :  { %v38_v22 = vmul.f32 %v27_v11, %v18_v10  ;;  %v39_v23 = vmul.f32 %v31_v12, %v19_v15  ;;  %v40_v24 = vmul.f32 %v27_v11, %v20_v16  ;;  %v41_v25 = vmul.f32 %v31_v12, %v21_v17 }
   0xa   :  { %v54_v26 = vadd.f32 %v47_v13, %v34_v18  ;;  %v55_v27 = vadd.f32 %v51_v14, %v35_v19  ;;  %v56_v28 = vadd.f32 %v47_v13, %v36_v20  ;;  %v57_v29 = vadd.f32 %v51_v14, %v37_v21 }
   0xb   :  { %v58_v30 = vadd.f32 %v47_v13, %v38_v22  ;;  %v59_v31 = vadd.f32 %v51_v14, %v39_v23  ;;  %v60_v32 = vadd.f32 %v47_v13, %v40_v24  ;;  %v61_v33 = vadd.f32 %v51_v14, %v41_v25 }
   0xc   :  { %v62_v34 = vmax.f32 %v54_v26, 0.0  ;;  %v63_v35 = vmax.f32 %v55_v27, 0.0  ;;  %v64_v36 = vmax.f32 %v56_v28, 0.0  ;;  %v65_v37 = vmax.f32 %v57_v29, 0.0 }
   0xd   :  { %v66_v38 = vmax.f32 %v58_v30, 0.0  ;;  %v67_v39 = vmax.f32 %v59_v31, 0.0  ;;  %v68_v40 = vmax.f32 %v60_v32, 0.0  ;;  %v69_v41 = vmax.f32 %v61_v33, 0.0 }
   0xe   :  { %v106_v42 = vpack.c.bf16 %v63_v35, %v62_v34  ;;  %v107_v43 = vpack.c.bf16 %v65_v37, %v64_v36 }
   0xf   :  { %v108_v44 = vpack.c.bf16 %v67_v39, %v66_v38  ;;  %v109_v45 = vpack.c.bf16 %v69_v41, %v68_v40 }
  0x10   :  { %94 = vst [vmem:[%s175_s3] sm:$0xff] %v106_v42  ;;  %95 = vst [vmem:[%s175_s3 + $0x8] sm:$0xff] %v107_v43 }
  0x11   :  { %96 = vst [vmem:[%s175_s3 + $0x10] sm:$0xff] %v108_v44  ;;  %97 = vst [vmem:[%s175_s3 + $0x18] sm:$0xff] %v109_v45 }

// kernel: forward.41
= control target key start
LH: loop header
LB: loop body
LE: loop exit
PB: predicated region body
PF: predicated region fallthrough
CT: control target
= control target key end

     0   :  { %s519_s9 = smov 0   ;;  %s584_s0 = inlined_call_operand.vmem [shape: bf16[512,32], index: 0, kind: input, shape index: {}]   ;;  %s585_s1 = inlined_call_operand.vmem [shape: bf16[32,16], index: 1, kind: input, shape index: {}]   ;;  %s586_s2 = inlined_call_operand.vmem [shape: f32[512,16], index: 2, kind: output, shape index: {}]  }
   0x1 LB: > { %s415_s10 = sadd.s32 4294967295, %s502_s9   ;;  %p419_p0 = scmp.ge.s32.totalorder %s502_s9, 1  ;;  %s502_s9 = sphi %s519_s9, %s12_s9  }
   0x2   : > { %p113_p1 = scmp.lt.s32.totalorder %s502_s9, 5 }
   0x4   : > { %p114_p2 = pnand %p419_p0, %p113_p1 }
   0x5   : > { %s420_s13 = sshll.u32 (!%p114_p2), %s415_s10, 4 }
   0x6   : > { %117 = sbr.rel (%p114_p2) target bundleno = 228 (0xe4), region = 28  ;;  %p136_p3 = scmp.lt.s32.totalorder (!%p114_p2), %s420_s13, 63 }
   0xb   : > { %v486_v0 = vld [vmem:[%s585_s1 + $0x8] sm:$0xff]   ;;  %v487_v1 = vld [vmem:[%s585_s1] sm:$0xff]   ;;  %s588_s13 = smov (!%p136_p3, %s420_s13), 63  ;;  %vm220_vm0 = vcmask 261120   ;;  %vm342_vm1 = vcmask 130048  }
   0xc   : > { %454 = vmatprep.subr.bf16.mxu0 %v486_v0  ;;  %474 = vmatprep.subr.bf16.mxu1 %v486_v0  ;;  %s421_s16 = sshll.u32 %s588_s13, 2  ;;  %s423_s20 = sshll.u32 %s588_s13, 3 }
   0xd   : > { %455 = vmatpush3.bf16.msra.mxu0 %v486_v0  ;;  %476 = vmatpush3.bf16.msra.mxu1 %v486_v0  ;;  %s139_s19 = scalar_lea.vmem %s584_s0, %s421_s16  ;;  %s547_s23 = scalar_lea.vmem %s586_s2, %s423_s20 }
   0xe   : > { %456 = vmatprep.subr.bf16.mxu0 %v487_v1  ;;  %475 = vmatprep.subr.bf16.mxu1 %v487_v1  ;;  %v488_v2 = vld [vmem:[%s139_s19] sm:$0xff]   ;;  %v490_v4 = vld [vmem:[%s139_s19 + $0x8] sm:$0xff]   ;;  %v492_v6 = vld [vmem:[%s139_s19 + $0x10] sm:$0xff]  }
   0xf   : > { %v489_v3 = vld [vmem:[%s139_s19 + $0x20] sm:$0xff]   ;;  %458 = vmatprep.mubr.msk.bf16.mxu0 %vm220_vm0, %v488_v2  ;;  %v491_v5 = vld [vmem:[%s139_s19 + $0x28] sm:$0xff]   ;;  %v493_v7 = vld [vmem:[%s139_s19 + $0x30] sm:$0xff]  }
  0x10   : > { %466 = vmatprep.mubr.msk.bf16.mxu1 %vm220_vm0, %v489_v3  ;;  %v494_v8 = vld [vmem:[%s139_s19 + $0x18] sm:$0xff]  }
  0x11   : > { %457 = vmatpush3.bf16.msra.mxu0 %v487_v1  ;;  %477 = vmatpush3.bf16.msra.mxu1 %v487_v1  ;;  %v495_v9 = vld [vmem:[%s139_s19 + $0x38] sm:$0xff]  }
  0x14   : > { %459 = vmatmul.mubr.msk.bf16.vlgmr.msra.gmra.mxu0 %vm220_vm0, %v490_v4  ;;  %467 = vmatmul.mubr.msk.bf16.vlgmr.msra.gmra.mxu1 %vm220_vm0, %v491_v5 }
  0x15   : > { %462 = vmatprep.mubr.msk.bf16.mxu0 %vm220_vm0, %v492_v6  ;;  %470 = vmatprep.mubr.msk.bf16.mxu1 %vm220_vm0, %v493_v7 }
  0x1c   : > { %463 = vmatmul.mubr.msk.bf16.gmra.mxu0 %vm220_vm0, %v494_v8  ;;  %471 = vmatmul.mubr.msk.bf16.gmra.mxu1 %vm220_vm0, %v495_v9 }
  0xd4   : > { %v460_v10 = vpop.f32.mrf.mxu0  ;;  %v468_v11 = vpop.f32.mrf.mxu1 }
  0xd5   : > { %345 = vst.msk [vmem:[%s547_s23 + $0x10] sm:$0xff] %vm342_vm1, %v460_v10  ;;  %353 = vst.msk [vmem:[%s547_s23 + $0x50] sm:$0xff] %vm342_vm1, %v468_v11 }
  0xd6   : > { %v279_v12 = vpop.f32.mrf.mxu0  ;;  %v311_v13 = vpop.f32.mrf.mxu1 }
  0xd7   : > { %343 = vst.msk [vmem:[%s547_s23] sm:$0xff] %vm342_vm1, %v279_v12  ;;  %351 = vst.msk [vmem:[%s547_s23 + $0x40] sm:$0xff] %vm342_vm1, %v311_v13 }
  0xd8   : > { %v461_v14 = vpop.f32.mrf.mxu0  ;;  %v469_v15 = vpop.f32.mrf.mxu1 }
  0xd9   : > { %346 = vst.msk [vmem:[%s547_s23 + $0x18] sm:$0xff] %vm342_vm1, %v461_v14  ;;  %354 = vst.msk [vmem:[%s547_s23 + $0x58] sm:$0xff] %vm342_vm1, %v469_v15 }
  0xda   : > { %v282_v16 = vpop.f32.mrf.mxu0  ;;  %v314_v17 = vpop.f32.mrf.mxu1 }
  0xdb   : > { %344 = vst.msk [vmem:[%s547_s23 + $0x8] sm:$0xff] %vm342_vm1, %v282_v16  ;;  %352 = vst.msk [vmem:[%s547_s23 + $0x48] sm:$0xff] %vm342_vm1, %v314_v17 }
  0xdc   : > { %v464_v18 = vpop.f32.mrf.mxu0  ;;  %v472_v19 = vpop.f32.mrf.mxu1 }
  0xdd   : > { %349 = vst.msk [vmem:[%s547_s23 + $0x30] sm:$0xff] %vm342_vm1, %v464_v18  ;;  %357 = vst.msk [vmem:[%s547_s23 + $0x70] sm:$0xff] %vm342_vm1, %v472_v19 }
  0xde   : > { %v295_v20 = vpop.f32.mrf.mxu0  ;;  %v327_v21 = vpop.f32.mrf.mxu1 }
  0xdf   : > { %347 = vst.msk [vmem:[%s547_s23 + $0x20] sm:$0xff] %vm342_vm1, %v295_v20  ;;  %355 = vst.msk [vmem:[%s547_s23 + $0x60] sm:$0xff] %vm342_vm1, %v327_v21 }
  0xe0   : > { %v465_v22 = vpop.f32.mrf.mxu0  ;;  %v473_v23 = vpop.f32.mrf.mxu1 }
  0xe1   : > { %350 = vst.msk [vmem:[%s547_s23 + $0x38] sm:$0xff] %vm342_vm1, %v465_v22  ;;  %358 = vst.msk [vmem:[%s547_s23 + $0x78] sm:$0xff] %vm342_vm1, %v473_v23 }
  0xe2   : > { %v298_v24 = vpop.f32.mrf.mxu0  ;;  %v330_v25 = vpop.f32.mrf.mxu1 }
  0xe3   : > { %348 = vst.msk [vmem:[%s547_s23 + $0x28] sm:$0xff] %vm342_vm1, %v298_v24  ;;  %356 = vst.msk [vmem:[%s547_s23 + $0x68] sm:$0xff] %vm342_vm1, %v330_v25 }
  0xe4 PF: > { %s12_s9 = sadd.s32 1, %s502_s9  }
  0xe5   : > { %p9_p4 = scmp.ge.s32.totalorder %s12_s9, 6  }
  0xe7   :  { %11 = sbr.rel (!%p9_p4) target bundleno = 1 (0x1), region = 58 }

// kernel: forward.43
= control target key start
LH: loop header
LB: loop body
LE: loop exit
PB: predicated region body
PF: predicated region fallthrough
CT: control target
= control target key end

     0   :  { %s860_s15 = smov 0   ;;  %s1010_s0 = inlined_call_operand.vmem [shape: bf16[512,144], index: 0, kind: input, shape index: {}]   ;;  %s1011_s1 = inlined_call_operand.vmem [shape: bf16[144,64], index: 1, kind: input, shape index: {}]   ;;  %s1012_s2 = inlined_call_operand.vmem [shape: f32[1,64], index: 2, kind: input, shape index: {}]   ;;  %s1013_s3 = inlined_call_operand.vmem [shape: f32[1,64], index: 3, kind: input, shape index: {}]   ;;  %s1014_s4 = inlined_call_operand.vmem [shape: bf16[512,64], index: 4, kind: output, shape index: {}]  }
   0x1 LB: > { %s686_s16 = sadd.s32 4294967295, %s832_s15   ;;  %p690_p0 = scmp.ge.s32.totalorder %s832_s15, 1  ;;  %s832_s15 = sphi %s860_s15, %s14_s15  }
   0x2   : > { %p164_p1 = scmp.lt.s32.totalorder %s832_s15, 5 }
   0x4   : > { %p165_p2 = pnand %p690_p0, %p164_p1 }
   0x5   : > { %s691_s19 = sshll.u32 (!%p165_p2), %s686_s16, 4 }
   0x6   : > { %168 = sbr.rel (%p165_p2) target bundleno = 278 (0x116), region = 36  ;;  %p192_p3 = scmp.lt.s32.totalorder (!%p165_p2), %s691_s19, 63 }
   0xb   : > { %v793_v0 = vld [vmem:[%s1011_s1 + $0x38] sm:$0xff]   ;;  %v834_v1 = vmov 0   ;;  %v794_v2 = vld [vmem:[%s1011_s1 + $0x30] sm:$0xff]   ;;  %s1016_s19 = smov (!%p192_p3, %s691_s19), 63  ;;  %v795_v3 = vld [vmem:[%s1011_s1 + $0x28] sm:$0xff]   ;;  %vm365_vm0 = vcmask 130048  }
   0xc   : > { %390 = vmatprep.subr.bf16.mxu0 %v834_v1  ;;  %766 = vmatprep.subr.bf16.mxu1 %v834_v1  ;;  %s749_s24 = sshll.u32 %s1016_s19, 3  ;;  %v796_v4 = vld [vmem:[%s1011_s1 + $0x20] sm:$0xff]   ;;  %v797_v7 = vld [vmem:[%s1011_s1 + $0x18] sm:$0xff]   ;;  %v798_v8 = vld [vmem:[%s1011_s1 + $0x10] sm:$0xff]   ;;  %s695_s20 = sshll.u32 %s1016_s19, 2  ;;  %vm613_vm1 = vcmask 519168  }
   0xd   : > { %391 = vmatpush1.bf16.msra.mxu0 %v793_v0  ;;  %775 = vmatpush1.bf16.msra.mxu1 %v793_v0  ;;  %s883_s27 = scalar_lea.vmem %s1010_s0, %s749_s24  ;;  %v799_v9 = vld [vmem:[%s1011_s1 + $0x8] sm:$0xff]   ;;  %v800_v10 = vld [vmem:[%s1011_s1] sm:$0xff]   ;;  %s947_s23 = scalar_lea.vmem %s1014_s4, %s695_s20 }
   0xe   : > { %392 = vmatprep.subr.bf16.mxu0 %v834_v1  ;;  %767 = vmatprep.subr.bf16.mxu1 %v834_v1  ;;  %v804_v5 = vld [vmem:[%s883_s27 + $0x4] ss:$8 sps:$4 sm:$0xff]   ;;  %v802_v12 = vld [vmem:[%s883_s27] ss:$8 sps:$4 sm:$0xff]   ;;  %v808_v14 = vld [vmem:[%s883_s27 + $0x14] ss:$8 sps:$4 sm:$0xff]  }
   0xf   : > { %v807_v6 = vld [vmem:[%s883_s27 + $0x44] ss:$8 sps:$4 sm:$0xff]   ;;  %721 = vmatprep.mubr.msk.bf16.mxu0 %vm365_vm0, %v804_v5  ;;  %v805_v13 = vld [vmem:[%s883_s27 + $0x40] ss:$8 sps:$4 sm:$0xff]   ;;  %v810_v15 = vld [vmem:[%s883_s27 + $0x54] ss:$8 sps:$4 sm:$0xff]  }
  0x10   : > { %725 = vmatprep.mubr.msk.bf16.mxu1 %vm365_vm0, %v807_v6  ;;  %v801_v11 = vld [vmem:[%s1011_s1 + $0x40] sm:$0xff]   ;;  %v812_v16 = vld [vmem:[%s883_s27 + $0x10] ss:$8 sps:$4 sm:$0xff]   ;;  %v820_v22 = vld [vmem:[%s883_s27 + $0x34] ss:$8 sps:$4 sm:$0xff]  }
  0x11   : > { %393 = vmatpush1.bf16.msra.mxu0 %v794_v2  ;;  %776 = vmatpush1.bf16.msra.mxu1 %v794_v2  ;;  %v813_v17 = vld [vmem:[%s883_s27 + $0x50] ss:$8 sps:$4 sm:$0xff]   ;;  %v814_v18 = vld [vmem:[%s883_s27 + $0x24] ss:$8 sps:$4 sm:$0xff]   ;;  %v818_v20 = vld [vmem:[%s883_s27 + $0x20] ss:$8 sps:$4 sm:$0xff]  }
  0x12   : > { %394 = vmatprep.subr.bf16.mxu0 %v834_v1  ;;  %768 = vmatprep.subr.bf16.mxu1 %v834_v1  ;;  %v816_v19 = vld [vmem:[%s883_s27 + $0x64] ss:$8 sps:$4 sm:$0xff]   ;;  %v819_v21 = vld [vmem:[%s883_s27 + $0x60] ss:$8 sps:$4 sm:$0xff]   ;;  %v822_v23 = vld [vmem:[%s883_s27 + $0x74] ss:$8 sps:$4 sm:$0xff]  }
  0x13   : > { %v824_v24 = vld [vmem:[%s883_s27 + $0x30] ss:$8 sps:$4 sm:$0xff]   ;;  %v930_v26 = vld [vmem:[%s1012_s2] ss:$0 sm:$0xff] }
  0x14   : > { %v825_v25 = vld [vmem:[%s883_s27 + $0x70] ss:$8 sps:$4 sm:$0xff]   ;;  %v935_v28 = vld [vmem:[%s1013_s3] ss:$0 sm:$0xff] }
  0x15   : > { %395 = vmatpush1.bf16.msra.mxu0 %v795_v3  ;;  %777 = vmatpush1.bf16.msra.mxu1 %v795_v3 }
  0x16   : > { %396 = vmatprep.subr.bf16.mxu0 %v834_v1  ;;  %769 = vmatprep.subr.bf16.mxu1 %v834_v1 }
  0x19   : > { %397 = vmatpush1.bf16.msra.mxu0 %v796_v4  ;;  %778 = vmatpush1.bf16.msra.mxu1 %v796_v4 }
  0x1a   : > { %398 = vmatprep.subr.bf16.mxu0 %v834_v1  ;;  %770 = vmatprep.subr.bf16.mxu1 %v834_v1 }
  0x1d   : > { %399 = vmatpush1.bf16.msra.mxu0 %v797_v7  ;;  %779 = vmatpush1.bf16.msra.mxu1 %v797_v7 }
  0x1e   : > { %400 = vmatprep.subr.bf16.mxu0 %v834_v1  ;;  %771 = vmatprep.subr.bf16.mxu1 %v834_v1 }
  0x21   : > { %401 = vmatpush1.bf16.msra.mxu0 %v798_v8  ;;  %780 = vmatpush1.bf16.msra.mxu1 %v798_v8 }
  0x22   : > { %402 = vmatprep.subr.bf16.mxu0 %v834_v1  ;;  %772 = vmatprep.subr.bf16.mxu1 %v834_v1 }
  0x25   : > { %403 = vmatpush1.bf16.msra.mxu0 %v799_v9  ;;  %781 = vmatpush1.bf16.msra.mxu1 %v799_v9 }
  0x26   : > { %404 = vmatprep.subr.bf16.mxu0 %v834_v1  ;;  %773 = vmatprep.subr.bf16.mxu1 %v834_v1 }
  0x29   : > { %405 = vmatpush1.bf16.msra.mxu0 %v800_v10  ;;  %782 = vmatpush1.bf16.msra.mxu1 %v800_v10 }
  0x2a   : > { %420 = vmatprep.subr.bf16.mxu0 %v834_v1  ;;  %774 = vmatprep.subr.bf16.mxu1 %v834_v1 }
  0x2d   : > { %421 = vmatpush2.bf16.msra.mxu0 %v801_v11  ;;  %783 = vmatpush2.bf16.msra.mxu1 %v801_v11 }
  0x30   : > { %423 = vmatmul.mubr.bf16.vlgmr.msra.gmra.mxu0 %v802_v12  ;;  %455 = vmatmul.mubr.bf16.vlgmr.msra.gmra.mxu1 %v805_v13 }
  0x31   : > { %722 = vmatprep.mubr.msk.bf16.mxu0 %vm365_vm0, %v808_v14  ;;  %726 = vmatprep.mubr.msk.bf16.mxu1 %vm365_vm0, %v810_v15 }
  0x38   : > { %431 = vmatmul.mubr.bf16.gmra.mxu0 %v812_v16  ;;  %463 = vmatmul.mubr.bf16.gmra.mxu1 %v813_v17 }
  0x39   : > { %723 = vmatprep.mubr.msk.bf16.mxu0 %vm365_vm0, %v814_v18  ;;  %727 = vmatprep.mubr.msk.bf16.mxu1 %vm365_vm0, %v816_v19 }
  0x40   : > { %439 = vmatmul.mubr.bf16.gmra.mxu0 %v818_v20  ;;  %471 = vmatmul.mubr.bf16.gmra.mxu1 %v819_v21 }
  0x41   : > { %724 = vmatprep.mubr.msk.bf16.mxu0 %vm365_vm0, %v820_v22  ;;  %728 = vmatprep.mubr.msk.bf16.mxu1 %vm365_vm0, %v822_v23 }
  0x48   : > { %447 = vmatmul.mubr.bf16.gmra.mxu0 %v824_v24  ;;  %479 = vmatmul.mubr.bf16.gmra.mxu1 %v825_v25 }
  0xf0   : > { %v424_v27 = vpop.f32.mrf.mxu0  ;;  %v456_v29 = vpop.f32.mrf.mxu1 }
  0xf1   : > { %v494_v30 = vmul.f32 %v930_v26, %v424_v27  ;;  %v502_v31 = vmul.f32 %v930_v26, %v456_v29 }
  0xf2   : > { %v426_v32 = vpop.f32.mrf.mxu0  ;;  %v458_v33 = vpop.f32.mrf.mxu1 }
  0xf3   : > { %v517_v34 = vadd.f32 %v935_v28, %v494_v30  ;;  %v525_v35 = vadd.f32 %v935_v28, %v502_v31 }
  0xf4   : > { %v427_v36 = vpop.f32.mrf.mxu0  ;;  %v459_v37 = vpop.f32.mrf.mxu1 }
  0xf5   : > { %v533_v38 = vmax.f32 %v517_v34, 0.0  ;;  %v541_v39 = vmax.f32 %v525_v35, 0.0  ;;  %v495_v40 = vmul.f32 %v930_v26, %v427_v36  ;;  %v503_v41 = vmul.f32 %v930_v26, %v459_v37 }
  0xf6   : > { %v429_v42 = vpop.f32.mrf.mxu0  ;;  %v461_v43 = vpop.f32.mrf.mxu1 }
  0xf7   : > { %v750_v44 = vpack.c.bf16 %v533_v38, %v533_v38  ;;  %v758_v45 = vpack.c.bf16 %v541_v39, %v541_v39  ;;  %v518_v46 = vadd.f32 %v935_v28, %v495_v40  ;;  %v526_v47 = vadd.f32 %v935_v28, %v503_v41 }
  0xf8   : > { %v432_v48 = vpop.f32.mrf.mxu0  ;;  %v464_v49 = vpop.f32.mrf.mxu1 }
  0xf9   : > { %614 = vst.msk [vmem:[%s947_s23] sm:$0xf] %vm613_vm1, %v750_v44  ;;  %622 = vst.msk [vmem:[%s947_s23 + $0x20] sm:$0xf] %vm613_vm1, %v758_v45  ;;  %v534_v50 = vmax.f32 %v518_v46, 0.0  ;;  %v542_v51 = vmax.f32 %v526_v47, 0.0  ;;  %v496_v52 = vmul.f32 %v930_v26, %v432_v48  ;;  %v504_v53 = vmul.f32 %v930_v26, %v464_v49 }
  0xfa   : > { %v434_v54 = vpop.f32.mrf.mxu0  ;;  %v466_v55 = vpop.f32.mrf.mxu1 }
  0xfb   : > { %v751_v56 = vpack.c.bf16 %v534_v50, %v534_v50  ;;  %v759_v57 = vpack.c.bf16 %v542_v51, %v542_v51  ;;  %v519_v58 = vadd.f32 %v935_v28, %v496_v52  ;;  %v527_v59 = vadd.f32 %v935_v28, %v504_v53 }
  0xfc   : > { %v435_v60 = vpop.f32.mrf.mxu0  ;;  %v467_v61 = vpop.f32.mrf.mxu1 }
  0xfd   : > { %615 = vst.msk [vmem:[%s947_s23 + $0x4] sm:$0xf] %vm613_vm1, %v751_v56  ;;  %623 = vst.msk [vmem:[%s947_s23 + $0x24] sm:$0xf] %vm613_vm1, %v759_v57  ;;  %v535_v62 = vmax.f32 %v519_v58, 0.0  ;;  %v543_v63 = vmax.f32 %v527_v59, 0.0  ;;  %v497_v0 = vmul.f32 %v930_v26, %v435_v60  ;;  %v505_v1 = vmul.f32 %v930_v26, %v467_v61 }
  0xfe   : > { %v437_v2 = vpop.f32.mrf.mxu0  ;;  %v469_v3 = vpop.f32.mrf.mxu1 }
  0xff   : > { %v752_v4 = vpack.c.bf16 %v535_v62, %v535_v62  ;;  %v760_v5 = vpack.c.bf16 %v543_v63, %v543_v63  ;;  %v520_v6 = vadd.f32 %v935_v28, %v497_v0  ;;  %v528_v7 = vadd.f32 %v935_v28, %v505_v1 }
 0x100   : > { %v440_v8 = vpop.f32.mrf.mxu0  ;;  %v472_v9 = vpop.f32.mrf.mxu1 }
 0x101   : > { %616 = vst.msk [vmem:[%s947_s23 + $0x8] sm:$0xf] %vm613_vm1, %v752_v4  ;;  %624 = vst.msk [vmem:[%s947_s23 + $0x28] sm:$0xf] %vm613_vm1, %v760_v5  ;;  %v536_v10 = vmax.f32 %v520_v6, 0.0  ;;  %v544_v11 = vmax.f32 %v528_v7, 0.0  ;;  %v498_v12 = vmul.f32 %v930_v26, %v440_v8  ;;  %v506_v13 = vmul.f32 %v930_v26, %v472_v9 }
 0x102   : > { %v442_v14 = vpop.f32.mrf.mxu0  ;;  %v474_v15 = vpop.f32.mrf.mxu1 }
 0x103   : > { %v753_v16 = vpack.c.bf16 %v536_v10, %v536_v10  ;;  %v761_v17 = vpack.c.bf16 %v544_v11, %v544_v11  ;;  %v521_v18 = vadd.f32 %v935_v28, %v498_v12  ;;  %v529_v19 = vadd.f32 %v935_v28, %v506_v13 }
 0x104   : > { %v443_v20 = vpop.f32.mrf.mxu0  ;;  %v475_v21 = vpop.f32.mrf.mxu1 }
 0x105   : > { %617 = vst.msk [vmem:[%s947_s23 + $0xc] sm:$0xf] %vm613_vm1, %v753_v16  ;;  %625 = vst.msk [vmem:[%s947_s23 + $0x2c] sm:$0xf] %vm613_vm1, %v761_v17  ;;  %v537_v22 = vmax.f32 %v521_v18, 0.0  ;;  %v545_v23 = vmax.f32 %v529_v19, 0.0  ;;  %v499_v24 = vmul.f32 %v930_v26, %v443_v20  ;;  %v507_v25 = vmul.f32 %v930_v26, %v475_v21 }
 0x106   : > { %v445_v27 = vpop.f32.mrf.mxu0  ;;  %v477_v29 = vpop.f32.mrf.mxu1 }
 0x107   : > { %v754_v30 = vpack.c.bf16 %v537_v22, %v537_v22  ;;  %v762_v31 = vpack.c.bf16 %v545_v23, %v545_v23  ;;  %v522_v32 = vadd.f32 %v935_v28, %v499_v24  ;;  %v530_v33 = vadd.f32 %v935_v28, %v507_v25 }
 0x108   : > { %v448_v34 = vpop.f32.mrf.mxu0  ;;  %v480_v35 = vpop.f32.mrf.mxu1 }
 0x109   : > { %618 = vst.msk [vmem:[%s947_s23 + $0x10] sm:$0xf] %vm613_vm1, %v754_v30  ;;  %626 = vst.msk [vmem:[%s947_s23 + $0x30] sm:$0xf] %vm613_vm1, %v762_v31  ;;  %v538_v36 = vmax.f32 %v522_v32, 0.0  ;;  %v546_v37 = vmax.f32 %v530_v33, 0.0  ;;  %v500_v38 = vmul.f32 %v930_v26, %v448_v34  ;;  %v508_v39 = vmul.f32 %v930_v26, %v480_v35 }
 0x10a   : > { %v450_v40 = vpop.f32.mrf.mxu0  ;;  %v482_v41 = vpop.f32.mrf.mxu1 }
 0x10b   : > { %v755_v42 = vpack.c.bf16 %v538_v36, %v538_v36  ;;  %v763_v43 = vpack.c.bf16 %v546_v37, %v546_v37  ;;  %v523_v44 = vadd.f32 %v935_v28, %v500_v38  ;;  %v531_v45 = vadd.f32 %v935_v28, %v508_v39 }
 0x10c   : > { %v451_v46 = vpop.f32.mrf.mxu0  ;;  %v483_v47 = vpop.f32.mrf.mxu1 }
 0x10d   : > { %619 = vst.msk [vmem:[%s947_s23 + $0x14] sm:$0xf] %vm613_vm1, %v755_v42  ;;  %627 = vst.msk [vmem:[%s947_s23 + $0x34] sm:$0xf] %vm613_vm1, %v763_v43  ;;  %v539_v48 = vmax.f32 %v523_v44, 0.0  ;;  %v547_v49 = vmax.f32 %v531_v45, 0.0  ;;  %v501_v50 = vmul.f32 %v930_v26, %v451_v46  ;;  %v509_v51 = vmul.f32 %v930_v26, %v483_v47 }
 0x10e   : > { %v453_v52 = vpop.f32.mrf.mxu0  ;;  %v485_v53 = vpop.f32.mrf.mxu1 }
 0x10f   : > { %v756_v54 = vpack.c.bf16 %v539_v48, %v539_v48  ;;  %v764_v55 = vpack.c.bf16 %v547_v49, %v547_v49  ;;  %v524_v56 = vadd.f32 %v935_v28, %v501_v50  ;;  %v532_v57 = vadd.f32 %v935_v28, %v509_v51 }
 0x111   : > { %620 = vst.msk [vmem:[%s947_s23 + $0x18] sm:$0xf] %vm613_vm1, %v756_v54  ;;  %628 = vst.msk [vmem:[%s947_s23 + $0x38] sm:$0xf] %vm613_vm1, %v764_v55  ;;  %v540_v58 = vmax.f32 %v524_v56, 0.0  ;;  %v548_v59 = vmax.f32 %v532_v57, 0.0 }
 0x113   : > { %v757_v60 = vpack.c.bf16 %v540_v58, %v540_v58  ;;  %v765_v61 = vpack.c.bf16 %v548_v59, %v548_v59 }
 0x115   : > { %621 = vst.msk [vmem:[%s947_s23 + $0x1c] sm:$0xf] %vm613_vm1, %v757_v60  ;;  %629 = vst.msk [vmem:[%s947_s23 + $0x3c] sm:$0xf] %vm613_vm1, %v765_v61 }
 0x116 PF: > { %s14_s15 = sadd.s32 1, %s832_s15  }
 0x117   : > { %p11_p4 = scmp.ge.s32.totalorder %s14_s15, 6  }
 0x119   :  { %13 = sbr.rel (!%p11_p4) target bundleno = 1 (0x1), region = 66 }

// kernel: forward.44
= control target key start
LH: loop header
LB: loop body
LE: loop exit
PB: predicated region body
PF: predicated region fallthrough
CT: control target
= control target key end

     0   :  { %s504_s9 = smov 0   ;;  %s566_s0 = inlined_call_operand.vmem [shape: bf16[512,16], index: 0, kind: input, shape index: {}]   ;;  %s567_s1 = inlined_call_operand.vmem [shape: bf16[16,64], index: 1, kind: input, shape index: {}]   ;;  %s568_s2 = inlined_call_operand.vmem [shape: f32[512,64], index: 2, kind: output, shape index: {}]  }
   0x1 LB: > { %s407_s10 = sadd.s32 4294967295, %s487_s9   ;;  %p411_p0 = scmp.ge.s32.totalorder %s487_s9, 1  ;;  %s487_s9 = sphi %s504_s9, %s12_s9  }
   0x2   : > { %p113_p1 = scmp.lt.s32.totalorder %s487_s9, 5 }
   0x4   : > { %p114_p2 = pnand %p411_p0, %p113_p1 }
   0x5   : > { %s412_s13 = sshll.u32 (!%p114_p2), %s407_s10, 4 }
   0x6   : > { %117 = sbr.rel (%p114_p2) target bundleno = 225 (0xe1), region = 28  ;;  %p136_p3 = scmp.lt.s32.totalorder (!%p114_p2), %s412_s13, 63 }
   0xb   : > { %v472_v0 = vld [vmem:[%s567_s1] sm:$0xff]   ;;  %s570_s13 = smov (!%p136_p3, %s412_s13), 63  ;;  %vm212_vm0 = vcmask 130048   ;;  %vm334_vm1 = vcmask 523264  }
   0xc   : > { %444 = vmatprep.subr.bf16.mxu0 %v472_v0  ;;  %462 = vmatprep.subr.bf16.mxu1 %v472_v0  ;;  %s413_s14 = sshll.u32 %s570_s13, 2  ;;  %s415_s18 = sshll.u32 %s570_s13, 3 }
   0xd   : > { %445 = vmatpush3.bf16.msra.mxu0 %v472_v0  ;;  %463 = vmatpush3.bf16.msra.mxu1 %v472_v0  ;;  %s139_s17 = scalar_lea.vmem %s566_s0, %s413_s14  ;;  %s529_s21 = scalar_lea.vmem %s568_s2, %s415_s18 }
   0xe   : > { %v473_v1 = vld [vmem:[%s139_s17] sm:$0xff]   ;;  %v475_v3 = vld [vmem:[%s139_s17 + $0x8] sm:$0xff]   ;;  %v477_v5 = vld [vmem:[%s139_s17 + $0x10] sm:$0xff]  }
   0xf   : > { %v474_v2 = vld [vmem:[%s139_s17 + $0x20] sm:$0xff]   ;;  %446 = vmatprep.mubr.msk.bf16.mxu0 %vm212_vm0, %v473_v1  ;;  %v476_v4 = vld [vmem:[%s139_s17 + $0x28] sm:$0xff]   ;;  %v478_v6 = vld [vmem:[%s139_s17 + $0x30] sm:$0xff]  }
  0x10   : > { %454 = vmatprep.mubr.msk.bf16.mxu1 %vm212_vm0, %v474_v2  ;;  %447 = vmatmul.mubr.msk.bf16.vlgmr.msra.gmra.mxu0 %vm212_vm0, %v475_v3  ;;  %v479_v7 = vld [vmem:[%s139_s17 + $0x18] sm:$0xff]  }
  0x11   : > { %455 = vmatmul.mubr.msk.bf16.vlgmr.msra.gmra.mxu1 %vm212_vm0, %v476_v4  ;;  %450 = vmatprep.mubr.msk.bf16.mxu0 %vm212_vm0, %v477_v5  ;;  %v480_v8 = vld [vmem:[%s139_s17 + $0x38] sm:$0xff]  }
  0x12   : > { %458 = vmatprep.mubr.msk.bf16.mxu1 %vm212_vm0, %v478_v6 }
  0x18   : > { %451 = vmatmul.mubr.msk.bf16.gmra.mxu0 %vm212_vm0, %v479_v7 }
  0x19   : > { %459 = vmatmul.mubr.msk.bf16.gmra.mxu1 %vm212_vm0, %v480_v8 }
  0xd0   : > { %v448_v9 = vpop.f32.mrf.mxu0 }
  0xd1   : > { %337 = vst.msk [vmem:[%s529_s21 + $0x10] sm:$0xff] %vm334_vm1, %v448_v9  ;;  %v456_v10 = vpop.f32.mrf.mxu1 }
  0xd2   : > { %345 = vst.msk [vmem:[%s529_s21 + $0x50] sm:$0xff] %vm334_vm1, %v456_v10  ;;  %v271_v11 = vpop.f32.mrf.mxu0 }
  0xd3   : > { %335 = vst.msk [vmem:[%s529_s21] sm:$0xff] %vm334_vm1, %v271_v11  ;;  %v303_v12 = vpop.f32.mrf.mxu1 }
  0xd4   : > { %343 = vst.msk [vmem:[%s529_s21 + $0x40] sm:$0xff] %vm334_vm1, %v303_v12  ;;  %v449_v13 = vpop.f32.mrf.mxu0 }
  0xd5   : > { %338 = vst.msk [vmem:[%s529_s21 + $0x18] sm:$0xff] %vm334_vm1, %v449_v13  ;;  %v457_v14 = vpop.f32.mrf.mxu1 }
  0xd6   : > { %346 = vst.msk [vmem:[%s529_s21 + $0x58] sm:$0xff] %vm334_vm1, %v457_v14  ;;  %v274_v15 = vpop.f32.mrf.mxu0 }
  0xd7   : > { %336 = vst.msk [vmem:[%s529_s21 + $0x8] sm:$0xff] %vm334_vm1, %v274_v15  ;;  %v306_v16 = vpop.f32.mrf.mxu1 }
  0xd8   : > { %344 = vst.msk [vmem:[%s529_s21 + $0x48] sm:$0xff] %vm334_vm1, %v306_v16  ;;  %v452_v17 = vpop.f32.mrf.mxu0 }
  0xd9   : > { %341 = vst.msk [vmem:[%s529_s21 + $0x30] sm:$0xff] %vm334_vm1, %v452_v17  ;;  %v460_v18 = vpop.f32.mrf.mxu1 }
  0xda   : > { %349 = vst.msk [vmem:[%s529_s21 + $0x70] sm:$0xff] %vm334_vm1, %v460_v18  ;;  %v287_v19 = vpop.f32.mrf.mxu0 }
  0xdb   : > { %339 = vst.msk [vmem:[%s529_s21 + $0x20] sm:$0xff] %vm334_vm1, %v287_v19  ;;  %v319_v20 = vpop.f32.mrf.mxu1 }
  0xdc   : > { %347 = vst.msk [vmem:[%s529_s21 + $0x60] sm:$0xff] %vm334_vm1, %v319_v20  ;;  %v453_v21 = vpop.f32.mrf.mxu0 }
  0xdd   : > { %342 = vst.msk [vmem:[%s529_s21 + $0x38] sm:$0xff] %vm334_vm1, %v453_v21  ;;  %v461_v22 = vpop.f32.mrf.mxu1 }
  0xde   : > { %350 = vst.msk [vmem:[%s529_s21 + $0x78] sm:$0xff] %vm334_vm1, %v461_v22  ;;  %v290_v23 = vpop.f32.mrf.mxu0 }
  0xdf   : > { %340 = vst.msk [vmem:[%s529_s21 + $0x28] sm:$0xff] %vm334_vm1, %v290_v23  ;;  %v322_v24 = vpop.f32.mrf.mxu1 }
  0xe0   : > { %348 = vst.msk [vmem:[%s529_s21 + $0x68] sm:$0xff] %vm334_vm1, %v322_v24 }
  0xe1 PF: > { %s12_s9 = sadd.s32 1, %s487_s9  }
  0xe2   : > { %p9_p4 = scmp.ge.s32.totalorder %s12_s9, 6  }
  0xe4   :  { %11 = sbr.rel (!%p9_p4) target bundleno = 1 (0x1), region = 58 }

// kernel: tile.133
= control target key start
LH: loop header
LB: loop body
LE: loop exit
PB: predicated region body
PF: predicated region fallthrough
CT: control target
= control target key end

     0   :  { %s28_s0 = inlined_call_operand.vmem [shape: f32[64], index: 0, kind: input, shape index: {}]   ;;  %s29_s1 = inlined_call_operand.vmem [shape: f32[16,64], index: 1, kind: output, shape index: {}]  }
   0x1   :  { %v4_v0 = vld [vmem:[%s28_s0] ss:$0 sm:$0xff] }
   0x2   :  { %5 = vst [vmem:[%s29_s1] sm:$0xff] %v4_v0  ;;  %8 = vst [vmem:[%s29_s1 + $0x8] sm:$0xff] %v4_v0 }

// kernel: tile.134
= control target key start
LH: loop header
LB: loop body
LE: loop exit
PB: predicated region body
PF: predicated region fallthrough
CT: control target
= control target key end

     0   :  { %vm3_vm0 = vcmask 523264   ;;  %vm10_vm1 = vcmask 1048064   ;;  %s125_s0 = inlined_call_operand.vmem [shape: f32[16,64], index: 0, kind: input, shape index: {}]   ;;  %s126_s1 = inlined_call_operand.vmem [shape: f32[1,1024], index: 1, kind: output, shape index: {}]  }
   0x1   :  { %v75_v0 = vld [vmem:[%s125_s0 + $0x1] ss:$2 sm:$0xff]   ;;  %v2_v1 = vld [vmem:[%s125_s0] ss:$2 sm:$0xff]   ;;  %s84_s0 = smov 64  }
   0x2   :  { %8 = vrot.lane.b32.xlu0 %v75_v0, %s84_s0  ;;  %4 = vst.msk [vmem:[#allocation0] ss:$8 sm:$0xf] %vm3_vm0, %v2_v1   ;;  %5 = vst.msk [vmem:[#allocation0] ss:$8 sm:$0xf0] %vm3_vm0, %v2_v1  }
  0x74   :  { %v9_v2 = vpop.permute.xlu0 %8  }
  0x75   :  { %11 = vst.msk [vmem:[#allocation0] ss:$8 sm:$0xf] %vm10_vm1, %v9_v2   ;;  %12 = vst.msk [vmem:[#allocation0] ss:$8 sm:$0xf0] %vm10_vm1, %v9_v2  }
  0x7c   :  { %v17_v3 = vld [vmem:[#allocation0] sm:$0x1]  ;;  %v22_v4 = vld [vmem:[#allocation0 + $0x8] sm:$0x1]  ;;  %v28_v5 = vld [vmem:[#allocation0 + $0x10] sm:$0x1] }
  0x7d   :  { %20 = vst [vmem:[%s126_s1] sm:$0x1] %v17_v3  ;;  %76 = vst [vmem:[%s126_s1 + $0x1] sm:$0x1] %v22_v4  ;;  %v35_v6 = vld [vmem:[#allocation0 + $0x18] sm:$0x1] }
  0x7e   :  { %77 = vst [vmem:[%s126_s1 + $0x2] sm:$0x1] %v28_v5  ;;  %v42_v7 = vld [vmem:[#allocation0 + $0x20] sm:$0x1]  ;;  %v49_v8 = vld [vmem:[#allocation0 + $0x28] sm:$0x1] }
  0x7f   :  { %78 = vst [vmem:[%s126_s1 + $0x3] sm:$0x1] %v35_v6  ;;  %79 = vst [vmem:[%s126_s1 + $0x4] sm:$0x1] %v42_v7  ;;  %v56_v9 = vld [vmem:[#allocation0 + $0x30] sm:$0x1] }
  0x80   :  { %80 = vst [vmem:[%s126_s1 + $0x5] sm:$0x1] %v49_v8  ;;  %v63_v10 = vld [vmem:[#allocation0 + $0x38] sm:$0x1]  ;;  %81 = vst [vmem:[%s126_s1 + $0x6] sm:$0x1] %v56_v9 }
  0x81   :  { %82 = vst [vmem:[%s126_s1 + $0x7] sm:$0x1] %v63_v10 }

// kernel: forward.45
= control target key start
LH: loop header
LB: loop body
LE: loop exit
PB: predicated region body
PF: predicated region fallthrough
CT: control target
= control target key end

     0   :  { %s1550_s12 = smov 0   ;;  %s1913_s0 = inlined_call_operand.vmem [shape: bf16[512,576], index: 0, kind: input, shape index: {}]   ;;  %s1914_s1 = inlined_call_operand.vmem [shape: bf16[576,64], index: 1, kind: input, shape index: {}]   ;;  %s1915_s2 = inlined_call_operand.vmem [shape: f32[512,64], index: 2, kind: input, shape index: {}]   ;;  %s1916_s3 = inlined_call_operand.vmem [shape: f32[512,64], index: 3, kind: output, shape index: {}]  }
   0x1 LB: > { %s1152_s13 = sadd.s32 4294967295, %s1528_s12   ;;  %p1156_p0 = scmp.ge.s32.totalorder %s1528_s12, 1  ;;  %s1528_s12 = sphi %s1550_s12, %s13_s12  }
   0x2   : > { %p150_p1 = scmp.lt.s32.totalorder %s1528_s12, 5 }
   0x4   : > { %p151_p2 = pnand %p1156_p0, %p150_p1 }
   0x6   : > { %154 = sbr.rel (%p151_p2) target bundleno = 320 (0x140), region = 32 }
   0xb   : > { %v1430_v0 = vld [vmem:[%s1914_s1 + $0x78] sm:$0xff]   ;;  %v1434_v4 = vld [vmem:[%s1914_s1 + $0x70] sm:$0xff]   ;;  %v1438_v8 = vld [vmem:[%s1914_s1 + $0x68] sm:$0xff]   ;;  %s1157_s19 = sshll.u32 %s1152_s13, 4  ;;  %vm752_vm0 = vcmask 523264  }
   0xc   : > { %v1431_v1 = vld [vmem:[%s1914_s1 + $0xf8] sm:$0xff]   ;;  %1249 = vmatprep.subr.bf16.mxu0 %v1430_v0  ;;  %v1435_v5 = vld [vmem:[%s1914_s1 + $0xf0] sm:$0xff]   ;;  %v1439_v9 = vld [vmem:[%s1914_s1 + $0xe8] sm:$0xff]   ;;  %p181_p3 = scmp.lt.s32.totalorder %s1157_s19, 63 }
   0xd   : > { %v1432_v2 = vld [vmem:[%s1914_s1 + $0x38] sm:$0xff]   ;;  %1313 = vmatprep.subr.bf16.mxu1 %v1431_v1  ;;  %v1436_v6 = vld [vmem:[%s1914_s1 + $0x30] sm:$0xff]   ;;  %v1440_v10 = vld [vmem:[%s1914_s1 + $0x28] sm:$0xff]  }
   0xe   : > { %v1433_v3 = vld [vmem:[%s1914_s1 + $0xb8] sm:$0xff]   ;;  %1250 = vmatpush3.bf16.msra.mxu0 %v1432_v2  ;;  %v1437_v7 = vld [vmem:[%s1914_s1 + $0xb0] sm:$0xff]   ;;  %v1441_v11 = vld [vmem:[%s1914_s1 + $0xa8] sm:$0xff]   ;;  %s1930_s19 = smov (!%p181_p3, %s1157_s19), 63 }
   0xf   : > { %1314 = vmatpush3.bf16.msra.mxu1 %v1433_v3  ;;  %1251 = vmatprep.subr.bf16.mxu0 %v1434_v4  ;;  %v1442_v12 = vld [vmem:[%s1914_s1 + $0x60] sm:$0xff]   ;;  %v1446_v16 = vld [vmem:[%s1914_s1 + $0x58] sm:$0xff]   ;;  %v1450_v20 = vld [vmem:[%s1914_s1 + $0x50] sm:$0xff]   ;;  %s1421_s16 = smul.u32 20, %s1930_s19  ;;  %s1160_s15 = sshll.u32 %s1930_s19, 3 }
  0x10   : > { %1315 = vmatprep.subr.bf16.mxu1 %v1435_v5  ;;  %v1443_v13 = vld [vmem:[%s1914_s1 + $0xe0] sm:$0xff]   ;;  %v1447_v17 = vld [vmem:[%s1914_s1 + $0xd8] sm:$0xff]   ;;  %v1451_v21 = vld [vmem:[%s1914_s1 + $0xd0] sm:$0xff]   ;;  %s1796_s18 = scalar_lea.vmem %s1915_s2, %s1160_s15  ;;  %s1843_s22 = scalar_lea.vmem %s1916_s3, %s1160_s15 }
  0x11   : > { %v1444_v14 = vld [vmem:[%s1914_s1 + $0x20] sm:$0xff]   ;;  %v1448_v18 = vld [vmem:[%s1914_s1 + $0x18] sm:$0xff]   ;;  %v1452_v22 = vld [vmem:[%s1914_s1 + $0x10] sm:$0xff]   ;;  %s1656_s13 = scalar_lea.vmem %s1913_s0, %s1421_s16 }
  0x12   : > { %1252 = vmatpush3.bf16.msra.mxu0 %v1436_v6  ;;  %v1445_v15 = vld [vmem:[%s1914_s1 + $0xa0] sm:$0xff]   ;;  %v1449_v19 = vld [vmem:[%s1914_s1 + $0x98] sm:$0xff]   ;;  %v1453_v23 = vld [vmem:[%s1914_s1 + $0x90] sm:$0xff]  }
  0x13   : > { %1316 = vmatpush3.bf16.msra.mxu1 %v1437_v7  ;;  %1253 = vmatprep.subr.bf16.mxu0 %v1438_v8  ;;  %v1454_v24 = vld [vmem:[%s1914_s1 + $0x48] sm:$0xff]   ;;  %v1458_v28 = vld [vmem:[%s1914_s1 + $0x40] sm:$0xff]   ;;  %v1468_v36 = vld [vmem:[%s1914_s1 + $0x118] sm:$0xff]  }
  0x14   : > { %1317 = vmatprep.subr.bf16.mxu1 %v1439_v9  ;;  %v1455_v25 = vld [vmem:[%s1914_s1 + $0xc8] sm:$0xff]   ;;  %v1459_v29 = vld [vmem:[%s1914_s1 + $0xc0] sm:$0xff]   ;;  %v1481_v42 = vld [vmem:[%s1914_s1 + $0x110] sm:$0xff]  }
  0x15   : > { %v1456_v26 = vld [vmem:[%s1914_s1 + $0x8] sm:$0xff]   ;;  %v1460_v30 = vld [vmem:[%s1914_s1] sm:$0xff]   ;;  %v1477_v43 = vld [vmem:[%s1656_s13 + $0x5c] ss:$20 sps:$4 sm:$0xff]  }
  0x16   : > { %1254 = vmatpush3.bf16.msra.mxu0 %v1440_v10  ;;  %v1457_v27 = vld [vmem:[%s1914_s1 + $0x88] sm:$0xff]   ;;  %v1461_v31 = vld [vmem:[%s1914_s1 + $0x80] sm:$0xff]   ;;  %v1482_v47 = vld [vmem:[%s1656_s13 + $0x7c] ss:$20 sps:$4 sm:$0xff]  }
  0x17   : > { %1318 = vmatpush3.bf16.msra.mxu1 %v1441_v11  ;;  %1255 = vmatprep.subr.bf16.mxu0 %v1442_v12  ;;  %v1462_v32 = vld [vmem:[%s1656_s13] ss:$20 sps:$4 sm:$0xff]   ;;  %v1464_v33 = vld [vmem:[%s1656_s13 + $0x4] ss:$20 sps:$4 sm:$0xff]   ;;  %v1465_v34 = vld [vmem:[%s1656_s13 + $0x8] ss:$20 sps:$4 sm:$0xff]  }
  0x18   : > { %1319 = vmatprep.subr.bf16.mxu1 %v1443_v13  ;;  %v1467_v35 = vld [vmem:[%s1656_s13 + $0xc] ss:$20 sps:$4 sm:$0xff]   ;;  %809 = vmatprep.mubr.bf16.mxu0 %v1464_v33  ;;  %v1471_v38 = vld [vmem:[%s1656_s13 + $0x34] ss:$20 sps:$4 sm:$0xff]   ;;  %v1474_v40 = vld [vmem:[%s1656_s13 + $0x30] ss:$20 sps:$4 sm:$0xff]  }
  0x19   : > { %906 = vmatprep.mubr.bf16.mxu1 %v1467_v35  ;;  %v1469_v37 = vld [vmem:[%s1656_s13 + $0x2c] ss:$20 sps:$4 sm:$0xff]   ;;  %v1473_v39 = vld [vmem:[%s1656_s13 + $0x28] ss:$20 sps:$4 sm:$0xff]   ;;  %v1479_v44 = vld [vmem:[%s1656_s13 + $0x50] ss:$20 sps:$4 sm:$0xff]  }
  0x1a   : > { %1256 = vmatpush3.bf16.msra.mxu0 %v1444_v14  ;;  %v1475_v41 = vld [vmem:[%s1656_s13 + $0x54] ss:$20 sps:$4 sm:$0xff]   ;;  %v1480_v45 = vld [vmem:[%s1656_s13 + $0x58] ss:$20 sps:$4 sm:$0xff]   ;;  %v1507_v49 = vld [vmem:[%s1914_s1 + $0x100] sm:$0xff]  }
  0x1b   : > { %1320 = vmatpush3.bf16.msra.mxu1 %v1445_v15  ;;  %1257 = vmatprep.subr.bf16.mxu0 %v1446_v16  ;;  %v1494_v46 = vld [vmem:[%s1914_s1 + $0x108] sm:$0xff]   ;;  %v1484_v48 = vld [vmem:[%s1656_s13 + $0x84] ss:$20 sps:$4 sm:$0xff]   ;;  %v1487_v51 = vld [vmem:[%s1656_s13 + $0x80] ss:$20 sps:$4 sm:$0xff]  }
  0x1c   : > { %1321 = vmatprep.subr.bf16.mxu1 %v1447_v17  ;;  %v1486_v50 = vld [vmem:[%s1656_s13 + $0x78] ss:$20 sps:$4 sm:$0xff]   ;;  %v1492_v54 = vld [vmem:[%s1656_s13 + $0xa0] ss:$20 sps:$4 sm:$0xff]   ;;  %v1493_v55 = vld [vmem:[%s1656_s13 + $0xa8] ss:$20 sps:$4 sm:$0xff]  }
  0x1d   : > { %v1488_v52 = vld [vmem:[%s1656_s13 + $0xa4] ss:$20 sps:$4 sm:$0xff]   ;;  %v1490_v53 = vld [vmem:[%s1656_s13 + $0xac] ss:$20 sps:$4 sm:$0xff]   ;;  %v1497_v57 = vld [vmem:[%s1656_s13 + $0xd4] ss:$20 sps:$4 sm:$0xff]  }
  0x1e   : > { %1258 = vmatpush3.bf16.msra.mxu0 %v1448_v18  ;;  %v1495_v56 = vld [vmem:[%s1656_s13 + $0xcc] ss:$20 sps:$4 sm:$0xff]   ;;  %v1499_v58 = vld [vmem:[%s1656_s13 + $0xc8] ss:$20 sps:$4 sm:$0xff]   ;;  %v1500_v59 = vld [vmem:[%s1656_s13 + $0xd0] ss:$20 sps:$4 sm:$0xff]  }
  0x1f   : > { %1322 = vmatpush3.bf16.msra.mxu1 %v1449_v19  ;;  %1259 = vmatprep.subr.bf16.mxu0 %v1450_v20  ;;  %v1501_v60 = vld [vmem:[%s1656_s13 + $0xf4] ss:$20 sps:$4 sm:$0xff]   ;;  %v1503_v61 = vld [vmem:[%s1656_s13 + $0xfc] ss:$20 sps:$4 sm:$0xff]   ;;  %v1506_v63 = vld [vmem:[%s1656_s13 + $0xf8] ss:$20 sps:$4 sm:$0xff]  }
  0x20   : > { %1323 = vmatprep.subr.bf16.mxu1 %v1451_v21  ;;  %v1505_v62 = vld [vmem:[%s1656_s13 + $0xf0] ss:$20 sps:$4 sm:$0xff]   ;;  %v1512_v2 = vld [vmem:[%s1656_s13 + $0x118] ss:$20 sps:$4 sm:$0xff]   ;;  %v1513_v3 = vld [vmem:[%s1656_s13 + $0x120] ss:$20 sps:$4 sm:$0xff]  }
  0x21   : > { %v1508_v0 = vld [vmem:[%s1656_s13 + $0x11c] ss:$20 sps:$4 sm:$0xff]   ;;  %v1510_v1 = vld [vmem:[%s1656_s13 + $0x124] ss:$20 sps:$4 sm:$0xff]   ;;  %v1518_v8 = vld [vmem:[%s1656_s13 + $0x60] ss:$20 sps:$4 sm:$0xff]  }
  0x22   : > { %1260 = vmatpush3.bf16.msra.mxu0 %v1452_v22  ;;  %v1514_v4 = vld [vmem:[%s1656_s13 + $0x10] ss:$20 sps:$4 sm:$0xff]   ;;  %v1516_v6 = vld [vmem:[%s1656_s13 + $0x38] ss:$20 sps:$4 sm:$0xff]   ;;  %v1519_v9 = vld [vmem:[%s1656_s13 + $0x100] ss:$20 sps:$4 sm:$0xff]  }
  0x23   : > { %1324 = vmatpush3.bf16.msra.mxu1 %v1453_v23  ;;  %1261 = vmatprep.subr.bf16.mxu0 %v1454_v24  ;;  %v1515_v5 = vld [vmem:[%s1656_s13 + $0xb0] ss:$20 sps:$4 sm:$0xff]   ;;  %v1517_v7 = vld [vmem:[%s1656_s13 + $0xd8] ss:$20 sps:$4 sm:$0xff]   ;;  %v1520_v10 = vld [vmem:[%s1656_s13 + $0x88] ss:$20 sps:$4 sm:$0xff]  }
  0x24   : > { %1325 = vmatprep.subr.bf16.mxu1 %v1455_v25  ;;  %v1521_v11 = vld [vmem:[%s1656_s13 + $0x128] ss:$20 sps:$4 sm:$0xff]  }
  0x26   : > { %1262 = vmatpush3.bf16.msra.mxu0 %v1456_v26 }
  0x27   : > { %1326 = vmatpush3.bf16.msra.mxu1 %v1457_v27  ;;  %1263 = vmatprep.subr.bf16.mxu0 %v1458_v28 }
  0x28   : > { %1327 = vmatprep.subr.bf16.mxu1 %v1459_v29 }
  0x2a   : > { %1264 = vmatpush3.bf16.msra.mxu0 %v1460_v30 }
  0x2b   : > { %1328 = vmatpush3.bf16.msra.mxu1 %v1461_v31  ;;  %1389 = vmatprep.subr.bf16.mxu0 %v1468_v36 }
  0x2c   : > { %1413 = vmatprep.subr.bf16.mxu1 %v1468_v36 }
  0x2d   : > { %810 = vmatmul.mubr.bf16.vlgmr.msra.gmra.mxu0 %v1462_v32 }
  0x2e   : > { %907 = vmatmul.mubr.bf16.vlgmr.msra.gmra.mxu1 %v1465_v34  ;;  %1390 = vmatpush3.bf16.msra.mxu0 %v1468_v36 }
  0x2f   : > { %1417 = vmatpush3.bf16.msra.mxu1 %v1468_v36  ;;  %817 = vmatprep.mubr.bf16.mxu0 %v1469_v37 }
  0x30   : > { %914 = vmatprep.mubr.bf16.mxu1 %v1471_v38  ;;  %1391 = vmatprep.subr.bf16.mxu0 %v1481_v42 }
  0x31   : > { %1414 = vmatprep.subr.bf16.mxu1 %v1481_v42 }
  0x32   : > { %1392 = vmatpush3.bf16.msra.mxu0 %v1481_v42 }
  0x33   : > { %1418 = vmatpush3.bf16.msra.mxu1 %v1481_v42  ;;  %1393 = vmatprep.subr.bf16.mxu0 %v1494_v46 }
  0x34   : > { %1415 = vmatprep.subr.bf16.mxu1 %v1494_v46 }
  0x35   : > { %818 = vmatmul.mubr.bf16.gmra.mxu0 %v1473_v39 }
  0x36   : > { %915 = vmatmul.mubr.bf16.gmra.mxu1 %v1474_v40  ;;  %825 = vmatprep.mubr.bf16.mxu0 %v1475_v41 }
  0x37   : > { %922 = vmatprep.mubr.bf16.mxu1 %v1477_v43  ;;  %1394 = vmatpush3.bf16.msra.mxu0 %v1494_v46 }
  0x38   : > { %1419 = vmatpush3.bf16.msra.mxu1 %v1494_v46  ;;  %1395 = vmatprep.subr.bf16.mxu0 %v1507_v49 }
  0x39   : > { %1416 = vmatprep.subr.bf16.mxu1 %v1507_v49 }
  0x3b   : > { %1396 = vmatpush3.bf16.msra.mxu0 %v1507_v49 }
  0x3c   : > { %1420 = vmatpush3.bf16.msra.mxu1 %v1507_v49 }
  0x3d   : > { %826 = vmatmul.mubr.bf16.gmra.mxu0 %v1479_v44 }
  0x3e   : > { %923 = vmatmul.mubr.bf16.gmra.mxu1 %v1480_v45  ;;  %833 = vmatprep.mubr.bf16.mxu0 %v1482_v47 }
  0x3f   : > { %930 = vmatprep.mubr.bf16.mxu1 %v1484_v48 }
  0x45   : > { %834 = vmatmul.mubr.bf16.gmra.mxu0 %v1486_v50 }
  0x46   : > { %931 = vmatmul.mubr.bf16.gmra.mxu1 %v1487_v51  ;;  %841 = vmatprep.mubr.bf16.mxu0 %v1488_v52 }
  0x47   : > { %938 = vmatprep.mubr.bf16.mxu1 %v1490_v53 }
  0x4d   : > { %842 = vmatmul.mubr.bf16.gmra.mxu0 %v1492_v54 }
  0x4e   : > { %939 = vmatmul.mubr.bf16.gmra.mxu1 %v1493_v55  ;;  %849 = vmatprep.mubr.bf16.mxu0 %v1495_v56 }
  0x4f   : > { %946 = vmatprep.mubr.bf16.mxu1 %v1497_v57 }
  0x55   : > { %850 = vmatmul.mubr.bf16.gmra.mxu0 %v1499_v58 }
  0x56   : > { %947 = vmatmul.mubr.bf16.gmra.mxu1 %v1500_v59  ;;  %857 = vmatprep.mubr.bf16.mxu0 %v1501_v60 }
  0x57   : > { %954 = vmatprep.mubr.bf16.mxu1 %v1503_v61 }
  0x5d   : > { %858 = vmatmul.mubr.bf16.gmra.mxu0 %v1505_v62 }
  0x5e   : > { %955 = vmatmul.mubr.bf16.gmra.mxu1 %v1506_v63  ;;  %865 = vmatprep.mubr.bf16.mxu0 %v1508_v0 }
  0x5f   : > { %962 = vmatprep.mubr.bf16.mxu1 %v1510_v1 }
  0x65   : > { %866 = vmatmul.mubr.bf16.gmra.mxu0 %v1512_v2 }
  0x66   : > { %963 = vmatmul.mubr.bf16.gmra.mxu1 %v1513_v3  ;;  %1397 = vmatprep.mubr.msk.bf16.mxu0 %vm752_vm0, %v1514_v4  ;;  %v320_v4 = vld [vmem:[%s1796_s18] sm:$0xff] }
  0x67   : > { %1405 = vmatprep.mubr.msk.bf16.mxu1 %vm752_vm0, %v1515_v5 }
  0x6d   : > { %1398 = vmatmul.mubr.msk.bf16.vlgmr.msra.gmra.mxu0 %vm752_vm0, %v1516_v6 }
  0x6e   : > { %1406 = vmatmul.mubr.msk.bf16.vlgmr.msra.gmra.mxu1 %vm752_vm0, %v1517_v7  ;;  %1401 = vmatprep.mubr.msk.bf16.mxu0 %vm752_vm0, %v1518_v8  ;;  %v321_v8 = vld [vmem:[%s1796_s18 + $0x8] sm:$0xff] }
  0x6f   : > { %1409 = vmatprep.mubr.msk.bf16.mxu1 %vm752_vm0, %v1519_v9  ;;  %v322_v9 = vld [vmem:[%s1796_s18 + $0x10] sm:$0xff] }
  0x75   : > { %1402 = vmatmul.mubr.msk.bf16.gmra.mxu0 %vm752_vm0, %v1520_v10 }
  0x76   : > { %1410 = vmatmul.mubr.msk.bf16.gmra.mxu1 %vm752_vm0, %v1521_v11 }
  0xed   : > { %v1265_v12 = vpop.f32.mrf.mxu0 }
  0xee   : > { %v1724_v13 = vpop.f32.mrf.mxu1 }
  0xef   : > { %v1266_v14 = vpop.f32.mrf.mxu0 }
  0xf0   : > { %v1726_v15 = vpop.f32.mrf.mxu1  ;;  %v1267_v2 = vadd.f32 %v1266_v14, %v1265_v12 }
  0xf1   : > { %v1268_v16 = vpop.f32.mrf.mxu0 }
  0xf2   : > { %v1728_v17 = vpop.f32.mrf.mxu1 }
  0xf3   : > { %v1269_v18 = vpop.f32.mrf.mxu0 }
  0xf4   : > { %v1730_v19 = vpop.f32.mrf.mxu1  ;;  %v1270_v5 = vadd.f32 %v1269_v18, %v1268_v16  ;;  %v328_v18 = vld [vmem:[%s1796_s18 + $0x40] sm:$0xff] }
  0xf5   : > { %v1271_v20 = vpop.f32.mrf.mxu0 }
  0xf6   : > { %v1732_v21 = vpop.f32.mrf.mxu1 }
  0xf7   : > { %v1272_v22 = vpop.f32.mrf.mxu0 }
  0xf8   : > { %v1734_v23 = vpop.f32.mrf.mxu1  ;;  %v1273_v6 = vadd.f32 %v1272_v22, %v1271_v20  ;;  %v1331_v22 = vadd.f32 %v1726_v15, %v1724_v13  ;;  %v324_v13 = vld [vmem:[%s1796_s18 + $0x20] sm:$0xff] }
  0xf9   : > { %v1274_v24 = vpop.f32.mrf.mxu0 }
  0xfa   : > { %v1736_v25 = vpop.f32.mrf.mxu1  ;;  %v820_v16 = vadd.f32 %v1273_v6, %v322_v9 }
  0xfb   : > { %v1275_v26 = vpop.f32.mrf.mxu0 }
  0xfc   : > { %v1738_v27 = vpop.f32.mrf.mxu1 }
  0xfd   : > { %v1740_v28 = vpop.f32.mrf.mxu0 }
  0xfe   : > { %v1742_v29 = vpop.f32.mrf.mxu1 }
  0xff   : > { %v1744_v30 = vpop.f32.mrf.mxu0 }
 0x100   : > { %v1746_v31 = vpop.f32.mrf.mxu1 }
 0x101   : > { %v1748_v32 = vpop.f32.mrf.mxu0 }
 0x102   : > { %v1750_v33 = vpop.f32.mrf.mxu1 }
 0x103   : > { %1917 = vst [vmem:[#allocation2_spill] sm:$0xff] %v1750_v33  ;;  %v1752_v34 = vpop.f32.mrf.mxu0  ;;  %v330_v33 = vld [vmem:[%s1796_s18 + $0x50] sm:$0xff] }
 0x104   : > { %v1754_v35 = vpop.f32.mrf.mxu1 }
 0x105   : > { %1918 = vst [vmem:[#allocation3_spill] sm:$0xff] %v1754_v35  ;;  %v1756_v36 = vpop.f32.mrf.mxu0  ;;  %v1276_v35 = vadd.f32 %v1275_v26, %v1274_v24  ;;  %v1334_v24 = vadd.f32 %v1730_v19, %v1728_v17 }
 0x106   : > { %v1758_v37 = vpop.f32.mrf.mxu1 }
 0x107   : > { %v1760_v38 = vpop.f32.mrf.mxu0 }
 0x108   : > { %v1762_v39 = vpop.f32.mrf.mxu1 }
 0x109   : > { %v1764_v40 = vpop.f32.mrf.mxu0 }
 0x10a   : > { %v1766_v41 = vpop.f32.mrf.mxu1 }
 0x10b   : > { %1919 = vst [vmem:[#allocation4_spill] sm:$0xff] %v1766_v41  ;;  %v1768_v42 = vpop.f32.mrf.mxu0  ;;  %v812_v41 = vadd.f32 %v1267_v2, %v320_v4  ;;  %v1279_v2 = vadd.f32 %v1744_v30, %v1740_v28 }
 0x10c   : > { %v1770_v43 = vpop.f32.mrf.mxu1 }
 0x10d   : > { %1920 = vst [vmem:[#allocation5_spill] sm:$0xff] %v1770_v43  ;;  %v1289_v44 = vpop.f32.mrf.mxu0 }
 0x10e   : > { %v1772_v45 = vpop.f32.mrf.mxu1 }
 0x10f   : > { %v1290_v46 = vpop.f32.mrf.mxu0 }
 0x110   : > { %v1774_v47 = vpop.f32.mrf.mxu1  ;;  %v1291_v12 = vadd.f32 %v1290_v46, %v1289_v44  ;;  %v1337_v44 = vadd.f32 %v1734_v23, %v1732_v21  ;;  %v1340_v21 = vadd.f32 %v1738_v27, %v1736_v25  ;;  %v1285_v23 = vadd.f32 %v1760_v38, %v1756_v36 }
 0x111   : > { %v1292_v48 = vpop.f32.mrf.mxu0  ;;  %v828_v36 = vadd.f32 %v1279_v2, %v324_v13 }
 0x112   : > { %v1776_v49 = vpop.f32.mrf.mxu1  ;;  %v844_v15 = vadd.f32 %v1291_v12, %v328_v18  ;;  %v917_v28 = vadd.f32 %v1337_v44, %v820_v16  ;;  %v1288_v12 = vadd.f32 %v1768_v42, %v1764_v40  ;;  %v332_v16 = vld [vmem:[%s1796_s18 + $0x60] sm:$0xff]  ;;  %v1282_v40 = vadd.f32 %v1752_v34, %v1748_v32  ;;  %v325_v44 = vld [vmem:[%s1796_s18 + $0x28] sm:$0xff] }
 0x113   : > { %v1293_v50 = vpop.f32.mrf.mxu0  ;;  %v1349_v42 = vadd.f32 %v1762_v39, %v1758_v37  ;;  %v1343_v39 = vadd.f32 %v1746_v31, %v1742_v29  ;;  %v1924_v29 = vld [vmem:[#allocation4_spill] sm:$0xff] }
 0x114   : > { %v1778_v51 = vpop.f32.mrf.mxu1  ;;  %v1294_v4 = vadd.f32 %v1293_v50, %v1292_v48  ;;  %v326_v48 = vld [vmem:[%s1796_s18 + $0x30] sm:$0xff]  ;;  %v1355_v50 = vadd.f32 %v1774_v47, %v1772_v45  ;;  %v1925_v31 = vld [vmem:[#allocation5_spill] sm:$0xff] }
 0x115   : > { %v1295_v52 = vpop.f32.mrf.mxu0 }
 0x116   : > { %v1359_v53 = vpop.f32.mrf.mxu1 }
 0x117   : > { %v1296_v54 = vpop.f32.mrf.mxu0 }
 0x118   : > { %v1360_v55 = vpop.f32.mrf.mxu1  ;;  %v1297_v10 = vadd.f32 %v1296_v54, %v1295_v52 }
 0x119   : > { %v1298_v56 = vpop.f32.mrf.mxu0  ;;  %v1361_v17 = vadd.f32 %v1360_v55, %v1359_v53 }
 0x11a   : > { %v1780_v57 = vpop.f32.mrf.mxu1  ;;  %v852_v26 = vadd.f32 %v1297_v10, %v330_v33  ;;  %v909_v33 = vadd.f32 %v1331_v22, %v812_v41  ;;  %v334_v41 = vld [vmem:[%s1796_s18 + $0x70] sm:$0xff]  ;;  %v941_v10 = vadd.f32 %v1355_v50, %v844_v15 }
 0x11b   : > { %v1299_v58 = vpop.f32.mrf.mxu0 }
 0x11c   : > { %v1782_v59 = vpop.f32.mrf.mxu1  ;;  %v1300_v52 = vadd.f32 %v1299_v58, %v1298_v56  ;;  %v949_v27 = vadd.f32 %v1361_v17, %v852_v26 }
 0x11d   : > { %v1784_v60 = vpop.f32.mrf.mxu0  ;;  %v1364_v45 = vadd.f32 %v1782_v59, %v1780_v57  ;;  %v327_v59 = vld [vmem:[%s1796_s18 + $0x38] sm:$0xff] }
 0x11e   : > { %v1787_v61 = vpop.f32.mrf.mxu1 }
 0x11f   : > { %v1302_v62 = vpop.f32.mrf.mxu0 }
 0x120   : > { %v1789_v63 = vpop.f32.mrf.mxu1  ;;  %v1303_v47 = vadd.f32 %v1302_v62, %v1784_v60 }
 0x121   : > { %1921 = vst [vmem:[#allocation6_spill] sm:$0xff] %v1789_v63  ;;  %v1798_v0 = vpop.f32.mrf.mxu0  ;;  %v323_v63 = vld [vmem:[%s1796_s18 + $0x18] sm:$0xff] }
 0x122   : > { %v1800_v1 = vpop.f32.mrf.mxu1  ;;  %v823_v46 = vadd.f32 %v1276_v35, %v323_v63 }
 0x123   : > { %1922 = vst [vmem:[#allocation7_spill] sm:$0xff] %v1800_v1  ;;  %v1802_v3 = vpop.f32.mrf.mxu0  ;;  %v815_v1 = vadd.f32 %v1270_v5, %v321_v8  ;;  %v331_v5 = vld [vmem:[%s1796_s18 + $0x58] sm:$0xff]  ;;  %v329_v8 = vld [vmem:[%s1796_s18 + $0x48] sm:$0xff] }
 0x124   : > { %v1805_v7 = vpop.f32.mrf.mxu1  ;;  %v855_v56 = vadd.f32 %v1300_v52, %v331_v5  ;;  %v847_v38 = vadd.f32 %v1294_v4, %v329_v8  ;;  %v920_v63 = vadd.f32 %v1340_v21, %v823_v46  ;;  %v860_v46 = vadd.f32 %v1303_v47, %v332_v16  ;;  %v333_v5 = vld [vmem:[%s1796_s18 + $0x68] sm:$0xff] }
 0x125   : > { %v1307_v11 = vpop.f32.mrf.mxu0  ;;  %v912_v30 = vadd.f32 %v1334_v24, %v815_v1  ;;  %v1306_v2 = vadd.f32 %v1802_v3, %v1798_v0  ;;  %v839_v4 = vadd.f32 %v1288_v12, %v327_v59  ;;  %v1352_v21 = vadd.f32 %v1925_v31, %v1924_v29 }
 0x126   : > { %v1810_v43 = vpop.f32.mrf.mxu1  ;;  %v952_v26 = vadd.f32 %v1364_v45, %v855_v56 }
 0x127   : > { %v1308_v14 = vpop.f32.mrf.mxu0 }
 0x128   : > { %v1814_v20 = vpop.f32.mrf.mxu1  ;;  %v1309_v58 = vadd.f32 %v1308_v14, %v1307_v11  ;;  %v836_v11 = vadd.f32 %v1285_v23, %v326_v48  ;;  %v1358_v14 = vadd.f32 %v1778_v51, %v1776_v49  ;;  %v335_v49 = vld [vmem:[%s1796_s18 + $0x78] sm:$0xff]  ;;  %v1923_v0 = vld [vmem:[#allocation6_spill] sm:$0xff]  ;;  %v863_v48 = vadd.f32 %v1306_v2, %v333_v5 }
 0x129   : > { %v1310_v54 = vpop.f32.mrf.mxu0  ;;  %v1373_v32 = vadd.f32 %v1814_v20, %v1810_v43  ;;  %v1367_v3 = vadd.f32 %v1923_v0, %v1787_v61 }
 0x12a   : > { %v1825_v6 = vpop.f32.mrf.mxu1  ;;  %v868_v60 = vadd.f32 %v1309_v58, %v334_v41  ;;  %v933_v8 = vadd.f32 %v1349_v42, %v836_v11 }
 0x12b   : > { %v1311_v19 = vpop.f32.mrf.mxu0  ;;  %v957_v58 = vadd.f32 %v1367_v3, %v860_v46 }
 0x12c   : > { %v1833_v35 = vpop.f32.mrf.mxu1  ;;  %v1312_v62 = vadd.f32 %v1311_v19, %v1310_v54  ;;  %v944_v54 = vadd.f32 %v1358_v14, %v847_v38  ;;  %v965_v19 = vadd.f32 %v1373_v32, %v868_v60 }
 0x12d   : > { %v1399_v25 = vpop.f32.mrf.mxu0  ;;  %v1376_v61 = vadd.f32 %v1833_v35, %v1825_v6 }
 0x12e   : > { %v1014_v53 = vadd.f32 %v1399_v25, %v917_v28  ;;  %v1407_v55 = vpop.f32.mrf.mxu1  ;;  %v871_v43 = vadd.f32 %v1312_v62, %v335_v49  ;;  %v1926_v25 = vld [vmem:[#allocation2_spill] sm:$0xff] }
 0x12f   : > { %v1046_v1 = vadd.f32 %v1407_v55, %v949_v27  ;;  %v1005_v9 = vpop.f32.mrf.mxu0  ;;  %v1927_v27 = vld [vmem:[#allocation3_spill] sm:$0xff] }
 0x130   : > { %1070 = vst.msk [vmem:[%s1843_s22 + $0x10] sm:$0xff] %vm752_vm0, %v1014_v53  ;;  %v1006_v18 = vadd.f32 %v1005_v9, %v909_v33  ;;  %v1037_v57 = vpop.f32.mrf.mxu1  ;;  %v831_v33 = vadd.f32 %v1282_v40, %v325_v44  ;;  %v1346_v38 = vadd.f32 %v1927_v27, %v1926_v25  ;;  %v1928_v55 = vld [vmem:[#allocation7_spill] sm:$0xff]  ;;  %v968_v45 = vadd.f32 %v1376_v61, %v871_v43 }
 0x131   : > { %1078 = vst.msk [vmem:[%s1843_s22 + $0x50] sm:$0xff] %vm752_vm0, %v1046_v1  ;;  %v1038_v22 = vadd.f32 %v1037_v57, %v941_v10  ;;  %v1400_v24 = vpop.f32.mrf.mxu0 }
 0x132   : > { %1068 = vst.msk [vmem:[%s1843_s22] sm:$0xff] %vm752_vm0, %v1006_v18  ;;  %v1017_v51 = vadd.f32 %v1400_v24, %v920_v63  ;;  %v1408_v52 = vpop.f32.mrf.mxu1  ;;  %v1370_v63 = vadd.f32 %v1805_v7, %v1928_v55  ;;  %v928_v9 = vadd.f32 %v1346_v38, %v831_v33 }
 0x133   : > { %1076 = vst.msk [vmem:[%s1843_s22 + $0x40] sm:$0xff] %vm752_vm0, %v1038_v22  ;;  %v1049_v34 = vadd.f32 %v1408_v52, %v952_v26  ;;  %v1008_v37 = vpop.f32.mrf.mxu0 }
 0x134   : > { %1071 = vst.msk [vmem:[%s1843_s22 + $0x18] sm:$0xff] %vm752_vm0, %v1017_v51  ;;  %v1009_v13 = vadd.f32 %v1008_v37, %v912_v30  ;;  %v1040_v15 = vpop.f32.mrf.mxu1  ;;  %v925_v30 = vadd.f32 %v1343_v39, %v828_v36  ;;  %v936_v36 = vadd.f32 %v1352_v21, %v839_v4  ;;  %v960_v12 = vadd.f32 %v1370_v63, %v863_v48 }
 0x135   : > { %1079 = vst.msk [vmem:[%s1843_s22 + $0x58] sm:$0xff] %vm752_vm0, %v1049_v34  ;;  %v1041_v20 = vadd.f32 %v1040_v15, %v944_v54  ;;  %v1403_v17 = vpop.f32.mrf.mxu0 }
 0x136   : > { %1069 = vst.msk [vmem:[%s1843_s22 + $0x8] sm:$0xff] %vm752_vm0, %v1009_v13  ;;  %v1030_v23 = vadd.f32 %v1403_v17, %v933_v8  ;;  %v1411_v28 = vpop.f32.mrf.mxu1 }
 0x137   : > { %1077 = vst.msk [vmem:[%s1843_s22 + $0x48] sm:$0xff] %vm752_vm0, %v1041_v20  ;;  %v1062_v50 = vadd.f32 %v1411_v28, %v965_v19  ;;  %v1021_v56 = vpop.f32.mrf.mxu0 }
 0x138   : > { %1074 = vst.msk [vmem:[%s1843_s22 + $0x30] sm:$0xff] %vm752_vm0, %v1030_v23  ;;  %v1022_v41 = vadd.f32 %v1021_v56, %v925_v30  ;;  %v1053_v53 = vpop.f32.mrf.mxu1 }
 0x139   : > { %1082 = vst.msk [vmem:[%s1843_s22 + $0x70] sm:$0xff] %vm752_vm0, %v1062_v50  ;;  %v1054_v6 = vadd.f32 %v1053_v53, %v957_v58  ;;  %v1404_v35 = vpop.f32.mrf.mxu0 }
 0x13a   : > { %1072 = vst.msk [vmem:[%s1843_s22 + $0x20] sm:$0xff] %vm752_vm0, %v1022_v41  ;;  %v1033_v47 = vadd.f32 %v1404_v35, %v936_v36  ;;  %v1412_v1 = vpop.f32.mrf.mxu1 }
 0x13b   : > { %1080 = vst.msk [vmem:[%s1843_s22 + $0x60] sm:$0xff] %vm752_vm0, %v1054_v6  ;;  %v1065_v10 = vadd.f32 %v1412_v1, %v968_v45  ;;  %v1024_v11 = vpop.f32.mrf.mxu0 }
 0x13c   : > { %1075 = vst.msk [vmem:[%s1843_s22 + $0x38] sm:$0xff] %vm752_vm0, %v1033_v47  ;;  %v1025_v7 = vadd.f32 %v1024_v11, %v928_v9  ;;  %v1056_v14 = vpop.f32.mrf.mxu1 }
 0x13d   : > { %1083 = vst.msk [vmem:[%s1843_s22 + $0x78] sm:$0xff] %vm752_vm0, %v1065_v10  ;;  %v1057_v16 = vadd.f32 %v1056_v14, %v960_v12 }
 0x13e   : > { %1073 = vst.msk [vmem:[%s1843_s22 + $0x28] sm:$0xff] %vm752_vm0, %v1025_v7 }
 0x13f   : > { %1081 = vst.msk [vmem:[%s1843_s22 + $0x68] sm:$0xff] %vm752_vm0, %v1057_v16 }
 0x140 PF: > { %s13_s12 = sadd.s32 1, %s1528_s12  }
 0x141   : > { %p10_p4 = scmp.ge.s32.totalorder %s13_s12, 6  }
 0x143   :  { %12 = sbr.rel (!%p10_p4) target bundleno = 1 (0x1), region = 65 }

// kernel: forward.46
= control target key start
LH: loop header
LB: loop body
LE: loop exit
PB: predicated region body
PF: predicated region fallthrough
CT: control target
= control target key end

     0   :  { %v48_v0 = vlaneseq  ;;  %s650_s1 = inlined_call_operand.vmem [shape: f32[1,1024], index: 1, kind: input, shape index: {}]   ;;  %s651_s2 = inlined_call_operand.vmem [shape: f32[1,1024], index: 2, kind: input, shape index: {}]   ;;  %s652_s0 = inlined_call_operand.vmem [shape: f32[32,1024], index: 0, kind: input, shape index: {}]   ;;  %s653_s3 = inlined_call_operand.vmem [shape: bf16[32,1024], index: 3, kind: output, shape index: {}]  }
   0x1   :  { %v46_v2 = vld [vmem:[%s650_s1] sm:$0xff]  ;;  %v15_v9 = vld [vmem:[%s652_s0 + $0x8] sm:$0xff]  ;;  %v16_v18 = vld [vmem:[%s652_s0 + $0x10] sm:$0xff] }
   0x2   :  { %v394_v1 = vshrl.u32 %v48_v0, 7  ;;  %v120_v3 = vld [vmem:[%s651_s2] sm:$0xff]  ;;  %v17_v19 = vld [vmem:[%s652_s0 + $0x18] sm:$0xff]  ;;  %v19_v25 = vld [vmem:[%s652_s0 + $0x28] sm:$0xff] }
   0x3   :  { %v14_v8 = vld [vmem:[%s652_s0] sm:$0xff]  ;;  %v20_v38 = vld [vmem:[%s652_s0 + $0x30] sm:$0xff]  ;;  %v21_v39 = vld [vmem:[%s652_s0 + $0x38] sm:$0xff] }
   0x4   :  { %v50_v4 = vsub.s32 0, %v394_v1  ;;  %v54_v5 = vsub.s32 1, %v394_v1  ;;  %v58_v6 = vsub.s32 2, %v394_v1  ;;  %v62_v7 = vsub.s32 3, %v394_v1  ;;  %v18_v24 = vld [vmem:[%s652_s0 + $0x20] sm:$0xff]  ;;  %v23_v49 = vld [vmem:[%s652_s0 + $0x48] sm:$0xff] }
   0x5   :  { %v66_v10 = vsub.s32 4, %v394_v1  ;;  %v70_v11 = vsub.s32 5, %v394_v1  ;;  %v74_v12 = vsub.s32 6, %v394_v1  ;;  %v78_v13 = vsub.s32 7, %v394_v1  ;;  %v22_v48 = vld [vmem:[%s652_s0 + $0x40] sm:$0xff]  ;;  %v24_v54 = vld [vmem:[%s652_s0 + $0x50] sm:$0xff] }
   0x6   :  { %v416_v14 = vrot.slane %v46_v2, %v50_v4  ;;  %v418_v15 = vrot.slane %v46_v2, %v54_v5  ;;  %v420_v16 = vrot.slane %v120_v3, %v50_v4  ;;  %v422_v17 = vrot.slane %v120_v3, %v54_v5  ;;  %v25_v55 = vld [vmem:[%s652_s0 + $0x58] sm:$0xff]  ;;  %v26_v60 = vld [vmem:[%s652_s0 + $0x60] sm:$0xff]  ;;  %v27_v1 = vld [vmem:[%s652_s0 + $0x68] sm:$0xff] }
   0x7   :  { %v430_v20 = vrot.slane %v46_v2, %v58_v6  ;;  %v432_v21 = vrot.slane %v46_v2, %v62_v7  ;;  %v434_v22 = vrot.slane %v120_v3, %v58_v6  ;;  %v436_v23 = vrot.slane %v120_v3, %v62_v7 }
   0x8   :  { %v88_v26 = vmul.f32 %v416_v14, %v14_v8  ;;  %v89_v27 = vmul.f32 %v418_v15, %v15_v9  ;;  %v446_v28 = vrot.slane %v46_v2, %v66_v10  ;;  %v448_v29 = vrot.slane %v46_v2, %v70_v11 }
   0x9   :  { %v90_v30 = vmul.f32 %v430_v20, %v16_v18  ;;  %v91_v31 = vmul.f32 %v432_v21, %v17_v19  ;;  %v452_v32 = vrot.slane %v120_v3, %v66_v10  ;;  %v454_v33 = vrot.slane %v120_v3, %v70_v11  ;;  %v28_v10 = vld [vmem:[%s652_s0 + $0x70] sm:$0xff]  ;;  %v29_v19 = vld [vmem:[%s652_s0 + $0x78] sm:$0xff] }
   0xa   :  { %v162_v34 = vadd.f32 %v420_v16, %v88_v26  ;;  %v163_v35 = vadd.f32 %v422_v17, %v89_v27  ;;  %v92_v36 = vmul.f32 %v446_v28, %v18_v24  ;;  %v93_v37 = vmul.f32 %v448_v29, %v19_v25 }
   0xb   :  { %v164_v40 = vadd.f32 %v434_v22, %v90_v30  ;;  %v165_v41 = vadd.f32 %v436_v23, %v91_v31  ;;  %v468_v42 = vrot.slane %v46_v2, %v74_v12  ;;  %v470_v43 = vrot.slane %v46_v2, %v78_v13  ;;  %v30_v30 = vld [vmem:[%s652_s0 + $0x80] sm:$0xff] }
   0xc   :  { %v194_v44 = vmax.f32 %v162_v34, 0.0  ;;  %v195_v45 = vmax.f32 %v163_v35, 0.0  ;;  %v166_v46 = vadd.f32 %v452_v32, %v92_v36  ;;  %v167_v47 = vadd.f32 %v454_v33, %v93_v37  ;;  %v31_v37 = vld [vmem:[%s652_s0 + $0x88] sm:$0xff] }
   0xd   :  { %v196_v50 = vmax.f32 %v164_v40, 0.0  ;;  %v197_v51 = vmax.f32 %v165_v41, 0.0  ;;  %v94_v52 = vmul.f32 %v468_v42, %v20_v38  ;;  %v95_v53 = vmul.f32 %v470_v43, %v21_v39  ;;  %v32_v38 = vld [vmem:[%s652_s0 + $0x90] sm:$0xff]  ;;  %v33_v39 = vld [vmem:[%s652_s0 + $0x98] sm:$0xff] }
   0xe   :  { %v358_v56 = vpack.c.bf16 %v195_v45, %v194_v44  ;;  %v198_v57 = vmax.f32 %v166_v46, 0.0  ;;  %v199_v58 = vmax.f32 %v167_v47, 0.0  ;;  %v488_v59 = vrot.slane %v120_v3, %v74_v12  ;;  %v34_v46 = vld [vmem:[%s652_s0 + $0xa0] sm:$0xff] }
   0xf   :  { %v359_v61 = vpack.c.bf16 %v197_v51, %v196_v50  ;;  %v493_v62 = vrot.slane %v120_v3, %v78_v13  ;;  %v96_v63 = vmul.f32 %v416_v14, %v22_v48  ;;  %v97_v0 = vmul.f32 %v418_v15, %v23_v49 }
  0x10   :  { %322 = vst [vmem:[%s653_s3] sm:$0xff] %v358_v56  ;;  %v360_v2 = vpack.c.bf16 %v199_v58, %v198_v57  ;;  %v168_v4 = vadd.f32 %v488_v59, %v94_v52  ;;  %v98_v5 = vmul.f32 %v430_v20, %v24_v54  ;;  %v99_v3 = vmul.f32 %v432_v21, %v25_v55  ;;  %v35_v55 = vld [vmem:[%s652_s0 + $0xa8] sm:$0xff]  ;;  %v36_v56 = vld [vmem:[%s652_s0 + $0xb0] sm:$0xff] }
  0x11   :  { %323 = vst [vmem:[%s653_s3 + $0x8] sm:$0xff] %v359_v61  ;;  %v169_v6 = vadd.f32 %v493_v62, %v95_v53  ;;  %v170_v7 = vadd.f32 %v420_v16, %v96_v63  ;;  %v171_v8 = vadd.f32 %v422_v17, %v97_v0  ;;  %v100_v9 = vmul.f32 %v446_v28, %v26_v60 }
  0x12   :  { %324 = vst [vmem:[%s653_s3 + $0x10] sm:$0xff] %v360_v2  ;;  %v200_v11 = vmax.f32 %v168_v4, 0.0  ;;  %v172_v12 = vadd.f32 %v434_v22, %v98_v5  ;;  %v173_v13 = vadd.f32 %v436_v23, %v99_v3  ;;  %v101_v18 = vmul.f32 %v448_v29, %v27_v1  ;;  %v37_v4 = vld [vmem:[%s652_s0 + $0xb8] sm:$0xff] }
  0x13   :  { %v201_v24 = vmax.f32 %v169_v6, 0.0  ;;  %v202_v25 = vmax.f32 %v170_v7, 0.0  ;;  %v203_v26 = vmax.f32 %v171_v8, 0.0  ;;  %v174_v27 = vadd.f32 %v452_v32, %v100_v9  ;;  %v38_v8 = vld [vmem:[%s652_s0 + $0xc0] sm:$0xff]  ;;  %v39_v9 = vld [vmem:[%s652_s0 + $0xc8] sm:$0xff] }
  0x14   :  { %v204_v31 = vmax.f32 %v172_v12, 0.0  ;;  %v205_v34 = vmax.f32 %v173_v13, 0.0  ;;  %v175_v35 = vadd.f32 %v454_v33, %v101_v18  ;;  %v102_v36 = vmul.f32 %v468_v42, %v28_v10  ;;  %v40_v18 = vld [vmem:[%s652_s0 + $0xd0] sm:$0xff] }
  0x15   :  { %v361_v40 = vpack.c.bf16 %v201_v24, %v200_v11  ;;  %v362_v41 = vpack.c.bf16 %v203_v26, %v202_v25  ;;  %v206_v44 = vmax.f32 %v174_v27, 0.0  ;;  %v103_v45 = vmul.f32 %v470_v43, %v29_v19  ;;  %v41_v27 = vld [vmem:[%s652_s0 + $0xd8] sm:$0xff] }
  0x16   :  { %v363_v47 = vpack.c.bf16 %v205_v34, %v204_v31  ;;  %v207_v48 = vmax.f32 %v175_v35, 0.0  ;;  %v176_v49 = vadd.f32 %v488_v59, %v102_v36  ;;  %v104_v50 = vmul.f32 %v416_v14, %v30_v30  ;;  %v42_v30 = vld [vmem:[%s652_s0 + $0xe0] sm:$0xff] }
  0x17   :  { %325 = vst [vmem:[%s653_s3 + $0x18] sm:$0xff] %v361_v40  ;;  %326 = vst [vmem:[%s653_s3 + $0x20] sm:$0xff] %v362_v41  ;;  %v177_v51 = vadd.f32 %v493_v62, %v103_v45  ;;  %v105_v52 = vmul.f32 %v418_v15, %v31_v37  ;;  %v106_v53 = vmul.f32 %v430_v20, %v32_v38  ;;  %v43_v37 = vld [vmem:[%s652_s0 + $0xe8] sm:$0xff] }
  0x18   :  { %v107_v54 = vmul.f32 %v432_v21, %v33_v39  ;;  %327 = vst [vmem:[%s653_s3 + $0x28] sm:$0xff] %v363_v47  ;;  %v364_v57 = vpack.c.bf16 %v207_v48, %v206_v44  ;;  %v208_v58 = vmax.f32 %v176_v49, 0.0  ;;  %v178_v60 = vadd.f32 %v420_v16, %v104_v50 }
  0x19   :  { %v108_v61 = vmul.f32 %v446_v28, %v34_v46  ;;  %v209_v63 = vmax.f32 %v177_v51, 0.0  ;;  %v179_v0 = vadd.f32 %v422_v17, %v105_v52  ;;  %v180_v1 = vadd.f32 %v434_v22, %v106_v53 }
  0x1a   :  { %v181_v2 = vadd.f32 %v436_v23, %v107_v54  ;;  %328 = vst [vmem:[%s653_s3 + $0x30] sm:$0xff] %v364_v57  ;;  %v210_v5 = vmax.f32 %v178_v60, 0.0  ;;  %v109_v3 = vmul.f32 %v448_v29, %v35_v55  ;;  %v110_v7 = vmul.f32 %v468_v42, %v36_v56 }
  0x1b   :  { %v182_v6 = vadd.f32 %v452_v32, %v108_v61  ;;  %v365_v10 = vpack.c.bf16 %v209_v63, %v208_v58  ;;  %v211_v11 = vmax.f32 %v179_v0, 0.0  ;;  %v212_v12 = vmax.f32 %v180_v1, 0.0 }
  0x1c   :  { %v213_v13 = vmax.f32 %v181_v2, 0.0  ;;  %v183_v19 = vadd.f32 %v454_v33, %v109_v3  ;;  %v111_v25 = vmul.f32 %v470_v43, %v37_v4  ;;  %v184_v26 = vadd.f32 %v488_v59, %v110_v7 }
  0x1d   :  { %v214_v24 = vmax.f32 %v182_v6, 0.0  ;;  %329 = vst [vmem:[%s653_s3 + $0x38] sm:$0xff] %v365_v10  ;;  %v366_v31 = vpack.c.bf16 %v211_v11, %v210_v5  ;;  %v112_v35 = vmul.f32 %v416_v14, %v38_v8  ;;  %v113_v36 = vmul.f32 %v418_v15, %v39_v9 }
  0x1e   :  { %v367_v34 = vpack.c.bf16 %v213_v13, %v212_v12  ;;  %v215_v38 = vmax.f32 %v183_v19, 0.0  ;;  %v185_v39 = vadd.f32 %v493_v62, %v111_v25  ;;  %v216_v40 = vmax.f32 %v184_v26, 0.0 }
  0x1f   :  { %v114_v41 = vmul.f32 %v430_v20, %v40_v18  ;;  %330 = vst [vmem:[%s653_s3 + $0x40] sm:$0xff] %v366_v31  ;;  %v186_v14 = vadd.f32 %v420_v16, %v112_v35  ;;  %v187_v15 = vadd.f32 %v422_v17, %v113_v36  ;;  %v115_v44 = vmul.f32 %v432_v21, %v41_v27  ;;  %v44_v20 = vld [vmem:[%s652_s0 + $0xf0] sm:$0xff]  ;;  %v45_v16 = vld [vmem:[%s652_s0 + $0xf8] sm:$0xff] }
  0x20   :  { %331 = vst [vmem:[%s653_s3 + $0x48] sm:$0xff] %v367_v34  ;;  %v116_v45 = vmul.f32 %v446_v28, %v42_v30  ;;  %v368_v46 = vpack.c.bf16 %v215_v38, %v214_v24  ;;  %v217_v47 = vmax.f32 %v185_v39, 0.0  ;;  %v117_v49 = vmul.f32 %v448_v29, %v43_v37 }
  0x21   :  { %v188_v48 = vadd.f32 %v434_v22, %v114_v41  ;;  %v218_v50 = vmax.f32 %v186_v14, 0.0  ;;  %v219_v17 = vmax.f32 %v187_v15, 0.0  ;;  %v189_v21 = vadd.f32 %v436_v23, %v115_v44 }
  0x22   :  { %v190_v28 = vadd.f32 %v452_v32, %v116_v45  ;;  %332 = vst [vmem:[%s653_s3 + $0x50] sm:$0xff] %v368_v46  ;;  %v369_v51 = vpack.c.bf16 %v217_v47, %v216_v40  ;;  %v191_v22 = vadd.f32 %v454_v33, %v117_v49  ;;  %v118_v29 = vmul.f32 %v468_v42, %v44_v20 }
  0x23   :  { %v220_v52 = vmax.f32 %v188_v48, 0.0  ;;  %v370_v53 = vpack.c.bf16 %v219_v17, %v218_v50  ;;  %v221_v54 = vmax.f32 %v189_v21, 0.0  ;;  %v119_v56 = vmul.f32 %v470_v43, %v45_v16 }
  0x24   :  { %v222_v55 = vmax.f32 %v190_v28, 0.0  ;;  %333 = vst [vmem:[%s653_s3 + $0x58] sm:$0xff] %v369_v51  ;;  %v223_v23 = vmax.f32 %v191_v22, 0.0  ;;  %v192_v32 = vadd.f32 %v488_v59, %v118_v29 }
  0x25   :  { %334 = vst [vmem:[%s653_s3 + $0x60] sm:$0xff] %v370_v53  ;;  %v371_v57 = vpack.c.bf16 %v221_v54, %v220_v52  ;;  %v193_v33 = vadd.f32 %v493_v62, %v119_v56 }
  0x26   :  { %v372_v42 = vpack.c.bf16 %v223_v23, %v222_v55  ;;  %v224_v58 = vmax.f32 %v192_v32, 0.0 }
  0x27   :  { %335 = vst [vmem:[%s653_s3 + $0x68] sm:$0xff] %v371_v57  ;;  %v225_v43 = vmax.f32 %v193_v33, 0.0 }
  0x28   :  { %336 = vst [vmem:[%s653_s3 + $0x70] sm:$0xff] %v372_v42 }
  0x29   :  { %v373_v60 = vpack.c.bf16 %v225_v43, %v224_v58 }
  0x2b   :  { %337 = vst [vmem:[%s653_s3 + $0x78] sm:$0xff] %v373_v60 }

// kernel: forward.56
= control target key start
LH: loop header
LB: loop body
LE: loop exit
PB: predicated region body
PF: predicated region fallthrough
CT: control target
= control target key end

     0   :  { %vm554_vm0 = vcmask 523264   ;;  %s1793_s1 = inlined_call_operand.vmem [shape: bf16[576,128], index: 1, kind: input, shape index: {}]   ;;  %s1794_s0 = inlined_call_operand.vmem [shape: bf16[128,576], index: 0, kind: input, shape index: {}]   ;;  %s1795_s2 = inlined_call_operand.vmem [shape: f32[1,128], index: 2, kind: input, shape index: {}]   ;;  %s1796_s3 = inlined_call_operand.vmem [shape: f32[1,128], index: 3, kind: input, shape index: {}]   ;;  %s1797_s4 = inlined_call_operand.vmem [shape: bf16[128,128], index: 4, kind: output, shape index: {}]  }
   0x1   :  { %v1353_v0 = vld [vmem:[%s1793_s1 + $0x78] sm:$0xff]   ;;  %v1357_v4 = vld [vmem:[%s1793_s1 + $0x70] sm:$0xff]   ;;  %v1361_v8 = vld [vmem:[%s1793_s1 + $0x68] sm:$0xff]  }
   0x2   :  { %v1354_v1 = vld [vmem:[%s1793_s1 + $0xf8] sm:$0xff]   ;;  %1181 = vmatprep.subr.bf16.mxu0 %v1353_v0  ;;  %v1358_v5 = vld [vmem:[%s1793_s1 + $0xf0] sm:$0xff]   ;;  %v1362_v9 = vld [vmem:[%s1793_s1 + $0xe8] sm:$0xff]  }
   0x3   :  { %v1355_v2 = vld [vmem:[%s1793_s1 + $0x38] sm:$0xff]   ;;  %1245 = vmatprep.subr.bf16.mxu1 %v1354_v1  ;;  %v1359_v6 = vld [vmem:[%s1793_s1 + $0x30] sm:$0xff]   ;;  %v1363_v10 = vld [vmem:[%s1793_s1 + $0x28] sm:$0xff]  }
   0x4   :  { %v1356_v3 = vld [vmem:[%s1793_s1 + $0xb8] sm:$0xff]   ;;  %1182 = vmatpush3.bf16.msra.mxu0 %v1355_v2  ;;  %v1360_v7 = vld [vmem:[%s1793_s1 + $0xb0] sm:$0xff]   ;;  %v1364_v11 = vld [vmem:[%s1793_s1 + $0xa8] sm:$0xff]  }
   0x5   :  { %1246 = vmatpush3.bf16.msra.mxu1 %v1356_v3  ;;  %1183 = vmatprep.subr.bf16.mxu0 %v1357_v4  ;;  %v1365_v12 = vld [vmem:[%s1793_s1 + $0x60] sm:$0xff]   ;;  %v1369_v16 = vld [vmem:[%s1793_s1 + $0x58] sm:$0xff]   ;;  %v1373_v20 = vld [vmem:[%s1793_s1 + $0x50] sm:$0xff]  }
   0x6   :  { %1247 = vmatprep.subr.bf16.mxu1 %v1358_v5  ;;  %v1366_v13 = vld [vmem:[%s1793_s1 + $0xe0] sm:$0xff]   ;;  %v1370_v17 = vld [vmem:[%s1793_s1 + $0xd8] sm:$0xff]   ;;  %v1374_v21 = vld [vmem:[%s1793_s1 + $0xd0] sm:$0xff]  }
   0x7   :  { %v1367_v14 = vld [vmem:[%s1793_s1 + $0x20] sm:$0xff]   ;;  %v1371_v18 = vld [vmem:[%s1793_s1 + $0x18] sm:$0xff]   ;;  %v1375_v22 = vld [vmem:[%s1793_s1 + $0x10] sm:$0xff]  }
   0x8   :  { %1184 = vmatpush3.bf16.msra.mxu0 %v1359_v6  ;;  %v1368_v15 = vld [vmem:[%s1793_s1 + $0xa0] sm:$0xff]   ;;  %v1372_v19 = vld [vmem:[%s1793_s1 + $0x98] sm:$0xff]   ;;  %v1376_v23 = vld [vmem:[%s1793_s1 + $0x90] sm:$0xff]  }
   0x9   :  { %1248 = vmatpush3.bf16.msra.mxu1 %v1360_v7  ;;  %1185 = vmatprep.subr.bf16.mxu0 %v1361_v8  ;;  %v1377_v24 = vld [vmem:[%s1793_s1 + $0x48] sm:$0xff]   ;;  %v1381_v28 = vld [vmem:[%s1793_s1 + $0x40] sm:$0xff]   ;;  %v1391_v36 = vld [vmem:[%s1793_s1 + $0x118] sm:$0xff]  }
   0xa   :  { %1249 = vmatprep.subr.bf16.mxu1 %v1362_v9  ;;  %v1378_v25 = vld [vmem:[%s1793_s1 + $0xc8] sm:$0xff]   ;;  %v1382_v29 = vld [vmem:[%s1793_s1 + $0xc0] sm:$0xff]   ;;  %v1404_v42 = vld [vmem:[%s1793_s1 + $0x110] sm:$0xff]  }
   0xb   :  { %v1379_v26 = vld [vmem:[%s1793_s1 + $0x8] sm:$0xff]   ;;  %v1383_v30 = vld [vmem:[%s1793_s1] sm:$0xff]   ;;  %v1400_v43 = vld [vmem:[%s1794_s0 + $0x5c] ss:$20 sps:$4 sm:$0xff]  }
   0xc   :  { %1186 = vmatpush3.bf16.msra.mxu0 %v1363_v10  ;;  %v1380_v27 = vld [vmem:[%s1793_s1 + $0x88] sm:$0xff]   ;;  %v1384_v31 = vld [vmem:[%s1793_s1 + $0x80] sm:$0xff]   ;;  %v1405_v47 = vld [vmem:[%s1794_s0 + $0x7c] ss:$20 sps:$4 sm:$0xff]  }
   0xd   :  { %1250 = vmatpush3.bf16.msra.mxu1 %v1364_v11  ;;  %1187 = vmatprep.subr.bf16.mxu0 %v1365_v12  ;;  %v1385_v32 = vld [vmem:[%s1794_s0] ss:$20 sps:$4 sm:$0xff]   ;;  %v1387_v33 = vld [vmem:[%s1794_s0 + $0x4] ss:$20 sps:$4 sm:$0xff]   ;;  %v1388_v34 = vld [vmem:[%s1794_s0 + $0x8] ss:$20 sps:$4 sm:$0xff]  }
   0xe   :  { %1251 = vmatprep.subr.bf16.mxu1 %v1366_v13  ;;  %v1390_v35 = vld [vmem:[%s1794_s0 + $0xc] ss:$20 sps:$4 sm:$0xff]   ;;  %611 = vmatprep.mubr.bf16.mxu0 %v1387_v33  ;;  %v1394_v38 = vld [vmem:[%s1794_s0 + $0x34] ss:$20 sps:$4 sm:$0xff]   ;;  %v1397_v40 = vld [vmem:[%s1794_s0 + $0x30] ss:$20 sps:$4 sm:$0xff]  }
   0xf   :  { %708 = vmatprep.mubr.bf16.mxu1 %v1390_v35  ;;  %v1392_v37 = vld [vmem:[%s1794_s0 + $0x2c] ss:$20 sps:$4 sm:$0xff]   ;;  %v1396_v39 = vld [vmem:[%s1794_s0 + $0x28] ss:$20 sps:$4 sm:$0xff]   ;;  %v1402_v44 = vld [vmem:[%s1794_s0 + $0x50] ss:$20 sps:$4 sm:$0xff]  }
  0x10   :  { %1188 = vmatpush3.bf16.msra.mxu0 %v1367_v14  ;;  %v1398_v41 = vld [vmem:[%s1794_s0 + $0x54] ss:$20 sps:$4 sm:$0xff]   ;;  %v1403_v45 = vld [vmem:[%s1794_s0 + $0x58] ss:$20 sps:$4 sm:$0xff]   ;;  %v1430_v49 = vld [vmem:[%s1793_s1 + $0x100] sm:$0xff]  }
  0x11   :  { %1252 = vmatpush3.bf16.msra.mxu1 %v1368_v15  ;;  %1189 = vmatprep.subr.bf16.mxu0 %v1369_v16  ;;  %v1417_v46 = vld [vmem:[%s1793_s1 + $0x108] sm:$0xff]   ;;  %v1407_v48 = vld [vmem:[%s1794_s0 + $0x84] ss:$20 sps:$4 sm:$0xff]   ;;  %v1410_v51 = vld [vmem:[%s1794_s0 + $0x80] ss:$20 sps:$4 sm:$0xff]  }
  0x12   :  { %1253 = vmatprep.subr.bf16.mxu1 %v1370_v17  ;;  %v1409_v50 = vld [vmem:[%s1794_s0 + $0x78] ss:$20 sps:$4 sm:$0xff]   ;;  %v1415_v54 = vld [vmem:[%s1794_s0 + $0xa0] ss:$20 sps:$4 sm:$0xff]   ;;  %v1416_v55 = vld [vmem:[%s1794_s0 + $0xa8] ss:$20 sps:$4 sm:$0xff]  }
  0x13   :  { %v1411_v52 = vld [vmem:[%s1794_s0 + $0xa4] ss:$20 sps:$4 sm:$0xff]   ;;  %v1413_v53 = vld [vmem:[%s1794_s0 + $0xac] ss:$20 sps:$4 sm:$0xff]   ;;  %v1420_v57 = vld [vmem:[%s1794_s0 + $0xd4] ss:$20 sps:$4 sm:$0xff]  }
  0x14   :  { %1190 = vmatpush3.bf16.msra.mxu0 %v1371_v18  ;;  %v1418_v56 = vld [vmem:[%s1794_s0 + $0xcc] ss:$20 sps:$4 sm:$0xff]   ;;  %v1422_v58 = vld [vmem:[%s1794_s0 + $0xc8] ss:$20 sps:$4 sm:$0xff]   ;;  %v1423_v59 = vld [vmem:[%s1794_s0 + $0xd0] ss:$20 sps:$4 sm:$0xff]  }
  0x15   :  { %1254 = vmatpush3.bf16.msra.mxu1 %v1372_v19  ;;  %1191 = vmatprep.subr.bf16.mxu0 %v1373_v20  ;;  %v1424_v60 = vld [vmem:[%s1794_s0 + $0xf4] ss:$20 sps:$4 sm:$0xff]   ;;  %v1426_v61 = vld [vmem:[%s1794_s0 + $0xfc] ss:$20 sps:$4 sm:$0xff]   ;;  %v1429_v63 = vld [vmem:[%s1794_s0 + $0xf8] ss:$20 sps:$4 sm:$0xff]  }
  0x16   :  { %1255 = vmatprep.subr.bf16.mxu1 %v1374_v21  ;;  %v1428_v62 = vld [vmem:[%s1794_s0 + $0xf0] ss:$20 sps:$4 sm:$0xff]   ;;  %v1435_v2 = vld [vmem:[%s1794_s0 + $0x118] ss:$20 sps:$4 sm:$0xff]   ;;  %v1436_v3 = vld [vmem:[%s1794_s0 + $0x120] ss:$20 sps:$4 sm:$0xff]  }
  0x17   :  { %v1431_v0 = vld [vmem:[%s1794_s0 + $0x11c] ss:$20 sps:$4 sm:$0xff]   ;;  %v1433_v1 = vld [vmem:[%s1794_s0 + $0x124] ss:$20 sps:$4 sm:$0xff]   ;;  %v1441_v8 = vld [vmem:[%s1794_s0 + $0x60] ss:$20 sps:$4 sm:$0xff]  }
  0x18   :  { %1192 = vmatpush3.bf16.msra.mxu0 %v1375_v22  ;;  %v1437_v4 = vld [vmem:[%s1794_s0 + $0x10] ss:$20 sps:$4 sm:$0xff]   ;;  %v1439_v6 = vld [vmem:[%s1794_s0 + $0x38] ss:$20 sps:$4 sm:$0xff]   ;;  %v1442_v9 = vld [vmem:[%s1794_s0 + $0x100] ss:$20 sps:$4 sm:$0xff]  }
  0x19   :  { %1256 = vmatpush3.bf16.msra.mxu1 %v1376_v23  ;;  %1193 = vmatprep.subr.bf16.mxu0 %v1377_v24  ;;  %v1438_v5 = vld [vmem:[%s1794_s0 + $0xb0] ss:$20 sps:$4 sm:$0xff]   ;;  %v1440_v7 = vld [vmem:[%s1794_s0 + $0xd8] ss:$20 sps:$4 sm:$0xff]   ;;  %v1443_v10 = vld [vmem:[%s1794_s0 + $0x88] ss:$20 sps:$4 sm:$0xff]  }
  0x1a   :  { %1257 = vmatprep.subr.bf16.mxu1 %v1378_v25  ;;  %v1444_v11 = vld [vmem:[%s1794_s0 + $0x128] ss:$20 sps:$4 sm:$0xff]  }
  0x1c   :  { %1194 = vmatpush3.bf16.msra.mxu0 %v1379_v26 }
  0x1d   :  { %1258 = vmatpush3.bf16.msra.mxu1 %v1380_v27  ;;  %1195 = vmatprep.subr.bf16.mxu0 %v1381_v28 }
  0x1e   :  { %1259 = vmatprep.subr.bf16.mxu1 %v1382_v29 }
  0x20   :  { %1196 = vmatpush3.bf16.msra.mxu0 %v1383_v30 }
  0x21   :  { %1260 = vmatpush3.bf16.msra.mxu1 %v1384_v31  ;;  %1321 = vmatprep.subr.bf16.mxu0 %v1391_v36 }
  0x22   :  { %1345 = vmatprep.subr.bf16.mxu1 %v1391_v36 }
  0x23   :  { %612 = vmatmul.mubr.bf16.vlgmr.msra.gmra.mxu0 %v1385_v32 }
  0x24   :  { %709 = vmatmul.mubr.bf16.vlgmr.msra.gmra.mxu1 %v1388_v34  ;;  %1322 = vmatpush3.bf16.msra.mxu0 %v1391_v36 }
  0x25   :  { %1349 = vmatpush3.bf16.msra.mxu1 %v1391_v36  ;;  %619 = vmatprep.mubr.bf16.mxu0 %v1392_v37 }
  0x26   :  { %716 = vmatprep.mubr.bf16.mxu1 %v1394_v38  ;;  %1323 = vmatprep.subr.bf16.mxu0 %v1404_v42 }
  0x27   :  { %1346 = vmatprep.subr.bf16.mxu1 %v1404_v42 }
  0x28   :  { %1324 = vmatpush3.bf16.msra.mxu0 %v1404_v42 }
  0x29   :  { %1350 = vmatpush3.bf16.msra.mxu1 %v1404_v42  ;;  %1325 = vmatprep.subr.bf16.mxu0 %v1417_v46 }
  0x2a   :  { %1347 = vmatprep.subr.bf16.mxu1 %v1417_v46 }
  0x2b   :  { %620 = vmatmul.mubr.bf16.gmra.mxu0 %v1396_v39 }
  0x2c   :  { %717 = vmatmul.mubr.bf16.gmra.mxu1 %v1397_v40  ;;  %627 = vmatprep.mubr.bf16.mxu0 %v1398_v41 }
  0x2d   :  { %724 = vmatprep.mubr.bf16.mxu1 %v1400_v43  ;;  %1326 = vmatpush3.bf16.msra.mxu0 %v1417_v46 }
  0x2e   :  { %1351 = vmatpush3.bf16.msra.mxu1 %v1417_v46  ;;  %1327 = vmatprep.subr.bf16.mxu0 %v1430_v49 }
  0x2f   :  { %1348 = vmatprep.subr.bf16.mxu1 %v1430_v49 }
  0x31   :  { %1328 = vmatpush3.bf16.msra.mxu0 %v1430_v49 }
  0x32   :  { %1352 = vmatpush3.bf16.msra.mxu1 %v1430_v49 }
  0x33   :  { %628 = vmatmul.mubr.bf16.gmra.mxu0 %v1402_v44 }
  0x34   :  { %725 = vmatmul.mubr.bf16.gmra.mxu1 %v1403_v45  ;;  %635 = vmatprep.mubr.bf16.mxu0 %v1405_v47 }
  0x35   :  { %732 = vmatprep.mubr.bf16.mxu1 %v1407_v48 }
  0x3b   :  { %636 = vmatmul.mubr.bf16.gmra.mxu0 %v1409_v50 }
  0x3c   :  { %733 = vmatmul.mubr.bf16.gmra.mxu1 %v1410_v51  ;;  %643 = vmatprep.mubr.bf16.mxu0 %v1411_v52 }
  0x3d   :  { %740 = vmatprep.mubr.bf16.mxu1 %v1413_v53 }
  0x43   :  { %644 = vmatmul.mubr.bf16.gmra.mxu0 %v1415_v54 }
  0x44   :  { %741 = vmatmul.mubr.bf16.gmra.mxu1 %v1416_v55  ;;  %651 = vmatprep.mubr.bf16.mxu0 %v1418_v56 }
  0x45   :  { %748 = vmatprep.mubr.bf16.mxu1 %v1420_v57 }
  0x4b   :  { %652 = vmatmul.mubr.bf16.gmra.mxu0 %v1422_v58 }
  0x4c   :  { %749 = vmatmul.mubr.bf16.gmra.mxu1 %v1423_v59  ;;  %659 = vmatprep.mubr.bf16.mxu0 %v1424_v60 }
  0x4d   :  { %756 = vmatprep.mubr.bf16.mxu1 %v1426_v61 }
  0x53   :  { %660 = vmatmul.mubr.bf16.gmra.mxu0 %v1428_v62 }
  0x54   :  { %757 = vmatmul.mubr.bf16.gmra.mxu1 %v1429_v63  ;;  %667 = vmatprep.mubr.bf16.mxu0 %v1431_v0 }
  0x55   :  { %764 = vmatprep.mubr.bf16.mxu1 %v1433_v1 }
  0x5b   :  { %668 = vmatmul.mubr.bf16.gmra.mxu0 %v1435_v2 }
  0x5c   :  { %765 = vmatmul.mubr.bf16.gmra.mxu1 %v1436_v3  ;;  %1329 = vmatprep.mubr.msk.bf16.mxu0 %vm554_vm0, %v1437_v4 }
  0x5d   :  { %1337 = vmatprep.mubr.msk.bf16.mxu1 %vm554_vm0, %v1438_v5 }
  0x63   :  { %1330 = vmatmul.mubr.msk.bf16.vlgmr.msra.gmra.mxu0 %vm554_vm0, %v1439_v6 }
  0x64   :  { %1338 = vmatmul.mubr.msk.bf16.vlgmr.msra.gmra.mxu1 %vm554_vm0, %v1440_v7  ;;  %1333 = vmatprep.mubr.msk.bf16.mxu0 %vm554_vm0, %v1441_v8 }
  0x65   :  { %1341 = vmatprep.mubr.msk.bf16.mxu1 %vm554_vm0, %v1442_v9 }
  0x6b   :  { %1334 = vmatmul.mubr.msk.bf16.gmra.mxu0 %vm554_vm0, %v1443_v10 }
  0x6c   :  { %1342 = vmatmul.mubr.msk.bf16.gmra.mxu1 %vm554_vm0, %v1444_v11 }
  0xe3   :  { %v1197_v12 = vpop.f32.mrf.mxu0 }
  0xe4   :  { %v1261_v13 = vpop.f32.mrf.mxu1 }
  0xe5   :  { %v1198_v14 = vpop.f32.mrf.mxu0 }
  0xe6   :  { %v1199_v15 = vadd.f32 %v1198_v14, %v1197_v12  ;;  %v1262_v16 = vpop.f32.mrf.mxu1 }
  0xe7   :  { %v1263_v17 = vadd.f32 %v1262_v16, %v1261_v13  ;;  %v1200_v18 = vpop.f32.mrf.mxu0 }
  0xe8   :  { %v1264_v19 = vpop.f32.mrf.mxu1 }
  0xe9   :  { %v1201_v20 = vpop.f32.mrf.mxu0  ;;  %v1706_v21 = vadd.f32 %v1263_v17, %v1199_v15 }
  0xea   :  { %v1265_v22 = vpop.f32.mrf.mxu1  ;;  %v1202_v8 = vadd.f32 %v1201_v20, %v1200_v18 }
  0xeb   :  { %1798 = vst [vmem:[#allocation2_spill] sm:$0xff] %v1706_v21  ;;  %v1203_v23 = vpop.f32.mrf.mxu0  ;;  %v1266_v9 = vadd.f32 %v1265_v22, %v1264_v19 }
  0xec   :  { %v1267_v24 = vpop.f32.mrf.mxu1 }
  0xed   :  { %v1204_v25 = vpop.f32.mrf.mxu0 }
  0xee   :  { %v1268_v26 = vpop.f32.mrf.mxu1  ;;  %v1205_v11 = vadd.f32 %v1204_v25, %v1203_v23 }
  0xef   :  { %v1206_v27 = vpop.f32.mrf.mxu0  ;;  %v1269_v12 = vadd.f32 %v1268_v26, %v1267_v24 }
  0xf0   :  { %v1270_v28 = vpop.f32.mrf.mxu1 }
  0xf1   :  { %v1207_v29 = vpop.f32.mrf.mxu0 }
  0xf2   :  { %v1271_v30 = vpop.f32.mrf.mxu1  ;;  %v1208_v13 = vadd.f32 %v1207_v29, %v1206_v27 }
  0xf3   :  { %v1209_v31 = vpop.f32.mrf.mxu0  ;;  %v1272_v14 = vadd.f32 %v1271_v30, %v1270_v28 }
  0xf4   :  { %v1273_v32 = vpop.f32.mrf.mxu1 }
  0xf5   :  { %v1210_v33 = vpop.f32.mrf.mxu0 }
  0xf6   :  { %v1274_v34 = vpop.f32.mrf.mxu1  ;;  %v1211_v16 = vadd.f32 %v1210_v33, %v1209_v31 }
  0xf7   :  { %v1212_v35 = vpop.f32.mrf.mxu0  ;;  %v1275_v17 = vadd.f32 %v1274_v34, %v1273_v32  ;;  %v719_v32 = vadd.f32 %v1269_v12, %v1205_v11  ;;  %v722_v34 = vadd.f32 %v1272_v14, %v1208_v13 }
  0xf8   :  { %v1276_v36 = vpop.f32.mrf.mxu1 }
  0xf9   :  { %v1213_v37 = vpop.f32.mrf.mxu0 }
  0xfa   :  { %v1277_v38 = vpop.f32.mrf.mxu1  ;;  %v1214_v21 = vadd.f32 %v1213_v37, %v1212_v35  ;;  %v714_v35 = vadd.f32 %v1266_v9, %v1202_v8  ;;  %v1719_v37 = vld [vmem:[%s1795_s2] ss:$0 sm:$0xff] }
  0xfb   :  { %v1215_v39 = vpop.f32.mrf.mxu0 }
  0xfc   :  { %v1279_v40 = vpop.f32.mrf.mxu1 }
  0xfd   :  { %v1216_v41 = vpop.f32.mrf.mxu0 }
  0xfe   :  { %v1280_v42 = vpop.f32.mrf.mxu1 }
  0xff   :  { %v1218_v43 = vpop.f32.mrf.mxu0 }
 0x100   :  { %v1282_v44 = vpop.f32.mrf.mxu1 }
 0x101   :  { %v1219_v45 = vpop.f32.mrf.mxu0 }
 0x102   :  { %v1283_v46 = vpop.f32.mrf.mxu1  ;;  %v1220_v22 = vadd.f32 %v1219_v45, %v1218_v43 }
 0x103   :  { %v1221_v47 = vpop.f32.mrf.mxu0  ;;  %v1284_v23 = vadd.f32 %v1283_v46, %v1282_v44 }
 0x104   :  { %v1285_v48 = vpop.f32.mrf.mxu1 }
 0x105   :  { %v1222_v49 = vpop.f32.mrf.mxu0  ;;  %v1723_v46 = vadd.f32 %v1284_v23, %v1220_v22 }
 0x106   :  { %v1286_v50 = vpop.f32.mrf.mxu1  ;;  %v1223_v25 = vadd.f32 %v1222_v49, %v1221_v47 }
 0x107   :  { %v1224_v51 = vpop.f32.mrf.mxu0  ;;  %v1287_v24 = vadd.f32 %v1286_v50, %v1285_v48 }
 0x108   :  { %v1288_v52 = vpop.f32.mrf.mxu1 }
 0x109   :  { %v1225_v53 = vpop.f32.mrf.mxu0  ;;  %v743_v49 = vadd.f32 %v1287_v24, %v1223_v25 }
 0x10a   :  { %v1289_v54 = vpop.f32.mrf.mxu1  ;;  %v1226_v27 = vadd.f32 %v1225_v53, %v1224_v51 }
 0x10b   :  { %v1227_v55 = vpop.f32.mrf.mxu0  ;;  %v1290_v29 = vadd.f32 %v1289_v54, %v1288_v52 }
 0x10c   :  { %v1291_v56 = vpop.f32.mrf.mxu1 }
 0x10d   :  { %v1228_v57 = vpop.f32.mrf.mxu0  ;;  %v746_v51 = vadd.f32 %v1290_v29, %v1226_v27 }
 0x10e   :  { %v1292_v58 = vpop.f32.mrf.mxu1  ;;  %v1229_v18 = vadd.f32 %v1228_v57, %v1227_v55  ;;  %v1803_v55 = vld [vmem:[#allocation2_spill] sm:$0xff] }
 0x10f   :  { %v1230_v59 = vpop.f32.mrf.mxu0  ;;  %v1293_v20 = vadd.f32 %v1292_v58, %v1291_v56 }
 0x110   :  { %v1294_v60 = vpop.f32.mrf.mxu1 }
 0x111   :  { %v1231_v61 = vpop.f32.mrf.mxu0 }
 0x112   :  { %v1295_v62 = vpop.f32.mrf.mxu1  ;;  %v1232_v28 = vadd.f32 %v1231_v61, %v1230_v59 }
 0x113   :  { %v1233_v63 = vpop.f32.mrf.mxu0  ;;  %v1296_v30 = vadd.f32 %v1295_v62, %v1294_v60 }
 0x114   :  { %v1297_v0 = vpop.f32.mrf.mxu1 }
 0x115   :  { %v1234_v1 = vpop.f32.mrf.mxu0  ;;  %v754_v50 = vadd.f32 %v1296_v30, %v1232_v28 }
 0x116   :  { %v1298_v2 = vpop.f32.mrf.mxu1 }
 0x117   :  { %v1708_v3 = vpop.f32.mrf.mxu0  ;;  %v1299_v43 = vadd.f32 %v1298_v2, %v1297_v0 }
 0x118   :  { %1799 = vst [vmem:[#allocation3_spill] sm:$0xff] %v1708_v3  ;;  %v1710_v4 = vpop.f32.mrf.mxu1  ;;  %v1278_v3 = vadd.f32 %v1277_v38, %v1276_v36  ;;  %v751_v38 = vadd.f32 %v1293_v20, %v1229_v18 }
 0x119   :  { %1800 = vst [vmem:[#allocation4_spill] sm:$0xff] %v1710_v4  ;;  %v1712_v5 = vpop.f32.mrf.mxu0 }
 0x11a   :  { %1801 = vst [vmem:[#allocation5_spill] sm:$0xff] %v1712_v5  ;;  %v1714_v6 = vpop.f32.mrf.mxu1  ;;  %v1217_v5 = vadd.f32 %v1216_v41, %v1215_v39  ;;  %v1721_v41 = vadd.f32 %v1278_v3, %v1214_v21  ;;  %v1729_v21 = vld [vmem:[%s1796_s3] ss:$0 sm:$0xff] }
 0x11b   :  { %1802 = vst [vmem:[#allocation6_spill] sm:$0xff] %v1714_v6  ;;  %v1239_v7 = vpop.f32.mrf.mxu0  ;;  %v1281_v6 = vadd.f32 %v1280_v42, %v1279_v40  ;;  %v727_v40 = vadd.f32 %v1275_v17, %v1211_v16  ;;  %v1235_v42 = vadd.f32 %v1234_v1, %v1233_v63 }
 0x11c   :  { %v1303_v10 = vpop.f32.mrf.mxu1 }
 0x11d   :  { %v1240_v15 = vpop.f32.mrf.mxu0  ;;  %v735_v39 = vadd.f32 %v1281_v6, %v1217_v5  ;;  %v759_v5 = vadd.f32 %v1299_v43, %v1235_v42 }
 0x11e   :  { %v1304_v4 = vpop.f32.mrf.mxu1  ;;  %v1241_v52 = vadd.f32 %v1240_v15, %v1239_v7 }
 0x11f   :  { %v1242_v19 = vpop.f32.mrf.mxu0  ;;  %v1305_v53 = vadd.f32 %v1304_v4, %v1303_v10  ;;  %v1804_v63 = vld [vmem:[#allocation3_spill] sm:$0xff] }
 0x120   :  { %v1306_v26 = vpop.f32.mrf.mxu1  ;;  %v1806_v6 = vld [vmem:[#allocation4_spill] sm:$0xff] }
 0x121   :  { %v1243_v31 = vpop.f32.mrf.mxu0  ;;  %v1805_v0 = vld [vmem:[#allocation5_spill] sm:$0xff]  ;;  %v767_v17 = vadd.f32 %v1305_v53, %v1241_v52 }
 0x122   :  { %v1307_v33 = vpop.f32.mrf.mxu1  ;;  %v1244_v58 = vadd.f32 %v1243_v31, %v1242_v19  ;;  %v1238_v1 = vadd.f32 %v1805_v0, %v1804_v63  ;;  %v1807_v7 = vld [vmem:[#allocation6_spill] sm:$0xff] }
 0x123   :  { %v1331_v36 = vpop.f32.mrf.mxu0  ;;  %v1308_v59 = vadd.f32 %v1307_v33, %v1306_v26  ;;  %v1302_v8 = vadd.f32 %v1807_v7, %v1806_v6 }
 0x124   :  { %v816_v44 = vadd.f32 %v1331_v36, %v719_v32  ;;  %v1339_v45 = vpop.f32.mrf.mxu1 }
 0x125   :  { %v848_v47 = vadd.f32 %v1339_v45, %v751_v38  ;;  %v807_v48 = vpop.f32.mrf.mxu0  ;;  %v770_v23 = vadd.f32 %v1308_v59, %v1244_v58 }
 0x126   :  { %v879_v54 = vmul.f32 %v1719_v37, %v816_v44  ;;  %v808_v56 = vadd.f32 %v807_v48, %v1803_v55  ;;  %v839_v57 = vpop.f32.mrf.mxu1 }
 0x127   :  { %v887_v60 = vmul.f32 %v1719_v37, %v848_v47  ;;  %v840_v61 = vadd.f32 %v839_v57, %v743_v49  ;;  %v1332_v62 = vpop.f32.mrf.mxu0 }
 0x128   :  { %v877_v2 = vmul.f32 %v1719_v37, %v808_v56  ;;  %v819_v3 = vadd.f32 %v1332_v62, %v722_v34  ;;  %v1340_v4 = vpop.f32.mrf.mxu1  ;;  %v902_v9 = vadd.f32 %v1729_v21, %v879_v54 }
 0x129   :  { %v885_v10 = vmul.f32 %v1719_v37, %v840_v61  ;;  %v851_v11 = vadd.f32 %v1340_v4, %v754_v50  ;;  %v810_v12 = vpop.f32.mrf.mxu0  ;;  %v910_v13 = vadd.f32 %v1729_v21, %v887_v60  ;;  %v762_v60 = vadd.f32 %v1302_v8, %v1238_v1 }
 0x12a   :  { %v880_v14 = vmul.f32 %v1719_v37, %v819_v3  ;;  %v811_v15 = vadd.f32 %v810_v12, %v714_v35  ;;  %v842_v16 = vpop.f32.mrf.mxu1  ;;  %v900_v18 = vadd.f32 %v1729_v21, %v877_v2  ;;  %v918_v28 = vmax.f32 %v902_v9, 0.0 }
 0x12b   :  { %v888_v20 = vmul.f32 %v1719_v37, %v851_v11  ;;  %v843_v19 = vadd.f32 %v842_v16, %v746_v51  ;;  %v1335_v22 = vpop.f32.mrf.mxu0  ;;  %v908_v25 = vadd.f32 %v1729_v21, %v885_v10  ;;  %v926_v34 = vmax.f32 %v910_v13, 0.0 }
 0x12c   :  { %v903_v24 = vadd.f32 %v1729_v21, %v880_v14  ;;  %v878_v26 = vmul.f32 %v1719_v37, %v811_v15  ;;  %v832_v27 = vadd.f32 %v1335_v22, %v735_v39  ;;  %v1343_v29 = vpop.f32.mrf.mxu1  ;;  %v916_v43 = vmax.f32 %v900_v18, 0.0 }
 0x12d   :  { %v911_v30 = vadd.f32 %v1729_v21, %v888_v20  ;;  %v886_v31 = vmul.f32 %v1719_v37, %v843_v19  ;;  %v864_v33 = vadd.f32 %v1343_v29, %v767_v17  ;;  %v823_v32 = vpop.f32.mrf.mxu0  ;;  %v924_v48 = vmax.f32 %v908_v25, 0.0 }
 0x12e   :  { %v919_v35 = vmax.f32 %v903_v24, 0.0  ;;  %v901_v36 = vadd.f32 %v1729_v21, %v878_v26  ;;  %v824_v38 = vadd.f32 %v823_v32, %v727_v40  ;;  %v855_v42 = vpop.f32.mrf.mxu1  ;;  %v883_v51 = vmul.f32 %v1719_v37, %v832_v27 }
 0x12f   :  { %v927_v44 = vmax.f32 %v911_v30, 0.0  ;;  %v909_v45 = vadd.f32 %v1729_v21, %v886_v31  ;;  %v856_v47 = vadd.f32 %v855_v42, %v759_v5  ;;  %v1336_v39 = vpop.f32.mrf.mxu0  ;;  %v891_v55 = vmul.f32 %v1719_v37, %v864_v33 }
 0x130   :  { %v1142_v49 = vpack.c.bf16 %v919_v35, %v918_v28  ;;  %v917_v50 = vmax.f32 %v901_v36, 0.0  ;;  %v1344_v52 = vpop.f32.mrf.mxu1  ;;  %v881_v56 = vmul.f32 %v1719_v37, %v824_v38  ;;  %v835_v59 = vadd.f32 %v1336_v39, %v1723_v46 }
 0x131   :  { %v1162_v53 = vpack.c.bf16 %v927_v44, %v926_v34  ;;  %v925_v54 = vmax.f32 %v909_v45, 0.0  ;;  %v826_v40 = vpop.f32.mrf.mxu0  ;;  %v889_v58 = vmul.f32 %v1719_v37, %v856_v47  ;;  %v867_v63 = vadd.f32 %v1344_v52, %v770_v23 }
 0x132   :  { %1174 = vst [vmem:[%s1797_s4 + $0x8] sm:$0xff] %v1142_v49   ;;  %v1137_v57 = vpack.c.bf16 %v917_v50, %v916_v43  ;;  %v858_v61 = vpop.f32.mrf.mxu1  ;;  %v906_v0 = vadd.f32 %v1729_v21, %v883_v51  ;;  %v884_v2 = vmul.f32 %v1719_v37, %v835_v59  ;;  %v827_v3 = vadd.f32 %v826_v40, %v1721_v41 }
 0x133   :  { %1178 = vst [vmem:[%s1797_s4 + $0x28] sm:$0xff] %v1162_v53   ;;  %v1157_v62 = vpack.c.bf16 %v925_v54, %v924_v48  ;;  %v859_v4 = vadd.f32 %v858_v61, %v762_v60  ;;  %v914_v46 = vadd.f32 %v1729_v21, %v891_v55  ;;  %v904_v1 = vadd.f32 %v1729_v21, %v881_v56 }
 0x134   :  { %1138 = vst [vmem:[%s1797_s4] sm:$0xff] %v1137_v57   ;;  %v892_v5 = vmul.f32 %v1719_v37, %v867_v63  ;;  %v912_v6 = vadd.f32 %v1729_v21, %v889_v58  ;;  %v907_v7 = vadd.f32 %v1729_v21, %v884_v2  ;;  %v882_v8 = vmul.f32 %v1719_v37, %v827_v3 }
 0x135   :  { %1177 = vst [vmem:[%s1797_s4 + $0x20] sm:$0xff] %v1157_v62   ;;  %v890_v9 = vmul.f32 %v1719_v37, %v859_v4  ;;  %v922_v10 = vmax.f32 %v906_v0, 0.0  ;;  %v930_v14 = vmax.f32 %v914_v46, 0.0  ;;  %v920_v15 = vmax.f32 %v904_v1, 0.0 }
 0x136   :  { %v915_v41 = vadd.f32 %v1729_v21, %v892_v5  ;;  %v923_v11 = vmax.f32 %v907_v7, 0.0  ;;  %v905_v12 = vadd.f32 %v1729_v21, %v882_v8  ;;  %v928_v17 = vmax.f32 %v912_v6, 0.0 }
 0x137   :  { %v913_v13 = vadd.f32 %v1729_v21, %v890_v9 }
 0x138   :  { %v931_v16 = vmax.f32 %v915_v41, 0.0  ;;  %v1152_v18 = vpack.c.bf16 %v923_v11, %v922_v10  ;;  %v921_v20 = vmax.f32 %v905_v12, 0.0 }
 0x139   :  { %v929_v19 = vmax.f32 %v913_v13, 0.0 }
 0x13a   :  { %v1172_v22 = vpack.c.bf16 %v931_v16, %v930_v14  ;;  %1176 = vst [vmem:[%s1797_s4 + $0x18] sm:$0xff] %v1152_v18   ;;  %v1147_v37 = vpack.c.bf16 %v921_v20, %v920_v15 }
 0x13b   :  { %v1167_v23 = vpack.c.bf16 %v929_v19, %v928_v17 }
 0x13c   :  { %1180 = vst [vmem:[%s1797_s4 + $0x38] sm:$0xff] %v1172_v22   ;;  %1175 = vst [vmem:[%s1797_s4 + $0x10] sm:$0xff] %v1147_v37  }
 0x13d   :  { %1179 = vst [vmem:[%s1797_s4 + $0x30] sm:$0xff] %v1167_v23  }

// kernel: tile.173
= control target key start
LH: loop header
LB: loop body
LE: loop exit
PB: predicated region body
PF: predicated region fallthrough
CT: control target
= control target key end

     0   :  { %s22_s0 = inlined_call_operand.vmem [shape: f32[128], index: 0, kind: input, shape index: {}]   ;;  %s23_s1 = inlined_call_operand.vmem [shape: f32[8,128], index: 1, kind: output, shape index: {}]  }
   0x1   :  { %v4_v0 = vld [vmem:[%s22_s0] ss:$0 sm:$0xff] }
   0x2   :  { %5 = vst [vmem:[%s23_s1] sm:$0xff] %v4_v0 }

// kernel: forward.47
= control target key start
LH: loop header
LB: loop body
LE: loop exit
PB: predicated region body
PF: predicated region fallthrough
CT: control target
= control target key end

     0   :  { %s1691_s15 = smov 0   ;;  %s1963_s0 = inlined_call_operand.vmem [shape: bf16[512,576], index: 0, kind: input, shape index: {}]   ;;  %s1964_s1 = inlined_call_operand.vmem [shape: bf16[576,64], index: 1, kind: input, shape index: {}]   ;;  %s1965_s2 = inlined_call_operand.vmem [shape: f32[1,64], index: 2, kind: input, shape index: {}]   ;;  %s1966_s3 = inlined_call_operand.vmem [shape: f32[1,64], index: 3, kind: input, shape index: {}]   ;;  %s1967_s4 = inlined_call_operand.vmem [shape: bf16[512,64], index: 4, kind: output, shape index: {}]  }
   0x1 LB: > { %s1256_s16 = sadd.s32 4294967295, %s1664_s15   ;;  %p1260_p0 = scmp.ge.s32.totalorder %s1664_s15, 1  ;;  %s1664_s15 = sphi %s1691_s15, %s14_s15  }
   0x2   : > { %p164_p1 = scmp.lt.s32.totalorder %s1664_s15, 5 }
   0x4   : > { %p165_p2 = pnand %p1260_p0, %p164_p1 }
   0x5   : > { %s1261_s23 = sshll.u32 (!%p165_p2), %s1256_s16, 4 }
   0x6   : > { %168 = sbr.rel (%p165_p2) target bundleno = 330 (0x14a), region = 36  ;;  %p192_p3 = scmp.lt.s32.totalorder (!%p165_p2), %s1261_s23, 63 }
   0xb   : > { %v1566_v0 = vld [vmem:[%s1964_s1 + $0x78] sm:$0xff]   ;;  %v1570_v4 = vld [vmem:[%s1964_s1 + $0x70] sm:$0xff]   ;;  %v1574_v8 = vld [vmem:[%s1964_s1 + $0x68] sm:$0xff]   ;;  %s1969_s23 = smov (!%p192_p3, %s1261_s23), 63  ;;  %vm741_vm0 = vcmask 523264   ;;  %vm1183_vm1 = vcmask 519168  }
   0xc   : > { %v1567_v1 = vld [vmem:[%s1964_s1 + $0xf8] sm:$0xff]   ;;  %1385 = vmatprep.subr.bf16.mxu0 %v1566_v0  ;;  %v1571_v5 = vld [vmem:[%s1964_s1 + $0xf0] sm:$0xff]   ;;  %v1575_v9 = vld [vmem:[%s1964_s1 + $0xe8] sm:$0xff]   ;;  %s1557_s21 = smul.u32 20, %s1969_s23  ;;  %s1264_s26 = sshll.u32 %s1969_s23, 2 }
   0xd   : > { %v1568_v2 = vld [vmem:[%s1964_s1 + $0x38] sm:$0xff]   ;;  %1449 = vmatprep.subr.bf16.mxu1 %v1567_v1  ;;  %v1572_v6 = vld [vmem:[%s1964_s1 + $0x30] sm:$0xff]   ;;  %v1576_v10 = vld [vmem:[%s1964_s1 + $0x28] sm:$0xff]   ;;  %s1897_s28 = scalar_lea.vmem %s1967_s4, %s1264_s26 }
   0xe   : > { %v1569_v3 = vld [vmem:[%s1964_s1 + $0xb8] sm:$0xff]   ;;  %1386 = vmatpush3.bf16.msra.mxu0 %v1568_v2  ;;  %v1573_v7 = vld [vmem:[%s1964_s1 + $0xb0] sm:$0xff]   ;;  %v1577_v11 = vld [vmem:[%s1964_s1 + $0xa8] sm:$0xff]   ;;  %s1797_s6 = scalar_lea.vmem %s1963_s0, %s1557_s21 }
   0xf   : > { %1450 = vmatpush3.bf16.msra.mxu1 %v1569_v3  ;;  %1387 = vmatprep.subr.bf16.mxu0 %v1570_v4  ;;  %v1578_v12 = vld [vmem:[%s1964_s1 + $0x60] sm:$0xff]   ;;  %v1582_v16 = vld [vmem:[%s1964_s1 + $0x58] sm:$0xff]   ;;  %v1586_v20 = vld [vmem:[%s1964_s1 + $0x50] sm:$0xff]  }
  0x10   : > { %1451 = vmatprep.subr.bf16.mxu1 %v1571_v5  ;;  %v1579_v13 = vld [vmem:[%s1964_s1 + $0xe0] sm:$0xff]   ;;  %v1583_v17 = vld [vmem:[%s1964_s1 + $0xd8] sm:$0xff]   ;;  %v1587_v21 = vld [vmem:[%s1964_s1 + $0xd0] sm:$0xff]  }
  0x11   : > { %v1580_v14 = vld [vmem:[%s1964_s1 + $0x20] sm:$0xff]   ;;  %v1584_v18 = vld [vmem:[%s1964_s1 + $0x18] sm:$0xff]   ;;  %v1588_v22 = vld [vmem:[%s1964_s1 + $0x10] sm:$0xff]  }
  0x12   : > { %1388 = vmatpush3.bf16.msra.mxu0 %v1572_v6  ;;  %v1581_v15 = vld [vmem:[%s1964_s1 + $0xa0] sm:$0xff]   ;;  %v1585_v19 = vld [vmem:[%s1964_s1 + $0x98] sm:$0xff]   ;;  %v1589_v23 = vld [vmem:[%s1964_s1 + $0x90] sm:$0xff]  }
  0x13   : > { %1452 = vmatpush3.bf16.msra.mxu1 %v1573_v7  ;;  %1389 = vmatprep.subr.bf16.mxu0 %v1574_v8  ;;  %v1590_v24 = vld [vmem:[%s1964_s1 + $0x48] sm:$0xff]   ;;  %v1594_v28 = vld [vmem:[%s1964_s1 + $0x40] sm:$0xff]   ;;  %v1604_v36 = vld [vmem:[%s1964_s1 + $0x118] sm:$0xff]  }
  0x14   : > { %1453 = vmatprep.subr.bf16.mxu1 %v1575_v9  ;;  %v1591_v25 = vld [vmem:[%s1964_s1 + $0xc8] sm:$0xff]   ;;  %v1595_v29 = vld [vmem:[%s1964_s1 + $0xc0] sm:$0xff]   ;;  %v1617_v42 = vld [vmem:[%s1964_s1 + $0x110] sm:$0xff]  }
  0x15   : > { %v1592_v26 = vld [vmem:[%s1964_s1 + $0x8] sm:$0xff]   ;;  %v1596_v30 = vld [vmem:[%s1964_s1] sm:$0xff]   ;;  %v1613_v43 = vld [vmem:[%s1797_s6 + $0x5c] ss:$20 sps:$4 sm:$0xff]  }
  0x16   : > { %1390 = vmatpush3.bf16.msra.mxu0 %v1576_v10  ;;  %v1593_v27 = vld [vmem:[%s1964_s1 + $0x88] sm:$0xff]   ;;  %v1597_v31 = vld [vmem:[%s1964_s1 + $0x80] sm:$0xff]   ;;  %v1618_v47 = vld [vmem:[%s1797_s6 + $0x7c] ss:$20 sps:$4 sm:$0xff]  }
  0x17   : > { %1454 = vmatpush3.bf16.msra.mxu1 %v1577_v11  ;;  %1391 = vmatprep.subr.bf16.mxu0 %v1578_v12  ;;  %v1598_v32 = vld [vmem:[%s1797_s6] ss:$20 sps:$4 sm:$0xff]   ;;  %v1600_v33 = vld [vmem:[%s1797_s6 + $0x4] ss:$20 sps:$4 sm:$0xff]   ;;  %v1601_v34 = vld [vmem:[%s1797_s6 + $0x8] ss:$20 sps:$4 sm:$0xff]  }
  0x18   : > { %1455 = vmatprep.subr.bf16.mxu1 %v1579_v13  ;;  %v1603_v35 = vld [vmem:[%s1797_s6 + $0xc] ss:$20 sps:$4 sm:$0xff]   ;;  %798 = vmatprep.mubr.bf16.mxu0 %v1600_v33  ;;  %v1607_v38 = vld [vmem:[%s1797_s6 + $0x34] ss:$20 sps:$4 sm:$0xff]   ;;  %v1610_v40 = vld [vmem:[%s1797_s6 + $0x30] ss:$20 sps:$4 sm:$0xff]  }
  0x19   : > { %895 = vmatprep.mubr.bf16.mxu1 %v1603_v35  ;;  %v1605_v37 = vld [vmem:[%s1797_s6 + $0x2c] ss:$20 sps:$4 sm:$0xff]   ;;  %v1609_v39 = vld [vmem:[%s1797_s6 + $0x28] ss:$20 sps:$4 sm:$0xff]   ;;  %v1615_v44 = vld [vmem:[%s1797_s6 + $0x50] ss:$20 sps:$4 sm:$0xff]  }
  0x1a   : > { %1392 = vmatpush3.bf16.msra.mxu0 %v1580_v14  ;;  %v1611_v41 = vld [vmem:[%s1797_s6 + $0x54] ss:$20 sps:$4 sm:$0xff]   ;;  %v1616_v45 = vld [vmem:[%s1797_s6 + $0x58] ss:$20 sps:$4 sm:$0xff]   ;;  %v1643_v49 = vld [vmem:[%s1964_s1 + $0x100] sm:$0xff]  }
  0x1b   : > { %1456 = vmatpush3.bf16.msra.mxu1 %v1581_v15  ;;  %1393 = vmatprep.subr.bf16.mxu0 %v1582_v16  ;;  %v1630_v46 = vld [vmem:[%s1964_s1 + $0x108] sm:$0xff]   ;;  %v1620_v48 = vld [vmem:[%s1797_s6 + $0x84] ss:$20 sps:$4 sm:$0xff]   ;;  %v1623_v51 = vld [vmem:[%s1797_s6 + $0x80] ss:$20 sps:$4 sm:$0xff]  }
  0x1c   : > { %1457 = vmatprep.subr.bf16.mxu1 %v1583_v17  ;;  %v1622_v50 = vld [vmem:[%s1797_s6 + $0x78] ss:$20 sps:$4 sm:$0xff]   ;;  %v1628_v54 = vld [vmem:[%s1797_s6 + $0xa0] ss:$20 sps:$4 sm:$0xff]   ;;  %v1629_v55 = vld [vmem:[%s1797_s6 + $0xa8] ss:$20 sps:$4 sm:$0xff]  }
  0x1d   : > { %v1624_v52 = vld [vmem:[%s1797_s6 + $0xa4] ss:$20 sps:$4 sm:$0xff]   ;;  %v1626_v53 = vld [vmem:[%s1797_s6 + $0xac] ss:$20 sps:$4 sm:$0xff]   ;;  %v1633_v57 = vld [vmem:[%s1797_s6 + $0xd4] ss:$20 sps:$4 sm:$0xff]  }
  0x1e   : > { %1394 = vmatpush3.bf16.msra.mxu0 %v1584_v18  ;;  %v1631_v56 = vld [vmem:[%s1797_s6 + $0xcc] ss:$20 sps:$4 sm:$0xff]   ;;  %v1635_v58 = vld [vmem:[%s1797_s6 + $0xc8] ss:$20 sps:$4 sm:$0xff]   ;;  %v1636_v59 = vld [vmem:[%s1797_s6 + $0xd0] ss:$20 sps:$4 sm:$0xff]  }
  0x1f   : > { %1458 = vmatpush3.bf16.msra.mxu1 %v1585_v19  ;;  %1395 = vmatprep.subr.bf16.mxu0 %v1586_v20  ;;  %v1637_v60 = vld [vmem:[%s1797_s6 + $0xf4] ss:$20 sps:$4 sm:$0xff]   ;;  %v1639_v61 = vld [vmem:[%s1797_s6 + $0xfc] ss:$20 sps:$4 sm:$0xff]   ;;  %v1642_v63 = vld [vmem:[%s1797_s6 + $0xf8] ss:$20 sps:$4 sm:$0xff]  }
  0x20   : > { %1459 = vmatprep.subr.bf16.mxu1 %v1587_v21  ;;  %v1641_v62 = vld [vmem:[%s1797_s6 + $0xf0] ss:$20 sps:$4 sm:$0xff]   ;;  %v1648_v2 = vld [vmem:[%s1797_s6 + $0x118] ss:$20 sps:$4 sm:$0xff]   ;;  %v1649_v3 = vld [vmem:[%s1797_s6 + $0x120] ss:$20 sps:$4 sm:$0xff]  }
  0x21   : > { %v1644_v0 = vld [vmem:[%s1797_s6 + $0x11c] ss:$20 sps:$4 sm:$0xff]   ;;  %v1646_v1 = vld [vmem:[%s1797_s6 + $0x124] ss:$20 sps:$4 sm:$0xff]   ;;  %v1654_v8 = vld [vmem:[%s1797_s6 + $0x60] ss:$20 sps:$4 sm:$0xff]  }
  0x22   : > { %1396 = vmatpush3.bf16.msra.mxu0 %v1588_v22  ;;  %v1650_v4 = vld [vmem:[%s1797_s6 + $0x10] ss:$20 sps:$4 sm:$0xff]   ;;  %v1652_v6 = vld [vmem:[%s1797_s6 + $0x38] ss:$20 sps:$4 sm:$0xff]   ;;  %v1655_v9 = vld [vmem:[%s1797_s6 + $0x100] ss:$20 sps:$4 sm:$0xff]  }
  0x23   : > { %1460 = vmatpush3.bf16.msra.mxu1 %v1589_v23  ;;  %1397 = vmatprep.subr.bf16.mxu0 %v1590_v24  ;;  %v1651_v5 = vld [vmem:[%s1797_s6 + $0xb0] ss:$20 sps:$4 sm:$0xff]   ;;  %v1653_v7 = vld [vmem:[%s1797_s6 + $0xd8] ss:$20 sps:$4 sm:$0xff]   ;;  %v1656_v10 = vld [vmem:[%s1797_s6 + $0x88] ss:$20 sps:$4 sm:$0xff]  }
  0x24   : > { %1461 = vmatprep.subr.bf16.mxu1 %v1591_v25  ;;  %v1657_v11 = vld [vmem:[%s1797_s6 + $0x128] ss:$20 sps:$4 sm:$0xff]  }
  0x26   : > { %1398 = vmatpush3.bf16.msra.mxu0 %v1592_v26 }
  0x27   : > { %1462 = vmatpush3.bf16.msra.mxu1 %v1593_v27  ;;  %1399 = vmatprep.subr.bf16.mxu0 %v1594_v28 }
  0x28   : > { %1463 = vmatprep.subr.bf16.mxu1 %v1595_v29 }
  0x2a   : > { %1400 = vmatpush3.bf16.msra.mxu0 %v1596_v30 }
  0x2b   : > { %1464 = vmatpush3.bf16.msra.mxu1 %v1597_v31  ;;  %1525 = vmatprep.subr.bf16.mxu0 %v1604_v36 }
  0x2c   : > { %1549 = vmatprep.subr.bf16.mxu1 %v1604_v36 }
  0x2d   : > { %799 = vmatmul.mubr.bf16.vlgmr.msra.gmra.mxu0 %v1598_v32 }
  0x2e   : > { %896 = vmatmul.mubr.bf16.vlgmr.msra.gmra.mxu1 %v1601_v34  ;;  %1526 = vmatpush3.bf16.msra.mxu0 %v1604_v36 }
  0x2f   : > { %1553 = vmatpush3.bf16.msra.mxu1 %v1604_v36  ;;  %806 = vmatprep.mubr.bf16.mxu0 %v1605_v37 }
  0x30   : > { %903 = vmatprep.mubr.bf16.mxu1 %v1607_v38  ;;  %1527 = vmatprep.subr.bf16.mxu0 %v1617_v42 }
  0x31   : > { %1550 = vmatprep.subr.bf16.mxu1 %v1617_v42 }
  0x32   : > { %1528 = vmatpush3.bf16.msra.mxu0 %v1617_v42 }
  0x33   : > { %1554 = vmatpush3.bf16.msra.mxu1 %v1617_v42  ;;  %1529 = vmatprep.subr.bf16.mxu0 %v1630_v46 }
  0x34   : > { %1551 = vmatprep.subr.bf16.mxu1 %v1630_v46 }
  0x35   : > { %807 = vmatmul.mubr.bf16.gmra.mxu0 %v1609_v39 }
  0x36   : > { %904 = vmatmul.mubr.bf16.gmra.mxu1 %v1610_v40  ;;  %814 = vmatprep.mubr.bf16.mxu0 %v1611_v41 }
  0x37   : > { %911 = vmatprep.mubr.bf16.mxu1 %v1613_v43  ;;  %1530 = vmatpush3.bf16.msra.mxu0 %v1630_v46 }
  0x38   : > { %1555 = vmatpush3.bf16.msra.mxu1 %v1630_v46  ;;  %1531 = vmatprep.subr.bf16.mxu0 %v1643_v49 }
  0x39   : > { %1552 = vmatprep.subr.bf16.mxu1 %v1643_v49 }
  0x3b   : > { %1532 = vmatpush3.bf16.msra.mxu0 %v1643_v49 }
  0x3c   : > { %1556 = vmatpush3.bf16.msra.mxu1 %v1643_v49 }
  0x3d   : > { %815 = vmatmul.mubr.bf16.gmra.mxu0 %v1615_v44 }
  0x3e   : > { %912 = vmatmul.mubr.bf16.gmra.mxu1 %v1616_v45  ;;  %822 = vmatprep.mubr.bf16.mxu0 %v1618_v47 }
  0x3f   : > { %919 = vmatprep.mubr.bf16.mxu1 %v1620_v48 }
  0x45   : > { %823 = vmatmul.mubr.bf16.gmra.mxu0 %v1622_v50 }
  0x46   : > { %920 = vmatmul.mubr.bf16.gmra.mxu1 %v1623_v51  ;;  %830 = vmatprep.mubr.bf16.mxu0 %v1624_v52 }
  0x47   : > { %927 = vmatprep.mubr.bf16.mxu1 %v1626_v53 }
  0x4d   : > { %831 = vmatmul.mubr.bf16.gmra.mxu0 %v1628_v54 }
  0x4e   : > { %928 = vmatmul.mubr.bf16.gmra.mxu1 %v1629_v55  ;;  %838 = vmatprep.mubr.bf16.mxu0 %v1631_v56 }
  0x4f   : > { %935 = vmatprep.mubr.bf16.mxu1 %v1633_v57 }
  0x55   : > { %839 = vmatmul.mubr.bf16.gmra.mxu0 %v1635_v58 }
  0x56   : > { %936 = vmatmul.mubr.bf16.gmra.mxu1 %v1636_v59  ;;  %846 = vmatprep.mubr.bf16.mxu0 %v1637_v60 }
  0x57   : > { %943 = vmatprep.mubr.bf16.mxu1 %v1639_v61 }
  0x5d   : > { %847 = vmatmul.mubr.bf16.gmra.mxu0 %v1641_v62 }
  0x5e   : > { %944 = vmatmul.mubr.bf16.gmra.mxu1 %v1642_v63  ;;  %854 = vmatprep.mubr.bf16.mxu0 %v1644_v0 }
  0x5f   : > { %951 = vmatprep.mubr.bf16.mxu1 %v1646_v1 }
  0x65   : > { %855 = vmatmul.mubr.bf16.gmra.mxu0 %v1648_v2 }
  0x66   : > { %952 = vmatmul.mubr.bf16.gmra.mxu1 %v1649_v3  ;;  %1533 = vmatprep.mubr.msk.bf16.mxu0 %vm741_vm0, %v1650_v4 }
  0x67   : > { %1541 = vmatprep.mubr.msk.bf16.mxu1 %vm741_vm0, %v1651_v5 }
  0x6d   : > { %1534 = vmatmul.mubr.msk.bf16.vlgmr.msra.gmra.mxu0 %vm741_vm0, %v1652_v6 }
  0x6e   : > { %1542 = vmatmul.mubr.msk.bf16.vlgmr.msra.gmra.mxu1 %vm741_vm0, %v1653_v7  ;;  %1537 = vmatprep.mubr.msk.bf16.mxu0 %vm741_vm0, %v1654_v8 }
  0x6f   : > { %1545 = vmatprep.mubr.msk.bf16.mxu1 %vm741_vm0, %v1655_v9 }
  0x75   : > { %1538 = vmatmul.mubr.msk.bf16.gmra.mxu0 %vm741_vm0, %v1656_v10 }
  0x76   : > { %1546 = vmatmul.mubr.msk.bf16.gmra.mxu1 %vm741_vm0, %v1657_v11 }
  0xed   : > { %v1401_v12 = vpop.f32.mrf.mxu0 }
  0xee   : > { %v1465_v13 = vpop.f32.mrf.mxu1 }
  0xef   : > { %v1402_v14 = vpop.f32.mrf.mxu0 }
  0xf0   : > { %v1466_v15 = vpop.f32.mrf.mxu1  ;;  %v1403_v3 = vadd.f32 %v1402_v14, %v1401_v12 }
  0xf1   : > { %v1404_v16 = vpop.f32.mrf.mxu0  ;;  %v1467_v4 = vadd.f32 %v1466_v15, %v1465_v13 }
  0xf2   : > { %v1468_v17 = vpop.f32.mrf.mxu1 }
  0xf3   : > { %v1405_v18 = vpop.f32.mrf.mxu0 }
  0xf4   : > { %v1469_v19 = vpop.f32.mrf.mxu1  ;;  %v1406_v5 = vadd.f32 %v1405_v18, %v1404_v16 }
  0xf5   : > { %v1407_v20 = vpop.f32.mrf.mxu0  ;;  %v1470_v6 = vadd.f32 %v1469_v19, %v1468_v17 }
  0xf6   : > { %v1471_v21 = vpop.f32.mrf.mxu1 }
  0xf7   : > { %v1408_v22 = vpop.f32.mrf.mxu0 }
  0xf8   : > { %v1472_v23 = vpop.f32.mrf.mxu1  ;;  %v1409_v8 = vadd.f32 %v1408_v22, %v1407_v20 }
  0xf9   : > { %v1410_v24 = vpop.f32.mrf.mxu0  ;;  %v1473_v9 = vadd.f32 %v1472_v23, %v1471_v21 }
  0xfa   : > { %v1474_v25 = vpop.f32.mrf.mxu1 }
  0xfb   : > { %v1411_v26 = vpop.f32.mrf.mxu0 }
  0xfc   : > { %v1475_v27 = vpop.f32.mrf.mxu1  ;;  %v1412_v10 = vadd.f32 %v1411_v26, %v1410_v24  ;;  %v906_v26 = vadd.f32 %v1473_v9, %v1409_v8 }
  0xfd   : > { %v1413_v28 = vpop.f32.mrf.mxu0  ;;  %v1476_v11 = vadd.f32 %v1475_v27, %v1474_v25  ;;  %v898_v25 = vadd.f32 %v1467_v4, %v1403_v3 }
  0xfe   : > { %v1477_v29 = vpop.f32.mrf.mxu1 }
  0xff   : > { %v1414_v30 = vpop.f32.mrf.mxu0  ;;  %v909_v27 = vadd.f32 %v1476_v11, %v1412_v10 }
 0x100   : > { %v1478_v31 = vpop.f32.mrf.mxu1  ;;  %v1415_v14 = vadd.f32 %v1414_v30, %v1413_v28  ;;  %v901_v28 = vadd.f32 %v1470_v6, %v1406_v5 }
 0x101   : > { %v1416_v32 = vpop.f32.mrf.mxu0  ;;  %v1479_v13 = vadd.f32 %v1478_v31, %v1477_v29 }
 0x102   : > { %v1480_v33 = vpop.f32.mrf.mxu1 }
 0x103   : > { %v1417_v34 = vpop.f32.mrf.mxu0 }
 0x104   : > { %v1481_v35 = vpop.f32.mrf.mxu1  ;;  %v1418_v15 = vadd.f32 %v1417_v34, %v1416_v32  ;;  %v1865_v32 = vadd.f32 %v1479_v13, %v1415_v14 }
 0x105   : > { %v1419_v36 = vpop.f32.mrf.mxu0  ;;  %v1482_v16 = vadd.f32 %v1481_v35, %v1480_v33 }
 0x106   : > { %v1483_v37 = vpop.f32.mrf.mxu1 }
 0x107   : > { %v1420_v38 = vpop.f32.mrf.mxu0  ;;  %v1867_v34 = vadd.f32 %v1482_v16, %v1418_v15 }
 0x108   : > { %v1484_v39 = vpop.f32.mrf.mxu1  ;;  %v1421_v17 = vadd.f32 %v1420_v38, %v1419_v36 }
 0x109   : > { %v1422_v40 = vpop.f32.mrf.mxu0  ;;  %v1485_v19 = vadd.f32 %v1484_v39, %v1483_v37 }
 0x10a   : > { %v1486_v41 = vpop.f32.mrf.mxu1 }
 0x10b   : > { %v1423_v42 = vpop.f32.mrf.mxu0  ;;  %v1869_v38 = vadd.f32 %v1485_v19, %v1421_v17 }
 0x10c   : > { %v1487_v43 = vpop.f32.mrf.mxu1  ;;  %v1424_v30 = vadd.f32 %v1423_v42, %v1422_v40 }
 0x10d   : > { %v1425_v44 = vpop.f32.mrf.mxu0  ;;  %v1488_v29 = vadd.f32 %v1487_v43, %v1486_v41  ;;  %v1874_v43 = vld [vmem:[%s1965_s2] ss:$0 sm:$0xff] }
 0x10e   : > { %v1489_v45 = vpop.f32.mrf.mxu1 }
 0x10f   : > { %v1426_v46 = vpop.f32.mrf.mxu0 }
 0x110   : > { %v1490_v47 = vpop.f32.mrf.mxu1  ;;  %v1427_v33 = vadd.f32 %v1426_v46, %v1425_v44 }
 0x111   : > { %v1428_v48 = vpop.f32.mrf.mxu0  ;;  %v1491_v35 = vadd.f32 %v1490_v47, %v1489_v45 }
 0x112   : > { %v1492_v49 = vpop.f32.mrf.mxu1 }
 0x113   : > { %v1429_v50 = vpop.f32.mrf.mxu0 }
 0x114   : > { %v1493_v51 = vpop.f32.mrf.mxu1  ;;  %v1430_v36 = vadd.f32 %v1429_v50, %v1428_v48  ;;  %v1876_v48 = vadd.f32 %v1488_v29, %v1424_v30 }
 0x115   : > { %v1431_v52 = vpop.f32.mrf.mxu0  ;;  %v1494_v39 = vadd.f32 %v1493_v51, %v1492_v49  ;;  %v1881_v51 = vld [vmem:[%s1966_s3] ss:$0 sm:$0xff] }
 0x116   : > { %v1495_v53 = vpop.f32.mrf.mxu1 }
 0x117   : > { %v1432_v54 = vpop.f32.mrf.mxu0 }
 0x118   : > { %v1496_v55 = vpop.f32.mrf.mxu1  ;;  %v1433_v22 = vadd.f32 %v1432_v54, %v1431_v52 }
 0x119   : > { %v1434_v56 = vpop.f32.mrf.mxu0  ;;  %v1497_v21 = vadd.f32 %v1496_v55, %v1495_v53 }
 0x11a   : > { %v1498_v57 = vpop.f32.mrf.mxu1 }
 0x11b   : > { %v1435_v58 = vpop.f32.mrf.mxu0  ;;  %v938_v55 = vadd.f32 %v1497_v21, %v1433_v22 }
 0x11c   : > { %v1499_v59 = vpop.f32.mrf.mxu1  ;;  %v1436_v52 = vadd.f32 %v1435_v58, %v1434_v56  ;;  %v930_v58 = vadd.f32 %v1491_v35, %v1427_v33 }
 0x11d   : > { %v1437_v60 = vpop.f32.mrf.mxu0  ;;  %v1500_v53 = vadd.f32 %v1499_v59, %v1498_v57 }
 0x11e   : > { %v1501_v61 = vpop.f32.mrf.mxu1 }
 0x11f   : > { %v1438_v62 = vpop.f32.mrf.mxu0 }
 0x120   : > { %v1502_v63 = vpop.f32.mrf.mxu1  ;;  %v1439_v3 = vadd.f32 %v1438_v62, %v1437_v60  ;;  %v941_v62 = vadd.f32 %v1500_v53, %v1436_v52 }
 0x121   : > { %v1440_v0 = vpop.f32.mrf.mxu0  ;;  %v1503_v4 = vadd.f32 %v1502_v63, %v1501_v61  ;;  %v933_v63 = vadd.f32 %v1494_v39, %v1430_v36 }
 0x122   : > { %v1504_v1 = vpop.f32.mrf.mxu1 }
 0x123   : > { %v1441_v2 = vpop.f32.mrf.mxu0  ;;  %v946_v5 = vadd.f32 %v1503_v4, %v1439_v3 }
 0x124   : > { %v1505_v7 = vpop.f32.mrf.mxu1  ;;  %v1442_v40 = vadd.f32 %v1441_v2, %v1440_v0 }
 0x125   : > { %v1443_v12 = vpop.f32.mrf.mxu0  ;;  %v1506_v41 = vadd.f32 %v1505_v7, %v1504_v1 }
 0x126   : > { %v1507_v18 = vpop.f32.mrf.mxu1 }
 0x127   : > { %v1444_v20 = vpop.f32.mrf.mxu0  ;;  %v1885_v6 = vadd.f32 %v1506_v41, %v1442_v40 }
 0x128   : > { %v1508_v23 = vpop.f32.mrf.mxu1  ;;  %v1445_v44 = vadd.f32 %v1444_v20, %v1443_v12 }
 0x129   : > { %v1446_v24 = vpop.f32.mrf.mxu0  ;;  %v1509_v45 = vadd.f32 %v1508_v23, %v1507_v18 }
 0x12a   : > { %v1510_v31 = vpop.f32.mrf.mxu1 }
 0x12b   : > { %v1447_v37 = vpop.f32.mrf.mxu0  ;;  %v954_v11 = vadd.f32 %v1509_v45, %v1445_v44 }
 0x12c   : > { %v1511_v54 = vpop.f32.mrf.mxu1  ;;  %v1448_v49 = vadd.f32 %v1447_v37, %v1446_v24 }
 0x12d   : > { %v1535_v42 = vpop.f32.mrf.mxu0  ;;  %v1512_v50 = vadd.f32 %v1511_v54, %v1510_v31 }
 0x12e   : > { %v1003_v46 = vadd.f32 %v1535_v42, %v906_v26  ;;  %v1543_v47 = vpop.f32.mrf.mxu1 }
 0x12f   : > { %v1035_v56 = vadd.f32 %v1543_v47, %v938_v55  ;;  %v994_v57 = vpop.f32.mrf.mxu0  ;;  %v957_v16 = vadd.f32 %v1512_v50, %v1448_v49 }
 0x130   : > { %v1066_v59 = vmul.f32 %v1874_v43, %v1003_v46  ;;  %v995_v60 = vadd.f32 %v994_v57, %v898_v25  ;;  %v1026_v61 = vpop.f32.mrf.mxu1 }
 0x131   : > { %v1074_v0 = vmul.f32 %v1874_v43, %v1035_v56  ;;  %v1027_v1 = vadd.f32 %v1026_v61, %v930_v58  ;;  %v1536_v2 = vpop.f32.mrf.mxu0 }
 0x132   : > { %v1089_v7 = vadd.f32 %v1881_v51, %v1066_v59  ;;  %v1064_v8 = vmul.f32 %v1874_v43, %v995_v60  ;;  %v1006_v9 = vadd.f32 %v1536_v2, %v909_v27  ;;  %v1544_v10 = vpop.f32.mrf.mxu1 }
 0x133   : > { %v1097_v12 = vadd.f32 %v1881_v51, %v1074_v0  ;;  %v1072_v14 = vmul.f32 %v1874_v43, %v1027_v1  ;;  %v1038_v13 = vadd.f32 %v1544_v10, %v941_v62  ;;  %v997_v15 = vpop.f32.mrf.mxu0 }
 0x134   : > { %v1105_v18 = vmax.f32 %v1089_v7, 0.0  ;;  %v1087_v17 = vadd.f32 %v1881_v51, %v1064_v8  ;;  %v1067_v19 = vmul.f32 %v1874_v43, %v1006_v9  ;;  %v998_v20 = vadd.f32 %v997_v15, %v901_v28  ;;  %v1029_v22 = vpop.f32.mrf.mxu1 }
 0x135   : > { %v1113_v21 = vmax.f32 %v1097_v12, 0.0  ;;  %v1095_v23 = vadd.f32 %v1881_v51, %v1072_v14  ;;  %v1075_v24 = vmul.f32 %v1874_v43, %v1038_v13  ;;  %v1030_v26 = vadd.f32 %v1029_v22, %v933_v63  ;;  %v1539_v25 = vpop.f32.mrf.mxu0 }
 0x136   : > { %v1371_v27 = vpack.c.bf16 %v1105_v18, %v1105_v18  ;;  %v1103_v30 = vmax.f32 %v1087_v17, 0.0  ;;  %v1090_v29 = vadd.f32 %v1881_v51, %v1067_v19  ;;  %v1065_v28 = vmul.f32 %v1874_v43, %v998_v20  ;;  %v1547_v31 = vpop.f32.mrf.mxu1 }
 0x137   : > { %v1379_v33 = vpack.c.bf16 %v1113_v21, %v1113_v21  ;;  %v1111_v35 = vmax.f32 %v1095_v23, 0.0  ;;  %v1098_v36 = vadd.f32 %v1881_v51, %v1075_v24  ;;  %v1073_v37 = vmul.f32 %v1874_v43, %v1030_v26  ;;  %v1010_v39 = vpop.f32.mrf.mxu0 }
 0x138   : > { %1186 = vst.msk [vmem:[%s1897_s28 + $0x8] sm:$0xf] %vm1183_vm1, %v1371_v27  ;;  %v1369_v52 = vpack.c.bf16 %v1103_v30, %v1103_v30  ;;  %v1106_v53 = vmax.f32 %v1090_v29, 0.0  ;;  %v1088_v54 = vadd.f32 %v1881_v51, %v1065_v28  ;;  %v1019_v55 = vadd.f32 %v1539_v25, %v1869_v38  ;;  %v1042_v3 = vpop.f32.mrf.mxu1 }
 0x139   : > { %1194 = vst.msk [vmem:[%s1897_s28 + $0x28] sm:$0xf] %vm1183_vm1, %v1379_v33  ;;  %v1377_v4 = vpack.c.bf16 %v1111_v35, %v1111_v35  ;;  %v1114_v40 = vmax.f32 %v1098_v36, 0.0  ;;  %v1096_v41 = vadd.f32 %v1881_v51, %v1073_v37  ;;  %v1051_v42 = vadd.f32 %v1547_v31, %v954_v11  ;;  %v1540_v44 = vpop.f32.mrf.mxu0 }
 0x13a   : > { %1184 = vst.msk [vmem:[%s1897_s28] sm:$0xf] %vm1183_vm1, %v1369_v52  ;;  %v1372_v45 = vpack.c.bf16 %v1106_v53, %v1106_v53  ;;  %v1104_v46 = vmax.f32 %v1088_v54, 0.0  ;;  %v1070_v47 = vmul.f32 %v1874_v43, %v1019_v55  ;;  %v1011_v49 = vadd.f32 %v1010_v39, %v1865_v32  ;;  %v1548_v38 = vpop.f32.mrf.mxu1 }
 0x13b   : > { %1192 = vst.msk [vmem:[%s1897_s28 + $0x20] sm:$0xf] %vm1183_vm1, %v1377_v4  ;;  %v1380_v50 = vpack.c.bf16 %v1114_v40, %v1114_v40  ;;  %v1112_v56 = vmax.f32 %v1096_v41, 0.0  ;;  %v1078_v57 = vmul.f32 %v1874_v43, %v1051_v42  ;;  %v1043_v58 = vadd.f32 %v1042_v3, %v946_v5  ;;  %v1013_v59 = vpop.f32.mrf.mxu0 }
 0x13c   : > { %1187 = vst.msk [vmem:[%s1897_s28 + $0xc] sm:$0xf] %vm1183_vm1, %v1372_v45  ;;  %v1370_v60 = vpack.c.bf16 %v1104_v46, %v1104_v46  ;;  %v1093_v61 = vadd.f32 %v1881_v51, %v1070_v47  ;;  %v1068_v62 = vmul.f32 %v1874_v43, %v1011_v49  ;;  %v1022_v32 = vadd.f32 %v1540_v44, %v1876_v48  ;;  %v1045_v63 = vpop.f32.mrf.mxu1 }
 0x13d   : > { %1195 = vst.msk [vmem:[%s1897_s28 + $0x2c] sm:$0xf] %vm1183_vm1, %v1380_v50  ;;  %v1378_v0 = vpack.c.bf16 %v1112_v56, %v1112_v56  ;;  %v1101_v1 = vadd.f32 %v1881_v51, %v1078_v57  ;;  %v1076_v2 = vmul.f32 %v1874_v43, %v1043_v58  ;;  %v1054_v5 = vadd.f32 %v1548_v38, %v957_v16 }
 0x13e   : > { %1185 = vst.msk [vmem:[%s1897_s28 + $0x4] sm:$0xf] %vm1183_vm1, %v1370_v60  ;;  %v1109_v7 = vmax.f32 %v1093_v61, 0.0  ;;  %v1091_v8 = vadd.f32 %v1881_v51, %v1068_v62  ;;  %v1071_v9 = vmul.f32 %v1874_v43, %v1022_v32  ;;  %v1014_v10 = vadd.f32 %v1013_v59, %v1867_v34 }
 0x13f   : > { %1193 = vst.msk [vmem:[%s1897_s28 + $0x24] sm:$0xf] %vm1183_vm1, %v1378_v0  ;;  %v1117_v48 = vmax.f32 %v1101_v1, 0.0  ;;  %v1099_v11 = vadd.f32 %v1881_v51, %v1076_v2  ;;  %v1079_v12 = vmul.f32 %v1874_v43, %v1054_v5  ;;  %v1046_v14 = vadd.f32 %v1045_v63, %v1885_v6 }
 0x140   : > { %v1375_v13 = vpack.c.bf16 %v1109_v7, %v1109_v7  ;;  %v1107_v15 = vmax.f32 %v1091_v8, 0.0  ;;  %v1094_v16 = vadd.f32 %v1881_v51, %v1071_v9  ;;  %v1069_v18 = vmul.f32 %v1874_v43, %v1014_v10 }
 0x141   : > { %v1383_v17 = vpack.c.bf16 %v1117_v48, %v1117_v48  ;;  %v1115_v34 = vmax.f32 %v1099_v11, 0.0  ;;  %v1102_v19 = vadd.f32 %v1881_v51, %v1079_v12  ;;  %v1077_v20 = vmul.f32 %v1874_v43, %v1046_v14 }
 0x142   : > { %1190 = vst.msk [vmem:[%s1897_s28 + $0x18] sm:$0xf] %vm1183_vm1, %v1375_v13  ;;  %v1373_v22 = vpack.c.bf16 %v1107_v15, %v1107_v15  ;;  %v1110_v6 = vmax.f32 %v1094_v16, 0.0  ;;  %v1092_v21 = vadd.f32 %v1881_v51, %v1069_v18 }
 0x143   : > { %1198 = vst.msk [vmem:[%s1897_s28 + $0x38] sm:$0xf] %vm1183_vm1, %v1383_v17  ;;  %v1381_v23 = vpack.c.bf16 %v1115_v34, %v1115_v34  ;;  %v1118_v24 = vmax.f32 %v1102_v19, 0.0  ;;  %v1100_v26 = vadd.f32 %v1881_v51, %v1077_v20 }
 0x144   : > { %1188 = vst.msk [vmem:[%s1897_s28 + $0x10] sm:$0xf] %vm1183_vm1, %v1373_v22  ;;  %v1376_v25 = vpack.c.bf16 %v1110_v6, %v1110_v6  ;;  %v1108_v27 = vmax.f32 %v1092_v21, 0.0 }
 0x145   : > { %1196 = vst.msk [vmem:[%s1897_s28 + $0x30] sm:$0xf] %vm1183_vm1, %v1381_v23  ;;  %v1384_v43 = vpack.c.bf16 %v1118_v24, %v1118_v24  ;;  %v1116_v30 = vmax.f32 %v1100_v26, 0.0 }
 0x146   : > { %1191 = vst.msk [vmem:[%s1897_s28 + $0x1c] sm:$0xf] %vm1183_vm1, %v1376_v25  ;;  %v1374_v29 = vpack.c.bf16 %v1108_v27, %v1108_v27 }
 0x147   : > { %1199 = vst.msk [vmem:[%s1897_s28 + $0x3c] sm:$0xf] %vm1183_vm1, %v1384_v43  ;;  %v1382_v28 = vpack.c.bf16 %v1116_v30, %v1116_v30 }
 0x148   : > { %1189 = vst.msk [vmem:[%s1897_s28 + $0x14] sm:$0xf] %vm1183_vm1, %v1374_v29 }
 0x149   : > { %1197 = vst.msk [vmem:[%s1897_s28 + $0x34] sm:$0xf] %vm1183_vm1, %v1382_v28 }
 0x14a PF: > { %s14_s15 = sadd.s32 1, %s1664_s15  }
 0x14b   : > { %p11_p4 = scmp.ge.s32.totalorder %s14_s15, 6  }
 0x14d   :  { %13 = sbr.rel (!%p11_p4) target bundleno = 1 (0x1), region = 66 }

// kernel: forward.57
= control target key start
LH: loop header
LB: loop body
LE: loop exit
PB: predicated region body
PF: predicated region fallthrough
CT: control target
= control target key end

     0   :  { %vm100_vm0 = vcmask 523264   ;;  %s425_s1 = inlined_call_operand.vmem [shape: bf16[64,128], index: 1, kind: input, shape index: {}]   ;;  %s426_s0 = inlined_call_operand.vmem [shape: bf16[128,64], index: 0, kind: input, shape index: {}]   ;;  %s427_s2 = inlined_call_operand.vmem [shape: f32[128,128], index: 2, kind: output, shape index: {}]  }
   0x1   :  { %v306_v0 = vld [vmem:[%s425_s1 + $0x18] sm:$0xff]   ;;  %v307_v1 = vld [vmem:[%s425_s1 + $0x10] sm:$0xff]   ;;  %v308_v2 = vld [vmem:[%s425_s1 + $0x8] sm:$0xff]  }
   0x2   :  { %274 = vmatprep.subr.bf16.mxu0 %v306_v0  ;;  %298 = vmatprep.subr.bf16.mxu1 %v306_v0  ;;  %v310_v3 = vld [vmem:[%s426_s0] sm:$0xff]   ;;  %v312_v6 = vld [vmem:[%s426_s0 + $0x8] sm:$0xff]   ;;  %v314_v8 = vld [vmem:[%s426_s0 + $0x10] sm:$0xff]  }
   0x3   :  { %275 = vmatpush3.bf16.msra.mxu0 %v306_v0  ;;  %302 = vmatpush3.bf16.msra.mxu1 %v306_v0  ;;  %v311_v4 = vld [vmem:[%s426_s0 + $0x20] sm:$0xff]   ;;  %v313_v7 = vld [vmem:[%s426_s0 + $0x28] sm:$0xff]   ;;  %v315_v9 = vld [vmem:[%s426_s0 + $0x30] sm:$0xff]  }
   0x4   :  { %276 = vmatprep.subr.bf16.mxu0 %v307_v1  ;;  %299 = vmatprep.subr.bf16.mxu1 %v307_v1  ;;  %v309_v5 = vld [vmem:[%s425_s1] sm:$0xff]   ;;  %v316_v10 = vld [vmem:[%s426_s0 + $0x18] sm:$0xff]  }
   0x5   :  { %282 = vmatprep.mubr.msk.bf16.mxu0 %vm100_vm0, %v310_v3  ;;  %290 = vmatprep.mubr.msk.bf16.mxu1 %vm100_vm0, %v311_v4  ;;  %v317_v11 = vld [vmem:[%s426_s0 + $0x38] sm:$0xff]  }
   0x7   :  { %277 = vmatpush3.bf16.msra.mxu0 %v307_v1  ;;  %303 = vmatpush3.bf16.msra.mxu1 %v307_v1 }
   0x8   :  { %278 = vmatprep.subr.bf16.mxu0 %v308_v2  ;;  %300 = vmatprep.subr.bf16.mxu1 %v308_v2 }
   0xb   :  { %279 = vmatpush3.bf16.msra.mxu0 %v308_v2  ;;  %304 = vmatpush3.bf16.msra.mxu1 %v308_v2 }
   0xc   :  { %280 = vmatprep.subr.bf16.mxu0 %v309_v5  ;;  %301 = vmatprep.subr.bf16.mxu1 %v309_v5 }
   0xf   :  { %281 = vmatpush3.bf16.msra.mxu0 %v309_v5  ;;  %305 = vmatpush3.bf16.msra.mxu1 %v309_v5 }
  0x12   :  { %283 = vmatmul.mubr.msk.bf16.vlgmr.msra.gmra.mxu0 %vm100_vm0, %v312_v6  ;;  %291 = vmatmul.mubr.msk.bf16.vlgmr.msra.gmra.mxu1 %vm100_vm0, %v313_v7 }
  0x13   :  { %286 = vmatprep.mubr.msk.bf16.mxu0 %vm100_vm0, %v314_v8  ;;  %294 = vmatprep.mubr.msk.bf16.mxu1 %vm100_vm0, %v315_v9 }
  0x1a   :  { %287 = vmatmul.mubr.msk.bf16.gmra.mxu0 %vm100_vm0, %v316_v10  ;;  %295 = vmatmul.mubr.msk.bf16.gmra.mxu1 %vm100_vm0, %v317_v11 }
  0xd2   :  { %v284_v12 = vpop.f32.mrf.mxu0  ;;  %v292_v13 = vpop.f32.mrf.mxu1 }
  0xd3   :  { %224 = vst [vmem:[%s427_s2 + $0x10] sm:$0xff] %v284_v12  ;;  %232 = vst [vmem:[%s427_s2 + $0x50] sm:$0xff] %v292_v13 }
  0xd4   :  { %v159_v14 = vpop.f32.mrf.mxu0  ;;  %v191_v15 = vpop.f32.mrf.mxu1 }
  0xd5   :  { %222 = vst [vmem:[%s427_s2] sm:$0xff] %v159_v14  ;;  %230 = vst [vmem:[%s427_s2 + $0x40] sm:$0xff] %v191_v15 }
  0xd6   :  { %v285_v16 = vpop.f32.mrf.mxu0  ;;  %v293_v17 = vpop.f32.mrf.mxu1 }
  0xd7   :  { %225 = vst [vmem:[%s427_s2 + $0x18] sm:$0xff] %v285_v16  ;;  %233 = vst [vmem:[%s427_s2 + $0x58] sm:$0xff] %v293_v17 }
  0xd8   :  { %v162_v18 = vpop.f32.mrf.mxu0  ;;  %v194_v19 = vpop.f32.mrf.mxu1 }
  0xd9   :  { %223 = vst [vmem:[%s427_s2 + $0x8] sm:$0xff] %v162_v18  ;;  %231 = vst [vmem:[%s427_s2 + $0x48] sm:$0xff] %v194_v19 }
  0xda   :  { %v288_v20 = vpop.f32.mrf.mxu0  ;;  %v296_v21 = vpop.f32.mrf.mxu1 }
  0xdb   :  { %228 = vst [vmem:[%s427_s2 + $0x30] sm:$0xff] %v288_v20  ;;  %236 = vst [vmem:[%s427_s2 + $0x70] sm:$0xff] %v296_v21 }
  0xdc   :  { %v175_v22 = vpop.f32.mrf.mxu0  ;;  %v207_v23 = vpop.f32.mrf.mxu1 }
  0xdd   :  { %226 = vst [vmem:[%s427_s2 + $0x20] sm:$0xff] %v175_v22  ;;  %234 = vst [vmem:[%s427_s2 + $0x60] sm:$0xff] %v207_v23 }
  0xde   :  { %v289_v24 = vpop.f32.mrf.mxu0  ;;  %v297_v25 = vpop.f32.mrf.mxu1 }
  0xdf   :  { %229 = vst [vmem:[%s427_s2 + $0x38] sm:$0xff] %v289_v24  ;;  %237 = vst [vmem:[%s427_s2 + $0x78] sm:$0xff] %v297_v25 }
  0xe0   :  { %v178_v26 = vpop.f32.mrf.mxu0  ;;  %v210_v27 = vpop.f32.mrf.mxu1 }
  0xe1   :  { %227 = vst [vmem:[%s427_s2 + $0x28] sm:$0xff] %v178_v26  ;;  %235 = vst [vmem:[%s427_s2 + $0x68] sm:$0xff] %v210_v27 }

// kernel: forward.59
= control target key start
LH: loop header
LB: loop body
LE: loop exit
PB: predicated region body
PF: predicated region fallthrough
CT: control target
= control target key end

     0   :  { %v32_v0 = vlaneseq  ;;  %s346_s1 = inlined_call_operand.vmem [shape: f32[1,1024], index: 1, kind: input, shape index: {}]   ;;  %s347_s2 = inlined_call_operand.vmem [shape: f32[1,1024], index: 2, kind: input, shape index: {}]   ;;  %s348_s0 = inlined_call_operand.vmem [shape: f32[16,1024], index: 0, kind: input, shape index: {}]   ;;  %s349_s3 = inlined_call_operand.vmem [shape: bf16[16,1024], index: 3, kind: output, shape index: {}]  }
   0x1   :  { %v30_v2 = vld [vmem:[%s346_s1] sm:$0xff]  ;;  %v15_v9 = vld [vmem:[%s348_s0 + $0x8] sm:$0xff]  ;;  %v16_v18 = vld [vmem:[%s348_s0 + $0x10] sm:$0xff] }
   0x2   :  { %v258_v1 = vshrl.u32 %v32_v0, 7  ;;  %v88_v3 = vld [vmem:[%s347_s2] sm:$0xff]  ;;  %v17_v19 = vld [vmem:[%s348_s0 + $0x18] sm:$0xff]  ;;  %v19_v25 = vld [vmem:[%s348_s0 + $0x28] sm:$0xff] }
   0x3   :  { %v14_v8 = vld [vmem:[%s348_s0] sm:$0xff]  ;;  %v20_v38 = vld [vmem:[%s348_s0 + $0x30] sm:$0xff]  ;;  %v21_v39 = vld [vmem:[%s348_s0 + $0x38] sm:$0xff] }
   0x4   :  { %v34_v4 = vsub.s32 0, %v258_v1  ;;  %v38_v5 = vsub.s32 1, %v258_v1  ;;  %v42_v6 = vsub.s32 2, %v258_v1  ;;  %v46_v7 = vsub.s32 3, %v258_v1  ;;  %v18_v24 = vld [vmem:[%s348_s0 + $0x20] sm:$0xff]  ;;  %v23_v49 = vld [vmem:[%s348_s0 + $0x48] sm:$0xff] }
   0x5   :  { %v50_v10 = vsub.s32 4, %v258_v1  ;;  %v54_v11 = vsub.s32 5, %v258_v1  ;;  %v58_v12 = vsub.s32 6, %v258_v1  ;;  %v62_v13 = vsub.s32 7, %v258_v1  ;;  %v22_v48 = vld [vmem:[%s348_s0 + $0x40] sm:$0xff]  ;;  %v24_v54 = vld [vmem:[%s348_s0 + $0x50] sm:$0xff] }
   0x6   :  { %v35_v14 = vrot.slane %v30_v2, %v34_v4  ;;  %v39_v15 = vrot.slane %v30_v2, %v38_v5  ;;  %v93_v16 = vrot.slane %v88_v3, %v34_v4  ;;  %v97_v17 = vrot.slane %v88_v3, %v38_v5  ;;  %v25_v55 = vld [vmem:[%s348_s0 + $0x58] sm:$0xff]  ;;  %v26_v60 = vld [vmem:[%s348_s0 + $0x60] sm:$0xff]  ;;  %v27_v1 = vld [vmem:[%s348_s0 + $0x68] sm:$0xff] }
   0x7   :  { %v43_v20 = vrot.slane %v30_v2, %v42_v6  ;;  %v47_v21 = vrot.slane %v30_v2, %v46_v7  ;;  %v101_v22 = vrot.slane %v88_v3, %v42_v6  ;;  %v105_v23 = vrot.slane %v88_v3, %v46_v7 }
   0x8   :  { %v72_v26 = vmul.f32 %v35_v14, %v14_v8  ;;  %v73_v27 = vmul.f32 %v39_v15, %v15_v9  ;;  %v51_v28 = vrot.slane %v30_v2, %v50_v10  ;;  %v55_v29 = vrot.slane %v30_v2, %v54_v11 }
   0x9   :  { %v74_v30 = vmul.f32 %v43_v20, %v16_v18  ;;  %v75_v31 = vmul.f32 %v47_v21, %v17_v19  ;;  %v109_v32 = vrot.slane %v88_v3, %v50_v10  ;;  %v113_v33 = vrot.slane %v88_v3, %v54_v11  ;;  %v28_v10 = vld [vmem:[%s348_s0 + $0x70] sm:$0xff] }
   0xa   :  { %v130_v34 = vadd.f32 %v93_v16, %v72_v26  ;;  %v131_v35 = vadd.f32 %v97_v17, %v73_v27  ;;  %v76_v36 = vmul.f32 %v51_v28, %v18_v24  ;;  %v77_v37 = vmul.f32 %v55_v29, %v19_v25 }
   0xb   :  { %v132_v40 = vadd.f32 %v101_v22, %v74_v30  ;;  %v133_v41 = vadd.f32 %v105_v23, %v75_v31  ;;  %v59_v42 = vrot.slane %v30_v2, %v58_v12  ;;  %v63_v43 = vrot.slane %v30_v2, %v62_v13 }
   0xc   :  { %v146_v44 = vmax.f32 %v130_v34, 0.0  ;;  %v147_v45 = vmax.f32 %v131_v35, 0.0  ;;  %v134_v46 = vadd.f32 %v109_v32, %v76_v36  ;;  %v135_v47 = vadd.f32 %v113_v33, %v77_v37 }
   0xd   :  { %v148_v50 = vmax.f32 %v132_v40, 0.0  ;;  %v149_v51 = vmax.f32 %v133_v41, 0.0  ;;  %v78_v52 = vmul.f32 %v59_v42, %v20_v38  ;;  %v79_v53 = vmul.f32 %v63_v43, %v21_v39 }
   0xe   :  { %v230_v56 = vpack.c.bf16 %v147_v45, %v146_v44  ;;  %v150_v57 = vmax.f32 %v134_v46, 0.0  ;;  %v151_v58 = vmax.f32 %v135_v47, 0.0  ;;  %v117_v59 = vrot.slane %v88_v3, %v58_v12 }
   0xf   :  { %v231_v61 = vpack.c.bf16 %v149_v51, %v148_v50  ;;  %v121_v62 = vrot.slane %v88_v3, %v62_v13  ;;  %v80_v63 = vmul.f32 %v35_v14, %v22_v48  ;;  %v81_v0 = vmul.f32 %v39_v15, %v23_v49  ;;  %v29_v15 = vld [vmem:[%s348_s0 + $0x78] sm:$0xff] }
  0x10   :  { %210 = vst [vmem:[%s349_s3] sm:$0xff] %v230_v56  ;;  %v232_v2 = vpack.c.bf16 %v151_v58, %v150_v57  ;;  %v136_v4 = vadd.f32 %v117_v59, %v78_v52  ;;  %v82_v5 = vmul.f32 %v43_v20, %v24_v54  ;;  %v83_v6 = vmul.f32 %v47_v21, %v25_v55 }
  0x11   :  { %211 = vst [vmem:[%s349_s3 + $0x8] sm:$0xff] %v231_v61  ;;  %v137_v7 = vadd.f32 %v121_v62, %v79_v53  ;;  %v138_v3 = vadd.f32 %v93_v16, %v80_v63  ;;  %v139_v8 = vadd.f32 %v97_v17, %v81_v0  ;;  %v84_v9 = vmul.f32 %v51_v28, %v26_v60 }
  0x12   :  { %212 = vst [vmem:[%s349_s3 + $0x10] sm:$0xff] %v232_v2  ;;  %v152_v11 = vmax.f32 %v136_v4, 0.0  ;;  %v140_v12 = vadd.f32 %v101_v22, %v82_v5  ;;  %v141_v13 = vadd.f32 %v105_v23, %v83_v6  ;;  %v85_v14 = vmul.f32 %v55_v29, %v27_v1 }
  0x13   :  { %v153_v18 = vmax.f32 %v137_v7, 0.0  ;;  %v154_v16 = vmax.f32 %v138_v3, 0.0  ;;  %v155_v17 = vmax.f32 %v139_v8, 0.0  ;;  %v142_v19 = vadd.f32 %v109_v32, %v84_v9 }
  0x14   :  { %v156_v20 = vmax.f32 %v140_v12, 0.0  ;;  %v157_v21 = vmax.f32 %v141_v13, 0.0  ;;  %v143_v24 = vadd.f32 %v113_v33, %v85_v14  ;;  %v86_v25 = vmul.f32 %v59_v42, %v28_v10 }
  0x15   :  { %v233_v26 = vpack.c.bf16 %v153_v18, %v152_v11  ;;  %v234_v27 = vpack.c.bf16 %v155_v17, %v154_v16  ;;  %v158_v28 = vmax.f32 %v142_v19, 0.0  ;;  %v87_v30 = vmul.f32 %v63_v43, %v29_v15 }
  0x16   :  { %v235_v31 = vpack.c.bf16 %v157_v21, %v156_v20  ;;  %v159_v22 = vmax.f32 %v143_v24, 0.0  ;;  %v144_v23 = vadd.f32 %v117_v59, %v86_v25 }
  0x17   :  { %213 = vst [vmem:[%s349_s3 + $0x18] sm:$0xff] %v233_v26  ;;  %214 = vst [vmem:[%s349_s3 + $0x20] sm:$0xff] %v234_v27  ;;  %v145_v29 = vadd.f32 %v121_v62, %v87_v30 }
  0x18   :  { %215 = vst [vmem:[%s349_s3 + $0x28] sm:$0xff] %v235_v31  ;;  %v236_v32 = vpack.c.bf16 %v159_v22, %v158_v28  ;;  %v160_v33 = vmax.f32 %v144_v23, 0.0 }
  0x19   :  { %v161_v34 = vmax.f32 %v145_v29, 0.0 }
  0x1a   :  { %216 = vst [vmem:[%s349_s3 + $0x30] sm:$0xff] %v236_v32 }
  0x1b   :  { %v237_v35 = vpack.c.bf16 %v161_v34, %v160_v33 }
  0x1d   :  { %217 = vst [vmem:[%s349_s3 + $0x38] sm:$0xff] %v237_v35 }

// kernel: forward.58
= control target key start
LH: loop header
LB: loop body
LE: loop exit
PB: predicated region body
PF: predicated region fallthrough
CT: control target
= control target key end

     0   :  { %s2883_s1 = inlined_call_operand.vmem [shape: bf16[1152,128], index: 1, kind: input, shape index: {}]   ;;  %s2884_s0 = inlined_call_operand.vmem [shape: bf16[128,1152], index: 0, kind: input, shape index: {}]   ;;  %s2885_s2 = inlined_call_operand.vmem [shape: f32[128,128], index: 2, kind: input, shape index: {}]   ;;  %s2886_s3 = inlined_call_operand.vmem [shape: f32[128,128], index: 3, kind: output, shape index: {}]  }
   0x1   :  { %v2024_v0 = vld [vmem:[%s2883_s1 + $0x78] sm:$0xff]   ;;  %v2028_v4 = vld [vmem:[%s2883_s1 + $0x70] sm:$0xff]   ;;  %v2032_v8 = vld [vmem:[%s2883_s1 + $0x68] sm:$0xff]  }
   0x2   :  { %v2025_v1 = vld [vmem:[%s2883_s1 + $0xf8] sm:$0xff]   ;;  %1704 = vmatprep.subr.bf16.mxu0 %v2024_v0  ;;  %v2029_v5 = vld [vmem:[%s2883_s1 + $0xf0] sm:$0xff]   ;;  %v2033_v9 = vld [vmem:[%s2883_s1 + $0xe8] sm:$0xff]  }
   0x3   :  { %v2026_v2 = vld [vmem:[%s2883_s1 + $0x38] sm:$0xff]   ;;  %1768 = vmatprep.subr.bf16.mxu1 %v2025_v1  ;;  %v2030_v6 = vld [vmem:[%s2883_s1 + $0x30] sm:$0xff]   ;;  %v2034_v10 = vld [vmem:[%s2883_s1 + $0x28] sm:$0xff]  }
   0x4   :  { %v2027_v3 = vld [vmem:[%s2883_s1 + $0xb8] sm:$0xff]   ;;  %1705 = vmatpush3.bf16.msra.mxu0 %v2026_v2  ;;  %v2031_v7 = vld [vmem:[%s2883_s1 + $0xb0] sm:$0xff]   ;;  %v2035_v11 = vld [vmem:[%s2883_s1 + $0xa8] sm:$0xff]  }
   0x5   :  { %1769 = vmatpush3.bf16.msra.mxu1 %v2027_v3  ;;  %1706 = vmatprep.subr.bf16.mxu0 %v2028_v4  ;;  %v2036_v12 = vld [vmem:[%s2883_s1 + $0x60] sm:$0xff]   ;;  %v2040_v16 = vld [vmem:[%s2883_s1 + $0x58] sm:$0xff]   ;;  %v2044_v20 = vld [vmem:[%s2883_s1 + $0x50] sm:$0xff]  }
   0x6   :  { %1770 = vmatprep.subr.bf16.mxu1 %v2029_v5  ;;  %v2037_v13 = vld [vmem:[%s2883_s1 + $0xe0] sm:$0xff]   ;;  %v2041_v17 = vld [vmem:[%s2883_s1 + $0xd8] sm:$0xff]   ;;  %v2045_v21 = vld [vmem:[%s2883_s1 + $0xd0] sm:$0xff]  }
   0x7   :  { %v2038_v14 = vld [vmem:[%s2883_s1 + $0x20] sm:$0xff]   ;;  %v2042_v18 = vld [vmem:[%s2883_s1 + $0x18] sm:$0xff]   ;;  %v2046_v22 = vld [vmem:[%s2883_s1 + $0x10] sm:$0xff]  }
   0x8   :  { %1707 = vmatpush3.bf16.msra.mxu0 %v2030_v6  ;;  %v2039_v15 = vld [vmem:[%s2883_s1 + $0xa0] sm:$0xff]   ;;  %v2043_v19 = vld [vmem:[%s2883_s1 + $0x98] sm:$0xff]   ;;  %v2047_v23 = vld [vmem:[%s2883_s1 + $0x90] sm:$0xff]  }
   0x9   :  { %1771 = vmatpush3.bf16.msra.mxu1 %v2031_v7  ;;  %1708 = vmatprep.subr.bf16.mxu0 %v2032_v8  ;;  %v2048_v24 = vld [vmem:[%s2883_s1 + $0x48] sm:$0xff]   ;;  %v2052_v28 = vld [vmem:[%s2883_s1 + $0x40] sm:$0xff]   ;;  %v2062_v36 = vld [vmem:[%s2883_s1 + $0x178] sm:$0xff]  }
   0xa   :  { %1772 = vmatprep.subr.bf16.mxu1 %v2033_v9  ;;  %v2049_v25 = vld [vmem:[%s2883_s1 + $0xc8] sm:$0xff]   ;;  %v2053_v29 = vld [vmem:[%s2883_s1 + $0xc0] sm:$0xff]   ;;  %v2063_v37 = vld [vmem:[%s2883_s1 + $0x1f8] sm:$0xff]  }
   0xb   :  { %v2050_v26 = vld [vmem:[%s2883_s1 + $0x8] sm:$0xff]   ;;  %v2054_v30 = vld [vmem:[%s2883_s1] sm:$0xff]   ;;  %v2064_v38 = vld [vmem:[%s2883_s1 + $0x138] sm:$0xff]  }
   0xc   :  { %1709 = vmatpush3.bf16.msra.mxu0 %v2034_v10  ;;  %v2051_v27 = vld [vmem:[%s2883_s1 + $0x88] sm:$0xff]   ;;  %v2055_v31 = vld [vmem:[%s2883_s1 + $0x80] sm:$0xff]   ;;  %v2065_v39 = vld [vmem:[%s2883_s1 + $0x1b8] sm:$0xff]  }
   0xd   :  { %1773 = vmatpush3.bf16.msra.mxu1 %v2035_v11  ;;  %1710 = vmatprep.subr.bf16.mxu0 %v2036_v12  ;;  %v2056_v32 = vld [vmem:[%s2884_s0] ss:$36 sps:$4 sm:$0xff]   ;;  %v2059_v34 = vld [vmem:[%s2884_s0 + $0x8] ss:$36 sps:$4 sm:$0xff]   ;;  %v2068_v41 = vld [vmem:[%s2884_s0 + $0x54] ss:$36 sps:$4 sm:$0xff]  }
   0xe   :  { %1774 = vmatprep.subr.bf16.mxu1 %v2037_v13  ;;  %v2058_v33 = vld [vmem:[%s2884_s0 + $0x4] ss:$36 sps:$4 sm:$0xff]   ;;  %v2061_v35 = vld [vmem:[%s2884_s0 + $0xc] ss:$36 sps:$4 sm:$0xff]   ;;  %v2076_v48 = vld [vmem:[%s2884_s0 + $0x94] ss:$36 sps:$4 sm:$0xff]  }
   0xf   :  { %1087 = vmatprep.mubr.bf16.mxu0 %v2058_v33  ;;  %1184 = vmatprep.mubr.bf16.mxu1 %v2061_v35  ;;  %v2066_v40 = vld [vmem:[%s2884_s0 + $0x4c] ss:$36 sps:$4 sm:$0xff]   ;;  %v2078_v49 = vld [vmem:[%s2884_s0 + $0x9c] ss:$36 sps:$4 sm:$0xff]   ;;  %v2088_v57 = vld [vmem:[%s2884_s0 + $0xe4] ss:$36 sps:$4 sm:$0xff]  }
  0x10   :  { %1711 = vmatpush3.bf16.msra.mxu0 %v2038_v14  ;;  %v2070_v42 = vld [vmem:[%s2884_s0 + $0x48] ss:$36 sps:$4 sm:$0xff]   ;;  %v2071_v43 = vld [vmem:[%s2884_s0 + $0x50] ss:$36 sps:$4 sm:$0xff]   ;;  %v2081_v51 = vld [vmem:[%s2884_s0 + $0x98] ss:$36 sps:$4 sm:$0xff]  }
  0x11   :  { %1775 = vmatpush3.bf16.msra.mxu1 %v2039_v15  ;;  %1712 = vmatprep.subr.bf16.mxu0 %v2040_v16  ;;  %v2072_v44 = vld [vmem:[%s2883_s1 + $0x170] sm:$0xff]   ;;  %v2082_v52 = vld [vmem:[%s2883_s1 + $0x168] sm:$0xff]   ;;  %v2086_v56 = vld [vmem:[%s2884_s0 + $0xdc] ss:$36 sps:$4 sm:$0xff]  }
  0x12   :  { %1776 = vmatprep.subr.bf16.mxu1 %v2041_v17  ;;  %v2073_v45 = vld [vmem:[%s2883_s1 + $0x1f0] sm:$0xff]   ;;  %v2083_v53 = vld [vmem:[%s2883_s1 + $0x1e8] sm:$0xff]   ;;  %v2090_v58 = vld [vmem:[%s2884_s0 + $0xd8] ss:$36 sps:$4 sm:$0xff]  }
  0x13   :  { %v2074_v46 = vld [vmem:[%s2883_s1 + $0x130] sm:$0xff]   ;;  %v2084_v54 = vld [vmem:[%s2883_s1 + $0x128] sm:$0xff]   ;;  %v2091_v59 = vld [vmem:[%s2884_s0 + $0xe0] ss:$36 sps:$4 sm:$0xff]  }
  0x14   :  { %1713 = vmatpush3.bf16.msra.mxu0 %v2042_v18  ;;  %v2075_v47 = vld [vmem:[%s2883_s1 + $0x1b0] sm:$0xff]   ;;  %v2085_v55 = vld [vmem:[%s2883_s1 + $0x1a8] sm:$0xff]   ;;  %v2092_v60 = vld [vmem:[%s2883_s1 + $0x160] sm:$0xff]  }
  0x15   :  { %1777 = vmatpush3.bf16.msra.mxu1 %v2043_v19  ;;  %1714 = vmatprep.subr.bf16.mxu0 %v2044_v20  ;;  %v2080_v50 = vld [vmem:[%s2884_s0 + $0x90] ss:$36 sps:$4 sm:$0xff]   ;;  %v2093_v61 = vld [vmem:[%s2883_s1 + $0x1e0] sm:$0xff]   ;;  %v2102_v3 = vld [vmem:[%s2883_s1 + $0x158] sm:$0xff]  }
  0x16   :  { %1778 = vmatprep.subr.bf16.mxu1 %v2045_v21  ;;  %v2094_v62 = vld [vmem:[%s2883_s1 + $0x120] sm:$0xff]   ;;  %v2098_v1 = vld [vmem:[%s2884_s0 + $0x12c] ss:$36 sps:$4 sm:$0xff]   ;;  %v2103_v5 = vld [vmem:[%s2883_s1 + $0x1d8] sm:$0xff]  }
  0x17   :  { %v2095_v63 = vld [vmem:[%s2883_s1 + $0x1a0] sm:$0xff]   ;;  %v2101_v4 = vld [vmem:[%s2884_s0 + $0x128] ss:$36 sps:$4 sm:$0xff]   ;;  %v2104_v6 = vld [vmem:[%s2883_s1 + $0x118] sm:$0xff]  }
  0x18   :  { %1715 = vmatpush3.bf16.msra.mxu0 %v2046_v22  ;;  %v2096_v0 = vld [vmem:[%s2884_s0 + $0x124] ss:$36 sps:$4 sm:$0xff]   ;;  %v2105_v7 = vld [vmem:[%s2883_s1 + $0x198] sm:$0xff]   ;;  %v2106_v8 = vld [vmem:[%s2884_s0 + $0x16c] ss:$36 sps:$4 sm:$0xff]  }
  0x19   :  { %1779 = vmatpush3.bf16.msra.mxu1 %v2047_v23  ;;  %1716 = vmatprep.subr.bf16.mxu0 %v2048_v24  ;;  %v2100_v2 = vld [vmem:[%s2884_s0 + $0x120] ss:$36 sps:$4 sm:$0xff]   ;;  %v2108_v9 = vld [vmem:[%s2884_s0 + $0x174] ss:$36 sps:$4 sm:$0xff]   ;;  %v2110_v12 = vld [vmem:[%s2884_s0 + $0x168] ss:$36 sps:$4 sm:$0xff]  }
  0x1a   :  { %1780 = vmatprep.subr.bf16.mxu1 %v2049_v25  ;;  %v2112_v10 = vld [vmem:[%s2883_s1 + $0x150] sm:$0xff]   ;;  %v2118_v17 = vld [vmem:[%s2884_s0 + $0x1bc] ss:$36 sps:$4 sm:$0xff]   ;;  %v2122_v18 = vld [vmem:[%s2883_s1 + $0x148] sm:$0xff]  }
  0x1b   :  { %v2113_v11 = vld [vmem:[%s2883_s1 + $0x1d0] sm:$0xff]   ;;  %v2123_v19 = vld [vmem:[%s2883_s1 + $0x1c8] sm:$0xff]   ;;  %v2121_v23 = vld [vmem:[%s2884_s0 + $0x1b8] ss:$36 sps:$4 sm:$0xff]  }
  0x1c   :  { %1717 = vmatpush3.bf16.msra.mxu0 %v2050_v26  ;;  %v2114_v13 = vld [vmem:[%s2883_s1 + $0x110] sm:$0xff]   ;;  %v2124_v20 = vld [vmem:[%s2883_s1 + $0x108] sm:$0xff]   ;;  %v2126_v24 = vld [vmem:[%s2884_s0 + $0x1fc] ss:$36 sps:$4 sm:$0xff]  }
  0x1d   :  { %1781 = vmatpush3.bf16.msra.mxu1 %v2051_v27  ;;  %1718 = vmatprep.subr.bf16.mxu0 %v2052_v28  ;;  %v2115_v14 = vld [vmem:[%s2883_s1 + $0x190] sm:$0xff]   ;;  %v2125_v21 = vld [vmem:[%s2883_s1 + $0x188] sm:$0xff]   ;;  %v2132_v26 = vld [vmem:[%s2883_s1 + $0x140] sm:$0xff]  }
  0x1e   :  { %1782 = vmatprep.subr.bf16.mxu1 %v2053_v29  ;;  %v2111_v15 = vld [vmem:[%s2884_s0 + $0x170] ss:$36 sps:$4 sm:$0xff]   ;;  %v2128_v25 = vld [vmem:[%s2884_s0 + $0x204] ss:$36 sps:$4 sm:$0xff]  }
  0x1f   :  { %v2116_v16 = vld [vmem:[%s2884_s0 + $0x1b4] ss:$36 sps:$4 sm:$0xff]   ;;  %v2133_v27 = vld [vmem:[%s2883_s1 + $0x1c0] sm:$0xff]  }
  0x20   :  { %1719 = vmatpush3.bf16.msra.mxu0 %v2054_v30  ;;  %v2120_v22 = vld [vmem:[%s2884_s0 + $0x1b0] ss:$36 sps:$4 sm:$0xff]   ;;  %v2134_v28 = vld [vmem:[%s2883_s1 + $0x100] sm:$0xff]   ;;  %v2130_v30 = vld [vmem:[%s2884_s0 + $0x1f8] ss:$36 sps:$4 sm:$0xff]  }
  0x21   :  { %1783 = vmatpush3.bf16.msra.mxu1 %v2055_v31  ;;  %1832 = vmatprep.subr.bf16.mxu0 %v2062_v36  ;;  %v2135_v29 = vld [vmem:[%s2883_s1 + $0x180] sm:$0xff]   ;;  %v2138_v33 = vld [vmem:[%s2884_s0 + $0x14] ss:$36 sps:$4 sm:$0xff]  }
  0x22   :  { %1896 = vmatprep.subr.bf16.mxu1 %v2063_v37  ;;  %v2131_v31 = vld [vmem:[%s2884_s0 + $0x200] ss:$36 sps:$4 sm:$0xff]   ;;  %v2136_v35 = vld [vmem:[%s2884_s0 + $0x10] ss:$36 sps:$4 sm:$0xff]   ;;  %v2139_v36 = vld [vmem:[%s2884_s0 + $0x18] ss:$36 sps:$4 sm:$0xff]  }
  0x23   :  { %1088 = vmatmul.mubr.bf16.vlgmr.msra.gmra.mxu0 %v2056_v32  ;;  %v2142_v32 = vld [vmem:[%s2883_s1 + $0x238] sm:$0xff]  }
  0x24   :  { %1185 = vmatmul.mubr.bf16.vlgmr.msra.gmra.mxu1 %v2059_v34  ;;  %1833 = vmatpush3.bf16.msra.mxu0 %v2064_v38  ;;  %v2141_v34 = vld [vmem:[%s2884_s0 + $0x1c] ss:$36 sps:$4 sm:$0xff]   ;;  %v2145_v38 = vld [vmem:[%s2884_s0 + $0x64] ss:$36 sps:$4 sm:$0xff]  }
  0x25   :  { %1897 = vmatpush3.bf16.msra.mxu1 %v2065_v39  ;;  %1095 = vmatprep.mubr.bf16.mxu0 %v2066_v40  ;;  %v2143_v37 = vld [vmem:[%s2884_s0 + $0x5c] ss:$36 sps:$4 sm:$0xff]   ;;  %v2149_v39 = vld [vmem:[%s2883_s1 + $0x230] sm:$0xff]   ;;  %v2156_v40 = vld [vmem:[%s2883_s1 + $0x228] sm:$0xff]  }
  0x26   :  { %1192 = vmatprep.mubr.bf16.mxu1 %v2068_v41  ;;  %1834 = vmatprep.subr.bf16.mxu0 %v2072_v44  ;;  %v2147_v41 = vld [vmem:[%s2884_s0 + $0x58] ss:$36 sps:$4 sm:$0xff]   ;;  %v2152_v44 = vld [vmem:[%s2884_s0 + $0xac] ss:$36 sps:$4 sm:$0xff]  }
  0x27   :  { %1898 = vmatprep.subr.bf16.mxu1 %v2073_v45  ;;  %v2163_v45 = vld [vmem:[%s2883_s1 + $0x220] sm:$0xff]  }
  0x28   :  { %1835 = vmatpush3.bf16.msra.mxu0 %v2074_v46  ;;  %v2170_v46 = vld [vmem:[%s2883_s1 + $0x218] sm:$0xff]  }
  0x29   :  { %1899 = vmatpush3.bf16.msra.mxu1 %v2075_v47  ;;  %1836 = vmatprep.subr.bf16.mxu0 %v2082_v52  ;;  %v2154_v47 = vld [vmem:[%s2884_s0 + $0xa0] ss:$36 sps:$4 sm:$0xff]   ;;  %v2161_v52 = vld [vmem:[%s2884_s0 + $0xe8] ss:$36 sps:$4 sm:$0xff]  }
  0x2a   :  { %1900 = vmatprep.subr.bf16.mxu1 %v2083_v53  ;;  %v2184_v53 = vld [vmem:[%s2883_s1 + $0x208] sm:$0xff]  }
  0x2b   :  { %1096 = vmatmul.mubr.bf16.gmra.mxu0 %v2070_v42  ;;  %v2148_v42 = vld [vmem:[%s2884_s0 + $0x60] ss:$36 sps:$4 sm:$0xff]  }
  0x2c   :  { %1193 = vmatmul.mubr.bf16.gmra.mxu1 %v2071_v43  ;;  %1103 = vmatprep.mubr.bf16.mxu0 %v2076_v48  ;;  %v2150_v43 = vld [vmem:[%s2884_s0 + $0xa4] ss:$36 sps:$4 sm:$0xff]  }
  0x2d   :  { %1200 = vmatprep.mubr.bf16.mxu1 %v2078_v49  ;;  %1837 = vmatpush3.bf16.msra.mxu0 %v2084_v54  ;;  %v2155_v48 = vld [vmem:[%s2884_s0 + $0xa8] ss:$36 sps:$4 sm:$0xff]   ;;  %v2162_v54 = vld [vmem:[%s2884_s0 + $0xf0] ss:$36 sps:$4 sm:$0xff]  }
  0x2e   :  { %1901 = vmatpush3.bf16.msra.mxu1 %v2085_v55  ;;  %1838 = vmatprep.subr.bf16.mxu0 %v2092_v60  ;;  %v2157_v49 = vld [vmem:[%s2884_s0 + $0xec] ss:$36 sps:$4 sm:$0xff]   ;;  %v2164_v55 = vld [vmem:[%s2884_s0 + $0x134] ss:$36 sps:$4 sm:$0xff]   ;;  %v2171_v60 = vld [vmem:[%s2884_s0 + $0x17c] ss:$36 sps:$4 sm:$0xff]  }
  0x2f   :  { %1902 = vmatprep.subr.bf16.mxu1 %v2093_v61  ;;  %v2173_v61 = vld [vmem:[%s2884_s0 + $0x184] ss:$36 sps:$4 sm:$0xff]  }
  0x31   :  { %1839 = vmatpush3.bf16.msra.mxu0 %v2094_v62  ;;  %v2175_v62 = vld [vmem:[%s2884_s0 + $0x178] ss:$36 sps:$4 sm:$0xff]  }
  0x32   :  { %1903 = vmatpush3.bf16.msra.mxu1 %v2095_v63  ;;  %1840 = vmatprep.subr.bf16.mxu0 %v2102_v3  ;;  %v2176_v63 = vld [vmem:[%s2884_s0 + $0x180] ss:$36 sps:$4 sm:$0xff]   ;;  %v2183_v3 = vld [vmem:[%s2884_s0 + $0x1c8] ss:$36 sps:$4 sm:$0xff]  }
  0x33   :  { %1104 = vmatmul.mubr.bf16.gmra.mxu0 %v2080_v50  ;;  %1904 = vmatprep.subr.bf16.mxu1 %v2103_v5  ;;  %v2159_v50 = vld [vmem:[%s2884_s0 + $0xf4] ss:$36 sps:$4 sm:$0xff]  }
  0x34   :  { %1201 = vmatmul.mubr.bf16.gmra.mxu1 %v2081_v51  ;;  %1111 = vmatprep.mubr.bf16.mxu0 %v2086_v56  ;;  %v2177_v51 = vld [vmem:[%s2883_s1 + $0x210] sm:$0xff]   ;;  %v2166_v56 = vld [vmem:[%s2884_s0 + $0x13c] ss:$36 sps:$4 sm:$0xff]  }
  0x35   :  { %1208 = vmatprep.mubr.bf16.mxu1 %v2088_v57  ;;  %1841 = vmatpush3.bf16.msra.mxu0 %v2104_v6  ;;  %v2191_v57 = vld [vmem:[%s2883_s1 + $0x200] sm:$0xff]   ;;  %v2187_v5 = vld [vmem:[%s2884_s0 + $0x214] ss:$36 sps:$4 sm:$0xff]   ;;  %v2189_v6 = vld [vmem:[%s2884_s0 + $0x208] ss:$36 sps:$4 sm:$0xff]  }
  0x36   :  { %1905 = vmatpush3.bf16.msra.mxu1 %v2105_v7  ;;  %1842 = vmatprep.subr.bf16.mxu0 %v2112_v10  ;;  %v2190_v7 = vld [vmem:[%s2884_s0 + $0x210] ss:$36 sps:$4 sm:$0xff]   ;;  %v2194_v10 = vld [vmem:[%s2884_s0 + $0x68] ss:$36 sps:$4 sm:$0xff]  }
  0x37   :  { %1906 = vmatprep.subr.bf16.mxu1 %v2113_v11  ;;  %v2195_v11 = vld [vmem:[%s2884_s0 + $0x188] ss:$36 sps:$4 sm:$0xff]  }
  0x39   :  { %1843 = vmatpush3.bf16.msra.mxu0 %v2114_v13  ;;  %v2197_v13 = vld [vmem:[%s2884_s0 + $0x1d0] ss:$36 sps:$4 sm:$0xff]  }
  0x3a   :  { %1907 = vmatpush3.bf16.msra.mxu1 %v2115_v14  ;;  %1844 = vmatprep.subr.bf16.mxu0 %v2122_v18  ;;  %v2198_v14 = vld [vmem:[%s2884_s0 + $0xf8] ss:$36 sps:$4 sm:$0xff]   ;;  %v239_v18 = vld [vmem:[%s2885_s2] sm:$0xff] }
  0x3b   :  { %1112 = vmatmul.mubr.bf16.gmra.mxu0 %v2090_v58  ;;  %1908 = vmatprep.subr.bf16.mxu1 %v2123_v19  ;;  %v2168_v58 = vld [vmem:[%s2884_s0 + $0x130] ss:$36 sps:$4 sm:$0xff]  }
  0x3c   :  { %1209 = vmatmul.mubr.bf16.gmra.mxu1 %v2091_v59  ;;  %1119 = vmatprep.mubr.bf16.mxu0 %v2096_v0  ;;  %v2169_v59 = vld [vmem:[%s2884_s0 + $0x138] ss:$36 sps:$4 sm:$0xff]   ;;  %v2178_v0 = vld [vmem:[%s2884_s0 + $0x1c4] ss:$36 sps:$4 sm:$0xff]  }
  0x3d   :  { %1216 = vmatprep.mubr.bf16.mxu1 %v2098_v1  ;;  %1845 = vmatpush3.bf16.msra.mxu0 %v2124_v20  ;;  %v2180_v1 = vld [vmem:[%s2884_s0 + $0x1cc] ss:$36 sps:$4 sm:$0xff]  }
  0x3e   :  { %1909 = vmatpush3.bf16.msra.mxu1 %v2125_v21  ;;  %1846 = vmatprep.subr.bf16.mxu0 %v2132_v26  ;;  %v240_v26 = vld [vmem:[%s2885_s2 + $0x8] sm:$0xff] }
  0x3f   :  { %1910 = vmatprep.subr.bf16.mxu1 %v2133_v27 }
  0x41   :  { %1847 = vmatpush3.bf16.msra.mxu0 %v2134_v28 }
  0x42   :  { %1911 = vmatpush3.bf16.msra.mxu1 %v2135_v29  ;;  %1976 = vmatprep.subr.bf16.mxu0 %v2142_v32 }
  0x43   :  { %1120 = vmatmul.mubr.bf16.gmra.mxu0 %v2100_v2  ;;  %2008 = vmatprep.subr.bf16.mxu1 %v2142_v32  ;;  %v2182_v2 = vld [vmem:[%s2884_s0 + $0x1c0] ss:$36 sps:$4 sm:$0xff]  }
  0x44   :  { %1217 = vmatmul.mubr.bf16.gmra.mxu1 %v2101_v4  ;;  %1127 = vmatprep.mubr.bf16.mxu0 %v2106_v8  ;;  %v2185_v4 = vld [vmem:[%s2884_s0 + $0x20c] ss:$36 sps:$4 sm:$0xff]   ;;  %v2192_v8 = vld [vmem:[%s2884_s0 + $0x20] ss:$36 sps:$4 sm:$0xff]  }
  0x45   :  { %1224 = vmatprep.mubr.bf16.mxu1 %v2108_v9  ;;  %v2193_v9 = vld [vmem:[%s2884_s0 + $0x140] ss:$36 sps:$4 sm:$0xff]  }
  0x4b   :  { %1128 = vmatmul.mubr.bf16.gmra.mxu0 %v2110_v12  ;;  %v2196_v12 = vld [vmem:[%s2884_s0 + $0xb0] ss:$36 sps:$4 sm:$0xff]  }
  0x4c   :  { %1225 = vmatmul.mubr.bf16.gmra.mxu1 %v2111_v15  ;;  %1135 = vmatprep.mubr.bf16.mxu0 %v2116_v16  ;;  %v2199_v15 = vld [vmem:[%s2884_s0 + $0x218] ss:$36 sps:$4 sm:$0xff]  }
  0x4d   :  { %1232 = vmatprep.mubr.bf16.mxu1 %v2118_v17 }
  0x53   :  { %1136 = vmatmul.mubr.bf16.gmra.mxu0 %v2120_v22 }
  0x54   :  { %1233 = vmatmul.mubr.bf16.gmra.mxu1 %v2121_v23  ;;  %1143 = vmatprep.mubr.bf16.mxu0 %v2126_v24 }
  0x55   :  { %1240 = vmatprep.mubr.bf16.mxu1 %v2128_v25 }
  0x5b   :  { %1144 = vmatmul.mubr.bf16.gmra.mxu0 %v2130_v30 }
  0x5c   :  { %1241 = vmatmul.mubr.bf16.gmra.mxu1 %v2131_v31  ;;  %1281 = vmatprep.mubr.bf16.mxu0 %v2138_v33 }
  0x5d   :  { %1378 = vmatprep.mubr.bf16.mxu1 %v2141_v34 }
  0x63   :  { %1282 = vmatmul.mubr.bf16.vlgmr.msra.gmra.mxu0 %v2136_v35  ;;  %v241_v35 = vld [vmem:[%s2885_s2 + $0x10] sm:$0xff] }
  0x64   :  { %1379 = vmatmul.mubr.bf16.vlgmr.msra.gmra.mxu1 %v2139_v36  ;;  %1977 = vmatpush3.bf16.msra.mxu0 %v2142_v32 }
  0x65   :  { %2016 = vmatpush3.bf16.msra.mxu1 %v2142_v32  ;;  %1289 = vmatprep.mubr.bf16.mxu0 %v2143_v37 }
  0x66   :  { %1386 = vmatprep.mubr.bf16.mxu1 %v2145_v38  ;;  %1978 = vmatprep.subr.bf16.mxu0 %v2149_v39 }
  0x67   :  { %2009 = vmatprep.subr.bf16.mxu1 %v2149_v39 }
  0x68   :  { %1979 = vmatpush3.bf16.msra.mxu0 %v2149_v39 }
  0x69   :  { %2017 = vmatpush3.bf16.msra.mxu1 %v2149_v39  ;;  %1980 = vmatprep.subr.bf16.mxu0 %v2156_v40 }
  0x6a   :  { %2010 = vmatprep.subr.bf16.mxu1 %v2156_v40 }
  0x6b   :  { %1290 = vmatmul.mubr.bf16.gmra.mxu0 %v2147_v41 }
  0x6c   :  { %1387 = vmatmul.mubr.bf16.gmra.mxu1 %v2148_v42  ;;  %1297 = vmatprep.mubr.bf16.mxu0 %v2150_v43 }
  0x6d   :  { %1394 = vmatprep.mubr.bf16.mxu1 %v2152_v44  ;;  %1981 = vmatpush3.bf16.msra.mxu0 %v2156_v40  ;;  %v242_v44 = vld [vmem:[%s2885_s2 + $0x18] sm:$0xff] }
  0x6e   :  { %2018 = vmatpush3.bf16.msra.mxu1 %v2156_v40  ;;  %1982 = vmatprep.subr.bf16.mxu0 %v2163_v45 }
  0x6f   :  { %2011 = vmatprep.subr.bf16.mxu1 %v2163_v45 }
  0x71   :  { %1983 = vmatpush3.bf16.msra.mxu0 %v2163_v45 }
  0x72   :  { %2019 = vmatpush3.bf16.msra.mxu1 %v2163_v45  ;;  %1984 = vmatprep.subr.bf16.mxu0 %v2170_v46 }
  0x73   :  { %1298 = vmatmul.mubr.bf16.gmra.mxu0 %v2154_v47  ;;  %2012 = vmatprep.subr.bf16.mxu1 %v2170_v46 }
  0x74   :  { %1395 = vmatmul.mubr.bf16.gmra.mxu1 %v2155_v48  ;;  %1305 = vmatprep.mubr.bf16.mxu0 %v2157_v49 }
  0x75   :  { %1402 = vmatprep.mubr.bf16.mxu1 %v2159_v50  ;;  %1985 = vmatpush3.bf16.msra.mxu0 %v2170_v46 }
  0x76   :  { %2020 = vmatpush3.bf16.msra.mxu1 %v2170_v46  ;;  %1986 = vmatprep.subr.bf16.mxu0 %v2177_v51 }
  0x77   :  { %2013 = vmatprep.subr.bf16.mxu1 %v2177_v51 }
  0x79   :  { %1987 = vmatpush3.bf16.msra.mxu0 %v2177_v51 }
  0x7a   :  { %2021 = vmatpush3.bf16.msra.mxu1 %v2177_v51  ;;  %1988 = vmatprep.subr.bf16.mxu0 %v2184_v53 }
  0x7b   :  { %1306 = vmatmul.mubr.bf16.gmra.mxu0 %v2161_v52  ;;  %2014 = vmatprep.subr.bf16.mxu1 %v2184_v53 }
  0x7c   :  { %1403 = vmatmul.mubr.bf16.gmra.mxu1 %v2162_v54  ;;  %1313 = vmatprep.mubr.bf16.mxu0 %v2164_v55 }
  0x7d   :  { %1410 = vmatprep.mubr.bf16.mxu1 %v2166_v56  ;;  %1989 = vmatpush3.bf16.msra.mxu0 %v2184_v53 }
  0x7e   :  { %2022 = vmatpush3.bf16.msra.mxu1 %v2184_v53  ;;  %1990 = vmatprep.subr.bf16.mxu0 %v2191_v57  ;;  %v243_v53 = vld [vmem:[%s2885_s2 + $0x20] sm:$0xff] }
  0x7f   :  { %2015 = vmatprep.subr.bf16.mxu1 %v2191_v57 }
  0x81   :  { %1991 = vmatpush3.bf16.msra.mxu0 %v2191_v57 }
  0x82   :  { %2023 = vmatpush3.bf16.msra.mxu1 %v2191_v57 }
  0x83   :  { %1314 = vmatmul.mubr.bf16.gmra.mxu0 %v2168_v58 }
  0x84   :  { %1411 = vmatmul.mubr.bf16.gmra.mxu1 %v2169_v59  ;;  %1321 = vmatprep.mubr.bf16.mxu0 %v2171_v60 }
  0x85   :  { %1418 = vmatprep.mubr.bf16.mxu1 %v2173_v61 }
  0x8b   :  { %1322 = vmatmul.mubr.bf16.gmra.mxu0 %v2175_v62  ;;  %v244_v62 = vld [vmem:[%s2885_s2 + $0x28] sm:$0xff] }
  0x8c   :  { %1419 = vmatmul.mubr.bf16.gmra.mxu1 %v2176_v63  ;;  %1329 = vmatprep.mubr.bf16.mxu0 %v2178_v0 }
  0x8d   :  { %1426 = vmatprep.mubr.bf16.mxu1 %v2180_v1 }
  0x93   :  { %1330 = vmatmul.mubr.bf16.gmra.mxu0 %v2182_v2 }
  0x94   :  { %1427 = vmatmul.mubr.bf16.gmra.mxu1 %v2183_v3  ;;  %1337 = vmatprep.mubr.bf16.mxu0 %v2185_v4 }
  0x95   :  { %1434 = vmatprep.mubr.bf16.mxu1 %v2187_v5 }
  0x9b   :  { %1338 = vmatmul.mubr.bf16.gmra.mxu0 %v2189_v6 }
  0x9c   :  { %1435 = vmatmul.mubr.bf16.gmra.mxu1 %v2190_v7  ;;  %1992 = vmatprep.mubr.bf16.mxu0 %v2192_v8  ;;  %v245_v7 = vld [vmem:[%s2885_s2 + $0x30] sm:$0xff] }
  0x9d   :  { %2000 = vmatprep.mubr.bf16.mxu1 %v2193_v9 }
  0xa3   :  { %1993 = vmatmul.mubr.bf16.vlgmr.msra.gmra.mxu0 %v2194_v10 }
  0xa4   :  { %2001 = vmatmul.mubr.bf16.vlgmr.msra.gmra.mxu1 %v2195_v11  ;;  %1996 = vmatprep.mubr.bf16.mxu0 %v2196_v12 }
  0xa5   :  { %2004 = vmatprep.mubr.bf16.mxu1 %v2197_v13 }
  0xab   :  { %1997 = vmatmul.mubr.bf16.gmra.mxu0 %v2198_v14 }
  0xac   :  { %2005 = vmatmul.mubr.bf16.gmra.mxu1 %v2199_v15 }
  0xe3   :  { %v1720_v16 = vpop.f32.mrf.mxu0 }
  0xe4   :  { %v1784_v17 = vpop.f32.mrf.mxu1 }
  0xe5   :  { %v1721_v19 = vpop.f32.mrf.mxu0 }
  0xe6   :  { %v1722_v20 = vadd.f32 %v1721_v19, %v1720_v16  ;;  %v1785_v21 = vpop.f32.mrf.mxu1  ;;  %v246_v16 = vld [vmem:[%s2885_s2 + $0x38] sm:$0xff] }
  0xe7   :  { %v1786_v22 = vadd.f32 %v1785_v21, %v1784_v17  ;;  %v1723_v23 = vpop.f32.mrf.mxu0 }
  0xe8   :  { %v1090_v24 = vadd.f32 %v1722_v20, %v239_v18  ;;  %v1787_v25 = vpop.f32.mrf.mxu1 }
  0xe9   :  { %v1724_v27 = vpop.f32.mrf.mxu0 }
  0xea   :  { %v2658_v28 = vadd.f32 %v1786_v22, %v1090_v24  ;;  %v1725_v29 = vadd.f32 %v1724_v27, %v1723_v23  ;;  %v1788_v30 = vpop.f32.mrf.mxu1 }
  0xeb   :  { %v1789_v31 = vadd.f32 %v1788_v30, %v1787_v25  ;;  %v1726_v32 = vpop.f32.mrf.mxu0  ;;  %v247_v25 = vld [vmem:[%s2885_s2 + $0x40] sm:$0xff] }
  0xec   :  { %v1093_v33 = vadd.f32 %v1725_v29, %v240_v26  ;;  %v1790_v34 = vpop.f32.mrf.mxu1 }
  0xed   :  { %v1727_v36 = vpop.f32.mrf.mxu0 }
  0xee   :  { %v2663_v37 = vadd.f32 %v1789_v31, %v1093_v33  ;;  %v1728_v38 = vadd.f32 %v1727_v36, %v1726_v32  ;;  %v1791_v39 = vpop.f32.mrf.mxu1 }
  0xef   :  { %v1792_v40 = vadd.f32 %v1791_v39, %v1790_v34  ;;  %v1729_v41 = vpop.f32.mrf.mxu0 }
  0xf0   :  { %v1098_v42 = vadd.f32 %v1728_v38, %v241_v35  ;;  %v1793_v43 = vpop.f32.mrf.mxu1  ;;  %v248_v35 = vld [vmem:[%s2885_s2 + $0x48] sm:$0xff] }
  0xf1   :  { %v1730_v45 = vpop.f32.mrf.mxu0 }
  0xf2   :  { %v2668_v46 = vadd.f32 %v1792_v40, %v1098_v42  ;;  %v1731_v47 = vadd.f32 %v1730_v45, %v1729_v41  ;;  %v1794_v48 = vpop.f32.mrf.mxu1  ;;  %v249_v45 = vld [vmem:[%s2885_s2 + $0x50] sm:$0xff] }
  0xf3   :  { %v1795_v49 = vadd.f32 %v1794_v48, %v1793_v43  ;;  %v1732_v50 = vpop.f32.mrf.mxu0 }
  0xf4   :  { %v1101_v51 = vadd.f32 %v1731_v47, %v242_v44  ;;  %v1796_v52 = vpop.f32.mrf.mxu1 }
  0xf5   :  { %v1733_v54 = vpop.f32.mrf.mxu0 }
  0xf6   :  { %v2673_v55 = vadd.f32 %v1795_v49, %v1101_v51  ;;  %v1734_v56 = vadd.f32 %v1733_v54, %v1732_v50  ;;  %v1797_v57 = vpop.f32.mrf.mxu1 }
  0xf7   :  { %v1798_v58 = vadd.f32 %v1797_v57, %v1796_v52  ;;  %v1735_v59 = vpop.f32.mrf.mxu0 }
  0xf8   :  { %v1106_v60 = vadd.f32 %v1734_v56, %v243_v53  ;;  %v1799_v61 = vpop.f32.mrf.mxu1  ;;  %v250_v56 = vld [vmem:[%s2885_s2 + $0x58] sm:$0xff] }
  0xf9   :  { %v1736_v63 = vpop.f32.mrf.mxu0 }
  0xfa   :  { %v2678_v0 = vadd.f32 %v1798_v58, %v1106_v60  ;;  %v1737_v1 = vadd.f32 %v1736_v63, %v1735_v59  ;;  %v1800_v2 = vpop.f32.mrf.mxu1 }
  0xfb   :  { %v1801_v3 = vadd.f32 %v1800_v2, %v1799_v61  ;;  %v1738_v4 = vpop.f32.mrf.mxu0  ;;  %v251_v2 = vld [vmem:[%s2885_s2 + $0x60] sm:$0xff] }
  0xfc   :  { %v1109_v5 = vadd.f32 %v1737_v1, %v244_v62  ;;  %v1802_v6 = vpop.f32.mrf.mxu1 }
  0xfd   :  { %v1739_v8 = vpop.f32.mrf.mxu0 }
  0xfe   :  { %v2683_v9 = vadd.f32 %v1801_v3, %v1109_v5  ;;  %v1740_v10 = vadd.f32 %v1739_v8, %v1738_v4  ;;  %v1803_v11 = vpop.f32.mrf.mxu1 }
  0xff   :  { %v1804_v12 = vadd.f32 %v1803_v11, %v1802_v6  ;;  %v1741_v13 = vpop.f32.mrf.mxu0 }
 0x100   :  { %2887 = vst [vmem:[#allocation2_spill] sm:$0xff] %v2683_v9  ;;  %v1114_v14 = vadd.f32 %v1740_v10, %v245_v7  ;;  %v1805_v15 = vpop.f32.mrf.mxu1 }
 0x101   :  { %v1742_v17 = vpop.f32.mrf.mxu0 }
 0x102   :  { %v2688_v18 = vadd.f32 %v1804_v12, %v1114_v14  ;;  %v1743_v19 = vadd.f32 %v1742_v17, %v1741_v13  ;;  %v1806_v20 = vpop.f32.mrf.mxu1  ;;  %v252_v12 = vld [vmem:[%s2885_s2 + $0x68] sm:$0xff] }
 0x103   :  { %v1807_v21 = vadd.f32 %v1806_v20, %v1805_v15  ;;  %v1744_v22 = vpop.f32.mrf.mxu0 }
 0x104   :  { %v1117_v23 = vadd.f32 %v1743_v19, %v246_v16  ;;  %v1808_v24 = vpop.f32.mrf.mxu1 }
 0x105   :  { %v1745_v26 = vpop.f32.mrf.mxu0 }
 0x106   :  { %v2693_v27 = vadd.f32 %v1807_v21, %v1117_v23  ;;  %v1746_v29 = vadd.f32 %v1745_v26, %v1744_v22  ;;  %v1809_v30 = vpop.f32.mrf.mxu1  ;;  %v253_v22 = vld [vmem:[%s2885_s2 + $0x70] sm:$0xff] }
 0x107   :  { %v1810_v31 = vadd.f32 %v1809_v30, %v1808_v24  ;;  %v1747_v32 = vpop.f32.mrf.mxu0 }
 0x108   :  { %2888 = vst [vmem:[#allocation3_spill] sm:$0xff] %v2693_v27  ;;  %v1122_v33 = vadd.f32 %v1746_v29, %v247_v25  ;;  %v1811_v34 = vpop.f32.mrf.mxu1 }
 0x109   :  { %v1748_v36 = vpop.f32.mrf.mxu0 }
 0x10a   :  { %v2698_v38 = vadd.f32 %v1810_v31, %v1122_v33  ;;  %v1749_v39 = vadd.f32 %v1748_v36, %v1747_v32  ;;  %v1812_v40 = vpop.f32.mrf.mxu1  ;;  %v254_v33 = vld [vmem:[%s2885_s2 + $0x78] sm:$0xff] }
 0x10b   :  { %v1813_v41 = vadd.f32 %v1812_v40, %v1811_v34  ;;  %v1750_v42 = vpop.f32.mrf.mxu0 }
 0x10c   :  { %v1125_v43 = vadd.f32 %v1749_v39, %v248_v35  ;;  %v1814_v44 = vpop.f32.mrf.mxu1 }
 0x10d   :  { %v1751_v47 = vpop.f32.mrf.mxu0 }
 0x10e   :  { %v2703_v48 = vadd.f32 %v1813_v41, %v1125_v43  ;;  %v1752_v49 = vadd.f32 %v1751_v47, %v1750_v42  ;;  %v1815_v50 = vpop.f32.mrf.mxu1 }
 0x10f   :  { %v1816_v51 = vadd.f32 %v1815_v50, %v1814_v44  ;;  %v1753_v52 = vpop.f32.mrf.mxu0 }
 0x110   :  { %v1130_v53 = vadd.f32 %v1752_v49, %v249_v45  ;;  %v1817_v54 = vpop.f32.mrf.mxu1 }
 0x111   :  { %v1754_v57 = vpop.f32.mrf.mxu0 }
 0x112   :  { %v2708_v58 = vadd.f32 %v1816_v51, %v1130_v53  ;;  %v1755_v59 = vadd.f32 %v1754_v57, %v1753_v52  ;;  %v1818_v60 = vpop.f32.mrf.mxu1 }
 0x113   :  { %v1819_v61 = vadd.f32 %v1818_v60, %v1817_v54  ;;  %v1756_v62 = vpop.f32.mrf.mxu0 }
 0x114   :  { %v1133_v63 = vadd.f32 %v1755_v59, %v250_v56  ;;  %v1820_v1 = vpop.f32.mrf.mxu1 }
 0x115   :  { %v1757_v3 = vpop.f32.mrf.mxu0 }
 0x116   :  { %v2713_v4 = vadd.f32 %v1819_v61, %v1133_v63  ;;  %v1758_v5 = vadd.f32 %v1757_v3, %v1756_v62  ;;  %v1821_v6 = vpop.f32.mrf.mxu1 }
 0x117   :  { %v1822_v7 = vadd.f32 %v1821_v6, %v1820_v1  ;;  %v1759_v8 = vpop.f32.mrf.mxu0 }
 0x118   :  { %v1138_v10 = vadd.f32 %v1758_v5, %v251_v2  ;;  %v1823_v11 = vpop.f32.mrf.mxu1 }
 0x119   :  { %v1760_v13 = vpop.f32.mrf.mxu0 }
 0x11a   :  { %v2718_v14 = vadd.f32 %v1822_v7, %v1138_v10  ;;  %v1761_v15 = vadd.f32 %v1760_v13, %v1759_v8  ;;  %v1824_v16 = vpop.f32.mrf.mxu1 }
 0x11b   :  { %v1825_v17 = vadd.f32 %v1824_v16, %v1823_v11  ;;  %v1762_v19 = vpop.f32.mrf.mxu0 }
 0x11c   :  { %2889 = vst [vmem:[#allocation4_spill] sm:$0xff] %v2718_v14  ;;  %v1141_v20 = vadd.f32 %v1761_v15, %v252_v12  ;;  %v1826_v21 = vpop.f32.mrf.mxu1 }
 0x11d   :  { %v1763_v23 = vpop.f32.mrf.mxu0 }
 0x11e   :  { %v2723_v24 = vadd.f32 %v1825_v17, %v1141_v20  ;;  %v1764_v25 = vadd.f32 %v1763_v23, %v1762_v19  ;;  %v1827_v26 = vpop.f32.mrf.mxu1 }
 0x11f   :  { %v1828_v29 = vadd.f32 %v1827_v26, %v1826_v21  ;;  %v1765_v30 = vpop.f32.mrf.mxu0 }
 0x120   :  { %2890 = vst [vmem:[#allocation5_spill] sm:$0xff] %v2723_v24  ;;  %v1146_v31 = vadd.f32 %v1764_v25, %v253_v22  ;;  %v1829_v32 = vpop.f32.mrf.mxu1 }
 0x121   :  { %v1766_v34 = vpop.f32.mrf.mxu0 }
 0x122   :  { %v2728_v35 = vadd.f32 %v1828_v29, %v1146_v31  ;;  %v1767_v36 = vadd.f32 %v1766_v34, %v1765_v30  ;;  %v1830_v39 = vpop.f32.mrf.mxu1 }
 0x123   :  { %v1831_v40 = vadd.f32 %v1830_v39, %v1829_v32  ;;  %v1848_v41 = vpop.f32.mrf.mxu0 }
 0x124   :  { %2891 = vst [vmem:[#allocation6_spill] sm:$0xff] %v2728_v35  ;;  %v1149_v42 = vadd.f32 %v1767_v36, %v254_v33  ;;  %v2730_v43 = vpop.f32.mrf.mxu1 }
 0x125   :  { %v1849_v44 = vpop.f32.mrf.mxu0 }
 0x126   :  { %v2732_v45 = vadd.f32 %v1831_v40, %v1149_v42  ;;  %v2734_v47 = vpop.f32.mrf.mxu1 }
 0x127   :  { %v1851_v49 = vpop.f32.mrf.mxu0 }
 0x128   :  { %2892 = vst [vmem:[#allocation7_spill] sm:$0xff] %v2732_v45  ;;  %v2736_v50 = vpop.f32.mrf.mxu1  ;;  %v1850_v45 = vadd.f32 %v1849_v44, %v1848_v41  ;;  %v1914_v41 = vadd.f32 %v2734_v47, %v2730_v43 }
 0x129   :  { %v1852_v51 = vpop.f32.mrf.mxu0 }
 0x12a   :  { %v2738_v52 = vpop.f32.mrf.mxu1 }
 0x12b   :  { %v1854_v53 = vpop.f32.mrf.mxu0  ;;  %v1917_v44 = vadd.f32 %v2738_v52, %v2736_v50 }
 0x12c   :  { %v2740_v54 = vpop.f32.mrf.mxu1 }
 0x12d   :  { %v1855_v56 = vpop.f32.mrf.mxu0 }
 0x12e   :  { %v2742_v57 = vpop.f32.mrf.mxu1 }
 0x12f   :  { %v1857_v59 = vpop.f32.mrf.mxu0 }
 0x130   :  { %v2744_v60 = vpop.f32.mrf.mxu1 }
 0x131   :  { %v1858_v61 = vpop.f32.mrf.mxu0 }
 0x132   :  { %v2746_v62 = vpop.f32.mrf.mxu1 }
 0x133   :  { %v1860_v63 = vpop.f32.mrf.mxu0  ;;  %v1923_v50 = vadd.f32 %v2746_v62, %v2744_v60 }
 0x134   :  { %v2748_v1 = vpop.f32.mrf.mxu1 }
 0x135   :  { %2893 = vst [vmem:[#allocation8_spill] sm:$0xff] %v2748_v1  ;;  %v1861_v2 = vpop.f32.mrf.mxu0  ;;  %v1856_v1 = vadd.f32 %v1855_v56, %v1854_v53 }
 0x136   :  { %v2750_v3 = vpop.f32.mrf.mxu1  ;;  %v1862_v56 = vadd.f32 %v1861_v2, %v1860_v63 }
 0x137   :  { %2894 = vst [vmem:[#allocation9_spill] sm:$0xff] %v2750_v3  ;;  %v2752_v5 = vpop.f32.mrf.mxu0  ;;  %v1853_v3 = vadd.f32 %v1852_v51, %v1851_v49 }
 0x138   :  { %2895 = vst [vmem:[#allocation10_spill] sm:$0xff] %v2752_v5  ;;  %v2754_v6 = vpop.f32.mrf.mxu1  ;;  %v1300_v2 = vadd.f32 %v1862_v56, %v2678_v0 }
 0x139   :  { %2896 = vst [vmem:[#allocation11_spill] sm:$0xff] %v2754_v6  ;;  %v2756_v7 = vpop.f32.mrf.mxu0 }
 0x13a   :  { %2897 = vst [vmem:[#allocation12_spill] sm:$0xff] %v2756_v7  ;;  %v2758_v8 = vpop.f32.mrf.mxu1  ;;  %v1859_v7 = vadd.f32 %v1858_v61, %v1857_v59 }
 0x13b   :  { %2898 = vst [vmem:[#allocation13_spill] sm:$0xff] %v2758_v8  ;;  %v1866_v10 = vpop.f32.mrf.mxu0 }
 0x13c   :  { %v2760_v11 = vpop.f32.mrf.mxu1 }
 0x13d   :  { %2899 = vst [vmem:[#allocation14_spill] sm:$0xff] %v2760_v11  ;;  %v1867_v12 = vpop.f32.mrf.mxu0 }
 0x13e   :  { %v2762_v13 = vpop.f32.mrf.mxu1 }
 0x13f   :  { %2900 = vst [vmem:[#allocation15_spill] sm:$0xff] %v2762_v13  ;;  %v2764_v15 = vpop.f32.mrf.mxu0 }
 0x140   :  { %v2766_v16 = vpop.f32.mrf.mxu1 }
 0x141   :  { %2901 = vst [vmem:[#allocation16_spill] sm:$0xff] %v2766_v16  ;;  %v2768_v17 = vpop.f32.mrf.mxu0 }
 0x142   :  { %v2770_v19 = vpop.f32.mrf.mxu1 }
 0x143   :  { %2902 = vst [vmem:[#allocation17_spill] sm:$0xff] %v2770_v19  ;;  %v1872_v20 = vpop.f32.mrf.mxu0 }
 0x144   :  { %v1936_v21 = vpop.f32.mrf.mxu1 }
 0x145   :  { %v1873_v22 = vpop.f32.mrf.mxu0 }
 0x146   :  { %v1937_v23 = vpop.f32.mrf.mxu1  ;;  %v1874_v35 = vadd.f32 %v1873_v22, %v1872_v20 }
 0x147   :  { %v1875_v25 = vpop.f32.mrf.mxu0 }
 0x148   :  { %v2772_v26 = vpop.f32.mrf.mxu1 }
 0x149   :  { %v1876_v29 = vpop.f32.mrf.mxu0 }
 0x14a   :  { %v2774_v30 = vpop.f32.mrf.mxu1 }
 0x14b   :  { %2903 = vst [vmem:[#allocation18_spill] sm:$0xff] %v2774_v30  ;;  %v1878_v31 = vpop.f32.mrf.mxu0 }
 0x14c   :  { %v1942_v32 = vpop.f32.mrf.mxu1 }
 0x14d   :  { %v1879_v33 = vpop.f32.mrf.mxu0 }
 0x14e   :  { %v1943_v34 = vpop.f32.mrf.mxu1  ;;  %v1880_v13 = vadd.f32 %v1879_v33, %v1878_v31 }
 0x14f   :  { %v1881_v36 = vpop.f32.mrf.mxu0  ;;  %v1944_v61 = vadd.f32 %v1943_v34, %v1942_v32  ;;  %v2914_v34 = vld [vmem:[#allocation4_spill] sm:$0xff] }
 0x150   :  { %v1945_v39 = vpop.f32.mrf.mxu1  ;;  %v1324_v49 = vadd.f32 %v1880_v13, %v2708_v58  ;;  %v1868_v58 = vadd.f32 %v1867_v12, %v1866_v10  ;;  %v1938_v13 = vadd.f32 %v1937_v23, %v1936_v21 }
 0x151   :  { %v1882_v40 = vpop.f32.mrf.mxu0 }
 0x152   :  { %v1946_v42 = vpop.f32.mrf.mxu1  ;;  %v1883_v51 = vadd.f32 %v1882_v40, %v1881_v36  ;;  %v1421_v63 = vadd.f32 %v1944_v61, %v1324_v49  ;;  %v1308_v12 = vadd.f32 %v1868_v58, %v2688_v18  ;;  %v2916_v49 = vld [vmem:[#allocation8_spill] sm:$0xff]  ;;  %v2921_v61 = vld [vmem:[#allocation7_spill] sm:$0xff] }
 0x153   :  { %v1884_v8 = vpop.f32.mrf.mxu0  ;;  %v1947_v20 = vadd.f32 %v1946_v42, %v1945_v39 }
 0x154   :  { %v2776_v6 = vpop.f32.mrf.mxu1 }
 0x155   :  { %2904 = vst [vmem:[#allocation19_spill] sm:$0xff] %v2776_v6  ;;  %v1885_v24 = vpop.f32.mrf.mxu0  ;;  %v1284_v6 = vadd.f32 %v1850_v45, %v2658_v28  ;;  %v1920_v28 = vadd.f32 %v2742_v57, %v2740_v54  ;;  %v1295_v45 = vadd.f32 %v1859_v7, %v2673_v55  ;;  %v1327_v54 = vadd.f32 %v1883_v51, %v2713_v4  ;;  %v2917_v51 = vld [vmem:[#allocation9_spill] sm:$0xff] }
 0x156   :  { %v2778_v19 = vpop.f32.mrf.mxu1  ;;  %v1886_v22 = vadd.f32 %v1885_v24, %v1884_v8  ;;  %v1871_v4 = vadd.f32 %v2768_v17, %v2764_v15  ;;  %v2910_v15 = vld [vmem:[#allocation10_spill] sm:$0xff]  ;;  %v2911_v17 = vld [vmem:[#allocation12_spill] sm:$0xff] }
 0x157   :  { %2905 = vst [vmem:[#allocation20_spill] sm:$0xff] %v2778_v19  ;;  %v2780_v16 = vpop.f32.mrf.mxu0  ;;  %v1287_v19 = vadd.f32 %v1853_v3, %v2663_v37  ;;  %v1877_v37 = vadd.f32 %v1876_v29, %v1875_v25  ;;  %v1381_v47 = vadd.f32 %v1914_v41, %v1284_v6  ;;  %v1392_v6 = vadd.f32 %v1923_v50, %v1295_v45  ;;  %v2913_v29 = vld [vmem:[#allocation15_spill] sm:$0xff] }
 0x158   :  { %2906 = vst [vmem:[#allocation21_spill] sm:$0xff] %v2780_v16  ;;  %v2782_v9 = vpop.f32.mrf.mxu1  ;;  %v1292_v16 = vadd.f32 %v1856_v1, %v2668_v46  ;;  %v1316_v46 = vadd.f32 %v1874_v35, %v2698_v38  ;;  %v1424_v23 = vadd.f32 %v1947_v20, %v1327_v54  ;;  %v1865_v25 = vadd.f32 %v2911_v17, %v2910_v15  ;;  %v2923_v54 = vld [vmem:[#allocation16_spill] sm:$0xff] }
 0x159   :  { %2907 = vst [vmem:[#allocation22_spill] sm:$0xff] %v2782_v9  ;;  %v2784_v27 = vpop.f32.mrf.mxu0  ;;  %v1384_v3 = vadd.f32 %v1917_v44, %v1287_v19  ;;  %v1319_v38 = vadd.f32 %v1877_v37, %v2703_v48  ;;  %v2909_v19 = vld [vmem:[#allocation6_spill] sm:$0xff]  ;;  %v1332_v36 = vadd.f32 %v1886_v22, %v2914_v34 }
 0x15a   :  { %v2786_v14 = vpop.f32.mrf.mxu1  ;;  %v1389_v1 = vadd.f32 %v1920_v28, %v1292_v16  ;;  %v1413_v10 = vadd.f32 %v1938_v13, %v1316_v46  ;;  %v2918_v28 = vld [vmem:[#allocation3_spill] sm:$0xff] }
 0x15b   :  { %v1890_v11 = vpop.f32.mrf.mxu0  ;;  %v1311_v45 = vadd.f32 %v1871_v4, %v2918_v28 }
 0x15c   :  { %v1954_v5 = vpop.f32.mrf.mxu1 }
 0x15d   :  { %v1891_v30 = vpop.f32.mrf.mxu0 }
 0x15e   :  { %v1955_v9 = vpop.f32.mrf.mxu1  ;;  %v1892_v55 = vadd.f32 %v1891_v30, %v1890_v11  ;;  %v2908_v11 = vld [vmem:[#allocation18_spill] sm:$0xff] }
 0x15f   :  { %v1893_v53 = vpop.f32.mrf.mxu0  ;;  %v1941_v16 = vadd.f32 %v2908_v11, %v2772_v26  ;;  %v2912_v26 = vld [vmem:[#allocation14_spill] sm:$0xff]  ;;  %v2915_v39 = vld [vmem:[#allocation21_spill] sm:$0xff]  ;;  %v1956_v42 = vadd.f32 %v1955_v9, %v1954_v5  ;;  %v2920_v9 = vld [vmem:[#allocation20_spill] sm:$0xff] }
 0x160   :  { %v2799_v59 = vpop.f32.mrf.mxu1  ;;  %v1340_v21 = vadd.f32 %v1892_v55, %v2909_v19  ;;  %v1932_v30 = vadd.f32 %v2913_v29, %v2912_v26  ;;  %v1889_v40 = vadd.f32 %v2784_v27, %v2915_v39  ;;  %v2919_v27 = vld [vmem:[#allocation19_spill] sm:$0xff]  ;;  %v2924_v55 = vld [vmem:[#allocation17_spill] sm:$0xff] }
 0x161   :  { %v1894_v43 = vpop.f32.mrf.mxu0  ;;  %v1416_v33 = vadd.f32 %v1941_v16, %v1319_v38  ;;  %v1950_v5 = vadd.f32 %v2920_v9, %v2919_v27  ;;  %v2928_v16 = vld [vmem:[#allocation22_spill] sm:$0xff] }
 0x162   :  { %v1958_v52 = vpop.f32.mrf.mxu1  ;;  %v1895_v24 = vadd.f32 %v1894_v43, %v1893_v53  ;;  %v1926_v53 = vadd.f32 %v2917_v51, %v2916_v49  ;;  %v1405_v46 = vadd.f32 %v1932_v30, %v1308_v12  ;;  %v1437_v58 = vadd.f32 %v1956_v42, %v1340_v21 }
 0x163   :  { %v1994_v57 = vpop.f32.mrf.mxu0 }
 0x164   :  { %v1486_v35 = vadd.f32 %v1994_v57, %v1389_v1  ;;  %v2002_v7 = vpop.f32.mrf.mxu1  ;;  %v1343_v43 = vadd.f32 %v1895_v24, %v2921_v61  ;;  %v2922_v1 = vld [vmem:[#allocation2_spill] sm:$0xff]  ;;  %v1935_v57 = vadd.f32 %v2924_v55, %v2923_v54  ;;  %v1397_v38 = vadd.f32 %v1926_v53, %v1300_v2 }
 0x165   :  { %v1518_v60 = vadd.f32 %v2002_v7, %v1421_v63  ;;  %v1477_v62 = vpop.f32.mrf.mxu0  ;;  %v1303_v13 = vadd.f32 %v1865_v25, %v2922_v1 }
 0x166   :  { %1542 = vst [vmem:[%s2886_s3 + $0x10] sm:$0xff] %v1486_v35  ;;  %v1478_v0 = vadd.f32 %v1477_v62, %v1381_v47  ;;  %v1509_v48 = vpop.f32.mrf.mxu1  ;;  %v2925_v35 = vld [vmem:[#allocation5_spill] sm:$0xff]  ;;  %v2926_v62 = vld [vmem:[#allocation11_spill] sm:$0xff]  ;;  %v1408_v11 = vadd.f32 %v1935_v57, %v1311_v45 }
 0x167   :  { %1550 = vst [vmem:[%s2886_s3 + $0x50] sm:$0xff] %v1518_v60  ;;  %v1510_v18 = vadd.f32 %v1509_v48, %v1413_v10  ;;  %v1995_v8 = vpop.f32.mrf.mxu0  ;;  %v1335_v7 = vadd.f32 %v1889_v40, %v2925_v35  ;;  %v1429_v60 = vadd.f32 %v1950_v5, %v1332_v36  ;;  %v2927_v10 = vld [vmem:[#allocation13_spill] sm:$0xff] }
 0x168   :  { %1540 = vst [vmem:[%s2886_s3] sm:$0xff] %v1478_v0  ;;  %v1489_v31 = vadd.f32 %v1995_v8, %v1392_v6  ;;  %v2003_v32 = vpop.f32.mrf.mxu1  ;;  %v1959_v6 = vadd.f32 %v1958_v52, %v2799_v59  ;;  %v1929_v12 = vadd.f32 %v2927_v10, %v2926_v62  ;;  %v1953_v59 = vadd.f32 %v2786_v14, %v2928_v16 }
 0x169   :  { %1548 = vst [vmem:[%s2886_s3 + $0x40] sm:$0xff] %v1510_v18  ;;  %v1521_v41 = vadd.f32 %v2003_v32, %v1424_v23  ;;  %v1480_v44 = vpop.f32.mrf.mxu0 }
 0x16a   :  { %1543 = vst [vmem:[%s2886_s3 + $0x18] sm:$0xff] %v1489_v31  ;;  %v1481_v56 = vadd.f32 %v1480_v44, %v1384_v3  ;;  %v1512_v37 = vpop.f32.mrf.mxu1  ;;  %v1440_v48 = vadd.f32 %v1959_v6, %v1343_v43  ;;  %v1400_v24 = vadd.f32 %v1929_v12, %v1303_v13  ;;  %v1432_v8 = vadd.f32 %v1953_v59, %v1335_v7 }
 0x16b   :  { %1551 = vst [vmem:[%s2886_s3 + $0x58] sm:$0xff] %v1521_v41  ;;  %v1513_v47 = vadd.f32 %v1512_v37, %v1416_v33  ;;  %v1998_v50 = vpop.f32.mrf.mxu0 }
 0x16c   :  { %1541 = vst [vmem:[%s2886_s3 + $0x8] sm:$0xff] %v1481_v56  ;;  %v1502_v3 = vadd.f32 %v1998_v50, %v1405_v46  ;;  %v2006_v63 = vpop.f32.mrf.mxu1 }
 0x16d   :  { %1549 = vst [vmem:[%s2886_s3 + $0x48] sm:$0xff] %v1513_v47  ;;  %v1534_v20 = vadd.f32 %v2006_v63, %v1437_v58  ;;  %v1493_v22 = vpop.f32.mrf.mxu0 }
 0x16e   :  { %1546 = vst [vmem:[%s2886_s3 + $0x30] sm:$0xff] %v1502_v3  ;;  %v1494_v4 = vadd.f32 %v1493_v22, %v1397_v38  ;;  %v1525_v2 = vpop.f32.mrf.mxu1 }
 0x16f   :  { %1554 = vst [vmem:[%s2886_s3 + $0x70] sm:$0xff] %v1534_v20  ;;  %v1526_v52 = vadd.f32 %v1525_v2, %v1429_v60  ;;  %v1999_v0 = vpop.f32.mrf.mxu0 }
 0x170   :  { %1544 = vst [vmem:[%s2886_s3 + $0x20] sm:$0xff] %v1494_v4  ;;  %v1505_v19 = vadd.f32 %v1999_v0, %v1408_v11  ;;  %v2007_v21 = vpop.f32.mrf.mxu1 }
 0x171   :  { %1552 = vst [vmem:[%s2886_s3 + $0x60] sm:$0xff] %v1526_v52  ;;  %v1537_v18 = vadd.f32 %v2007_v21, %v1440_v48  ;;  %v1496_v14 = vpop.f32.mrf.mxu0 }
 0x172   :  { %1547 = vst [vmem:[%s2886_s3 + $0x38] sm:$0xff] %v1505_v19  ;;  %v1497_v23 = vadd.f32 %v1496_v14, %v1400_v24  ;;  %v1528_v15 = vpop.f32.mrf.mxu1 }
 0x173   :  { %1555 = vst [vmem:[%s2886_s3 + $0x78] sm:$0xff] %v1537_v18  ;;  %v1529_v17 = vadd.f32 %v1528_v15, %v1432_v8 }
 0x174   :  { %1545 = vst [vmem:[%s2886_s3 + $0x28] sm:$0xff] %v1497_v23 }
 0x175   :  { %1553 = vst [vmem:[%s2886_s3 + $0x68] sm:$0xff] %v1529_v17 }

// kernel: forward.60
= control target key start
LH: loop header
LB: loop body
LE: loop exit
PB: predicated region body
PF: predicated region fallthrough
CT: control target
= control target key end

     0   :  { %s3007_s1 = inlined_call_operand.vmem [shape: bf16[1152,128], index: 1, kind: input, shape index: {}]   ;;  %s3008_s0 = inlined_call_operand.vmem [shape: bf16[128,1152], index: 0, kind: input, shape index: {}]   ;;  %s3009_s2 = inlined_call_operand.vmem [shape: f32[1,128], index: 2, kind: input, shape index: {}]   ;;  %s3010_s3 = inlined_call_operand.vmem [shape: f32[1,128], index: 3, kind: input, shape index: {}]   ;;  %s3011_s4 = inlined_call_operand.vmem [shape: bf16[128,128], index: 4, kind: output, shape index: {}]  }
   0x1   :  { %v2218_v0 = vld [vmem:[%s3007_s1 + $0x78] sm:$0xff]   ;;  %v2222_v4 = vld [vmem:[%s3007_s1 + $0x70] sm:$0xff]   ;;  %v2226_v8 = vld [vmem:[%s3007_s1 + $0x68] sm:$0xff]  }
   0x2   :  { %v2219_v1 = vld [vmem:[%s3007_s1 + $0xf8] sm:$0xff]   ;;  %1898 = vmatprep.subr.bf16.mxu0 %v2218_v0  ;;  %v2223_v5 = vld [vmem:[%s3007_s1 + $0xf0] sm:$0xff]   ;;  %v2227_v9 = vld [vmem:[%s3007_s1 + $0xe8] sm:$0xff]  }
   0x3   :  { %v2220_v2 = vld [vmem:[%s3007_s1 + $0x38] sm:$0xff]   ;;  %1962 = vmatprep.subr.bf16.mxu1 %v2219_v1  ;;  %v2224_v6 = vld [vmem:[%s3007_s1 + $0x30] sm:$0xff]   ;;  %v2228_v10 = vld [vmem:[%s3007_s1 + $0x28] sm:$0xff]  }
   0x4   :  { %v2221_v3 = vld [vmem:[%s3007_s1 + $0xb8] sm:$0xff]   ;;  %1899 = vmatpush3.bf16.msra.mxu0 %v2220_v2  ;;  %v2225_v7 = vld [vmem:[%s3007_s1 + $0xb0] sm:$0xff]   ;;  %v2229_v11 = vld [vmem:[%s3007_s1 + $0xa8] sm:$0xff]  }
   0x5   :  { %1963 = vmatpush3.bf16.msra.mxu1 %v2221_v3  ;;  %1900 = vmatprep.subr.bf16.mxu0 %v2222_v4  ;;  %v2230_v12 = vld [vmem:[%s3007_s1 + $0x60] sm:$0xff]   ;;  %v2234_v16 = vld [vmem:[%s3007_s1 + $0x58] sm:$0xff]   ;;  %v2238_v20 = vld [vmem:[%s3007_s1 + $0x50] sm:$0xff]  }
   0x6   :  { %1964 = vmatprep.subr.bf16.mxu1 %v2223_v5  ;;  %v2231_v13 = vld [vmem:[%s3007_s1 + $0xe0] sm:$0xff]   ;;  %v2235_v17 = vld [vmem:[%s3007_s1 + $0xd8] sm:$0xff]   ;;  %v2239_v21 = vld [vmem:[%s3007_s1 + $0xd0] sm:$0xff]  }
   0x7   :  { %v2232_v14 = vld [vmem:[%s3007_s1 + $0x20] sm:$0xff]   ;;  %v2236_v18 = vld [vmem:[%s3007_s1 + $0x18] sm:$0xff]   ;;  %v2240_v22 = vld [vmem:[%s3007_s1 + $0x10] sm:$0xff]  }
   0x8   :  { %1901 = vmatpush3.bf16.msra.mxu0 %v2224_v6  ;;  %v2233_v15 = vld [vmem:[%s3007_s1 + $0xa0] sm:$0xff]   ;;  %v2237_v19 = vld [vmem:[%s3007_s1 + $0x98] sm:$0xff]   ;;  %v2241_v23 = vld [vmem:[%s3007_s1 + $0x90] sm:$0xff]  }
   0x9   :  { %1965 = vmatpush3.bf16.msra.mxu1 %v2225_v7  ;;  %1902 = vmatprep.subr.bf16.mxu0 %v2226_v8  ;;  %v2242_v24 = vld [vmem:[%s3007_s1 + $0x48] sm:$0xff]   ;;  %v2246_v28 = vld [vmem:[%s3007_s1 + $0x40] sm:$0xff]   ;;  %v2256_v36 = vld [vmem:[%s3007_s1 + $0x178] sm:$0xff]  }
   0xa   :  { %1966 = vmatprep.subr.bf16.mxu1 %v2227_v9  ;;  %v2243_v25 = vld [vmem:[%s3007_s1 + $0xc8] sm:$0xff]   ;;  %v2247_v29 = vld [vmem:[%s3007_s1 + $0xc0] sm:$0xff]   ;;  %v2257_v37 = vld [vmem:[%s3007_s1 + $0x1f8] sm:$0xff]  }
   0xb   :  { %v2244_v26 = vld [vmem:[%s3007_s1 + $0x8] sm:$0xff]   ;;  %v2248_v30 = vld [vmem:[%s3007_s1] sm:$0xff]   ;;  %v2258_v38 = vld [vmem:[%s3007_s1 + $0x138] sm:$0xff]  }
   0xc   :  { %1903 = vmatpush3.bf16.msra.mxu0 %v2228_v10  ;;  %v2245_v27 = vld [vmem:[%s3007_s1 + $0x88] sm:$0xff]   ;;  %v2249_v31 = vld [vmem:[%s3007_s1 + $0x80] sm:$0xff]   ;;  %v2259_v39 = vld [vmem:[%s3007_s1 + $0x1b8] sm:$0xff]  }
   0xd   :  { %1967 = vmatpush3.bf16.msra.mxu1 %v2229_v11  ;;  %1904 = vmatprep.subr.bf16.mxu0 %v2230_v12  ;;  %v2250_v32 = vld [vmem:[%s3008_s0] ss:$36 sps:$4 sm:$0xff]   ;;  %v2253_v34 = vld [vmem:[%s3008_s0 + $0x8] ss:$36 sps:$4 sm:$0xff]   ;;  %v2262_v41 = vld [vmem:[%s3008_s0 + $0x54] ss:$36 sps:$4 sm:$0xff]  }
   0xe   :  { %1968 = vmatprep.subr.bf16.mxu1 %v2231_v13  ;;  %v2252_v33 = vld [vmem:[%s3008_s0 + $0x4] ss:$36 sps:$4 sm:$0xff]   ;;  %v2255_v35 = vld [vmem:[%s3008_s0 + $0xc] ss:$36 sps:$4 sm:$0xff]   ;;  %v2270_v48 = vld [vmem:[%s3008_s0 + $0x94] ss:$36 sps:$4 sm:$0xff]  }
   0xf   :  { %1074 = vmatprep.mubr.bf16.mxu0 %v2252_v33  ;;  %1171 = vmatprep.mubr.bf16.mxu1 %v2255_v35  ;;  %v2260_v40 = vld [vmem:[%s3008_s0 + $0x4c] ss:$36 sps:$4 sm:$0xff]   ;;  %v2272_v49 = vld [vmem:[%s3008_s0 + $0x9c] ss:$36 sps:$4 sm:$0xff]   ;;  %v2282_v57 = vld [vmem:[%s3008_s0 + $0xe4] ss:$36 sps:$4 sm:$0xff]  }
  0x10   :  { %1905 = vmatpush3.bf16.msra.mxu0 %v2232_v14  ;;  %v2264_v42 = vld [vmem:[%s3008_s0 + $0x48] ss:$36 sps:$4 sm:$0xff]   ;;  %v2265_v43 = vld [vmem:[%s3008_s0 + $0x50] ss:$36 sps:$4 sm:$0xff]   ;;  %v2275_v51 = vld [vmem:[%s3008_s0 + $0x98] ss:$36 sps:$4 sm:$0xff]  }
  0x11   :  { %1969 = vmatpush3.bf16.msra.mxu1 %v2233_v15  ;;  %1906 = vmatprep.subr.bf16.mxu0 %v2234_v16  ;;  %v2266_v44 = vld [vmem:[%s3007_s1 + $0x170] sm:$0xff]   ;;  %v2276_v52 = vld [vmem:[%s3007_s1 + $0x168] sm:$0xff]   ;;  %v2280_v56 = vld [vmem:[%s3008_s0 + $0xdc] ss:$36 sps:$4 sm:$0xff]  }
  0x12   :  { %1970 = vmatprep.subr.bf16.mxu1 %v2235_v17  ;;  %v2267_v45 = vld [vmem:[%s3007_s1 + $0x1f0] sm:$0xff]   ;;  %v2277_v53 = vld [vmem:[%s3007_s1 + $0x1e8] sm:$0xff]   ;;  %v2284_v58 = vld [vmem:[%s3008_s0 + $0xd8] ss:$36 sps:$4 sm:$0xff]  }
  0x13   :  { %v2268_v46 = vld [vmem:[%s3007_s1 + $0x130] sm:$0xff]   ;;  %v2278_v54 = vld [vmem:[%s3007_s1 + $0x128] sm:$0xff]   ;;  %v2285_v59 = vld [vmem:[%s3008_s0 + $0xe0] ss:$36 sps:$4 sm:$0xff]  }
  0x14   :  { %1907 = vmatpush3.bf16.msra.mxu0 %v2236_v18  ;;  %v2269_v47 = vld [vmem:[%s3007_s1 + $0x1b0] sm:$0xff]   ;;  %v2279_v55 = vld [vmem:[%s3007_s1 + $0x1a8] sm:$0xff]   ;;  %v2286_v60 = vld [vmem:[%s3007_s1 + $0x160] sm:$0xff]  }
  0x15   :  { %1971 = vmatpush3.bf16.msra.mxu1 %v2237_v19  ;;  %1908 = vmatprep.subr.bf16.mxu0 %v2238_v20  ;;  %v2274_v50 = vld [vmem:[%s3008_s0 + $0x90] ss:$36 sps:$4 sm:$0xff]   ;;  %v2287_v61 = vld [vmem:[%s3007_s1 + $0x1e0] sm:$0xff]   ;;  %v2296_v3 = vld [vmem:[%s3007_s1 + $0x158] sm:$0xff]  }
  0x16   :  { %1972 = vmatprep.subr.bf16.mxu1 %v2239_v21  ;;  %v2288_v62 = vld [vmem:[%s3007_s1 + $0x120] sm:$0xff]   ;;  %v2292_v1 = vld [vmem:[%s3008_s0 + $0x12c] ss:$36 sps:$4 sm:$0xff]   ;;  %v2297_v5 = vld [vmem:[%s3007_s1 + $0x1d8] sm:$0xff]  }
  0x17   :  { %v2289_v63 = vld [vmem:[%s3007_s1 + $0x1a0] sm:$0xff]   ;;  %v2295_v4 = vld [vmem:[%s3008_s0 + $0x128] ss:$36 sps:$4 sm:$0xff]   ;;  %v2298_v6 = vld [vmem:[%s3007_s1 + $0x118] sm:$0xff]  }
  0x18   :  { %1909 = vmatpush3.bf16.msra.mxu0 %v2240_v22  ;;  %v2290_v0 = vld [vmem:[%s3008_s0 + $0x124] ss:$36 sps:$4 sm:$0xff]   ;;  %v2299_v7 = vld [vmem:[%s3007_s1 + $0x198] sm:$0xff]   ;;  %v2300_v8 = vld [vmem:[%s3008_s0 + $0x16c] ss:$36 sps:$4 sm:$0xff]  }
  0x19   :  { %1973 = vmatpush3.bf16.msra.mxu1 %v2241_v23  ;;  %1910 = vmatprep.subr.bf16.mxu0 %v2242_v24  ;;  %v2294_v2 = vld [vmem:[%s3008_s0 + $0x120] ss:$36 sps:$4 sm:$0xff]   ;;  %v2302_v9 = vld [vmem:[%s3008_s0 + $0x174] ss:$36 sps:$4 sm:$0xff]   ;;  %v2304_v12 = vld [vmem:[%s3008_s0 + $0x168] ss:$36 sps:$4 sm:$0xff]  }
  0x1a   :  { %1974 = vmatprep.subr.bf16.mxu1 %v2243_v25  ;;  %v2306_v10 = vld [vmem:[%s3007_s1 + $0x150] sm:$0xff]   ;;  %v2312_v17 = vld [vmem:[%s3008_s0 + $0x1bc] ss:$36 sps:$4 sm:$0xff]   ;;  %v2316_v18 = vld [vmem:[%s3007_s1 + $0x148] sm:$0xff]  }
  0x1b   :  { %v2307_v11 = vld [vmem:[%s3007_s1 + $0x1d0] sm:$0xff]   ;;  %v2317_v19 = vld [vmem:[%s3007_s1 + $0x1c8] sm:$0xff]   ;;  %v2315_v23 = vld [vmem:[%s3008_s0 + $0x1b8] ss:$36 sps:$4 sm:$0xff]  }
  0x1c   :  { %1911 = vmatpush3.bf16.msra.mxu0 %v2244_v26  ;;  %v2308_v13 = vld [vmem:[%s3007_s1 + $0x110] sm:$0xff]   ;;  %v2318_v20 = vld [vmem:[%s3007_s1 + $0x108] sm:$0xff]   ;;  %v2320_v24 = vld [vmem:[%s3008_s0 + $0x1fc] ss:$36 sps:$4 sm:$0xff]  }
  0x1d   :  { %1975 = vmatpush3.bf16.msra.mxu1 %v2245_v27  ;;  %1912 = vmatprep.subr.bf16.mxu0 %v2246_v28  ;;  %v2309_v14 = vld [vmem:[%s3007_s1 + $0x190] sm:$0xff]   ;;  %v2319_v21 = vld [vmem:[%s3007_s1 + $0x188] sm:$0xff]   ;;  %v2326_v26 = vld [vmem:[%s3007_s1 + $0x140] sm:$0xff]  }
  0x1e   :  { %1976 = vmatprep.subr.bf16.mxu1 %v2247_v29  ;;  %v2305_v15 = vld [vmem:[%s3008_s0 + $0x170] ss:$36 sps:$4 sm:$0xff]   ;;  %v2322_v25 = vld [vmem:[%s3008_s0 + $0x204] ss:$36 sps:$4 sm:$0xff]  }
  0x1f   :  { %v2310_v16 = vld [vmem:[%s3008_s0 + $0x1b4] ss:$36 sps:$4 sm:$0xff]   ;;  %v2327_v27 = vld [vmem:[%s3007_s1 + $0x1c0] sm:$0xff]  }
  0x20   :  { %1913 = vmatpush3.bf16.msra.mxu0 %v2248_v30  ;;  %v2314_v22 = vld [vmem:[%s3008_s0 + $0x1b0] ss:$36 sps:$4 sm:$0xff]   ;;  %v2328_v28 = vld [vmem:[%s3007_s1 + $0x100] sm:$0xff]   ;;  %v2324_v30 = vld [vmem:[%s3008_s0 + $0x1f8] ss:$36 sps:$4 sm:$0xff]  }
  0x21   :  { %1977 = vmatpush3.bf16.msra.mxu1 %v2249_v31  ;;  %2026 = vmatprep.subr.bf16.mxu0 %v2256_v36  ;;  %v2329_v29 = vld [vmem:[%s3007_s1 + $0x180] sm:$0xff]   ;;  %v2332_v33 = vld [vmem:[%s3008_s0 + $0x14] ss:$36 sps:$4 sm:$0xff]  }
  0x22   :  { %2090 = vmatprep.subr.bf16.mxu1 %v2257_v37  ;;  %v2325_v31 = vld [vmem:[%s3008_s0 + $0x200] ss:$36 sps:$4 sm:$0xff]   ;;  %v2330_v35 = vld [vmem:[%s3008_s0 + $0x10] ss:$36 sps:$4 sm:$0xff]   ;;  %v2333_v36 = vld [vmem:[%s3008_s0 + $0x18] ss:$36 sps:$4 sm:$0xff]  }
  0x23   :  { %1075 = vmatmul.mubr.bf16.vlgmr.msra.gmra.mxu0 %v2250_v32  ;;  %v2336_v32 = vld [vmem:[%s3007_s1 + $0x238] sm:$0xff]  }
  0x24   :  { %1172 = vmatmul.mubr.bf16.vlgmr.msra.gmra.mxu1 %v2253_v34  ;;  %2027 = vmatpush3.bf16.msra.mxu0 %v2258_v38  ;;  %v2335_v34 = vld [vmem:[%s3008_s0 + $0x1c] ss:$36 sps:$4 sm:$0xff]   ;;  %v2339_v38 = vld [vmem:[%s3008_s0 + $0x64] ss:$36 sps:$4 sm:$0xff]  }
  0x25   :  { %2091 = vmatpush3.bf16.msra.mxu1 %v2259_v39  ;;  %1082 = vmatprep.mubr.bf16.mxu0 %v2260_v40  ;;  %v2337_v37 = vld [vmem:[%s3008_s0 + $0x5c] ss:$36 sps:$4 sm:$0xff]   ;;  %v2343_v39 = vld [vmem:[%s3007_s1 + $0x230] sm:$0xff]   ;;  %v2350_v40 = vld [vmem:[%s3007_s1 + $0x228] sm:$0xff]  }
  0x26   :  { %1179 = vmatprep.mubr.bf16.mxu1 %v2262_v41  ;;  %2028 = vmatprep.subr.bf16.mxu0 %v2266_v44  ;;  %v2341_v41 = vld [vmem:[%s3008_s0 + $0x58] ss:$36 sps:$4 sm:$0xff]   ;;  %v2346_v44 = vld [vmem:[%s3008_s0 + $0xac] ss:$36 sps:$4 sm:$0xff]  }
  0x27   :  { %2092 = vmatprep.subr.bf16.mxu1 %v2267_v45  ;;  %v2357_v45 = vld [vmem:[%s3007_s1 + $0x220] sm:$0xff]  }
  0x28   :  { %2029 = vmatpush3.bf16.msra.mxu0 %v2268_v46  ;;  %v2364_v46 = vld [vmem:[%s3007_s1 + $0x218] sm:$0xff]  }
  0x29   :  { %2093 = vmatpush3.bf16.msra.mxu1 %v2269_v47  ;;  %2030 = vmatprep.subr.bf16.mxu0 %v2276_v52  ;;  %v2348_v47 = vld [vmem:[%s3008_s0 + $0xa0] ss:$36 sps:$4 sm:$0xff]   ;;  %v2355_v52 = vld [vmem:[%s3008_s0 + $0xe8] ss:$36 sps:$4 sm:$0xff]  }
  0x2a   :  { %2094 = vmatprep.subr.bf16.mxu1 %v2277_v53  ;;  %v2378_v53 = vld [vmem:[%s3007_s1 + $0x208] sm:$0xff]  }
  0x2b   :  { %1083 = vmatmul.mubr.bf16.gmra.mxu0 %v2264_v42  ;;  %v2342_v42 = vld [vmem:[%s3008_s0 + $0x60] ss:$36 sps:$4 sm:$0xff]  }
  0x2c   :  { %1180 = vmatmul.mubr.bf16.gmra.mxu1 %v2265_v43  ;;  %1090 = vmatprep.mubr.bf16.mxu0 %v2270_v48  ;;  %v2344_v43 = vld [vmem:[%s3008_s0 + $0xa4] ss:$36 sps:$4 sm:$0xff]  }
  0x2d   :  { %1187 = vmatprep.mubr.bf16.mxu1 %v2272_v49  ;;  %2031 = vmatpush3.bf16.msra.mxu0 %v2278_v54  ;;  %v2349_v48 = vld [vmem:[%s3008_s0 + $0xa8] ss:$36 sps:$4 sm:$0xff]   ;;  %v2356_v54 = vld [vmem:[%s3008_s0 + $0xf0] ss:$36 sps:$4 sm:$0xff]  }
  0x2e   :  { %2095 = vmatpush3.bf16.msra.mxu1 %v2279_v55  ;;  %2032 = vmatprep.subr.bf16.mxu0 %v2286_v60  ;;  %v2351_v49 = vld [vmem:[%s3008_s0 + $0xec] ss:$36 sps:$4 sm:$0xff]   ;;  %v2358_v55 = vld [vmem:[%s3008_s0 + $0x134] ss:$36 sps:$4 sm:$0xff]   ;;  %v2365_v60 = vld [vmem:[%s3008_s0 + $0x17c] ss:$36 sps:$4 sm:$0xff]  }
  0x2f   :  { %2096 = vmatprep.subr.bf16.mxu1 %v2287_v61  ;;  %v2367_v61 = vld [vmem:[%s3008_s0 + $0x184] ss:$36 sps:$4 sm:$0xff]  }
  0x31   :  { %2033 = vmatpush3.bf16.msra.mxu0 %v2288_v62  ;;  %v2369_v62 = vld [vmem:[%s3008_s0 + $0x178] ss:$36 sps:$4 sm:$0xff]  }
  0x32   :  { %2097 = vmatpush3.bf16.msra.mxu1 %v2289_v63  ;;  %2034 = vmatprep.subr.bf16.mxu0 %v2296_v3  ;;  %v2370_v63 = vld [vmem:[%s3008_s0 + $0x180] ss:$36 sps:$4 sm:$0xff]   ;;  %v2377_v3 = vld [vmem:[%s3008_s0 + $0x1c8] ss:$36 sps:$4 sm:$0xff]  }
  0x33   :  { %1091 = vmatmul.mubr.bf16.gmra.mxu0 %v2274_v50  ;;  %2098 = vmatprep.subr.bf16.mxu1 %v2297_v5  ;;  %v2353_v50 = vld [vmem:[%s3008_s0 + $0xf4] ss:$36 sps:$4 sm:$0xff]  }
  0x34   :  { %1188 = vmatmul.mubr.bf16.gmra.mxu1 %v2275_v51  ;;  %1098 = vmatprep.mubr.bf16.mxu0 %v2280_v56  ;;  %v2371_v51 = vld [vmem:[%s3007_s1 + $0x210] sm:$0xff]   ;;  %v2360_v56 = vld [vmem:[%s3008_s0 + $0x13c] ss:$36 sps:$4 sm:$0xff]  }
  0x35   :  { %1195 = vmatprep.mubr.bf16.mxu1 %v2282_v57  ;;  %2035 = vmatpush3.bf16.msra.mxu0 %v2298_v6  ;;  %v2385_v57 = vld [vmem:[%s3007_s1 + $0x200] sm:$0xff]   ;;  %v2381_v5 = vld [vmem:[%s3008_s0 + $0x214] ss:$36 sps:$4 sm:$0xff]   ;;  %v2383_v6 = vld [vmem:[%s3008_s0 + $0x208] ss:$36 sps:$4 sm:$0xff]  }
  0x36   :  { %2099 = vmatpush3.bf16.msra.mxu1 %v2299_v7  ;;  %2036 = vmatprep.subr.bf16.mxu0 %v2306_v10  ;;  %v2384_v7 = vld [vmem:[%s3008_s0 + $0x210] ss:$36 sps:$4 sm:$0xff]   ;;  %v2388_v10 = vld [vmem:[%s3008_s0 + $0x68] ss:$36 sps:$4 sm:$0xff]  }
  0x37   :  { %2100 = vmatprep.subr.bf16.mxu1 %v2307_v11  ;;  %v2389_v11 = vld [vmem:[%s3008_s0 + $0x188] ss:$36 sps:$4 sm:$0xff]  }
  0x39   :  { %2037 = vmatpush3.bf16.msra.mxu0 %v2308_v13  ;;  %v2391_v13 = vld [vmem:[%s3008_s0 + $0x1d0] ss:$36 sps:$4 sm:$0xff]  }
  0x3a   :  { %2101 = vmatpush3.bf16.msra.mxu1 %v2309_v14  ;;  %2038 = vmatprep.subr.bf16.mxu0 %v2316_v18  ;;  %v2392_v14 = vld [vmem:[%s3008_s0 + $0xf8] ss:$36 sps:$4 sm:$0xff]  }
  0x3b   :  { %1099 = vmatmul.mubr.bf16.gmra.mxu0 %v2284_v58  ;;  %2102 = vmatprep.subr.bf16.mxu1 %v2317_v19  ;;  %v2362_v58 = vld [vmem:[%s3008_s0 + $0x130] ss:$36 sps:$4 sm:$0xff]  }
  0x3c   :  { %1196 = vmatmul.mubr.bf16.gmra.mxu1 %v2285_v59  ;;  %1106 = vmatprep.mubr.bf16.mxu0 %v2290_v0  ;;  %v2363_v59 = vld [vmem:[%s3008_s0 + $0x138] ss:$36 sps:$4 sm:$0xff]   ;;  %v2372_v0 = vld [vmem:[%s3008_s0 + $0x1c4] ss:$36 sps:$4 sm:$0xff]  }
  0x3d   :  { %1203 = vmatprep.mubr.bf16.mxu1 %v2292_v1  ;;  %2039 = vmatpush3.bf16.msra.mxu0 %v2318_v20  ;;  %v2374_v1 = vld [vmem:[%s3008_s0 + $0x1cc] ss:$36 sps:$4 sm:$0xff]  }
  0x3e   :  { %2103 = vmatpush3.bf16.msra.mxu1 %v2319_v21  ;;  %2040 = vmatprep.subr.bf16.mxu0 %v2326_v26 }
  0x3f   :  { %2104 = vmatprep.subr.bf16.mxu1 %v2327_v27 }
  0x41   :  { %2041 = vmatpush3.bf16.msra.mxu0 %v2328_v28 }
  0x42   :  { %2105 = vmatpush3.bf16.msra.mxu1 %v2329_v29  ;;  %2170 = vmatprep.subr.bf16.mxu0 %v2336_v32 }
  0x43   :  { %1107 = vmatmul.mubr.bf16.gmra.mxu0 %v2294_v2  ;;  %2202 = vmatprep.subr.bf16.mxu1 %v2336_v32  ;;  %v2376_v2 = vld [vmem:[%s3008_s0 + $0x1c0] ss:$36 sps:$4 sm:$0xff]  }
  0x44   :  { %1204 = vmatmul.mubr.bf16.gmra.mxu1 %v2295_v4  ;;  %1114 = vmatprep.mubr.bf16.mxu0 %v2300_v8  ;;  %v2379_v4 = vld [vmem:[%s3008_s0 + $0x20c] ss:$36 sps:$4 sm:$0xff]   ;;  %v2386_v8 = vld [vmem:[%s3008_s0 + $0x20] ss:$36 sps:$4 sm:$0xff]  }
  0x45   :  { %1211 = vmatprep.mubr.bf16.mxu1 %v2302_v9  ;;  %v2387_v9 = vld [vmem:[%s3008_s0 + $0x140] ss:$36 sps:$4 sm:$0xff]  }
  0x4b   :  { %1115 = vmatmul.mubr.bf16.gmra.mxu0 %v2304_v12  ;;  %v2390_v12 = vld [vmem:[%s3008_s0 + $0xb0] ss:$36 sps:$4 sm:$0xff]  }
  0x4c   :  { %1212 = vmatmul.mubr.bf16.gmra.mxu1 %v2305_v15  ;;  %1122 = vmatprep.mubr.bf16.mxu0 %v2310_v16  ;;  %v2393_v15 = vld [vmem:[%s3008_s0 + $0x218] ss:$36 sps:$4 sm:$0xff]  }
  0x4d   :  { %1219 = vmatprep.mubr.bf16.mxu1 %v2312_v17 }
  0x53   :  { %1123 = vmatmul.mubr.bf16.gmra.mxu0 %v2314_v22 }
  0x54   :  { %1220 = vmatmul.mubr.bf16.gmra.mxu1 %v2315_v23  ;;  %1130 = vmatprep.mubr.bf16.mxu0 %v2320_v24 }
  0x55   :  { %1227 = vmatprep.mubr.bf16.mxu1 %v2322_v25 }
  0x5b   :  { %1131 = vmatmul.mubr.bf16.gmra.mxu0 %v2324_v30 }
  0x5c   :  { %1228 = vmatmul.mubr.bf16.gmra.mxu1 %v2325_v31  ;;  %1268 = vmatprep.mubr.bf16.mxu0 %v2332_v33 }
  0x5d   :  { %1365 = vmatprep.mubr.bf16.mxu1 %v2335_v34 }
  0x63   :  { %1269 = vmatmul.mubr.bf16.vlgmr.msra.gmra.mxu0 %v2330_v35 }
  0x64   :  { %1366 = vmatmul.mubr.bf16.vlgmr.msra.gmra.mxu1 %v2333_v36  ;;  %2171 = vmatpush3.bf16.msra.mxu0 %v2336_v32 }
  0x65   :  { %2210 = vmatpush3.bf16.msra.mxu1 %v2336_v32  ;;  %1276 = vmatprep.mubr.bf16.mxu0 %v2337_v37 }
  0x66   :  { %1373 = vmatprep.mubr.bf16.mxu1 %v2339_v38  ;;  %2172 = vmatprep.subr.bf16.mxu0 %v2343_v39 }
  0x67   :  { %2203 = vmatprep.subr.bf16.mxu1 %v2343_v39 }
  0x68   :  { %2173 = vmatpush3.bf16.msra.mxu0 %v2343_v39 }
  0x69   :  { %2211 = vmatpush3.bf16.msra.mxu1 %v2343_v39  ;;  %2174 = vmatprep.subr.bf16.mxu0 %v2350_v40 }
  0x6a   :  { %2204 = vmatprep.subr.bf16.mxu1 %v2350_v40 }
  0x6b   :  { %1277 = vmatmul.mubr.bf16.gmra.mxu0 %v2341_v41 }
  0x6c   :  { %1374 = vmatmul.mubr.bf16.gmra.mxu1 %v2342_v42  ;;  %1284 = vmatprep.mubr.bf16.mxu0 %v2344_v43 }
  0x6d   :  { %1381 = vmatprep.mubr.bf16.mxu1 %v2346_v44  ;;  %2175 = vmatpush3.bf16.msra.mxu0 %v2350_v40 }
  0x6e   :  { %2212 = vmatpush3.bf16.msra.mxu1 %v2350_v40  ;;  %2176 = vmatprep.subr.bf16.mxu0 %v2357_v45 }
  0x6f   :  { %2205 = vmatprep.subr.bf16.mxu1 %v2357_v45 }
  0x71   :  { %2177 = vmatpush3.bf16.msra.mxu0 %v2357_v45 }
  0x72   :  { %2213 = vmatpush3.bf16.msra.mxu1 %v2357_v45  ;;  %2178 = vmatprep.subr.bf16.mxu0 %v2364_v46 }
  0x73   :  { %1285 = vmatmul.mubr.bf16.gmra.mxu0 %v2348_v47  ;;  %2206 = vmatprep.subr.bf16.mxu1 %v2364_v46 }
  0x74   :  { %1382 = vmatmul.mubr.bf16.gmra.mxu1 %v2349_v48  ;;  %1292 = vmatprep.mubr.bf16.mxu0 %v2351_v49 }
  0x75   :  { %1389 = vmatprep.mubr.bf16.mxu1 %v2353_v50  ;;  %2179 = vmatpush3.bf16.msra.mxu0 %v2364_v46 }
  0x76   :  { %2214 = vmatpush3.bf16.msra.mxu1 %v2364_v46  ;;  %2180 = vmatprep.subr.bf16.mxu0 %v2371_v51 }
  0x77   :  { %2207 = vmatprep.subr.bf16.mxu1 %v2371_v51 }
  0x79   :  { %2181 = vmatpush3.bf16.msra.mxu0 %v2371_v51 }
  0x7a   :  { %2215 = vmatpush3.bf16.msra.mxu1 %v2371_v51  ;;  %2182 = vmatprep.subr.bf16.mxu0 %v2378_v53 }
  0x7b   :  { %1293 = vmatmul.mubr.bf16.gmra.mxu0 %v2355_v52  ;;  %2208 = vmatprep.subr.bf16.mxu1 %v2378_v53 }
  0x7c   :  { %1390 = vmatmul.mubr.bf16.gmra.mxu1 %v2356_v54  ;;  %1300 = vmatprep.mubr.bf16.mxu0 %v2358_v55 }
  0x7d   :  { %1397 = vmatprep.mubr.bf16.mxu1 %v2360_v56  ;;  %2183 = vmatpush3.bf16.msra.mxu0 %v2378_v53 }
  0x7e   :  { %2216 = vmatpush3.bf16.msra.mxu1 %v2378_v53  ;;  %2184 = vmatprep.subr.bf16.mxu0 %v2385_v57 }
  0x7f   :  { %2209 = vmatprep.subr.bf16.mxu1 %v2385_v57 }
  0x81   :  { %2185 = vmatpush3.bf16.msra.mxu0 %v2385_v57 }
  0x82   :  { %2217 = vmatpush3.bf16.msra.mxu1 %v2385_v57 }
  0x83   :  { %1301 = vmatmul.mubr.bf16.gmra.mxu0 %v2362_v58 }
  0x84   :  { %1398 = vmatmul.mubr.bf16.gmra.mxu1 %v2363_v59  ;;  %1308 = vmatprep.mubr.bf16.mxu0 %v2365_v60 }
  0x85   :  { %1405 = vmatprep.mubr.bf16.mxu1 %v2367_v61 }
  0x8b   :  { %1309 = vmatmul.mubr.bf16.gmra.mxu0 %v2369_v62 }
  0x8c   :  { %1406 = vmatmul.mubr.bf16.gmra.mxu1 %v2370_v63  ;;  %1316 = vmatprep.mubr.bf16.mxu0 %v2372_v0 }
  0x8d   :  { %1413 = vmatprep.mubr.bf16.mxu1 %v2374_v1 }
  0x93   :  { %1317 = vmatmul.mubr.bf16.gmra.mxu0 %v2376_v2 }
  0x94   :  { %1414 = vmatmul.mubr.bf16.gmra.mxu1 %v2377_v3  ;;  %1324 = vmatprep.mubr.bf16.mxu0 %v2379_v4 }
  0x95   :  { %1421 = vmatprep.mubr.bf16.mxu1 %v2381_v5 }
  0x9b   :  { %1325 = vmatmul.mubr.bf16.gmra.mxu0 %v2383_v6 }
  0x9c   :  { %1422 = vmatmul.mubr.bf16.gmra.mxu1 %v2384_v7  ;;  %2186 = vmatprep.mubr.bf16.mxu0 %v2386_v8 }
  0x9d   :  { %2194 = vmatprep.mubr.bf16.mxu1 %v2387_v9 }
  0xa3   :  { %2187 = vmatmul.mubr.bf16.vlgmr.msra.gmra.mxu0 %v2388_v10 }
  0xa4   :  { %2195 = vmatmul.mubr.bf16.vlgmr.msra.gmra.mxu1 %v2389_v11  ;;  %2190 = vmatprep.mubr.bf16.mxu0 %v2390_v12 }
  0xa5   :  { %2198 = vmatprep.mubr.bf16.mxu1 %v2391_v13 }
  0xab   :  { %2191 = vmatmul.mubr.bf16.gmra.mxu0 %v2392_v14 }
  0xac   :  { %2199 = vmatmul.mubr.bf16.gmra.mxu1 %v2393_v15 }
  0xe3   :  { %v1914_v16 = vpop.f32.mrf.mxu0 }
  0xe4   :  { %v1978_v17 = vpop.f32.mrf.mxu1 }
  0xe5   :  { %v1915_v18 = vpop.f32.mrf.mxu0 }
  0xe6   :  { %v1916_v19 = vadd.f32 %v1915_v18, %v1914_v16  ;;  %v1979_v20 = vpop.f32.mrf.mxu1 }
  0xe7   :  { %v1980_v21 = vadd.f32 %v1979_v20, %v1978_v17  ;;  %v1917_v22 = vpop.f32.mrf.mxu0 }
  0xe8   :  { %v1981_v23 = vpop.f32.mrf.mxu1 }
  0xe9   :  { %v2851_v24 = vadd.f32 %v1980_v21, %v1916_v19  ;;  %v1918_v25 = vpop.f32.mrf.mxu0 }
  0xea   :  { %v1919_v26 = vadd.f32 %v1918_v25, %v1917_v22  ;;  %v1982_v27 = vpop.f32.mrf.mxu1 }
  0xeb   :  { %v1983_v28 = vadd.f32 %v1982_v27, %v1981_v23  ;;  %v1920_v29 = vpop.f32.mrf.mxu0 }
  0xec   :  { %v1984_v30 = vpop.f32.mrf.mxu1 }
  0xed   :  { %v2853_v31 = vadd.f32 %v1983_v28, %v1919_v26  ;;  %v1921_v32 = vpop.f32.mrf.mxu0 }
  0xee   :  { %v1922_v33 = vadd.f32 %v1921_v32, %v1920_v29  ;;  %v1985_v34 = vpop.f32.mrf.mxu1 }
  0xef   :  { %v1986_v35 = vadd.f32 %v1985_v34, %v1984_v30  ;;  %v1923_v36 = vpop.f32.mrf.mxu0 }
  0xf0   :  { %v1987_v37 = vpop.f32.mrf.mxu1 }
  0xf1   :  { %v2855_v38 = vadd.f32 %v1986_v35, %v1922_v33  ;;  %v1924_v39 = vpop.f32.mrf.mxu0 }
  0xf2   :  { %v1925_v40 = vadd.f32 %v1924_v39, %v1923_v36  ;;  %v1988_v41 = vpop.f32.mrf.mxu1 }
  0xf3   :  { %v1989_v42 = vadd.f32 %v1988_v41, %v1987_v37  ;;  %v1926_v43 = vpop.f32.mrf.mxu0 }
  0xf4   :  { %v1990_v44 = vpop.f32.mrf.mxu1 }
  0xf5   :  { %v2857_v45 = vadd.f32 %v1989_v42, %v1925_v40  ;;  %v1927_v46 = vpop.f32.mrf.mxu0 }
  0xf6   :  { %v1928_v47 = vadd.f32 %v1927_v46, %v1926_v43  ;;  %v1991_v48 = vpop.f32.mrf.mxu1 }
  0xf7   :  { %v1992_v49 = vadd.f32 %v1991_v48, %v1990_v44  ;;  %v1929_v50 = vpop.f32.mrf.mxu0 }
  0xf8   :  { %v1993_v51 = vpop.f32.mrf.mxu1 }
  0xf9   :  { %v2859_v52 = vadd.f32 %v1992_v49, %v1928_v47  ;;  %v1930_v53 = vpop.f32.mrf.mxu0 }
  0xfa   :  { %v1931_v54 = vadd.f32 %v1930_v53, %v1929_v50  ;;  %v1994_v55 = vpop.f32.mrf.mxu1 }
  0xfb   :  { %v1995_v56 = vadd.f32 %v1994_v55, %v1993_v51  ;;  %v1932_v57 = vpop.f32.mrf.mxu0 }
  0xfc   :  { %v1996_v58 = vpop.f32.mrf.mxu1 }
  0xfd   :  { %v2861_v59 = vadd.f32 %v1995_v56, %v1931_v54  ;;  %v1933_v60 = vpop.f32.mrf.mxu0 }
  0xfe   :  { %v1934_v61 = vadd.f32 %v1933_v60, %v1932_v57  ;;  %v1997_v62 = vpop.f32.mrf.mxu1 }
  0xff   :  { %v1998_v63 = vadd.f32 %v1997_v62, %v1996_v58  ;;  %v1935_v0 = vpop.f32.mrf.mxu0 }
 0x100   :  { %v1999_v1 = vpop.f32.mrf.mxu1 }
 0x101   :  { %v2863_v2 = vadd.f32 %v1998_v63, %v1934_v61  ;;  %v1936_v3 = vpop.f32.mrf.mxu0 }
 0x102   :  { %v1937_v4 = vadd.f32 %v1936_v3, %v1935_v0  ;;  %v2000_v5 = vpop.f32.mrf.mxu1 }
 0x103   :  { %v2001_v6 = vadd.f32 %v2000_v5, %v1999_v1  ;;  %v1938_v7 = vpop.f32.mrf.mxu0 }
 0x104   :  { %v2002_v8 = vpop.f32.mrf.mxu1 }
 0x105   :  { %v2865_v9 = vadd.f32 %v2001_v6, %v1937_v4  ;;  %v1939_v10 = vpop.f32.mrf.mxu0 }
 0x106   :  { %v1940_v11 = vadd.f32 %v1939_v10, %v1938_v7  ;;  %v2003_v12 = vpop.f32.mrf.mxu1 }
 0x107   :  { %v2004_v13 = vadd.f32 %v2003_v12, %v2002_v8  ;;  %v1941_v14 = vpop.f32.mrf.mxu0 }
 0x108   :  { %v2005_v15 = vpop.f32.mrf.mxu1 }
 0x109   :  { %v2867_v16 = vadd.f32 %v2004_v13, %v1940_v11  ;;  %v1942_v17 = vpop.f32.mrf.mxu0 }
 0x10a   :  { %v1943_v18 = vadd.f32 %v1942_v17, %v1941_v14  ;;  %v2006_v19 = vpop.f32.mrf.mxu1 }
 0x10b   :  { %v2007_v20 = vadd.f32 %v2006_v19, %v2005_v15  ;;  %v1944_v21 = vpop.f32.mrf.mxu0 }
 0x10c   :  { %v2008_v22 = vpop.f32.mrf.mxu1 }
 0x10d   :  { %v2869_v23 = vadd.f32 %v2007_v20, %v1943_v18  ;;  %v1945_v25 = vpop.f32.mrf.mxu0 }
 0x10e   :  { %v1946_v26 = vadd.f32 %v1945_v25, %v1944_v21  ;;  %v2009_v27 = vpop.f32.mrf.mxu1 }
 0x10f   :  { %3012 = vst [vmem:[#allocation2_spill] sm:$0xff] %v2869_v23  ;;  %v2010_v28 = vadd.f32 %v2009_v27, %v2008_v22  ;;  %v1947_v29 = vpop.f32.mrf.mxu0 }
 0x110   :  { %v2011_v30 = vpop.f32.mrf.mxu1 }
 0x111   :  { %v2871_v32 = vadd.f32 %v2010_v28, %v1946_v26  ;;  %v1948_v33 = vpop.f32.mrf.mxu0 }
 0x112   :  { %v1949_v34 = vadd.f32 %v1948_v33, %v1947_v29  ;;  %v2012_v35 = vpop.f32.mrf.mxu1 }
 0x113   :  { %v2013_v36 = vadd.f32 %v2012_v35, %v2011_v30  ;;  %v1950_v37 = vpop.f32.mrf.mxu0 }
 0x114   :  { %v2014_v39 = vpop.f32.mrf.mxu1 }
 0x115   :  { %v2873_v40 = vadd.f32 %v2013_v36, %v1949_v34  ;;  %v1951_v41 = vpop.f32.mrf.mxu0 }
 0x116   :  { %v1952_v42 = vadd.f32 %v1951_v41, %v1950_v37  ;;  %v2015_v43 = vpop.f32.mrf.mxu1 }
 0x117   :  { %3013 = vst [vmem:[#allocation3_spill] sm:$0xff] %v2873_v40  ;;  %v2016_v44 = vadd.f32 %v2015_v43, %v2014_v39  ;;  %v1953_v46 = vpop.f32.mrf.mxu0 }
 0x118   :  { %v2017_v47 = vpop.f32.mrf.mxu1 }
 0x119   :  { %v2875_v48 = vadd.f32 %v2016_v44, %v1952_v42  ;;  %v1954_v49 = vpop.f32.mrf.mxu0 }
 0x11a   :  { %v1955_v50 = vadd.f32 %v1954_v49, %v1953_v46  ;;  %v2018_v51 = vpop.f32.mrf.mxu1 }
 0x11b   :  { %3014 = vst [vmem:[#allocation4_spill] sm:$0xff] %v2875_v48  ;;  %v2019_v53 = vadd.f32 %v2018_v51, %v2017_v47  ;;  %v1956_v54 = vpop.f32.mrf.mxu0 }
 0x11c   :  { %v2020_v55 = vpop.f32.mrf.mxu1 }
 0x11d   :  { %v2877_v56 = vadd.f32 %v2019_v53, %v1955_v50  ;;  %v1957_v57 = vpop.f32.mrf.mxu0 }
 0x11e   :  { %v1958_v58 = vadd.f32 %v1957_v57, %v1956_v54  ;;  %v2021_v60 = vpop.f32.mrf.mxu1 }
 0x11f   :  { %3015 = vst [vmem:[#allocation5_spill] sm:$0xff] %v2877_v56  ;;  %v2022_v61 = vadd.f32 %v2021_v60, %v2020_v55  ;;  %v1959_v62 = vpop.f32.mrf.mxu0 }
 0x120   :  { %v2023_v63 = vpop.f32.mrf.mxu1 }
 0x121   :  { %v2879_v0 = vadd.f32 %v2022_v61, %v1958_v58  ;;  %v1960_v1 = vpop.f32.mrf.mxu0 }
 0x122   :  { %v1961_v3 = vadd.f32 %v1960_v1, %v1959_v62  ;;  %v2024_v4 = vpop.f32.mrf.mxu1 }
 0x123   :  { %3016 = vst [vmem:[#allocation6_spill] sm:$0xff] %v2879_v0  ;;  %v2025_v5 = vadd.f32 %v2024_v4, %v2023_v63  ;;  %v2042_v6 = vpop.f32.mrf.mxu0 }
 0x124   :  { %v2106_v7 = vpop.f32.mrf.mxu1 }
 0x125   :  { %v2881_v8 = vadd.f32 %v2025_v5, %v1961_v3  ;;  %v2043_v10 = vpop.f32.mrf.mxu0 }
 0x126   :  { %v2044_v11 = vadd.f32 %v2043_v10, %v2042_v6  ;;  %v2107_v12 = vpop.f32.mrf.mxu1 }
 0x127   :  { %3017 = vst [vmem:[#allocation7_spill] sm:$0xff] %v2881_v8  ;;  %v2045_v13 = vpop.f32.mrf.mxu0  ;;  %v2108_v15 = vadd.f32 %v2107_v12, %v2106_v7 }
 0x128   :  { %v1271_v14 = vadd.f32 %v2044_v11, %v2851_v24  ;;  %v2109_v17 = vpop.f32.mrf.mxu1 }
 0x129   :  { %v2046_v18 = vpop.f32.mrf.mxu0 }
 0x12a   :  { %v2110_v19 = vpop.f32.mrf.mxu1  ;;  %v2884_v20 = vadd.f32 %v2108_v15, %v1271_v14  ;;  %v2047_v15 = vadd.f32 %v2046_v18, %v2045_v13 }
 0x12b   :  { %v2048_v21 = vpop.f32.mrf.mxu0 }
 0x12c   :  { %3018 = vst [vmem:[#allocation8_spill] sm:$0xff] %v2884_v20  ;;  %v2112_v22 = vpop.f32.mrf.mxu1 }
 0x12d   :  { %v2049_v25 = vpop.f32.mrf.mxu0 }
 0x12e   :  { %v2113_v26 = vpop.f32.mrf.mxu1  ;;  %v2050_v8 = vadd.f32 %v2049_v25, %v2048_v21 }
 0x12f   :  { %v2051_v27 = vpop.f32.mrf.mxu0 }
 0x130   :  { %v2115_v28 = vpop.f32.mrf.mxu1  ;;  %v1279_v23 = vadd.f32 %v2050_v8, %v2855_v38 }
 0x131   :  { %v2052_v29 = vpop.f32.mrf.mxu0 }
 0x132   :  { %v2116_v30 = vpop.f32.mrf.mxu1  ;;  %v2053_v20 = vadd.f32 %v2052_v29, %v2051_v27 }
 0x133   :  { %v2054_v33 = vpop.f32.mrf.mxu0 }
 0x134   :  { %v2118_v34 = vpop.f32.mrf.mxu1  ;;  %v1282_v13 = vadd.f32 %v2053_v20, %v2857_v45 }
 0x135   :  { %v2055_v35 = vpop.f32.mrf.mxu0 }
 0x136   :  { %v2119_v36 = vpop.f32.mrf.mxu1 }
 0x137   :  { %v2057_v37 = vpop.f32.mrf.mxu0 }
 0x138   :  { %v2121_v24 = vpop.f32.mrf.mxu1 }
 0x139   :  { %v2058_v39 = vpop.f32.mrf.mxu0 }
 0x13a   :  { %v2122_v41 = vpop.f32.mrf.mxu1  ;;  %v2059_v48 = vadd.f32 %v2058_v39, %v2057_v37  ;;  %v2117_v37 = vadd.f32 %v2116_v30, %v2115_v28 }
 0x13b   :  { %v2060_v42 = vpop.f32.mrf.mxu0  ;;  %v2123_v38 = vadd.f32 %v2122_v41, %v2121_v24 }
 0x13c   :  { %v2124_v43 = vpop.f32.mrf.mxu1  ;;  %v1290_v27 = vadd.f32 %v2059_v48, %v2861_v59 }
 0x13d   :  { %v2061_v44 = vpop.f32.mrf.mxu0 }
 0x13e   :  { %v2125_v46 = vpop.f32.mrf.mxu1  ;;  %v2916_v30 = vadd.f32 %v2123_v38, %v1290_v27 }
 0x13f   :  { %v2063_v47 = vpop.f32.mrf.mxu0  ;;  %v2126_v8 = vadd.f32 %v2125_v46, %v2124_v43  ;;  %v3027_v43 = vld [vmem:[#allocation3_spill] sm:$0xff] }
 0x140   :  { %v2886_v49 = vpop.f32.mrf.mxu1 }
 0x141   :  { %3019 = vst [vmem:[#allocation9_spill] sm:$0xff] %v2886_v49  ;;  %v2064_v50 = vpop.f32.mrf.mxu0  ;;  %v2111_v49 = vadd.f32 %v2110_v19, %v2109_v17 }
 0x142   :  { %v2888_v51 = vpop.f32.mrf.mxu1 }
 0x143   :  { %3020 = vst [vmem:[#allocation10_spill] sm:$0xff] %v2888_v51  ;;  %v2066_v53 = vpop.f32.mrf.mxu0  ;;  %v1274_v51 = vadd.f32 %v2047_v15, %v2853_v31 }
 0x144   :  { %v2890_v54 = vpop.f32.mrf.mxu1 }
 0x145   :  { %3021 = vst [vmem:[#allocation11_spill] sm:$0xff] %v2890_v54  ;;  %v2067_v55 = vpop.f32.mrf.mxu0  ;;  %v1371_v59 = vadd.f32 %v2111_v49, %v1274_v51 }
 0x146   :  { %v2892_v57 = vpop.f32.mrf.mxu1  ;;  %v2068_v31 = vadd.f32 %v2067_v55, %v2066_v53  ;;  %v3032_v55 = vld [vmem:[#allocation4_spill] sm:$0xff] }
 0x147   :  { %3022 = vst [vmem:[#allocation12_spill] sm:$0xff] %v2892_v57  ;;  %v2069_v58 = vpop.f32.mrf.mxu0 }
 0x148   :  { %v2894_v60 = vpop.f32.mrf.mxu1 }
 0x149   :  { %3023 = vst [vmem:[#allocation13_spill] sm:$0xff] %v2894_v60  ;;  %v2070_v61 = vpop.f32.mrf.mxu0  ;;  %v2056_v60 = vadd.f32 %v2055_v35, %v2054_v33  ;;  %v2065_v33 = vadd.f32 %v2064_v50, %v2063_v47 }
 0x14a   :  { %v2896_v62 = vpop.f32.mrf.mxu1  ;;  %v2071_v17 = vadd.f32 %v2070_v61, %v2069_v58  ;;  %v3029_v50 = vld [vmem:[#allocation10_spill] sm:$0xff] }
 0x14b   :  { %3024 = vst [vmem:[#allocation14_spill] sm:$0xff] %v2896_v62  ;;  %v2072_v63 = vpop.f32.mrf.mxu0  ;;  %v2062_v62 = vadd.f32 %v2061_v44, %v2060_v42  ;;  %v1287_v25 = vadd.f32 %v2056_v60, %v2859_v52  ;;  %v2120_v42 = vadd.f32 %v2119_v36, %v2118_v34  ;;  %v1379_v44 = vadd.f32 %v2117_v37, %v1282_v13  ;;  %v3026_v36 = vld [vmem:[#allocation2_spill] sm:$0xff] }
 0x14c   :  { %v2136_v1 = vpop.f32.mrf.mxu1  ;;  %v1303_v34 = vadd.f32 %v2068_v31, %v2867_v16  ;;  %v1306_v24 = vadd.f32 %v2071_v17, %v3026_v36  ;;  %v3030_v51 = vld [vmem:[#allocation11_spill] sm:$0xff]  ;;  %v2941_v31 = vld [vmem:[%s3010_s3] ss:$0 sm:$0xff] }
 0x14d   :  { %v2073_v3 = vpop.f32.mrf.mxu0  ;;  %v1295_v29 = vadd.f32 %v2062_v62, %v2863_v2  ;;  %v1298_v2 = vadd.f32 %v2065_v33, %v2865_v9  ;;  %v2914_v28 = vadd.f32 %v2120_v42, %v1287_v25 }
 0x14e   :  { %v2137_v4 = vpop.f32.mrf.mxu1  ;;  %v2074_v18 = vadd.f32 %v2073_v3, %v2072_v63  ;;  %v3031_v9 = vld [vmem:[#allocation12_spill] sm:$0xff] }
 0x14f   :  { %v2075_v5 = vpop.f32.mrf.mxu0  ;;  %v2912_v47 = vadd.f32 %v2126_v8, %v1295_v29  ;;  %v2138_v41 = vadd.f32 %v2137_v4, %v2136_v1  ;;  %v2132_v53 = vadd.f32 %v3031_v9, %v3030_v51  ;;  %v2931_v1 = vld [vmem:[%s3009_s2] ss:$0 sm:$0xff] }
 0x150   :  { %v2139_v6 = vpop.f32.mrf.mxu1  ;;  %v1311_v20 = vadd.f32 %v2074_v18, %v2871_v32  ;;  %v3033_v62 = vld [vmem:[#allocation13_spill] sm:$0xff] }
 0x151   :  { %v2076_v7 = vpop.f32.mrf.mxu0  ;;  %v1400_v27 = vadd.f32 %v2132_v53, %v1303_v34 }
 0x152   :  { %v2140_v10 = vpop.f32.mrf.mxu1  ;;  %v2077_v19 = vadd.f32 %v2076_v7, %v2075_v5  ;;  %v3034_v63 = vld [vmem:[#allocation14_spill] sm:$0xff]  ;;  %v1408_v4 = vadd.f32 %v2138_v41, %v1311_v20  ;;  %v3039_v20 = vld [vmem:[#allocation5_spill] sm:$0xff] }
 0x153   :  { %v2078_v11 = vpop.f32.mrf.mxu0  ;;  %v2135_v3 = vadd.f32 %v3034_v63, %v3033_v62  ;;  %v2141_v16 = vadd.f32 %v2140_v10, %v2139_v6  ;;  %v3036_v10 = vld [vmem:[#allocation6_spill] sm:$0xff] }
 0x154   :  { %v2898_v12 = vpop.f32.mrf.mxu1  ;;  %v1314_v32 = vadd.f32 %v2077_v19, %v3027_v43 }
 0x155   :  { %3025 = vst [vmem:[#allocation15_spill] sm:$0xff] %v2898_v12  ;;  %v2079_v14 = vpop.f32.mrf.mxu0  ;;  %v2114_v12 = vadd.f32 %v2113_v26, %v2112_v22  ;;  %v1403_v6 = vadd.f32 %v2135_v3, %v1306_v24 }
 0x156   :  { %v2143_v56 = vpop.f32.mrf.mxu1  ;;  %v2080_v22 = vadd.f32 %v2079_v14, %v2078_v11  ;;  %v1411_v29 = vadd.f32 %v2141_v16, %v1314_v32 }
 0x157   :  { %v2081_v0 = vpop.f32.mrf.mxu0  ;;  %v1376_v52 = vadd.f32 %v2114_v12, %v1279_v23  ;;  %v3028_v23 = vld [vmem:[#allocation9_spill] sm:$0xff] }
 0x158   :  { %v2900_v57 = vpop.f32.mrf.mxu1  ;;  %v2129_v49 = vadd.f32 %v3029_v50, %v3028_v23  ;;  %v1319_v58 = vadd.f32 %v2080_v22, %v3032_v55 }
 0x159   :  { %v2082_v54 = vpop.f32.mrf.mxu0 }
 0x15a   :  { %v2903_v40 = vpop.f32.mrf.mxu1  ;;  %v2083_v14 = vadd.f32 %v2082_v54, %v2081_v0  ;;  %v2934_v18 = vadd.f32 %v2129_v49, %v1298_v2 }
 0x15b   :  { %v2084_v21 = vpop.f32.mrf.mxu0  ;;  %v2147_v19 = vadd.f32 %v2903_v40, %v2900_v57 }
 0x15c   :  { %v2148_v35 = vpop.f32.mrf.mxu1  ;;  %v3035_v11 = vld [vmem:[#allocation15_spill] sm:$0xff] }
 0x15d   :  { %v2085_v39 = vpop.f32.mrf.mxu0  ;;  %v2144_v12 = vadd.f32 %v2143_v56, %v3035_v11  ;;  %v3037_v56 = vld [vmem:[#allocation8_spill] sm:$0xff] }
 0x15e   :  { %v2149_v45 = vpop.f32.mrf.mxu1  ;;  %v2086_v60 = vadd.f32 %v2085_v39, %v2084_v21  ;;  %v3038_v39 = vld [vmem:[#allocation7_spill] sm:$0xff] }
 0x15f   :  { %v2087_v26 = vpop.f32.mrf.mxu0  ;;  %v1416_v17 = vadd.f32 %v2144_v12, %v1319_v58 }
 0x160   :  { %v2151_v48 = vpop.f32.mrf.mxu1  ;;  %v1327_v33 = vadd.f32 %v2086_v60, %v3036_v10 }
 0x161   :  { %v2088_v46 = vpop.f32.mrf.mxu0 }
 0x162   :  { %v2152_v61 = vpop.f32.mrf.mxu1  ;;  %v2089_v5 = vadd.f32 %v2088_v46, %v2087_v26  ;;  %v1322_v26 = vadd.f32 %v2083_v14, %v3039_v20 }
 0x163   :  { %v2188_v7 = vpop.f32.mrf.mxu0  ;;  %v2153_v24 = vadd.f32 %v2152_v61, %v2151_v48 }
 0x164   :  { %v1473_v15 = vadd.f32 %v2188_v7, %v1376_v52  ;;  %v2196_v13 = vpop.f32.mrf.mxu1  ;;  %v1330_v42 = vadd.f32 %v2089_v5, %v3038_v39  ;;  %v2150_v52 = vadd.f32 %v2149_v45, %v2148_v35  ;;  %v1419_v39 = vadd.f32 %v2147_v19, %v1322_v26 }
 0x165   :  { %v1505_v21 = vadd.f32 %v2196_v13, %v1408_v4  ;;  %v1464_v25 = vpop.f32.mrf.mxu0 }
 0x166   :  { %v1536_v37 = vmul.f32 %v2931_v1, %v1473_v15  ;;  %v1465_v0 = vadd.f32 %v1464_v25, %v3037_v56  ;;  %v1496_v54 = vpop.f32.mrf.mxu1  ;;  %v1424_v49 = vadd.f32 %v2150_v52, %v1327_v33  ;;  %v1427_v48 = vadd.f32 %v2153_v24, %v1330_v42 }
 0x167   :  { %v1544_v38 = vmul.f32 %v2931_v1, %v1505_v21  ;;  %v1497_v8 = vadd.f32 %v1496_v54, %v1400_v27  ;;  %v2189_v22 = vpop.f32.mrf.mxu0 }
 0x168   :  { %v1534_v2 = vmul.f32 %v2931_v1, %v1465_v0  ;;  %v1476_v34 = vadd.f32 %v2189_v22, %v1379_v44  ;;  %v2197_v36 = vpop.f32.mrf.mxu1  ;;  %v1559_v41 = vadd.f32 %v2941_v31, %v1536_v37 }
 0x169   :  { %v1542_v43 = vmul.f32 %v2931_v1, %v1497_v8  ;;  %v1508_v32 = vadd.f32 %v2197_v36, %v1411_v29  ;;  %v1467_v40 = vpop.f32.mrf.mxu0  ;;  %v1567_v57 = vadd.f32 %v2941_v31, %v1544_v38 }
 0x16a   :  { %v1537_v46 = vmul.f32 %v2931_v1, %v1476_v34  ;;  %v1468_v23 = vadd.f32 %v1467_v40, %v1371_v59  ;;  %v1499_v50 = vpop.f32.mrf.mxu1  ;;  %v1557_v35 = vadd.f32 %v2941_v31, %v1534_v2  ;;  %v1575_v61 = vmax.f32 %v1559_v41, 0.0 }
 0x16b   :  { %v1545_v45 = vmul.f32 %v2931_v1, %v1508_v32  ;;  %v1500_v44 = vadd.f32 %v1499_v50, %v1403_v6  ;;  %v2192_v51 = vpop.f32.mrf.mxu0  ;;  %v1565_v9 = vadd.f32 %v2941_v31, %v1542_v43  ;;  %v1583_v16 = vmax.f32 %v1567_v57, 0.0 }
 0x16c   :  { %v1560_v53 = vadd.f32 %v2941_v31, %v1537_v46  ;;  %v1535_v55 = vmul.f32 %v2931_v1, %v1468_v23  ;;  %v1489_v58 = vadd.f32 %v2192_v51, %v2912_v47  ;;  %v2200_v60 = vpop.f32.mrf.mxu1  ;;  %v1573_v12 = vmax.f32 %v1557_v35, 0.0 }
 0x16d   :  { %v1568_v59 = vadd.f32 %v2941_v31, %v1545_v45  ;;  %v1543_v62 = vmul.f32 %v2931_v1, %v1500_v44  ;;  %v1521_v63 = vadd.f32 %v2200_v60, %v1424_v49  ;;  %v1480_v3 = vpop.f32.mrf.mxu0  ;;  %v1581_v21 = vmax.f32 %v1565_v9, 0.0 }
 0x16e   :  { %v1576_v5 = vmax.f32 %v1560_v53, 0.0  ;;  %v1558_v7 = vadd.f32 %v2941_v31, %v1535_v55  ;;  %v1481_v4 = vadd.f32 %v1480_v3, %v2914_v28  ;;  %v1512_v11 = vpop.f32.mrf.mxu1  ;;  %v1540_v29 = vmul.f32 %v2931_v1, %v1489_v58 }
 0x16f   :  { %v1584_v14 = vmax.f32 %v1568_v59, 0.0  ;;  %v1566_v15 = vadd.f32 %v2941_v31, %v1543_v62  ;;  %v1513_v47 = vadd.f32 %v1512_v11, %v1416_v17  ;;  %v2193_v13 = vpop.f32.mrf.mxu0  ;;  %v1548_v37 = vmul.f32 %v2931_v1, %v1521_v63 }
 0x170   :  { %v1859_v25 = vpack.c.bf16 %v1576_v5, %v1575_v61  ;;  %v1574_v27 = vmax.f32 %v1558_v7, 0.0  ;;  %v2201_v6 = vpop.f32.mrf.mxu1  ;;  %v1538_v56 = vmul.f32 %v2931_v1, %v1481_v4  ;;  %v1492_v17 = vadd.f32 %v2193_v13, %v2934_v18 }
 0x171   :  { %v1879_v10 = vpack.c.bf16 %v1584_v14, %v1583_v16  ;;  %v1582_v33 = vmax.f32 %v1566_v15, 0.0  ;;  %v1483_v28 = vpop.f32.mrf.mxu0  ;;  %v1546_v54 = vmul.f32 %v2931_v1, %v1513_v47  ;;  %v1524_v8 = vadd.f32 %v2201_v6, %v1427_v48 }
 0x172   :  { %1891 = vst [vmem:[%s3011_s4 + $0x8] sm:$0xff] %v1859_v25   ;;  %v1854_v0 = vpack.c.bf16 %v1574_v27, %v1573_v12  ;;  %v1515_v42 = vpop.f32.mrf.mxu1  ;;  %v1563_v22 = vadd.f32 %v2941_v31, %v1540_v29  ;;  %v1541_v20 = vmul.f32 %v2931_v1, %v1492_v17  ;;  %v1484_v52 = vadd.f32 %v1483_v28, %v2916_v30 }
 0x173   :  { %1895 = vst [vmem:[%s3011_s4 + $0x28] sm:$0xff] %v1879_v10   ;;  %v1874_v38 = vpack.c.bf16 %v1582_v33, %v1581_v21  ;;  %v1516_v2 = vadd.f32 %v1515_v42, %v1419_v39  ;;  %v1571_v18 = vadd.f32 %v2941_v31, %v1548_v37  ;;  %v1561_v19 = vadd.f32 %v2941_v31, %v1538_v56 }
 0x174   :  { %1855 = vst [vmem:[%s3011_s4] sm:$0xff] %v1854_v0   ;;  %v1549_v26 = vmul.f32 %v2931_v1, %v1524_v8  ;;  %v1569_v34 = vadd.f32 %v2941_v31, %v1546_v54  ;;  %v1564_v36 = vadd.f32 %v2941_v31, %v1541_v20  ;;  %v1539_v24 = vmul.f32 %v2931_v1, %v1484_v52 }
 0x175   :  { %1894 = vst [vmem:[%s3011_s4 + $0x20] sm:$0xff] %v1874_v38   ;;  %v1547_v41 = vmul.f32 %v2931_v1, %v1516_v2  ;;  %v1579_v43 = vmax.f32 %v1563_v22, 0.0  ;;  %v1587_v46 = vmax.f32 %v1571_v18, 0.0  ;;  %v1577_v23 = vmax.f32 %v1561_v19, 0.0 }
 0x176   :  { %v1572_v30 = vadd.f32 %v2941_v31, %v1549_v26  ;;  %v1580_v32 = vmax.f32 %v1564_v36, 0.0  ;;  %v1562_v40 = vadd.f32 %v2941_v31, %v1539_v24  ;;  %v1585_v49 = vmax.f32 %v1569_v34, 0.0 }
 0x177   :  { %v1570_v57 = vadd.f32 %v2941_v31, %v1547_v41 }
 0x178   :  { %v1588_v50 = vmax.f32 %v1572_v30, 0.0  ;;  %v1869_v35 = vpack.c.bf16 %v1580_v32, %v1579_v43  ;;  %v1578_v45 = vmax.f32 %v1562_v40, 0.0 }
 0x179   :  { %v1586_v44 = vmax.f32 %v1570_v57, 0.0 }
 0x17a   :  { %v1889_v51 = vpack.c.bf16 %v1588_v50, %v1587_v46  ;;  %1893 = vst [vmem:[%s3011_s4 + $0x18] sm:$0xff] %v1869_v35   ;;  %v1864_v1 = vpack.c.bf16 %v1578_v45, %v1577_v23 }
 0x17b   :  { %v1884_v48 = vpack.c.bf16 %v1586_v44, %v1585_v49 }
 0x17c   :  { %1897 = vst [vmem:[%s3011_s4 + $0x38] sm:$0xff] %v1889_v51   ;;  %1892 = vst [vmem:[%s3011_s4 + $0x10] sm:$0xff] %v1864_v1  }
 0x17d   :  { %1896 = vst [vmem:[%s3011_s4 + $0x30] sm:$0xff] %v1884_v48  }

// kernel: forward.70
= control target key start
LH: loop header
LB: loop body
LE: loop exit
PB: predicated region body
PF: predicated region fallthrough
CT: control target
= control target key end

     0   :  { %v250_v1 = vmov 0   ;;  %s344_s1 = inlined_call_operand.vmem [shape: bf16[128,256], index: 1, kind: input, shape index: {}]   ;;  %s345_s0 = inlined_call_operand.vmem [shape: bf16[32,128], index: 0, kind: input, shape index: {}]   ;;  %s346_s2 = inlined_call_operand.vmem [shape: f32[32,256], index: 2, kind: output, shape index: {}]  }
   0x1   :  { %v224_v0 = vld [vmem:[%s344_s1 + $0x74] ss:$8 sps:$4 sm:$0xff]   ;;  %156 = vmatprep.mubr.bf16.mxu0 %v250_v1  ;;  %166 = vmatprep.mubr.bf16.mxu1 %v250_v1  ;;  %v226_v2 = vld [vmem:[%s344_s1 + $0x70] ss:$8 sps:$4 sm:$0xff]   ;;  %v227_v3 = vld [vmem:[%s344_s1 + $0x64] ss:$8 sps:$4 sm:$0xff]  }
   0x2   :  { %124 = vmatprep.subr.bf16.mxu0 %v224_v0  ;;  %207 = vmatprep.subr.bf16.mxu1 %v224_v0  ;;  %v229_v4 = vld [vmem:[%s344_s1 + $0x60] ss:$8 sps:$4 sm:$0xff]   ;;  %v230_v5 = vld [vmem:[%s344_s1 + $0x54] ss:$8 sps:$4 sm:$0xff]   ;;  %v232_v6 = vld [vmem:[%s344_s1 + $0x50] ss:$8 sps:$4 sm:$0xff]  }
   0x3   :  { %125 = vmatpush1.bf16.msra.mxu0 %v226_v2  ;;  %215 = vmatpush1.bf16.msra.mxu1 %v226_v2  ;;  %v233_v7 = vld [vmem:[%s344_s1 + $0x44] ss:$8 sps:$4 sm:$0xff]   ;;  %v235_v8 = vld [vmem:[%s344_s1 + $0x40] ss:$8 sps:$4 sm:$0xff]   ;;  %v236_v9 = vld [vmem:[%s344_s1 + $0x34] ss:$8 sps:$4 sm:$0xff]  }
   0x4   :  { %126 = vmatprep.subr.bf16.mxu0 %v227_v3  ;;  %208 = vmatprep.subr.bf16.mxu1 %v227_v3  ;;  %v238_v10 = vld [vmem:[%s344_s1 + $0x30] ss:$8 sps:$4 sm:$0xff]   ;;  %v239_v11 = vld [vmem:[%s344_s1 + $0x24] ss:$8 sps:$4 sm:$0xff]   ;;  %v241_v12 = vld [vmem:[%s344_s1 + $0x20] ss:$8 sps:$4 sm:$0xff]  }
   0x5   :  { %v242_v13 = vld [vmem:[%s344_s1 + $0x14] ss:$8 sps:$4 sm:$0xff]   ;;  %v244_v14 = vld [vmem:[%s344_s1 + $0x10] ss:$8 sps:$4 sm:$0xff]   ;;  %v245_v15 = vld [vmem:[%s344_s1 + $0x4] ss:$8 sps:$4 sm:$0xff]  }
   0x6   :  { %v247_v16 = vld [vmem:[%s344_s1] ss:$8 sps:$4 sm:$0xff]  }
   0x7   :  { %127 = vmatpush1.bf16.msra.mxu0 %v229_v4  ;;  %216 = vmatpush1.bf16.msra.mxu1 %v229_v4  ;;  %v248_v17 = vld [vmem:[%s345_s0] sm:$0xff]   ;;  %v249_v18 = vld [vmem:[%s345_s0 + $0x8] sm:$0xff]  }
   0x8   :  { %128 = vmatprep.subr.bf16.mxu0 %v230_v5  ;;  %209 = vmatprep.subr.bf16.mxu1 %v230_v5 }
   0xb   :  { %129 = vmatpush1.bf16.msra.mxu0 %v232_v6  ;;  %217 = vmatpush1.bf16.msra.mxu1 %v232_v6 }
   0xc   :  { %130 = vmatprep.subr.bf16.mxu0 %v233_v7  ;;  %210 = vmatprep.subr.bf16.mxu1 %v233_v7 }
   0xf   :  { %131 = vmatpush1.bf16.msra.mxu0 %v235_v8  ;;  %218 = vmatpush1.bf16.msra.mxu1 %v235_v8 }
  0x10   :  { %132 = vmatprep.subr.bf16.mxu0 %v236_v9  ;;  %211 = vmatprep.subr.bf16.mxu1 %v236_v9 }
  0x13   :  { %133 = vmatpush1.bf16.msra.mxu0 %v238_v10  ;;  %219 = vmatpush1.bf16.msra.mxu1 %v238_v10 }
  0x14   :  { %134 = vmatprep.subr.bf16.mxu0 %v239_v11  ;;  %212 = vmatprep.subr.bf16.mxu1 %v239_v11 }
  0x17   :  { %135 = vmatpush1.bf16.msra.mxu0 %v241_v12  ;;  %220 = vmatpush1.bf16.msra.mxu1 %v241_v12 }
  0x18   :  { %136 = vmatprep.subr.bf16.mxu0 %v242_v13  ;;  %213 = vmatprep.subr.bf16.mxu1 %v242_v13 }
  0x1b   :  { %137 = vmatpush1.bf16.msra.mxu0 %v244_v14  ;;  %221 = vmatpush1.bf16.msra.mxu1 %v244_v14 }
  0x1c   :  { %138 = vmatprep.subr.bf16.mxu0 %v245_v15  ;;  %214 = vmatprep.subr.bf16.mxu1 %v245_v15 }
  0x1f   :  { %139 = vmatpush1.bf16.msra.mxu0 %v247_v16  ;;  %222 = vmatpush1.bf16.msra.mxu1 %v247_v16 }
  0x22   :  { %157 = vmatmul.mubr.bf16.vlgmr.msra.gmra.mxu0 %v248_v17  ;;  %167 = vmatmul.mubr.bf16.vlgmr.msra.gmra.mxu1 %v249_v18 }
  0xe2   :  { %v158_v19 = vpop.f32.mrf.mxu0  ;;  %v168_v20 = vpop.f32.mrf.mxu1 }
  0xe3   :  { %177 = vst [vmem:[%s346_s2] sm:$0xff] %v158_v19  ;;  %181 = vst [vmem:[%s346_s2 + $0x20] sm:$0xff] %v168_v20 }
  0xe4   :  { %v160_v21 = vpop.f32.mrf.mxu0  ;;  %v170_v22 = vpop.f32.mrf.mxu1 }
  0xe5   :  { %178 = vst [vmem:[%s346_s2 + $0x8] sm:$0xff] %v160_v21  ;;  %182 = vst [vmem:[%s346_s2 + $0x28] sm:$0xff] %v170_v22 }
  0xe6   :  { %v162_v23 = vpop.f32.mrf.mxu0  ;;  %v172_v24 = vpop.f32.mrf.mxu1 }
  0xe7   :  { %179 = vst [vmem:[%s346_s2 + $0x10] sm:$0xff] %v162_v23  ;;  %183 = vst [vmem:[%s346_s2 + $0x30] sm:$0xff] %v172_v24 }
  0xe8   :  { %v164_v25 = vpop.f32.mrf.mxu0  ;;  %v174_v26 = vpop.f32.mrf.mxu1 }
  0xe9   :  { %180 = vst [vmem:[%s346_s2 + $0x18] sm:$0xff] %v164_v25  ;;  %184 = vst [vmem:[%s346_s2 + $0x38] sm:$0xff] %v174_v26 }

// kernel: forward.72
= control target key start
LH: loop header
LB: loop body
LE: loop exit
PB: predicated region body
PF: predicated region fallthrough
CT: control target
= control target key end

     0   :  { %v24_v0 = vlaneseq  ;;  %s240_s1 = inlined_call_operand.vmem [shape: f32[1,1024], index: 1, kind: input, shape index: {}]   ;;  %s241_s2 = inlined_call_operand.vmem [shape: f32[1,1024], index: 2, kind: input, shape index: {}]   ;;  %s242_s0 = inlined_call_operand.vmem [shape: f32[8,1024], index: 0, kind: input, shape index: {}]   ;;  %s243_s3 = inlined_call_operand.vmem [shape: bf16[8,1024], index: 3, kind: output, shape index: {}]  }
   0x1   :  { %v22_v2 = vld [vmem:[%s240_s1] sm:$0xff]  ;;  %v15_v9 = vld [vmem:[%s242_s0 + $0x8] sm:$0xff]  ;;  %v16_v18 = vld [vmem:[%s242_s0 + $0x10] sm:$0xff] }
   0x2   :  { %v25_v1 = vshrl.u32 %v24_v0, 7  ;;  %v72_v3 = vld [vmem:[%s241_s2] sm:$0xff]  ;;  %v17_v19 = vld [vmem:[%s242_s0 + $0x18] sm:$0xff]  ;;  %v19_v25 = vld [vmem:[%s242_s0 + $0x28] sm:$0xff] }
   0x3   :  { %v14_v8 = vld [vmem:[%s242_s0] sm:$0xff]  ;;  %v20_v38 = vld [vmem:[%s242_s0 + $0x30] sm:$0xff]  ;;  %v21_v39 = vld [vmem:[%s242_s0 + $0x38] sm:$0xff] }
   0x4   :  { %v26_v4 = vsub.s32 0, %v25_v1  ;;  %v30_v5 = vsub.s32 1, %v25_v1  ;;  %v34_v6 = vsub.s32 2, %v25_v1  ;;  %v38_v7 = vsub.s32 3, %v25_v1  ;;  %v18_v24 = vld [vmem:[%s242_s0 + $0x20] sm:$0xff] }
   0x5   :  { %v42_v10 = vsub.s32 4, %v25_v1  ;;  %v46_v11 = vsub.s32 5, %v25_v1  ;;  %v50_v12 = vsub.s32 6, %v25_v1  ;;  %v54_v13 = vsub.s32 7, %v25_v1 }
   0x6   :  { %v27_v14 = vrot.slane %v22_v2, %v26_v4  ;;  %v31_v15 = vrot.slane %v22_v2, %v30_v5  ;;  %v77_v16 = vrot.slane %v72_v3, %v26_v4  ;;  %v81_v17 = vrot.slane %v72_v3, %v30_v5 }
   0x7   :  { %v35_v20 = vrot.slane %v22_v2, %v34_v6  ;;  %v39_v21 = vrot.slane %v22_v2, %v38_v7  ;;  %v85_v22 = vrot.slane %v72_v3, %v34_v6  ;;  %v89_v23 = vrot.slane %v72_v3, %v38_v7 }
   0x8   :  { %v64_v26 = vmul.f32 %v27_v14, %v14_v8  ;;  %v65_v27 = vmul.f32 %v31_v15, %v15_v9  ;;  %v43_v28 = vrot.slane %v22_v2, %v42_v10  ;;  %v47_v29 = vrot.slane %v22_v2, %v46_v11 }
   0x9   :  { %v66_v30 = vmul.f32 %v35_v20, %v16_v18  ;;  %v67_v31 = vmul.f32 %v39_v21, %v17_v19  ;;  %v93_v32 = vrot.slane %v72_v3, %v42_v10  ;;  %v97_v33 = vrot.slane %v72_v3, %v46_v11 }
   0xa   :  { %v114_v34 = vadd.f32 %v77_v16, %v64_v26  ;;  %v115_v35 = vadd.f32 %v81_v17, %v65_v27  ;;  %v68_v36 = vmul.f32 %v43_v28, %v18_v24  ;;  %v69_v37 = vmul.f32 %v47_v29, %v19_v25 }
   0xb   :  { %v116_v40 = vadd.f32 %v85_v22, %v66_v30  ;;  %v117_v41 = vadd.f32 %v89_v23, %v67_v31  ;;  %v51_v42 = vrot.slane %v22_v2, %v50_v12  ;;  %v55_v43 = vrot.slane %v22_v2, %v54_v13 }
   0xc   :  { %v122_v44 = vmax.f32 %v114_v34, 0.0  ;;  %v123_v45 = vmax.f32 %v115_v35, 0.0  ;;  %v118_v46 = vadd.f32 %v93_v32, %v68_v36  ;;  %v119_v47 = vadd.f32 %v97_v33, %v69_v37 }
   0xd   :  { %v124_v48 = vmax.f32 %v116_v40, 0.0  ;;  %v125_v49 = vmax.f32 %v117_v41, 0.0  ;;  %v70_v50 = vmul.f32 %v51_v42, %v20_v38  ;;  %v71_v51 = vmul.f32 %v55_v43, %v21_v39 }
   0xe   :  { %v174_v52 = vpack.c.bf16 %v123_v45, %v122_v44  ;;  %v126_v53 = vmax.f32 %v118_v46, 0.0  ;;  %v127_v54 = vmax.f32 %v119_v47, 0.0  ;;  %v101_v55 = vrot.slane %v72_v3, %v50_v12 }
   0xf   :  { %v175_v56 = vpack.c.bf16 %v125_v49, %v124_v48  ;;  %v105_v57 = vrot.slane %v72_v3, %v54_v13 }
  0x10   :  { %162 = vst [vmem:[%s243_s3] sm:$0xff] %v174_v52  ;;  %v176_v58 = vpack.c.bf16 %v127_v54, %v126_v53  ;;  %v120_v59 = vadd.f32 %v101_v55, %v70_v50 }
  0x11   :  { %163 = vst [vmem:[%s243_s3 + $0x8] sm:$0xff] %v175_v56  ;;  %v121_v60 = vadd.f32 %v105_v57, %v71_v51 }
  0x12   :  { %164 = vst [vmem:[%s243_s3 + $0x10] sm:$0xff] %v176_v58  ;;  %v128_v61 = vmax.f32 %v120_v59, 0.0 }
  0x13   :  { %v129_v62 = vmax.f32 %v121_v60, 0.0 }
  0x15   :  { %v177_v63 = vpack.c.bf16 %v129_v62, %v128_v61 }
  0x17   :  { %165 = vst [vmem:[%s243_s3 + $0x18] sm:$0xff] %v177_v63 }

// kernel: forward.69
= control target key start
LH: loop header
LB: loop body
LE: loop exit
PB: predicated region body
PF: predicated region fallthrough
CT: control target
= control target key end

     0   :  { %s2298_s1 = inlined_call_operand.vmem [shape: bf16[1152,256], index: 1, kind: input, shape index: {}]   ;;  %s2299_s0 = inlined_call_operand.vmem [shape: bf16[32,1152], index: 0, kind: input, shape index: {}]   ;;  %s2300_s2 = inlined_call_operand.vmem [shape: f32[1,256], index: 2, kind: input, shape index: {}]   ;;  %s2301_s3 = inlined_call_operand.vmem [shape: f32[1,256], index: 3, kind: input, shape index: {}]   ;;  %s2302_s4 = inlined_call_operand.vmem [shape: bf16[32,256], index: 4, kind: output, shape index: {}]  }
   0x1   :  { %v1526_v0 = vld [vmem:[%s2298_s1 + $0x74] ss:$8 sps:$4 sm:$0xff]   ;;  %v1530_v2 = vld [vmem:[%s2298_s1 + $0x70] ss:$8 sps:$4 sm:$0xff]   ;;  %v1532_v4 = vld [vmem:[%s2298_s1 + $0x64] ss:$8 sps:$4 sm:$0xff]  }
   0x2   :  { %v1528_v1 = vld [vmem:[%s2298_s1 + $0x174] ss:$8 sps:$4 sm:$0xff]   ;;  %994 = vmatprep.subr.bf16.mxu0 %v1526_v0  ;;  %v1531_v3 = vld [vmem:[%s2298_s1 + $0x170] ss:$8 sps:$4 sm:$0xff]   ;;  %v1534_v5 = vld [vmem:[%s2298_s1 + $0x164] ss:$8 sps:$4 sm:$0xff]  }
   0x3   :  { %1047 = vmatprep.subr.bf16.mxu1 %v1528_v1  ;;  %995 = vmatpush1.bf16.msra.mxu0 %v1530_v2  ;;  %v1536_v6 = vld [vmem:[%s2298_s1 + $0x60] ss:$8 sps:$4 sm:$0xff]   ;;  %v1538_v8 = vld [vmem:[%s2298_s1 + $0x54] ss:$8 sps:$4 sm:$0xff]   ;;  %v1542_v10 = vld [vmem:[%s2298_s1 + $0x50] ss:$8 sps:$4 sm:$0xff]  }
   0x4   :  { %1048 = vmatpush1.bf16.msra.mxu1 %v1531_v3  ;;  %996 = vmatprep.subr.bf16.mxu0 %v1532_v4  ;;  %v1537_v7 = vld [vmem:[%s2298_s1 + $0x160] ss:$8 sps:$4 sm:$0xff]   ;;  %v1540_v9 = vld [vmem:[%s2298_s1 + $0x154] ss:$8 sps:$4 sm:$0xff]   ;;  %v1543_v11 = vld [vmem:[%s2298_s1 + $0x150] ss:$8 sps:$4 sm:$0xff]  }
   0x5   :  { %1049 = vmatprep.subr.bf16.mxu1 %v1534_v5  ;;  %v1544_v12 = vld [vmem:[%s2298_s1 + $0x44] ss:$8 sps:$4 sm:$0xff]   ;;  %v1548_v14 = vld [vmem:[%s2298_s1 + $0x40] ss:$8 sps:$4 sm:$0xff]   ;;  %v1550_v16 = vld [vmem:[%s2298_s1 + $0x34] ss:$8 sps:$4 sm:$0xff]  }
   0x6   :  { %v1546_v13 = vld [vmem:[%s2298_s1 + $0x144] ss:$8 sps:$4 sm:$0xff]   ;;  %v1549_v15 = vld [vmem:[%s2298_s1 + $0x140] ss:$8 sps:$4 sm:$0xff]   ;;  %v1552_v17 = vld [vmem:[%s2298_s1 + $0x134] ss:$8 sps:$4 sm:$0xff]  }
   0x7   :  { %997 = vmatpush1.bf16.msra.mxu0 %v1536_v6  ;;  %v1554_v18 = vld [vmem:[%s2298_s1 + $0x30] ss:$8 sps:$4 sm:$0xff]   ;;  %v1556_v20 = vld [vmem:[%s2298_s1 + $0x24] ss:$8 sps:$4 sm:$0xff]   ;;  %v1560_v22 = vld [vmem:[%s2298_s1 + $0x20] ss:$8 sps:$4 sm:$0xff]  }
   0x8   :  { %1050 = vmatpush1.bf16.msra.mxu1 %v1537_v7  ;;  %998 = vmatprep.subr.bf16.mxu0 %v1538_v8  ;;  %v1555_v19 = vld [vmem:[%s2298_s1 + $0x130] ss:$8 sps:$4 sm:$0xff]   ;;  %v1558_v21 = vld [vmem:[%s2298_s1 + $0x124] ss:$8 sps:$4 sm:$0xff]   ;;  %v1561_v23 = vld [vmem:[%s2298_s1 + $0x120] ss:$8 sps:$4 sm:$0xff]  }
   0x9   :  { %1051 = vmatprep.subr.bf16.mxu1 %v1540_v9  ;;  %v1562_v24 = vld [vmem:[%s2298_s1 + $0x14] ss:$8 sps:$4 sm:$0xff]   ;;  %v1566_v26 = vld [vmem:[%s2298_s1 + $0x10] ss:$8 sps:$4 sm:$0xff]   ;;  %v1568_v28 = vld [vmem:[%s2298_s1 + $0x4] ss:$8 sps:$4 sm:$0xff]  }
   0xa   :  { %v1564_v25 = vld [vmem:[%s2298_s1 + $0x114] ss:$8 sps:$4 sm:$0xff]   ;;  %v1567_v27 = vld [vmem:[%s2298_s1 + $0x110] ss:$8 sps:$4 sm:$0xff]   ;;  %v1570_v29 = vld [vmem:[%s2298_s1 + $0x104] ss:$8 sps:$4 sm:$0xff]  }
   0xb   :  { %999 = vmatpush1.bf16.msra.mxu0 %v1542_v10  ;;  %v1572_v30 = vld [vmem:[%s2298_s1] ss:$8 sps:$4 sm:$0xff]   ;;  %v1574_v32 = vld [vmem:[%s2298_s1 + $0xf4] ss:$8 sps:$4 sm:$0xff]   ;;  %v1578_v34 = vld [vmem:[%s2298_s1 + $0xf0] ss:$8 sps:$4 sm:$0xff]  }
   0xc   :  { %1052 = vmatpush1.bf16.msra.mxu1 %v1543_v11  ;;  %1000 = vmatprep.subr.bf16.mxu0 %v1544_v12  ;;  %v1573_v31 = vld [vmem:[%s2298_s1 + $0x100] ss:$8 sps:$4 sm:$0xff]   ;;  %v1576_v33 = vld [vmem:[%s2298_s1 + $0x1f4] ss:$8 sps:$4 sm:$0xff]   ;;  %v1579_v35 = vld [vmem:[%s2298_s1 + $0x1f0] ss:$8 sps:$4 sm:$0xff]  }
   0xd   :  { %1053 = vmatprep.subr.bf16.mxu1 %v1546_v13  ;;  %v1580_v36 = vld [vmem:[%s2298_s1 + $0xe4] ss:$8 sps:$4 sm:$0xff]   ;;  %v1584_v38 = vld [vmem:[%s2298_s1 + $0xe0] ss:$8 sps:$4 sm:$0xff]   ;;  %v1586_v40 = vld [vmem:[%s2298_s1 + $0xd4] ss:$8 sps:$4 sm:$0xff]  }
   0xe   :  { %v1582_v37 = vld [vmem:[%s2298_s1 + $0x1e4] ss:$8 sps:$4 sm:$0xff]   ;;  %v1585_v39 = vld [vmem:[%s2298_s1 + $0x1e0] ss:$8 sps:$4 sm:$0xff]   ;;  %v1588_v41 = vld [vmem:[%s2298_s1 + $0x1d4] ss:$8 sps:$4 sm:$0xff]  }
   0xf   :  { %1001 = vmatpush1.bf16.msra.mxu0 %v1548_v14  ;;  %v1590_v42 = vld [vmem:[%s2298_s1 + $0xd0] ss:$8 sps:$4 sm:$0xff]   ;;  %v1592_v44 = vld [vmem:[%s2298_s1 + $0xc4] ss:$8 sps:$4 sm:$0xff]   ;;  %v1596_v46 = vld [vmem:[%s2298_s1 + $0xc0] ss:$8 sps:$4 sm:$0xff]  }
  0x10   :  { %1054 = vmatpush1.bf16.msra.mxu1 %v1549_v15  ;;  %1002 = vmatprep.subr.bf16.mxu0 %v1550_v16  ;;  %v1591_v43 = vld [vmem:[%s2298_s1 + $0x1d0] ss:$8 sps:$4 sm:$0xff]   ;;  %v1594_v45 = vld [vmem:[%s2298_s1 + $0x1c4] ss:$8 sps:$4 sm:$0xff]   ;;  %v1597_v47 = vld [vmem:[%s2298_s1 + $0x1c0] ss:$8 sps:$4 sm:$0xff]  }
  0x11   :  { %1055 = vmatprep.subr.bf16.mxu1 %v1552_v17  ;;  %v1598_v48 = vld [vmem:[%s2298_s1 + $0xb4] ss:$8 sps:$4 sm:$0xff]   ;;  %v1624_v49 = vld [vmem:[%s2299_s0 + $0x4] ss:$36 sps:$4 sm:$0xff]   ;;  %v1627_v51 = vld [vmem:[%s2299_s0 + $0xc] ss:$36 sps:$4 sm:$0xff]  }
  0x12   :  { %v1600_v50 = vld [vmem:[%s2298_s1 + $0x1b4] ss:$8 sps:$4 sm:$0xff]   ;;  %1026 = vmatprep.mubr.bf16.mxu0 %v1624_v49  ;;  %v1602_v52 = vld [vmem:[%s2298_s1 + $0xb0] ss:$8 sps:$4 sm:$0xff]   ;;  %1079 = vmatprep.mubr.bf16.mxu1 %v1627_v51  ;;  %v1604_v54 = vld [vmem:[%s2298_s1 + $0xa4] ss:$8 sps:$4 sm:$0xff]  }
  0x13   :  { %1003 = vmatpush1.bf16.msra.mxu0 %v1554_v18  ;;  %v1603_v53 = vld [vmem:[%s2298_s1 + $0x1b0] ss:$8 sps:$4 sm:$0xff]   ;;  %v1606_v55 = vld [vmem:[%s2298_s1 + $0x1a4] ss:$8 sps:$4 sm:$0xff]   ;;  %v1608_v56 = vld [vmem:[%s2298_s1 + $0xa0] ss:$8 sps:$4 sm:$0xff]  }
  0x14   :  { %1056 = vmatpush1.bf16.msra.mxu1 %v1555_v19  ;;  %1004 = vmatprep.subr.bf16.mxu0 %v1556_v20  ;;  %v1609_v57 = vld [vmem:[%s2298_s1 + $0x1a0] ss:$8 sps:$4 sm:$0xff]   ;;  %v1610_v58 = vld [vmem:[%s2298_s1 + $0x94] ss:$8 sps:$4 sm:$0xff]   ;;  %v1614_v60 = vld [vmem:[%s2298_s1 + $0x90] ss:$8 sps:$4 sm:$0xff]  }
  0x15   :  { %1057 = vmatprep.subr.bf16.mxu1 %v1558_v21  ;;  %v1612_v59 = vld [vmem:[%s2298_s1 + $0x194] ss:$8 sps:$4 sm:$0xff]   ;;  %v1615_v61 = vld [vmem:[%s2298_s1 + $0x190] ss:$8 sps:$4 sm:$0xff]   ;;  %v1616_v62 = vld [vmem:[%s2298_s1 + $0x84] ss:$8 sps:$4 sm:$0xff]  }
  0x16   :  { %v1618_v63 = vld [vmem:[%s2298_s1 + $0x184] ss:$8 sps:$4 sm:$0xff]   ;;  %v1620_v0 = vld [vmem:[%s2298_s1 + $0x80] ss:$8 sps:$4 sm:$0xff]   ;;  %v1630_v2 = vld [vmem:[%s2298_s1 + $0x274] ss:$8 sps:$4 sm:$0xff]  }
  0x17   :  { %1005 = vmatpush1.bf16.msra.mxu0 %v1560_v22  ;;  %v1621_v1 = vld [vmem:[%s2298_s1 + $0x180] ss:$8 sps:$4 sm:$0xff]   ;;  %v1633_v3 = vld [vmem:[%s2298_s1 + $0x374] ss:$8 sps:$4 sm:$0xff]   ;;  %v1628_v6 = vld [vmem:[%s2298_s1 + $0x270] ss:$8 sps:$4 sm:$0xff]  }
  0x18   :  { %1058 = vmatpush1.bf16.msra.mxu1 %v1561_v23  ;;  %1006 = vmatprep.subr.bf16.mxu0 %v1562_v24  ;;  %v1622_v4 = vld [vmem:[%s2299_s0] ss:$36 sps:$4 sm:$0xff]   ;;  %v1625_v5 = vld [vmem:[%s2299_s0 + $0x8] ss:$36 sps:$4 sm:$0xff]   ;;  %v1631_v7 = vld [vmem:[%s2298_s1 + $0x370] ss:$8 sps:$4 sm:$0xff]  }
  0x19   :  { %1059 = vmatprep.subr.bf16.mxu1 %v1564_v25  ;;  %v1636_v8 = vld [vmem:[%s2298_s1 + $0x264] ss:$8 sps:$4 sm:$0xff]   ;;  %v1634_v10 = vld [vmem:[%s2298_s1 + $0x260] ss:$8 sps:$4 sm:$0xff]   ;;  %v1642_v12 = vld [vmem:[%s2298_s1 + $0x254] ss:$8 sps:$4 sm:$0xff]  }
  0x1a   :  { %v1639_v9 = vld [vmem:[%s2298_s1 + $0x364] ss:$8 sps:$4 sm:$0xff]   ;;  %v1637_v11 = vld [vmem:[%s2298_s1 + $0x360] ss:$8 sps:$4 sm:$0xff]   ;;  %v1645_v13 = vld [vmem:[%s2298_s1 + $0x354] ss:$8 sps:$4 sm:$0xff]  }
  0x1b   :  { %1007 = vmatpush1.bf16.msra.mxu0 %v1566_v26  ;;  %v1640_v14 = vld [vmem:[%s2298_s1 + $0x250] ss:$8 sps:$4 sm:$0xff]   ;;  %v1648_v16 = vld [vmem:[%s2298_s1 + $0x244] ss:$8 sps:$4 sm:$0xff]   ;;  %v1646_v18 = vld [vmem:[%s2298_s1 + $0x240] ss:$8 sps:$4 sm:$0xff]  }
  0x1c   :  { %1060 = vmatpush1.bf16.msra.mxu1 %v1567_v27  ;;  %1008 = vmatprep.subr.bf16.mxu0 %v1568_v28  ;;  %v1643_v15 = vld [vmem:[%s2298_s1 + $0x350] ss:$8 sps:$4 sm:$0xff]   ;;  %v1651_v17 = vld [vmem:[%s2298_s1 + $0x344] ss:$8 sps:$4 sm:$0xff]   ;;  %v1649_v19 = vld [vmem:[%s2298_s1 + $0x340] ss:$8 sps:$4 sm:$0xff]  }
  0x1d   :  { %1061 = vmatprep.subr.bf16.mxu1 %v1570_v29  ;;  %v1654_v20 = vld [vmem:[%s2298_s1 + $0x234] ss:$8 sps:$4 sm:$0xff]   ;;  %v1652_v22 = vld [vmem:[%s2298_s1 + $0x230] ss:$8 sps:$4 sm:$0xff]   ;;  %v1660_v24 = vld [vmem:[%s2298_s1 + $0x224] ss:$8 sps:$4 sm:$0xff]  }
  0x1e   :  { %v1657_v21 = vld [vmem:[%s2298_s1 + $0x334] ss:$8 sps:$4 sm:$0xff]   ;;  %v1655_v23 = vld [vmem:[%s2298_s1 + $0x330] ss:$8 sps:$4 sm:$0xff]   ;;  %v1663_v25 = vld [vmem:[%s2298_s1 + $0x324] ss:$8 sps:$4 sm:$0xff]  }
  0x1f   :  { %1009 = vmatpush1.bf16.msra.mxu0 %v1572_v30  ;;  %v1706_v26 = vld [vmem:[%s2299_s0 + $0x4c] ss:$36 sps:$4 sm:$0xff]   ;;  %v1708_v27 = vld [vmem:[%s2299_s0 + $0x54] ss:$36 sps:$4 sm:$0xff]   ;;  %v1658_v30 = vld [vmem:[%s2298_s1 + $0x220] ss:$8 sps:$4 sm:$0xff]  }
  0x20   :  { %1062 = vmatpush1.bf16.msra.mxu1 %v1573_v31  ;;  %1010 = vmatprep.subr.bf16.mxu0 %v1574_v32  ;;  %v1710_v28 = vld [vmem:[%s2299_s0 + $0x48] ss:$36 sps:$4 sm:$0xff]   ;;  %v1711_v29 = vld [vmem:[%s2299_s0 + $0x50] ss:$36 sps:$4 sm:$0xff]  }
  0x21   :  { %1063 = vmatprep.subr.bf16.mxu1 %v1576_v33  ;;  %v1661_v31 = vld [vmem:[%s2298_s1 + $0x320] ss:$8 sps:$4 sm:$0xff]   ;;  %v1666_v32 = vld [vmem:[%s2298_s1 + $0x214] ss:$8 sps:$4 sm:$0xff]  }
  0x22   :  { %v1669_v33 = vld [vmem:[%s2298_s1 + $0x314] ss:$8 sps:$4 sm:$0xff]   ;;  %v1685_v49 = vld [vmem:[%s2298_s1 + $0x3e0] ss:$8 sps:$4 sm:$0xff]  }
  0x23   :  { %1011 = vmatpush2.bf16.msra.mxu0 %v1578_v34  ;;  %v1664_v34 = vld [vmem:[%s2298_s1 + $0x210] ss:$8 sps:$4 sm:$0xff]   ;;  %v1693_v51 = vld [vmem:[%s2298_s1 + $0x3d4] ss:$8 sps:$4 sm:$0xff]  }
  0x24   :  { %1064 = vmatpush2.bf16.msra.mxu1 %v1579_v35  ;;  %1012 = vmatprep.subr.bf16.mxu0 %v1580_v36  ;;  %v1667_v35 = vld [vmem:[%s2298_s1 + $0x310] ss:$8 sps:$4 sm:$0xff]   ;;  %v1672_v36 = vld [vmem:[%s2298_s1 + $0x204] ss:$8 sps:$4 sm:$0xff]  }
  0x25   :  { %1065 = vmatprep.subr.bf16.mxu1 %v1582_v37  ;;  %v1675_v37 = vld [vmem:[%s2298_s1 + $0x304] ss:$8 sps:$4 sm:$0xff]  }
  0x27   :  { %1013 = vmatpush2.bf16.msra.mxu0 %v1584_v38  ;;  %v1670_v38 = vld [vmem:[%s2298_s1 + $0x200] ss:$8 sps:$4 sm:$0xff]  }
  0x28   :  { %1066 = vmatpush2.bf16.msra.mxu1 %v1585_v39  ;;  %1014 = vmatprep.subr.bf16.mxu0 %v1586_v40  ;;  %v1673_v39 = vld [vmem:[%s2298_s1 + $0x300] ss:$8 sps:$4 sm:$0xff]   ;;  %v1678_v40 = vld [vmem:[%s2298_s1 + $0x2f4] ss:$8 sps:$4 sm:$0xff]  }
  0x29   :  { %1067 = vmatprep.subr.bf16.mxu1 %v1588_v41  ;;  %v1732_v41 = vld [vmem:[%s2299_s0 + $0x14] ss:$36 sps:$4 sm:$0xff]  }
  0x2b   :  { %1015 = vmatpush2.bf16.msra.mxu0 %v1590_v42  ;;  %v1681_v42 = vld [vmem:[%s2298_s1 + $0x3f4] ss:$8 sps:$4 sm:$0xff]  }
  0x2c   :  { %1068 = vmatpush2.bf16.msra.mxu1 %v1591_v43  ;;  %1016 = vmatprep.subr.bf16.mxu0 %v1592_v44  ;;  %v1735_v43 = vld [vmem:[%s2299_s0 + $0x1c] ss:$36 sps:$4 sm:$0xff]   ;;  %v1676_v44 = vld [vmem:[%s2298_s1 + $0x2f0] ss:$8 sps:$4 sm:$0xff]  }
  0x2d   :  { %1069 = vmatprep.subr.bf16.mxu1 %v1594_v45  ;;  %v1679_v45 = vld [vmem:[%s2298_s1 + $0x3f0] ss:$8 sps:$4 sm:$0xff]  }
  0x2f   :  { %1017 = vmatpush2.bf16.msra.mxu0 %v1596_v46  ;;  %v1684_v46 = vld [vmem:[%s2298_s1 + $0x2e4] ss:$8 sps:$4 sm:$0xff]  }
  0x30   :  { %1070 = vmatpush2.bf16.msra.mxu1 %v1597_v47  ;;  %1018 = vmatprep.subr.bf16.mxu0 %v1598_v48  ;;  %v1687_v47 = vld [vmem:[%s2298_s1 + $0x3e4] ss:$8 sps:$4 sm:$0xff]   ;;  %v1682_v48 = vld [vmem:[%s2298_s1 + $0x2e0] ss:$8 sps:$4 sm:$0xff]  }
  0x31   :  { %1071 = vmatprep.subr.bf16.mxu1 %v1600_v50  ;;  %v1690_v50 = vld [vmem:[%s2298_s1 + $0x2d4] ss:$8 sps:$4 sm:$0xff]  }
  0x33   :  { %1019 = vmatpush2.bf16.msra.mxu0 %v1602_v52  ;;  %v1688_v52 = vld [vmem:[%s2298_s1 + $0x2d0] ss:$8 sps:$4 sm:$0xff]  }
  0x34   :  { %1072 = vmatpush2.bf16.msra.mxu1 %v1603_v53  ;;  %1020 = vmatprep.subr.bf16.mxu0 %v1604_v54  ;;  %v1691_v53 = vld [vmem:[%s2298_s1 + $0x3d0] ss:$8 sps:$4 sm:$0xff]   ;;  %v1696_v54 = vld [vmem:[%s2298_s1 + $0x2c4] ss:$8 sps:$4 sm:$0xff]  }
  0x35   :  { %1073 = vmatprep.subr.bf16.mxu1 %v1606_v55  ;;  %v1699_v55 = vld [vmem:[%s2298_s1 + $0x3c4] ss:$8 sps:$4 sm:$0xff]  }
  0x37   :  { %1021 = vmatpush2.bf16.msra.mxu0 %v1608_v56  ;;  %v1694_v56 = vld [vmem:[%s2298_s1 + $0x2c0] ss:$8 sps:$4 sm:$0xff]  }
  0x38   :  { %1074 = vmatpush2.bf16.msra.mxu1 %v1609_v57  ;;  %1022 = vmatprep.subr.bf16.mxu0 %v1610_v58  ;;  %v1697_v57 = vld [vmem:[%s2298_s1 + $0x3c0] ss:$8 sps:$4 sm:$0xff]   ;;  %v1702_v58 = vld [vmem:[%s2298_s1 + $0x2b4] ss:$8 sps:$4 sm:$0xff]  }
  0x39   :  { %1075 = vmatprep.subr.bf16.mxu1 %v1612_v59  ;;  %v1705_v59 = vld [vmem:[%s2298_s1 + $0x3b4] ss:$8 sps:$4 sm:$0xff]  }
  0x3b   :  { %1023 = vmatpush2.bf16.msra.mxu0 %v1614_v60  ;;  %v1700_v60 = vld [vmem:[%s2298_s1 + $0x2b0] ss:$8 sps:$4 sm:$0xff]  }
  0x3c   :  { %1076 = vmatpush2.bf16.msra.mxu1 %v1615_v61  ;;  %1024 = vmatprep.subr.bf16.mxu0 %v1616_v62  ;;  %v1703_v61 = vld [vmem:[%s2298_s1 + $0x3b0] ss:$8 sps:$4 sm:$0xff]   ;;  %v1714_v62 = vld [vmem:[%s2298_s1 + $0x2a4] ss:$8 sps:$4 sm:$0xff]  }
  0x3d   :  { %1077 = vmatprep.subr.bf16.mxu1 %v1618_v63  ;;  %v1717_v63 = vld [vmem:[%s2298_s1 + $0x3a4] ss:$8 sps:$4 sm:$0xff]  }
  0x3f   :  { %1025 = vmatpush2.bf16.msra.mxu0 %v1620_v0  ;;  %v1712_v0 = vld [vmem:[%s2298_s1 + $0x2a0] ss:$8 sps:$4 sm:$0xff]  }
  0x40   :  { %1078 = vmatpush2.bf16.msra.mxu1 %v1621_v1  ;;  %1100 = vmatprep.subr.bf16.mxu0 %v1630_v2  ;;  %v1715_v1 = vld [vmem:[%s2298_s1 + $0x3a0] ss:$8 sps:$4 sm:$0xff]   ;;  %v1720_v2 = vld [vmem:[%s2298_s1 + $0x294] ss:$8 sps:$4 sm:$0xff]  }
  0x41   :  { %1153 = vmatprep.subr.bf16.mxu1 %v1633_v3  ;;  %v1723_v3 = vld [vmem:[%s2298_s1 + $0x394] ss:$8 sps:$4 sm:$0xff]  }
  0x42   :  { %1027 = vmatmul.mubr.bf16.vlgmr.msra.gmra.mxu0 %v1622_v4  ;;  %v1718_v4 = vld [vmem:[%s2298_s1 + $0x290] ss:$8 sps:$4 sm:$0xff]  }
  0x43   :  { %1080 = vmatmul.mubr.bf16.vlgmr.msra.gmra.mxu1 %v1625_v5  ;;  %1101 = vmatpush1.bf16.msra.mxu0 %v1628_v6  ;;  %v1721_v5 = vld [vmem:[%s2298_s1 + $0x390] ss:$8 sps:$4 sm:$0xff]   ;;  %v1726_v6 = vld [vmem:[%s2298_s1 + $0x284] ss:$8 sps:$4 sm:$0xff]  }
  0x44   :  { %1154 = vmatpush1.bf16.msra.mxu1 %v1631_v7  ;;  %1102 = vmatprep.subr.bf16.mxu0 %v1636_v8  ;;  %v1729_v7 = vld [vmem:[%s2298_s1 + $0x384] ss:$8 sps:$4 sm:$0xff]   ;;  %v1724_v8 = vld [vmem:[%s2298_s1 + $0x280] ss:$8 sps:$4 sm:$0xff]  }
  0x45   :  { %1155 = vmatprep.subr.bf16.mxu1 %v1639_v9  ;;  %1036 = vmatprep.mubr.bf16.mxu0 %v1706_v26  ;;  %v1727_v9 = vld [vmem:[%s2298_s1 + $0x380] ss:$8 sps:$4 sm:$0xff]   ;;  %v1754_v26 = vld [vmem:[%s2298_s1 + $0x430] ss:$8 sps:$4 sm:$0xff]  }
  0x46   :  { %1089 = vmatprep.mubr.bf16.mxu1 %v1708_v27  ;;  %v1759_v27 = vld [vmem:[%s2298_s1 + $0x424] ss:$8 sps:$4 sm:$0xff]  }
  0x47   :  { %1103 = vmatpush1.bf16.msra.mxu0 %v1634_v10  ;;  %v1738_v10 = vld [vmem:[%s2298_s1 + $0x474] ss:$8 sps:$4 sm:$0xff]  }
  0x48   :  { %1156 = vmatpush1.bf16.msra.mxu1 %v1637_v11  ;;  %1104 = vmatprep.subr.bf16.mxu0 %v1642_v12  ;;  %v1730_v11 = vld [vmem:[%s2299_s0 + $0x10] ss:$36 sps:$4 sm:$0xff]   ;;  %v1733_v12 = vld [vmem:[%s2299_s0 + $0x18] ss:$36 sps:$4 sm:$0xff]  }
  0x49   :  { %1157 = vmatprep.subr.bf16.mxu1 %v1645_v13  ;;  %v1736_v13 = vld [vmem:[%s2298_s1 + $0x470] ss:$8 sps:$4 sm:$0xff]  }
  0x4a   :  { %1037 = vmatmul.mubr.bf16.gmra.mxu0 %v1710_v28  ;;  %v1757_v28 = vld [vmem:[%s2298_s1 + $0x420] ss:$8 sps:$4 sm:$0xff]  }
  0x4b   :  { %1105 = vmatpush1.bf16.msra.mxu0 %v1640_v14  ;;  %1090 = vmatmul.mubr.bf16.gmra.mxu1 %v1711_v29  ;;  %v1741_v14 = vld [vmem:[%s2298_s1 + $0x464] ss:$8 sps:$4 sm:$0xff]   ;;  %v1762_v29 = vld [vmem:[%s2298_s1 + $0x414] ss:$8 sps:$4 sm:$0xff]  }
  0x4c   :  { %1158 = vmatpush1.bf16.msra.mxu1 %v1643_v15  ;;  %1106 = vmatprep.subr.bf16.mxu0 %v1648_v16  ;;  %v1742_v15 = vld [vmem:[%s2299_s0 + $0x5c] ss:$36 sps:$4 sm:$0xff]   ;;  %v1748_v16 = vld [vmem:[%s2299_s0 + $0x64] ss:$36 sps:$4 sm:$0xff]  }
  0x4d   :  { %1159 = vmatprep.subr.bf16.mxu1 %v1651_v17  ;;  %1132 = vmatprep.mubr.bf16.mxu0 %v1732_v41  ;;  %v1739_v17 = vld [vmem:[%s2298_s1 + $0x460] ss:$8 sps:$4 sm:$0xff]  }
  0x4e   :  { %1185 = vmatprep.mubr.bf16.mxu1 %v1735_v43 }
  0x4f   :  { %1107 = vmatpush1.bf16.msra.mxu0 %v1646_v18  ;;  %v1747_v18 = vld [vmem:[%s2298_s1 + $0x454] ss:$8 sps:$4 sm:$0xff]  }
  0x50   :  { %1160 = vmatpush1.bf16.msra.mxu1 %v1649_v19  ;;  %1108 = vmatprep.subr.bf16.mxu0 %v1654_v20  ;;  %v1744_v19 = vld [vmem:[%s2299_s0 + $0x58] ss:$36 sps:$4 sm:$0xff]   ;;  %v1750_v20 = vld [vmem:[%s2299_s0 + $0x60] ss:$36 sps:$4 sm:$0xff]  }
  0x51   :  { %1161 = vmatprep.subr.bf16.mxu1 %v1657_v21  ;;  %v1745_v21 = vld [vmem:[%s2298_s1 + $0x450] ss:$8 sps:$4 sm:$0xff]  }
  0x53   :  { %1109 = vmatpush1.bf16.msra.mxu0 %v1652_v22  ;;  %v1753_v22 = vld [vmem:[%s2298_s1 + $0x444] ss:$8 sps:$4 sm:$0xff]  }
  0x54   :  { %1162 = vmatpush1.bf16.msra.mxu1 %v1655_v23  ;;  %1110 = vmatprep.subr.bf16.mxu0 %v1660_v24  ;;  %v1751_v23 = vld [vmem:[%s2298_s1 + $0x440] ss:$8 sps:$4 sm:$0xff]   ;;  %v1756_v24 = vld [vmem:[%s2298_s1 + $0x434] ss:$8 sps:$4 sm:$0xff]  }
  0x55   :  { %1163 = vmatprep.subr.bf16.mxu1 %v1663_v25  ;;  %v1768_v25 = vmov 0  }
  0x57   :  { %1111 = vmatpush1.bf16.msra.mxu0 %v1658_v30  ;;  %v1760_v30 = vld [vmem:[%s2298_s1 + $0x410] ss:$8 sps:$4 sm:$0xff]  }
  0x58   :  { %1164 = vmatpush1.bf16.msra.mxu1 %v1661_v31  ;;  %1112 = vmatprep.subr.bf16.mxu0 %v1666_v32  ;;  %v1765_v31 = vld [vmem:[%s2298_s1 + $0x404] ss:$8 sps:$4 sm:$0xff]   ;;  %v1763_v32 = vld [vmem:[%s2298_s1 + $0x400] ss:$8 sps:$4 sm:$0xff]  }
  0x59   :  { %1165 = vmatprep.subr.bf16.mxu1 %v1669_v33  ;;  %v1766_v33 = vld [vmem:[%s2299_s0 + $0x20] ss:$36 sps:$4 sm:$0xff]  }
  0x5b   :  { %1113 = vmatpush1.bf16.msra.mxu0 %v1664_v34  ;;  %v1767_v34 = vld [vmem:[%s2299_s0 + $0x68] ss:$36 sps:$4 sm:$0xff]  }
  0x5c   :  { %1166 = vmatpush1.bf16.msra.mxu1 %v1667_v35  ;;  %1114 = vmatprep.subr.bf16.mxu0 %v1672_v36 }
  0x5d   :  { %1167 = vmatprep.subr.bf16.mxu1 %v1675_v37 }
  0x5f   :  { %1115 = vmatpush1.bf16.msra.mxu0 %v1670_v38 }
  0x60   :  { %1168 = vmatpush1.bf16.msra.mxu1 %v1673_v39  ;;  %1116 = vmatprep.subr.bf16.mxu0 %v1678_v40 }
  0x61   :  { %1169 = vmatprep.subr.bf16.mxu1 %v1681_v42 }
  0x63   :  { %1117 = vmatpush2.bf16.msra.mxu0 %v1676_v44 }
  0x64   :  { %1170 = vmatpush2.bf16.msra.mxu1 %v1679_v45  ;;  %1118 = vmatprep.subr.bf16.mxu0 %v1684_v46 }
  0x65   :  { %1171 = vmatprep.subr.bf16.mxu1 %v1687_v47 }
  0x67   :  { %1119 = vmatpush2.bf16.msra.mxu0 %v1682_v48 }
  0x68   :  { %1172 = vmatpush2.bf16.msra.mxu1 %v1685_v49  ;;  %1120 = vmatprep.subr.bf16.mxu0 %v1690_v50 }
  0x69   :  { %1173 = vmatprep.subr.bf16.mxu1 %v1693_v51 }
  0x6b   :  { %1121 = vmatpush2.bf16.msra.mxu0 %v1688_v52 }
  0x6c   :  { %1174 = vmatpush2.bf16.msra.mxu1 %v1691_v53  ;;  %1122 = vmatprep.subr.bf16.mxu0 %v1696_v54 }
  0x6d   :  { %1175 = vmatprep.subr.bf16.mxu1 %v1699_v55 }
  0x6f   :  { %1123 = vmatpush2.bf16.msra.mxu0 %v1694_v56 }
  0x70   :  { %1176 = vmatpush2.bf16.msra.mxu1 %v1697_v57  ;;  %1124 = vmatprep.subr.bf16.mxu0 %v1702_v58 }
  0x71   :  { %1177 = vmatprep.subr.bf16.mxu1 %v1705_v59 }
  0x73   :  { %1125 = vmatpush2.bf16.msra.mxu0 %v1700_v60 }
  0x74   :  { %1178 = vmatpush2.bf16.msra.mxu1 %v1703_v61  ;;  %1126 = vmatprep.subr.bf16.mxu0 %v1714_v62  ;;  %v1261_v61 = vlaneseq }
  0x75   :  { %1179 = vmatprep.subr.bf16.mxu1 %v1717_v63 }
  0x77   :  { %1127 = vmatpush2.bf16.msra.mxu0 %v1712_v0  ;;  %v1262_v0 = vshrl.u32 %v1261_v61, 7 }
  0x78   :  { %1180 = vmatpush2.bf16.msra.mxu1 %v1715_v1  ;;  %1128 = vmatprep.subr.bf16.mxu0 %v1720_v2 }
  0x79   :  { %1181 = vmatprep.subr.bf16.mxu1 %v1723_v3 }
  0x7b   :  { %1129 = vmatpush2.bf16.msra.mxu0 %v1718_v4 }
  0x7c   :  { %1182 = vmatpush2.bf16.msra.mxu1 %v1721_v5  ;;  %1130 = vmatprep.subr.bf16.mxu0 %v1726_v6  ;;  %v1263_v5 = vsub.s32 0, %v1262_v0  ;;  %v1267_v6 = vsub.s32 1, %v1262_v0 }
  0x7d   :  { %1183 = vmatprep.subr.bf16.mxu1 %v1729_v7 }
  0x7f   :  { %1131 = vmatpush2.bf16.msra.mxu0 %v1724_v8 }
  0x80   :  { %1184 = vmatpush2.bf16.msra.mxu1 %v1727_v9  ;;  %1206 = vmatprep.subr.bf16.mxu0 %v1738_v10 }
  0x81   :  { %1509 = vmatprep.subr.bf16.mxu1 %v1738_v10 }
  0x82   :  { %1133 = vmatmul.mubr.bf16.vlgmr.msra.gmra.mxu0 %v1730_v11  ;;  %v1259_v11 = vld [vmem:[%s2300_s2] sm:$0x3] }
  0x83   :  { %1186 = vmatmul.mubr.bf16.vlgmr.msra.gmra.mxu1 %v1733_v12  ;;  %1207 = vmatpush1.bf16.msra.mxu0 %v1736_v13  ;;  %v1279_v12 = vld [vmem:[%s2301_s3] sm:$0x3] }
  0x84   :  { %1517 = vmatpush1.bf16.msra.mxu1 %v1736_v13  ;;  %1208 = vmatprep.subr.bf16.mxu0 %v1741_v14 }
  0x85   :  { %1510 = vmatprep.subr.bf16.mxu1 %v1741_v14  ;;  %1142 = vmatprep.mubr.bf16.mxu0 %v1742_v15 }
  0x86   :  { %1195 = vmatprep.mubr.bf16.mxu1 %v1748_v16 }
  0x87   :  { %1209 = vmatpush1.bf16.msra.mxu0 %v1739_v17 }
  0x88   :  { %1518 = vmatpush1.bf16.msra.mxu1 %v1739_v17  ;;  %1210 = vmatprep.subr.bf16.mxu0 %v1747_v18 }
  0x89   :  { %1511 = vmatprep.subr.bf16.mxu1 %v1747_v18 }
  0x8a   :  { %1143 = vmatmul.mubr.bf16.gmra.mxu0 %v1744_v19  ;;  %v1264_v19 = vrot.slane %v1259_v11, %v1263_v5 }
  0x8b   :  { %1196 = vmatmul.mubr.bf16.gmra.mxu1 %v1750_v20  ;;  %1211 = vmatpush1.bf16.msra.mxu0 %v1745_v21 }
  0x8c   :  { %1519 = vmatpush1.bf16.msra.mxu1 %v1745_v21  ;;  %1212 = vmatprep.subr.bf16.mxu0 %v1753_v22 }
  0x8d   :  { %1512 = vmatprep.subr.bf16.mxu1 %v1753_v22  ;;  %1238 = vmatprep.mubr.bf16.mxu0 %v1768_v25  ;;  %v1284_v22 = vrot.slane %v1279_v12, %v1263_v5 }
  0x8e   :  { %1248 = vmatprep.mubr.bf16.mxu1 %v1768_v25 }
  0x8f   :  { %1213 = vmatpush1.bf16.msra.mxu0 %v1751_v23 }
  0x90   :  { %1520 = vmatpush1.bf16.msra.mxu1 %v1751_v23  ;;  %1214 = vmatprep.subr.bf16.mxu0 %v1756_v24  ;;  %v1268_v23 = vrot.slane %v1259_v11, %v1267_v6 }
  0x91   :  { %1513 = vmatprep.subr.bf16.mxu1 %v1756_v24 }
  0x93   :  { %1215 = vmatpush1.bf16.msra.mxu0 %v1754_v26 }
  0x94   :  { %1521 = vmatpush1.bf16.msra.mxu1 %v1754_v26  ;;  %1216 = vmatprep.subr.bf16.mxu0 %v1759_v27 }
  0x95   :  { %1514 = vmatprep.subr.bf16.mxu1 %v1759_v27 }
  0x97   :  { %1217 = vmatpush1.bf16.msra.mxu0 %v1757_v28 }
  0x98   :  { %1522 = vmatpush1.bf16.msra.mxu1 %v1757_v28  ;;  %1218 = vmatprep.subr.bf16.mxu0 %v1762_v29 }
  0x99   :  { %1515 = vmatprep.subr.bf16.mxu1 %v1762_v29 }
  0x9b   :  { %1219 = vmatpush1.bf16.msra.mxu0 %v1760_v30 }
  0x9c   :  { %1523 = vmatpush1.bf16.msra.mxu1 %v1760_v30  ;;  %1220 = vmatprep.subr.bf16.mxu0 %v1765_v31 }
  0x9d   :  { %1516 = vmatprep.subr.bf16.mxu1 %v1765_v31 }
  0x9f   :  { %1221 = vmatpush1.bf16.msra.mxu0 %v1763_v32 }
  0xa0   :  { %1524 = vmatpush1.bf16.msra.mxu1 %v1763_v32 }
  0xa2   :  { %1239 = vmatmul.mubr.bf16.vlgmr.msra.gmra.mxu0 %v1766_v33 }
  0xa3   :  { %1249 = vmatmul.mubr.bf16.vlgmr.msra.gmra.mxu1 %v1767_v34 }
 0x102   :  { %v1028_v35 = vpop.f32.mrf.mxu0 }
 0x103   :  { %v1081_v36 = vpop.f32.mrf.mxu1 }
 0x104   :  { %v1030_v37 = vpop.f32.mrf.mxu0  ;;  %v1082_v1 = vadd.f32 %v1081_v36, %v1028_v35 }
 0x105   :  { %v1083_v38 = vpop.f32.mrf.mxu1 }
 0x106   :  { %v1032_v39 = vpop.f32.mrf.mxu0  ;;  %v1084_v7 = vadd.f32 %v1083_v38, %v1030_v37  ;;  %v1288_v37 = vrot.slane %v1279_v12, %v1267_v6 }
 0x107   :  { %v1085_v40 = vpop.f32.mrf.mxu1 }
 0x108   :  { %v1034_v41 = vpop.f32.mrf.mxu0  ;;  %v1086_v15 = vadd.f32 %v1085_v40, %v1032_v39 }
 0x109   :  { %v1087_v42 = vpop.f32.mrf.mxu1 }
 0x10a   :  { %v1038_v43 = vpop.f32.mrf.mxu0  ;;  %v1088_v24 = vadd.f32 %v1087_v42, %v1034_v41 }
 0x10b   :  { %v1091_v44 = vpop.f32.mrf.mxu1 }
 0x10c   :  { %v1040_v45 = vpop.f32.mrf.mxu0  ;;  %v1092_v2 = vadd.f32 %v1091_v44, %v1038_v43 }
 0x10d   :  { %v1093_v46 = vpop.f32.mrf.mxu1 }
 0x10e   :  { %v1042_v47 = vpop.f32.mrf.mxu0  ;;  %v1094_v8 = vadd.f32 %v1093_v46, %v1040_v45 }
 0x10f   :  { %v1095_v48 = vpop.f32.mrf.mxu1 }
 0x110   :  { %v1044_v49 = vpop.f32.mrf.mxu0  ;;  %v1096_v16 = vadd.f32 %v1095_v48, %v1042_v47 }
 0x111   :  { %v1097_v50 = vpop.f32.mrf.mxu1 }
 0x112   :  { %v1098_v25 = vadd.f32 %v1097_v50, %v1044_v49 }
 0x142   :  { %v1134_v51 = vpop.f32.mrf.mxu0 }
 0x143   :  { %v1187_v52 = vpop.f32.mrf.mxu1  ;;  %v1135_v9 = vadd.f32 %v1134_v51, %v1082_v1 }
 0x144   :  { %v1136_v53 = vpop.f32.mrf.mxu0 }
 0x145   :  { %v1189_v54 = vpop.f32.mrf.mxu1  ;;  %v1137_v13 = vadd.f32 %v1136_v53, %v1084_v7  ;;  %v1188_v20 = vadd.f32 %v1187_v52, %v1135_v9 }
 0x146   :  { %v1138_v55 = vpop.f32.mrf.mxu0 }
 0x147   :  { %v1191_v56 = vpop.f32.mrf.mxu1  ;;  %v1139_v26 = vadd.f32 %v1138_v55, %v1086_v15  ;;  %v1190_v30 = vadd.f32 %v1189_v54, %v1137_v13 }
 0x148   :  { %v1140_v57 = vpop.f32.mrf.mxu0 }
 0x149   :  { %v1193_v58 = vpop.f32.mrf.mxu1  ;;  %v1141_v34 = vadd.f32 %v1140_v57, %v1088_v24  ;;  %v1192_v45 = vadd.f32 %v1191_v56, %v1139_v26 }
 0x14a   :  { %v1144_v59 = vpop.f32.mrf.mxu0 }
 0x14b   :  { %v1197_v60 = vpop.f32.mrf.mxu1  ;;  %v1145_v10 = vadd.f32 %v1144_v59, %v1092_v2  ;;  %v1194_v51 = vadd.f32 %v1193_v58, %v1141_v34 }
 0x14c   :  { %v1146_v62 = vpop.f32.mrf.mxu0 }
 0x14d   :  { %v1199_v63 = vpop.f32.mrf.mxu1  ;;  %v1147_v14 = vadd.f32 %v1146_v62, %v1094_v8  ;;  %v1198_v21 = vadd.f32 %v1197_v60, %v1145_v10 }
 0x14e   :  { %v1148_v3 = vpop.f32.mrf.mxu0 }
 0x14f   :  { %v1201_v4 = vpop.f32.mrf.mxu1  ;;  %v1149_v27 = vadd.f32 %v1148_v3, %v1096_v16  ;;  %v1200_v31 = vadd.f32 %v1199_v63, %v1147_v14 }
 0x150   :  { %v1150_v17 = vpop.f32.mrf.mxu0 }
 0x151   :  { %v1203_v18 = vpop.f32.mrf.mxu1  ;;  %v1151_v35 = vadd.f32 %v1150_v17, %v1098_v25  ;;  %v1202_v41 = vadd.f32 %v1201_v4, %v1149_v27 }
 0x153   :  { %v1204_v52 = vadd.f32 %v1203_v18, %v1151_v35 }
 0x162   :  { %v1240_v28 = vpop.f32.mrf.mxu0 }
 0x163   :  { %v1250_v29 = vpop.f32.mrf.mxu1  ;;  %v1241_v32 = vadd.f32 %v1240_v28, %v1188_v20 }
 0x164   :  { %v1251_v33 = vadd.f32 %v1250_v29, %v1198_v21  ;;  %v1242_v36 = vpop.f32.mrf.mxu0 }
 0x165   :  { %v1252_v38 = vpop.f32.mrf.mxu1  ;;  %v1271_v39 = vmul.f32 %v1264_v19, %v1241_v32  ;;  %v1243_v43 = vadd.f32 %v1242_v36, %v1190_v30 }
 0x166   :  { %v1275_v40 = vmul.f32 %v1264_v19, %v1251_v33  ;;  %v1253_v44 = vadd.f32 %v1252_v38, %v1200_v31  ;;  %v1244_v42 = vpop.f32.mrf.mxu0 }
 0x167   :  { %v1254_v46 = vpop.f32.mrf.mxu1  ;;  %v1291_v47 = vadd.f32 %v1284_v22, %v1271_v39  ;;  %v1272_v49 = vmul.f32 %v1268_v23, %v1243_v43  ;;  %v1245_v53 = vadd.f32 %v1244_v42, %v1192_v45 }
 0x168   :  { %v1295_v48 = vadd.f32 %v1284_v22, %v1275_v40  ;;  %v1276_v50 = vmul.f32 %v1268_v23, %v1253_v44  ;;  %v1255_v54 = vadd.f32 %v1254_v46, %v1202_v41  ;;  %v1246_v55 = vpop.f32.mrf.mxu0 }
 0x169   :  { %v1256_v57 = vpop.f32.mrf.mxu1  ;;  %v1292_v59 = vadd.f32 %v1288_v37, %v1272_v49  ;;  %v1273_v61 = vmul.f32 %v1264_v19, %v1245_v53  ;;  %v1247_v63 = vadd.f32 %v1246_v55, %v1194_v51  ;;  %v1299_v56 = vmax.f32 %v1291_v47, 0.0 }
 0x16a   :  { %v1296_v60 = vadd.f32 %v1288_v37, %v1276_v50  ;;  %v1277_v62 = vmul.f32 %v1264_v19, %v1255_v54  ;;  %v1257_v0 = vadd.f32 %v1256_v57, %v1204_v52  ;;  %v1303_v1 = vmax.f32 %v1295_v48, 0.0 }
 0x16b   :  { %v1300_v2 = vmax.f32 %v1292_v59, 0.0  ;;  %v1293_v4 = vadd.f32 %v1284_v22, %v1273_v61  ;;  %v1274_v6 = vmul.f32 %v1268_v23, %v1247_v63 }
 0x16c   :  { %v1304_v3 = vmax.f32 %v1296_v60, 0.0  ;;  %v1297_v5 = vadd.f32 %v1284_v22, %v1277_v62  ;;  %v1278_v7 = vmul.f32 %v1268_v23, %v1257_v0 }
 0x16d   :  { %v1505_v58 = vpack.c.bf16 %v1300_v2, %v1299_v56  ;;  %v1294_v9 = vadd.f32 %v1288_v37, %v1274_v6  ;;  %v1301_v11 = vmax.f32 %v1293_v4, 0.0 }
 0x16e   :  { %v1507_v8 = vpack.c.bf16 %v1304_v3, %v1303_v1  ;;  %v1298_v10 = vadd.f32 %v1288_v37, %v1278_v7  ;;  %v1305_v12 = vmax.f32 %v1297_v5, 0.0 }
 0x16f   :  { %1331 = vst [vmem:[%s2302_s4] sm:$0xff] %v1505_v58  ;;  %v1302_v13 = vmax.f32 %v1294_v9, 0.0 }
 0x170   :  { %1333 = vst [vmem:[%s2302_s4 + $0x10] sm:$0xff] %v1507_v8  ;;  %v1306_v14 = vmax.f32 %v1298_v10, 0.0 }
 0x171   :  { %v1506_v15 = vpack.c.bf16 %v1302_v13, %v1301_v11 }
 0x172   :  { %v1508_v16 = vpack.c.bf16 %v1306_v14, %v1305_v12 }
 0x173   :  { %1332 = vst [vmem:[%s2302_s4 + $0x8] sm:$0xff] %v1506_v15 }
 0x174   :  { %1334 = vst [vmem:[%s2302_s4 + $0x18] sm:$0xff] %v1508_v16 }

// kernel: forward.81
= control target key start
LH: loop header
LB: loop body
LE: loop exit
PB: predicated region body
PF: predicated region fallthrough
CT: control target
= control target key end

     0   :  { %v31_v0 = vlaneseq  ;;  %s330_s0 = inlined_call_operand.vmem [shape: f32[2,16,256], index: 0, kind: input, shape index: {}]   ;;  %s331_s1 = inlined_call_operand.vmem [shape: f32[1,1,256], index: 1, kind: input, shape index: {}]   ;;  %s332_s2 = inlined_call_operand.vmem [shape: f32[1,1,256], index: 2, kind: input, shape index: {}]   ;;  %s333_s3 = inlined_call_operand.vmem [shape: f32[10,256], index: 3, kind: input, shape index: {}]   ;;  %s334_s4 = inlined_call_operand.vmem [shape: f32[1,10], index: 4, kind: input, shape index: {}]   ;;  %s335_s5 = inlined_call_operand.hbm [shape: f32[2,10], index: 5, kind: output, shape index: {}]  }
   0x1   :  { %v29_v2 = vld [vmem:[%s331_s1] sm:$0x3]  ;;  %v26_v5 = vld [vmem:[%s330_s0 + $0x28] sm:$0xff]  ;;  %v27_v6 = vld [vmem:[%s330_s0 + $0x30] sm:$0xff] }
   0x2   :  { %v275_v1 = vshrl.u32 %v31_v0, 7  ;;  %v49_v3 = vld [vmem:[%s332_s2] sm:$0x3]  ;;  %v28_v9 = vld [vmem:[%s330_s0 + $0x38] sm:$0xff] }
   0x3   :  { %v25_v4 = vld [vmem:[%s330_s0 + $0x20] sm:$0xff] }
   0x4   :  { %v33_v7 = vsub.s32 0, %v275_v1  ;;  %v37_v8 = vsub.s32 1, %v275_v1  ;;  %v21_v10 = vld [vmem:[%s330_s0] sm:$0xff] }
   0x5   :  { %10 = vsyncpa [#allocation3], 0  ;;  %v22_v15 = vld [vmem:[%s330_s0 + $0x8] sm:$0xff]  ;;  %v23_v16 = vld [vmem:[%s330_s0 + $0x10] sm:$0xff]  ;;  %vm125_vm0 = vcmask 1041408   ;;  %vm185_vm1 = vcmask 130112  }
   0x6   :  { %v34_v11 = vrot.slane %v29_v2, %v33_v7  ;;  %v38_v12 = vrot.slane %v29_v2, %v37_v8  ;;  %v54_v13 = vrot.slane %v49_v3, %v33_v7  ;;  %v58_v14 = vrot.slane %v49_v3, %v37_v8  ;;  %v24_v17 = vld [vmem:[%s330_s0 + $0x18] sm:$0xff]  ;;  %v111_v7 = vld [vmem:[%s333_s3 + $0x8] sm:$0xff] }
   0x7   :  { %vm196_vm2 = vcmask 1041409   ;;  %vm199_vm3 = vcmask 74752  }
   0x8   :  { %v45_v18 = vmul.f32 %v34_v11, %v25_v4  ;;  %v46_v19 = vmul.f32 %v38_v12, %v26_v5  ;;  %v47_v20 = vmul.f32 %v34_v11, %v27_v6  ;;  %v48_v21 = vmul.f32 %v38_v12, %v28_v9  ;;  %v110_v6 = vld [vmem:[%s333_s3] sm:$0xff] }
   0x9   :  { %v41_v22 = vmul.f32 %v34_v11, %v21_v10  ;;  %v42_v23 = vmul.f32 %v38_v12, %v22_v15  ;;  %v43_v24 = vmul.f32 %v34_v11, %v23_v16  ;;  %v44_v25 = vmul.f32 %v38_v12, %v24_v17  ;;  %v112_v10 = vld [vmem:[%s333_s3 + $0x10] sm:$0x3]  ;;  %v113_v11 = vld [vmem:[%s333_s3 + $0x18] sm:$0x3] }
   0xa   :  { %v65_v26 = vadd.f32 %v54_v13, %v45_v18  ;;  %v66_v27 = vadd.f32 %v58_v14, %v46_v19  ;;  %v67_v28 = vadd.f32 %v54_v13, %v47_v20  ;;  %v68_v29 = vadd.f32 %v58_v14, %v48_v21 }
   0xb   :  { %v61_v30 = vadd.f32 %v54_v13, %v41_v22  ;;  %v62_v31 = vadd.f32 %v58_v14, %v42_v23  ;;  %v63_v32 = vadd.f32 %v54_v13, %v43_v24  ;;  %v64_v33 = vadd.f32 %v58_v14, %v44_v25 }
   0xc   :  { %v73_v34 = vmax.f32 %v65_v26, 0.0  ;;  %v74_v35 = vmax.f32 %v66_v27, 0.0  ;;  %v75_v36 = vmax.f32 %v67_v28, 0.0  ;;  %v76_v37 = vmax.f32 %v68_v29, 0.0 }
   0xd   :  { %v69_v38 = vmax.f32 %v61_v30, 0.0  ;;  %v70_v39 = vmax.f32 %v62_v31, 0.0  ;;  %v71_v40 = vmax.f32 %v63_v32, 0.0  ;;  %v72_v41 = vmax.f32 %v64_v33, 0.0  ;;  %v215_v32 = vld [vmem:[%s334_s4] ss:$0 sm:$0xff] }
   0xe   :  { %v91_v42 = vadd.f32 %v75_v36, %v73_v34  ;;  %v98_v43 = vadd.f32 %v76_v37, %v74_v35  ;;  %v242_v33 = vmov 0   ;;  %s243_s4 = smov [#allocation2]  }
   0xf   :  { %v77_v44 = vadd.f32 %v71_v40, %v69_v38  ;;  %v84_v45 = vadd.f32 %v72_v41, %v70_v39  ;;  %219 = vset.pattern.permute.xlu0 %v242_v33  ;;  %218 = vset.pattern.permute.xlu1 %v242_v33  ;;  %s207_s19 = sshll.u32 %s243_s4, 4  ;;  %s208_s19 = int_to_ptr.vmem [resolvable:$true] %s207_s19 }
  0x10   :  { %v92_v46 = vrot.slane %v91_v42, 4  ;;  %v99_v47 = vrot.slane %v98_v43, 4  ;;  %s220_s20 = scalar_lea.vmem %s208_s19, 32  ;;  %p225_p1 = scmp.lt.s32.totalorder %s208_s19, %s208_s19 }
  0x11   :  { %v78_v48 = vrot.slane %v77_v44, 4  ;;  %v85_v49 = vrot.slane %v84_v45, 4  ;;  %p221_p0 = scmp.ne.s32.totalorder %s208_s19, %s220_s20  ;;  %p226_p2 = scmp.lt.s32.totalorder %s220_s20, %s220_s20 }
  0x12   :  { %v93_v50 = vadd.f32 %v92_v46, %v91_v42  ;;  %v100_v51 = vadd.f32 %v99_v47, %v98_v43 }
  0x13   :  { %v79_v52 = vadd.f32 %v78_v48, %v77_v44  ;;  %v86_v53 = vadd.f32 %v85_v49, %v84_v45  ;;  %v175_v44 = vand.u32 127, %v31_v0  ;;  %p227_p3 = por %p226_p2, %p225_p1 }
  0x14   :  { %v94_v54 = vrot.slane %v93_v50, 2  ;;  %v101_v55 = vrot.slane %v100_v51, 2 }
  0x15   :  { %v80_v56 = vrot.slane %v79_v52, 2  ;;  %v87_v57 = vrot.slane %v86_v53, 2  ;;  %v180_v45 = vadd.s32 4294967288, %v175_v44  ;;  %v178_v49 = vsub.s32 %v175_v44, %v275_v1  ;;  %p228_p4 = pnand %p227_p3, %p221_p0 }
  0x16   :  { %v95_v58 = vadd.f32 %v94_v54, %v93_v50  ;;  %v102_v59 = vadd.f32 %v101_v55, %v100_v51 }
  0x17   :  { %v81_v60 = vadd.f32 %v80_v56, %v79_v52  ;;  %v88_v61 = vadd.f32 %v87_v57, %v86_v53  ;;  %v183_v47 = vsub.s32 %v180_v45, %v275_v1 }
  0x18   :  { %v96_v62 = vrot.slane %v95_v58, 1  ;;  %v103_v63 = vrot.slane %v102_v59, 1 }
  0x19   :  { %v82_v2 = vrot.slane %v81_v60, 1  ;;  %v89_v3 = vrot.slane %v88_v61, 1 }
  0x1a   :  { %v97_v4 = vadd.f32 %v96_v62, %v95_v58  ;;  %v104_v5 = vadd.f32 %v103_v63, %v102_v59 }
  0x1b   :  { %v83_v8 = vadd.f32 %v82_v2, %v81_v60  ;;  %v90_v9 = vadd.f32 %v89_v3, %v88_v61 }
  0x1c   :  { %v108_v12 = vmul.f32 0.0625, %v97_v4  ;;  %v109_v13 = vmul.f32 0.0625, %v104_v5 }
  0x1d   :  { %v106_v14 = vmul.f32 0.0625, %v83_v8  ;;  %v107_v15 = vmul.f32 0.0625, %v90_v9 }
  0x1e   :  { %v118_v16 = vmul.f32 %v110_v6, %v108_v12  ;;  %v119_v17 = vmul.f32 %v111_v7, %v109_v13  ;;  %v120_v18 = vmul.f32 %v112_v10, %v108_v12  ;;  %v121_v19 = vmul.f32 %v113_v11, %v109_v13 }
  0x1f   :  { %v114_v20 = vmul.f32 %v110_v6, %v106_v14  ;;  %v115_v21 = vmul.f32 %v111_v7, %v107_v15  ;;  %v116_v22 = vmul.f32 %v112_v10, %v106_v14  ;;  %v117_v23 = vmul.f32 %v113_v11, %v107_v15 }
  0x20   :  { %v131_v24 = vadd.f32 %v119_v17, %v118_v16  ;;  %v134_v25 = vsel %vm125_vm0, %v120_v18, 0.0  ;;  %v135_v26 = vsel %vm125_vm0, %v121_v19, 0.0 }
  0x21   :  { %v122_v27 = vadd.f32 %v115_v21, %v114_v20  ;;  %v126_v28 = vsel %vm125_vm0, %v116_v22, 0.0  ;;  %v127_v29 = vsel %vm125_vm0, %v117_v23, 0.0  ;;  %v136_v30 = vadd.f32 %v135_v26, %v134_v25 }
  0x22   :  { %132 = vadd.xlane.f32.xlu1 %v131_v24  ;;  %v128_v31 = vadd.f32 %v127_v29, %v126_v28 }
  0x23   :  { %123 = vadd.xlane.f32.xlu0 %v122_v27 }
  0x26   :  { %137 = vadd.xlane.f32.xlu1 %v136_v30 }
  0x27   :  { %129 = vadd.xlane.f32.xlu0 %v128_v31 }
  0x37   :  { %150 = vbcast.lane.b32.xlu1 %v215_v32, 264 }
  0x3d   :  { %146 = vbcast.lane.b32.xlu0 %v215_v32, 256 }
  0xab   :  { %v133_v34 = vpop.xlane.xlu1 %132 }
  0xac   :  { %v124_v35 = vpop.xlane.xlu0 %123 }
  0xaf   :  { %v138_v36 = vpop.xlane.xlu1 %137 }
  0xb0   :  { %v130_v37 = vpop.xlane.xlu0 %129 }
  0xb3   :  { %v151_v41 = vpop.permute.xlu1 %150 }
  0xb4   :  { %v147_v38 = vpop.permute.xlu0 %146  ;;  %v155_v42 = vadd.f32 %v151_v41, %v130_v37  ;;  %v157_v43 = vadd.f32 %v151_v41, %v138_v36 }
  0xb5   :  { %v154_v39 = vadd.f32 %v147_v38, %v124_v35  ;;  %v156_v40 = vadd.f32 %v147_v38, %v133_v34 }
  0xb7   :  { %169 = vperm.xlu0 %219, %v156_v40   ;;  %163 = vperm.xlu1 %218, %v154_v39  }
  0xbb   :  { %166 = vperm.xlu1 %218, %v155_v42  }
  0xbf   :  { %172 = vperm.xlu1 %218, %v157_v43  }
 0x132   :  { %v164_v46 = vpop.permute.xlu1 %163  ;;  %v170_v50 = vpop.permute.xlu0 %169 }
 0x133   :  { %v190_v53 = vrot.slane %v170_v50, %v178_v49  ;;  %v179_v54 = vrot.slane %v164_v46, %v178_v49 }
 0x136   :  { %v167_v48 = vpop.permute.xlu1 %166 }
 0x137   :  { %v184_v51 = vrot.slane %v167_v48, %v183_v47 }
 0x139   :  { %v186_v56 = vsel %vm185_vm1, %v184_v51, %v179_v54 }
 0x13a   :  { %v173_v52 = vpop.permute.xlu1 %172 }
 0x13b   :  { %v194_v55 = vrot.slane %v173_v52, %v183_v47 }
 0x13d   :  { %v195_v0 = vsel %vm185_vm1, %v194_v55, %v190_v53 }
 0x13e   :  { %v197_v57 = vsel %vm196_vm2, %v195_v0, %v186_v56 }
 0x13f   :  { %200 = vst.msk [vmem:[#allocation2] sm:$0x3] %vm199_vm3, %v197_v57 }
 0x140   :  { %231 = shalt.err (!%p228_p4)
}
 0x141   :  { %210 = dma.vmem_to_hbm [thread:$0]  %s208_s19, 32, %s335_s5, [#allocation3]  }
 0x142   :  { %240 = dma.done.wait [#allocation3], 32  }
 0x143   :  { %241 = vsyncadd [#allocation3], 4294967264 }
 0x144   :  { %214 = vsyncpa [#allocation3], 1 }

// kernel: forward.71
= control target key start
LH: loop header
LB: loop body
LE: loop exit
PB: predicated region body
PF: predicated region fallthrough
CT: control target
= control target key end

     0   :  { %s4463_s1 = inlined_call_operand.vmem [shape: bf16[2304,256], index: 1, kind: input, shape index: {}]   ;;  %s4464_s0 = inlined_call_operand.vmem [shape: bf16[32,2304], index: 0, kind: input, shape index: {}]   ;;  %s4465_s2 = inlined_call_operand.vmem [shape: f32[32,256], index: 2, kind: input, shape index: {}]   ;;  %s4466_s3 = inlined_call_operand.vmem [shape: f32[32,256], index: 3, kind: output, shape index: {}]  }
   0x1   :  { %v2811_v0 = vld [vmem:[%s4463_s1 + $0x74] ss:$8 sps:$4 sm:$0xff]   ;;  %v2815_v2 = vld [vmem:[%s4463_s1 + $0x70] ss:$8 sps:$4 sm:$0xff]   ;;  %v2817_v4 = vld [vmem:[%s4463_s1 + $0x64] ss:$8 sps:$4 sm:$0xff]  }
   0x2   :  { %v2813_v1 = vld [vmem:[%s4463_s1 + $0x174] ss:$8 sps:$4 sm:$0xff]   ;;  %1966 = vmatprep.subr.bf16.mxu0 %v2811_v0  ;;  %v2816_v3 = vld [vmem:[%s4463_s1 + $0x170] ss:$8 sps:$4 sm:$0xff]   ;;  %v2819_v5 = vld [vmem:[%s4463_s1 + $0x164] ss:$8 sps:$4 sm:$0xff]  }
   0x3   :  { %2019 = vmatprep.subr.bf16.mxu1 %v2813_v1  ;;  %1967 = vmatpush1.bf16.msra.mxu0 %v2815_v2  ;;  %v2821_v6 = vld [vmem:[%s4463_s1 + $0x60] ss:$8 sps:$4 sm:$0xff]   ;;  %v2823_v8 = vld [vmem:[%s4463_s1 + $0x54] ss:$8 sps:$4 sm:$0xff]   ;;  %v2827_v10 = vld [vmem:[%s4463_s1 + $0x50] ss:$8 sps:$4 sm:$0xff]  }
   0x4   :  { %2020 = vmatpush1.bf16.msra.mxu1 %v2816_v3  ;;  %1968 = vmatprep.subr.bf16.mxu0 %v2817_v4  ;;  %v2822_v7 = vld [vmem:[%s4463_s1 + $0x160] ss:$8 sps:$4 sm:$0xff]   ;;  %v2825_v9 = vld [vmem:[%s4463_s1 + $0x154] ss:$8 sps:$4 sm:$0xff]   ;;  %v2828_v11 = vld [vmem:[%s4463_s1 + $0x150] ss:$8 sps:$4 sm:$0xff]  }
   0x5   :  { %2021 = vmatprep.subr.bf16.mxu1 %v2819_v5  ;;  %v2829_v12 = vld [vmem:[%s4463_s1 + $0x44] ss:$8 sps:$4 sm:$0xff]   ;;  %v2833_v14 = vld [vmem:[%s4463_s1 + $0x40] ss:$8 sps:$4 sm:$0xff]   ;;  %v2835_v16 = vld [vmem:[%s4463_s1 + $0x34] ss:$8 sps:$4 sm:$0xff]  }
   0x6   :  { %v2831_v13 = vld [vmem:[%s4463_s1 + $0x144] ss:$8 sps:$4 sm:$0xff]   ;;  %v2834_v15 = vld [vmem:[%s4463_s1 + $0x140] ss:$8 sps:$4 sm:$0xff]   ;;  %v2837_v17 = vld [vmem:[%s4463_s1 + $0x134] ss:$8 sps:$4 sm:$0xff]  }
   0x7   :  { %1969 = vmatpush1.bf16.msra.mxu0 %v2821_v6  ;;  %v2839_v18 = vld [vmem:[%s4463_s1 + $0x30] ss:$8 sps:$4 sm:$0xff]   ;;  %v2841_v20 = vld [vmem:[%s4463_s1 + $0x24] ss:$8 sps:$4 sm:$0xff]   ;;  %v2845_v22 = vld [vmem:[%s4463_s1 + $0x20] ss:$8 sps:$4 sm:$0xff]  }
   0x8   :  { %2022 = vmatpush1.bf16.msra.mxu1 %v2822_v7  ;;  %1970 = vmatprep.subr.bf16.mxu0 %v2823_v8  ;;  %v2840_v19 = vld [vmem:[%s4463_s1 + $0x130] ss:$8 sps:$4 sm:$0xff]   ;;  %v2843_v21 = vld [vmem:[%s4463_s1 + $0x124] ss:$8 sps:$4 sm:$0xff]   ;;  %v2846_v23 = vld [vmem:[%s4463_s1 + $0x120] ss:$8 sps:$4 sm:$0xff]  }
   0x9   :  { %2023 = vmatprep.subr.bf16.mxu1 %v2825_v9  ;;  %v2847_v24 = vld [vmem:[%s4463_s1 + $0x14] ss:$8 sps:$4 sm:$0xff]   ;;  %v2851_v26 = vld [vmem:[%s4463_s1 + $0x10] ss:$8 sps:$4 sm:$0xff]   ;;  %v2853_v28 = vld [vmem:[%s4463_s1 + $0x4] ss:$8 sps:$4 sm:$0xff]  }
   0xa   :  { %v2849_v25 = vld [vmem:[%s4463_s1 + $0x114] ss:$8 sps:$4 sm:$0xff]   ;;  %v2852_v27 = vld [vmem:[%s4463_s1 + $0x110] ss:$8 sps:$4 sm:$0xff]   ;;  %v2855_v29 = vld [vmem:[%s4463_s1 + $0x104] ss:$8 sps:$4 sm:$0xff]  }
   0xb   :  { %1971 = vmatpush1.bf16.msra.mxu0 %v2827_v10  ;;  %v2857_v30 = vld [vmem:[%s4463_s1] ss:$8 sps:$4 sm:$0xff]   ;;  %v2859_v32 = vld [vmem:[%s4463_s1 + $0xf4] ss:$8 sps:$4 sm:$0xff]   ;;  %v2863_v34 = vld [vmem:[%s4463_s1 + $0xf0] ss:$8 sps:$4 sm:$0xff]  }
   0xc   :  { %2024 = vmatpush1.bf16.msra.mxu1 %v2828_v11  ;;  %1972 = vmatprep.subr.bf16.mxu0 %v2829_v12  ;;  %v2858_v31 = vld [vmem:[%s4463_s1 + $0x100] ss:$8 sps:$4 sm:$0xff]   ;;  %v2861_v33 = vld [vmem:[%s4463_s1 + $0x1f4] ss:$8 sps:$4 sm:$0xff]   ;;  %v2864_v35 = vld [vmem:[%s4463_s1 + $0x1f0] ss:$8 sps:$4 sm:$0xff]  }
   0xd   :  { %2025 = vmatprep.subr.bf16.mxu1 %v2831_v13  ;;  %v2865_v36 = vld [vmem:[%s4463_s1 + $0xe4] ss:$8 sps:$4 sm:$0xff]   ;;  %v2869_v38 = vld [vmem:[%s4463_s1 + $0xe0] ss:$8 sps:$4 sm:$0xff]   ;;  %v2871_v40 = vld [vmem:[%s4463_s1 + $0xd4] ss:$8 sps:$4 sm:$0xff]  }
   0xe   :  { %v2867_v37 = vld [vmem:[%s4463_s1 + $0x1e4] ss:$8 sps:$4 sm:$0xff]   ;;  %v2870_v39 = vld [vmem:[%s4463_s1 + $0x1e0] ss:$8 sps:$4 sm:$0xff]   ;;  %v2873_v41 = vld [vmem:[%s4463_s1 + $0x1d4] ss:$8 sps:$4 sm:$0xff]  }
   0xf   :  { %1973 = vmatpush1.bf16.msra.mxu0 %v2833_v14  ;;  %v2875_v42 = vld [vmem:[%s4463_s1 + $0xd0] ss:$8 sps:$4 sm:$0xff]   ;;  %v2877_v44 = vld [vmem:[%s4463_s1 + $0xc4] ss:$8 sps:$4 sm:$0xff]   ;;  %v2881_v46 = vld [vmem:[%s4463_s1 + $0xc0] ss:$8 sps:$4 sm:$0xff]  }
  0x10   :  { %2026 = vmatpush1.bf16.msra.mxu1 %v2834_v15  ;;  %1974 = vmatprep.subr.bf16.mxu0 %v2835_v16  ;;  %v2876_v43 = vld [vmem:[%s4463_s1 + $0x1d0] ss:$8 sps:$4 sm:$0xff]   ;;  %v2879_v45 = vld [vmem:[%s4463_s1 + $0x1c4] ss:$8 sps:$4 sm:$0xff]   ;;  %v2882_v47 = vld [vmem:[%s4463_s1 + $0x1c0] ss:$8 sps:$4 sm:$0xff]  }
  0x11   :  { %2027 = vmatprep.subr.bf16.mxu1 %v2837_v17  ;;  %v2883_v48 = vld [vmem:[%s4463_s1 + $0xb4] ss:$8 sps:$4 sm:$0xff]   ;;  %v2909_v49 = vld [vmem:[%s4464_s0 + $0x4] ss:$72 sps:$4 sm:$0xff]   ;;  %v2887_v52 = vld [vmem:[%s4463_s1 + $0xb0] ss:$8 sps:$4 sm:$0xff]  }
  0x12   :  { %v2885_v50 = vld [vmem:[%s4463_s1 + $0x1b4] ss:$8 sps:$4 sm:$0xff]   ;;  %1998 = vmatprep.mubr.bf16.mxu0 %v2909_v49  ;;  %v2888_v53 = vld [vmem:[%s4463_s1 + $0x1b0] ss:$8 sps:$4 sm:$0xff]   ;;  %v2889_v54 = vld [vmem:[%s4463_s1 + $0xa4] ss:$8 sps:$4 sm:$0xff]  }
  0x13   :  { %1975 = vmatpush1.bf16.msra.mxu0 %v2839_v18  ;;  %v2912_v51 = vld [vmem:[%s4464_s0 + $0xc] ss:$72 sps:$4 sm:$0xff]   ;;  %v2893_v56 = vld [vmem:[%s4463_s1 + $0xa0] ss:$8 sps:$4 sm:$0xff]   ;;  %v2899_v60 = vld [vmem:[%s4463_s1 + $0x90] ss:$8 sps:$4 sm:$0xff]  }
  0x14   :  { %2028 = vmatpush1.bf16.msra.mxu1 %v2840_v19  ;;  %1976 = vmatprep.subr.bf16.mxu0 %v2841_v20  ;;  %v2891_v55 = vld [vmem:[%s4463_s1 + $0x1a4] ss:$8 sps:$4 sm:$0xff]   ;;  %v2894_v57 = vld [vmem:[%s4463_s1 + $0x1a0] ss:$8 sps:$4 sm:$0xff]   ;;  %v2895_v58 = vld [vmem:[%s4463_s1 + $0x94] ss:$8 sps:$4 sm:$0xff]  }
  0x15   :  { %2029 = vmatprep.subr.bf16.mxu1 %v2843_v21  ;;  %2051 = vmatprep.mubr.bf16.mxu1 %v2912_v51  ;;  %v2897_v59 = vld [vmem:[%s4463_s1 + $0x194] ss:$8 sps:$4 sm:$0xff]   ;;  %v2900_v61 = vld [vmem:[%s4463_s1 + $0x190] ss:$8 sps:$4 sm:$0xff]   ;;  %v2901_v62 = vld [vmem:[%s4463_s1 + $0x84] ss:$8 sps:$4 sm:$0xff]  }
  0x16   :  { %v2903_v63 = vld [vmem:[%s4463_s1 + $0x184] ss:$8 sps:$4 sm:$0xff]   ;;  %v2905_v0 = vld [vmem:[%s4463_s1 + $0x80] ss:$8 sps:$4 sm:$0xff]   ;;  %v2915_v2 = vld [vmem:[%s4463_s1 + $0x274] ss:$8 sps:$4 sm:$0xff]  }
  0x17   :  { %1977 = vmatpush1.bf16.msra.mxu0 %v2845_v22  ;;  %v2906_v1 = vld [vmem:[%s4463_s1 + $0x180] ss:$8 sps:$4 sm:$0xff]   ;;  %v2918_v3 = vld [vmem:[%s4463_s1 + $0x374] ss:$8 sps:$4 sm:$0xff]   ;;  %v2913_v6 = vld [vmem:[%s4463_s1 + $0x270] ss:$8 sps:$4 sm:$0xff]  }
  0x18   :  { %2030 = vmatpush1.bf16.msra.mxu1 %v2846_v23  ;;  %1978 = vmatprep.subr.bf16.mxu0 %v2847_v24  ;;  %v2907_v4 = vld [vmem:[%s4464_s0] ss:$72 sps:$4 sm:$0xff]   ;;  %v2916_v7 = vld [vmem:[%s4463_s1 + $0x370] ss:$8 sps:$4 sm:$0xff]   ;;  %v2921_v8 = vld [vmem:[%s4463_s1 + $0x264] ss:$8 sps:$4 sm:$0xff]  }
  0x19   :  { %2031 = vmatprep.subr.bf16.mxu1 %v2849_v25  ;;  %v2910_v5 = vld [vmem:[%s4464_s0 + $0x8] ss:$72 sps:$4 sm:$0xff]   ;;  %v2924_v9 = vld [vmem:[%s4463_s1 + $0x364] ss:$8 sps:$4 sm:$0xff]   ;;  %v2927_v12 = vld [vmem:[%s4463_s1 + $0x254] ss:$8 sps:$4 sm:$0xff]  }
  0x1a   :  { %v2919_v10 = vld [vmem:[%s4463_s1 + $0x260] ss:$8 sps:$4 sm:$0xff]   ;;  %v2930_v13 = vld [vmem:[%s4463_s1 + $0x354] ss:$8 sps:$4 sm:$0xff]   ;;  %v2925_v14 = vld [vmem:[%s4463_s1 + $0x250] ss:$8 sps:$4 sm:$0xff]  }
  0x1b   :  { %1979 = vmatpush1.bf16.msra.mxu0 %v2851_v26  ;;  %v2922_v11 = vld [vmem:[%s4463_s1 + $0x360] ss:$8 sps:$4 sm:$0xff]   ;;  %v2928_v15 = vld [vmem:[%s4463_s1 + $0x350] ss:$8 sps:$4 sm:$0xff]   ;;  %v2933_v16 = vld [vmem:[%s4463_s1 + $0x244] ss:$8 sps:$4 sm:$0xff]  }
  0x1c   :  { %2032 = vmatpush1.bf16.msra.mxu1 %v2852_v27  ;;  %1980 = vmatprep.subr.bf16.mxu0 %v2853_v28  ;;  %v2936_v17 = vld [vmem:[%s4463_s1 + $0x344] ss:$8 sps:$4 sm:$0xff]   ;;  %v2931_v18 = vld [vmem:[%s4463_s1 + $0x240] ss:$8 sps:$4 sm:$0xff]   ;;  %v2939_v20 = vld [vmem:[%s4463_s1 + $0x234] ss:$8 sps:$4 sm:$0xff]  }
  0x1d   :  { %2033 = vmatprep.subr.bf16.mxu1 %v2855_v29  ;;  %v2934_v19 = vld [vmem:[%s4463_s1 + $0x340] ss:$8 sps:$4 sm:$0xff]   ;;  %v2942_v21 = vld [vmem:[%s4463_s1 + $0x334] ss:$8 sps:$4 sm:$0xff]   ;;  %v2937_v23 = vld [vmem:[%s4463_s1 + $0x230] ss:$8 sps:$4 sm:$0xff]  }
  0x1e   :  { %v2985_v22 = vld [vmem:[%s4464_s0 + $0x94] ss:$72 sps:$4 sm:$0xff]   ;;  %v2940_v24 = vld [vmem:[%s4463_s1 + $0x330] ss:$8 sps:$4 sm:$0xff]   ;;  %v2945_v25 = vld [vmem:[%s4463_s1 + $0x224] ss:$8 sps:$4 sm:$0xff]  }
  0x1f   :  { %1981 = vmatpush1.bf16.msra.mxu0 %v2857_v30  ;;  %v2948_v26 = vld [vmem:[%s4463_s1 + $0x324] ss:$8 sps:$4 sm:$0xff]   ;;  %v2993_v27 = vld [vmem:[%s4464_s0 + $0x90] ss:$72 sps:$4 sm:$0xff]   ;;  %v2943_v28 = vld [vmem:[%s4463_s1 + $0x220] ss:$8 sps:$4 sm:$0xff]  }
  0x20   :  { %2034 = vmatpush1.bf16.msra.mxu1 %v2858_v31  ;;  %1982 = vmatprep.subr.bf16.mxu0 %v2859_v32  ;;  %v2994_v29 = vld [vmem:[%s4464_s0 + $0x9c] ss:$72 sps:$4 sm:$0xff]   ;;  %v2946_v30 = vld [vmem:[%s4463_s1 + $0x320] ss:$8 sps:$4 sm:$0xff]  }
  0x21   :  { %2035 = vmatprep.subr.bf16.mxu1 %v2861_v33  ;;  %v2996_v31 = vld [vmem:[%s4464_s0 + $0x98] ss:$72 sps:$4 sm:$0xff]   ;;  %v2951_v32 = vld [vmem:[%s4463_s1 + $0x214] ss:$8 sps:$4 sm:$0xff]  }
  0x22   :  { %v2954_v33 = vld [vmem:[%s4463_s1 + $0x314] ss:$8 sps:$4 sm:$0xff]   ;;  %v2970_v49 = vld [vmem:[%s4463_s1 + $0x3e0] ss:$8 sps:$4 sm:$0xff]  }
  0x23   :  { %1983 = vmatpush2.bf16.msra.mxu0 %v2863_v34  ;;  %v2949_v34 = vld [vmem:[%s4463_s1 + $0x210] ss:$8 sps:$4 sm:$0xff]   ;;  %v2978_v51 = vld [vmem:[%s4463_s1 + $0x3d4] ss:$8 sps:$4 sm:$0xff]  }
  0x24   :  { %2036 = vmatpush2.bf16.msra.mxu1 %v2864_v35  ;;  %1984 = vmatprep.subr.bf16.mxu0 %v2865_v36  ;;  %v2952_v35 = vld [vmem:[%s4463_s1 + $0x310] ss:$8 sps:$4 sm:$0xff]   ;;  %v2957_v36 = vld [vmem:[%s4463_s1 + $0x204] ss:$8 sps:$4 sm:$0xff]  }
  0x25   :  { %2037 = vmatprep.subr.bf16.mxu1 %v2867_v37  ;;  %v2960_v37 = vld [vmem:[%s4463_s1 + $0x304] ss:$8 sps:$4 sm:$0xff]  }
  0x27   :  { %1985 = vmatpush2.bf16.msra.mxu0 %v2869_v38  ;;  %v2955_v38 = vld [vmem:[%s4463_s1 + $0x200] ss:$8 sps:$4 sm:$0xff]  }
  0x28   :  { %2038 = vmatpush2.bf16.msra.mxu1 %v2870_v39  ;;  %1986 = vmatprep.subr.bf16.mxu0 %v2871_v40  ;;  %v2958_v39 = vld [vmem:[%s4463_s1 + $0x300] ss:$8 sps:$4 sm:$0xff]   ;;  %v2963_v40 = vld [vmem:[%s4463_s1 + $0x2f4] ss:$8 sps:$4 sm:$0xff]  }
  0x29   :  { %2039 = vmatprep.subr.bf16.mxu1 %v2873_v41  ;;  %v3017_v41 = vld [vmem:[%s4464_s0 + $0x14] ss:$72 sps:$4 sm:$0xff]  }
  0x2b   :  { %1987 = vmatpush2.bf16.msra.mxu0 %v2875_v42  ;;  %v2966_v42 = vld [vmem:[%s4463_s1 + $0x3f4] ss:$8 sps:$4 sm:$0xff]  }
  0x2c   :  { %2040 = vmatpush2.bf16.msra.mxu1 %v2876_v43  ;;  %1988 = vmatprep.subr.bf16.mxu0 %v2877_v44  ;;  %v3020_v43 = vld [vmem:[%s4464_s0 + $0x1c] ss:$72 sps:$4 sm:$0xff]   ;;  %v2961_v44 = vld [vmem:[%s4463_s1 + $0x2f0] ss:$8 sps:$4 sm:$0xff]  }
  0x2d   :  { %2041 = vmatprep.subr.bf16.mxu1 %v2879_v45  ;;  %v2964_v45 = vld [vmem:[%s4463_s1 + $0x3f0] ss:$8 sps:$4 sm:$0xff]  }
  0x2f   :  { %1989 = vmatpush2.bf16.msra.mxu0 %v2881_v46  ;;  %v2969_v46 = vld [vmem:[%s4463_s1 + $0x2e4] ss:$8 sps:$4 sm:$0xff]  }
  0x30   :  { %2042 = vmatpush2.bf16.msra.mxu1 %v2882_v47  ;;  %1990 = vmatprep.subr.bf16.mxu0 %v2883_v48  ;;  %v2972_v47 = vld [vmem:[%s4463_s1 + $0x3e4] ss:$8 sps:$4 sm:$0xff]   ;;  %v2967_v48 = vld [vmem:[%s4463_s1 + $0x2e0] ss:$8 sps:$4 sm:$0xff]  }
  0x31   :  { %2043 = vmatprep.subr.bf16.mxu1 %v2885_v50  ;;  %v2975_v50 = vld [vmem:[%s4463_s1 + $0x2d4] ss:$8 sps:$4 sm:$0xff]  }
  0x33   :  { %1991 = vmatpush2.bf16.msra.mxu0 %v2887_v52  ;;  %v2973_v52 = vld [vmem:[%s4463_s1 + $0x2d0] ss:$8 sps:$4 sm:$0xff]  }
  0x34   :  { %2044 = vmatpush2.bf16.msra.mxu1 %v2888_v53  ;;  %1992 = vmatprep.subr.bf16.mxu0 %v2889_v54  ;;  %v2976_v53 = vld [vmem:[%s4463_s1 + $0x3d0] ss:$8 sps:$4 sm:$0xff]   ;;  %v2981_v54 = vld [vmem:[%s4463_s1 + $0x2c4] ss:$8 sps:$4 sm:$0xff]  }
  0x35   :  { %2045 = vmatprep.subr.bf16.mxu1 %v2891_v55  ;;  %v2984_v55 = vld [vmem:[%s4463_s1 + $0x3c4] ss:$8 sps:$4 sm:$0xff]  }
  0x37   :  { %1993 = vmatpush2.bf16.msra.mxu0 %v2893_v56  ;;  %v2979_v56 = vld [vmem:[%s4463_s1 + $0x2c0] ss:$8 sps:$4 sm:$0xff]  }
  0x38   :  { %2046 = vmatpush2.bf16.msra.mxu1 %v2894_v57  ;;  %1994 = vmatprep.subr.bf16.mxu0 %v2895_v58  ;;  %v2982_v57 = vld [vmem:[%s4463_s1 + $0x3c0] ss:$8 sps:$4 sm:$0xff]   ;;  %v2989_v58 = vld [vmem:[%s4463_s1 + $0x2b4] ss:$8 sps:$4 sm:$0xff]  }
  0x39   :  { %2047 = vmatprep.subr.bf16.mxu1 %v2897_v59  ;;  %v2992_v59 = vld [vmem:[%s4463_s1 + $0x3b4] ss:$8 sps:$4 sm:$0xff]  }
  0x3b   :  { %1995 = vmatpush2.bf16.msra.mxu0 %v2899_v60  ;;  %v2987_v60 = vld [vmem:[%s4463_s1 + $0x2b0] ss:$8 sps:$4 sm:$0xff]  }
  0x3c   :  { %2048 = vmatpush2.bf16.msra.mxu1 %v2900_v61  ;;  %1996 = vmatprep.subr.bf16.mxu0 %v2901_v62  ;;  %v2990_v61 = vld [vmem:[%s4463_s1 + $0x3b0] ss:$8 sps:$4 sm:$0xff]   ;;  %v2999_v62 = vld [vmem:[%s4463_s1 + $0x2a4] ss:$8 sps:$4 sm:$0xff]  }
  0x3d   :  { %2049 = vmatprep.subr.bf16.mxu1 %v2903_v63  ;;  %v3002_v63 = vld [vmem:[%s4463_s1 + $0x3a4] ss:$8 sps:$4 sm:$0xff]  }
  0x3f   :  { %1997 = vmatpush2.bf16.msra.mxu0 %v2905_v0  ;;  %v2997_v0 = vld [vmem:[%s4463_s1 + $0x2a0] ss:$8 sps:$4 sm:$0xff]  }
  0x40   :  { %2050 = vmatpush2.bf16.msra.mxu1 %v2906_v1  ;;  %2072 = vmatprep.subr.bf16.mxu0 %v2915_v2  ;;  %v3000_v1 = vld [vmem:[%s4463_s1 + $0x3a0] ss:$8 sps:$4 sm:$0xff]   ;;  %v3005_v2 = vld [vmem:[%s4463_s1 + $0x294] ss:$8 sps:$4 sm:$0xff]  }
  0x41   :  { %2125 = vmatprep.subr.bf16.mxu1 %v2918_v3  ;;  %v3008_v3 = vld [vmem:[%s4463_s1 + $0x394] ss:$8 sps:$4 sm:$0xff]  }
  0x42   :  { %1999 = vmatmul.mubr.bf16.vlgmr.msra.gmra.mxu0 %v2907_v4  ;;  %v3003_v4 = vld [vmem:[%s4463_s1 + $0x290] ss:$8 sps:$4 sm:$0xff]  }
  0x43   :  { %2052 = vmatmul.mubr.bf16.vlgmr.msra.gmra.mxu1 %v2910_v5  ;;  %2073 = vmatpush1.bf16.msra.mxu0 %v2913_v6  ;;  %v3006_v5 = vld [vmem:[%s4463_s1 + $0x390] ss:$8 sps:$4 sm:$0xff]   ;;  %v3011_v6 = vld [vmem:[%s4463_s1 + $0x284] ss:$8 sps:$4 sm:$0xff]  }
  0x44   :  { %2126 = vmatpush1.bf16.msra.mxu1 %v2916_v7  ;;  %2074 = vmatprep.subr.bf16.mxu0 %v2921_v8  ;;  %v3014_v7 = vld [vmem:[%s4463_s1 + $0x384] ss:$8 sps:$4 sm:$0xff]   ;;  %v3009_v8 = vld [vmem:[%s4463_s1 + $0x280] ss:$8 sps:$4 sm:$0xff]  }
  0x45   :  { %2127 = vmatprep.subr.bf16.mxu1 %v2924_v9  ;;  %2008 = vmatprep.mubr.bf16.mxu0 %v2985_v22  ;;  %v3012_v9 = vld [vmem:[%s4463_s1 + $0x380] ss:$8 sps:$4 sm:$0xff]   ;;  %v3038_v22 = vld [vmem:[%s4463_s1 + $0x454] ss:$8 sps:$4 sm:$0xff]  }
  0x46   :  { %2061 = vmatprep.mubr.bf16.mxu1 %v2994_v29  ;;  %v3050_v29 = vld [vmem:[%s4463_s1 + $0x544] ss:$8 sps:$4 sm:$0xff]  }
  0x47   :  { %2075 = vmatpush1.bf16.msra.mxu0 %v2919_v10  ;;  %v3023_v10 = vld [vmem:[%s4463_s1 + $0x474] ss:$8 sps:$4 sm:$0xff]  }
  0x48   :  { %2128 = vmatpush1.bf16.msra.mxu1 %v2922_v11  ;;  %2076 = vmatprep.subr.bf16.mxu0 %v2927_v12  ;;  %v3026_v11 = vld [vmem:[%s4463_s1 + $0x574] ss:$8 sps:$4 sm:$0xff]   ;;  %v3015_v12 = vld [vmem:[%s4464_s0 + $0x10] ss:$72 sps:$4 sm:$0xff]  }
  0x49   :  { %2129 = vmatprep.subr.bf16.mxu1 %v2930_v13  ;;  %v3018_v13 = vld [vmem:[%s4464_s0 + $0x18] ss:$72 sps:$4 sm:$0xff]  }
  0x4a   :  { %2009 = vmatmul.mubr.bf16.gmra.mxu0 %v2993_v27  ;;  %v3044_v27 = vld [vmem:[%s4464_s0 + $0xa8] ss:$72 sps:$4 sm:$0xff]  }
  0x4b   :  { %2077 = vmatpush1.bf16.msra.mxu0 %v2925_v14  ;;  %2062 = vmatmul.mubr.bf16.gmra.mxu1 %v2996_v31  ;;  %v3021_v14 = vld [vmem:[%s4463_s1 + $0x470] ss:$8 sps:$4 sm:$0xff]   ;;  %v3048_v31 = vld [vmem:[%s4463_s1 + $0x540] ss:$8 sps:$4 sm:$0xff]  }
  0x4c   :  { %2130 = vmatpush1.bf16.msra.mxu1 %v2928_v15  ;;  %2078 = vmatprep.subr.bf16.mxu0 %v2933_v16  ;;  %v3024_v15 = vld [vmem:[%s4463_s1 + $0x570] ss:$8 sps:$4 sm:$0xff]   ;;  %v3029_v16 = vld [vmem:[%s4463_s1 + $0x464] ss:$8 sps:$4 sm:$0xff]  }
  0x4d   :  { %2131 = vmatprep.subr.bf16.mxu1 %v2936_v17  ;;  %2104 = vmatprep.mubr.bf16.mxu0 %v3017_v41  ;;  %v3032_v17 = vld [vmem:[%s4463_s1 + $0x564] ss:$8 sps:$4 sm:$0xff]   ;;  %v3060_v41 = vld [vmem:[%s4463_s1 + $0x520] ss:$8 sps:$4 sm:$0xff]  }
  0x4e   :  { %2157 = vmatprep.mubr.bf16.mxu1 %v3020_v43  ;;  %v3068_v43 = vld [vmem:[%s4463_s1 + $0x514] ss:$8 sps:$4 sm:$0xff]  }
  0x4f   :  { %2079 = vmatpush1.bf16.msra.mxu0 %v2931_v18  ;;  %v3033_v18 = vld [vmem:[%s4464_s0 + $0xa4] ss:$72 sps:$4 sm:$0xff]  }
  0x50   :  { %2132 = vmatpush1.bf16.msra.mxu1 %v2934_v19  ;;  %2080 = vmatprep.subr.bf16.mxu0 %v2939_v20  ;;  %v3042_v19 = vld [vmem:[%s4464_s0 + $0xac] ss:$72 sps:$4 sm:$0xff]   ;;  %v3027_v20 = vld [vmem:[%s4463_s1 + $0x460] ss:$8 sps:$4 sm:$0xff]  }
  0x51   :  { %2133 = vmatprep.subr.bf16.mxu1 %v2942_v21  ;;  %v3030_v21 = vld [vmem:[%s4463_s1 + $0x560] ss:$8 sps:$4 sm:$0xff]  }
  0x53   :  { %2081 = vmatpush1.bf16.msra.mxu0 %v2937_v23  ;;  %v3041_v23 = vld [vmem:[%s4463_s1 + $0x554] ss:$8 sps:$4 sm:$0xff]  }
  0x54   :  { %2134 = vmatpush1.bf16.msra.mxu1 %v2940_v24  ;;  %2082 = vmatprep.subr.bf16.mxu0 %v2945_v25  ;;  %v3035_v24 = vld [vmem:[%s4464_s0 + $0xa0] ss:$72 sps:$4 sm:$0xff]   ;;  %v3036_v25 = vld [vmem:[%s4463_s1 + $0x450] ss:$8 sps:$4 sm:$0xff]  }
  0x55   :  { %2135 = vmatprep.subr.bf16.mxu1 %v2948_v26  ;;  %v3039_v26 = vld [vmem:[%s4463_s1 + $0x550] ss:$8 sps:$4 sm:$0xff]  }
  0x57   :  { %2083 = vmatpush1.bf16.msra.mxu0 %v2943_v28  ;;  %v3047_v28 = vld [vmem:[%s4463_s1 + $0x444] ss:$8 sps:$4 sm:$0xff]  }
  0x58   :  { %2136 = vmatpush1.bf16.msra.mxu1 %v2946_v30  ;;  %2084 = vmatprep.subr.bf16.mxu0 %v2951_v32  ;;  %v3045_v30 = vld [vmem:[%s4463_s1 + $0x440] ss:$8 sps:$4 sm:$0xff]   ;;  %v3053_v32 = vld [vmem:[%s4463_s1 + $0x434] ss:$8 sps:$4 sm:$0xff]  }
  0x59   :  { %2137 = vmatprep.subr.bf16.mxu1 %v2954_v33  ;;  %v3125_v33 = vld [vmem:[%s4464_s0 + $0x24] ss:$72 sps:$4 sm:$0xff]  }
  0x5b   :  { %2085 = vmatpush1.bf16.msra.mxu0 %v2949_v34  ;;  %v3056_v34 = vld [vmem:[%s4463_s1 + $0x534] ss:$8 sps:$4 sm:$0xff]  }
  0x5c   :  { %2138 = vmatpush1.bf16.msra.mxu1 %v2952_v35  ;;  %2086 = vmatprep.subr.bf16.mxu0 %v2957_v36  ;;  %v3128_v35 = vld [vmem:[%s4464_s0 + $0x2c] ss:$72 sps:$4 sm:$0xff]   ;;  %v3051_v36 = vld [vmem:[%s4463_s1 + $0x430] ss:$8 sps:$4 sm:$0xff]  }
  0x5d   :  { %2139 = vmatprep.subr.bf16.mxu1 %v2960_v37  ;;  %v3054_v37 = vld [vmem:[%s4463_s1 + $0x530] ss:$8 sps:$4 sm:$0xff]  }
  0x5f   :  { %2087 = vmatpush1.bf16.msra.mxu0 %v2955_v38  ;;  %v3059_v38 = vld [vmem:[%s4463_s1 + $0x424] ss:$8 sps:$4 sm:$0xff]  }
  0x60   :  { %2140 = vmatpush1.bf16.msra.mxu1 %v2958_v39  ;;  %2088 = vmatprep.subr.bf16.mxu0 %v2963_v40  ;;  %v3062_v39 = vld [vmem:[%s4463_s1 + $0x524] ss:$8 sps:$4 sm:$0xff]   ;;  %v3057_v40 = vld [vmem:[%s4463_s1 + $0x420] ss:$8 sps:$4 sm:$0xff]  }
  0x61   :  { %2141 = vmatprep.subr.bf16.mxu1 %v2966_v42  ;;  %v3065_v42 = vld [vmem:[%s4463_s1 + $0x414] ss:$8 sps:$4 sm:$0xff]  }
  0x63   :  { %2089 = vmatpush2.bf16.msra.mxu0 %v2961_v44  ;;  %v3063_v44 = vld [vmem:[%s4463_s1 + $0x410] ss:$8 sps:$4 sm:$0xff]  }
  0x64   :  { %2142 = vmatpush2.bf16.msra.mxu1 %v2964_v45  ;;  %2090 = vmatprep.subr.bf16.mxu0 %v2969_v46  ;;  %v3066_v45 = vld [vmem:[%s4463_s1 + $0x510] ss:$8 sps:$4 sm:$0xff]   ;;  %v3071_v46 = vld [vmem:[%s4463_s1 + $0x404] ss:$8 sps:$4 sm:$0xff]  }
  0x65   :  { %2143 = vmatprep.subr.bf16.mxu1 %v2972_v47  ;;  %v3074_v47 = vld [vmem:[%s4463_s1 + $0x504] ss:$8 sps:$4 sm:$0xff]  }
  0x67   :  { %2091 = vmatpush2.bf16.msra.mxu0 %v2967_v48  ;;  %v3069_v48 = vld [vmem:[%s4463_s1 + $0x400] ss:$8 sps:$4 sm:$0xff]  }
  0x68   :  { %2144 = vmatpush2.bf16.msra.mxu1 %v2970_v49  ;;  %2092 = vmatprep.subr.bf16.mxu0 %v2975_v50  ;;  %v3072_v49 = vld [vmem:[%s4463_s1 + $0x500] ss:$8 sps:$4 sm:$0xff]   ;;  %v3077_v50 = vld [vmem:[%s4463_s1 + $0x4f4] ss:$8 sps:$4 sm:$0xff]  }
  0x69   :  { %2145 = vmatprep.subr.bf16.mxu1 %v2978_v51  ;;  %v3080_v51 = vld [vmem:[%s4463_s1 + $0x5f4] ss:$8 sps:$4 sm:$0xff]  }
  0x6b   :  { %2093 = vmatpush2.bf16.msra.mxu0 %v2973_v52  ;;  %v3075_v52 = vld [vmem:[%s4463_s1 + $0x4f0] ss:$8 sps:$4 sm:$0xff]  }
  0x6c   :  { %2146 = vmatpush2.bf16.msra.mxu1 %v2976_v53  ;;  %2094 = vmatprep.subr.bf16.mxu0 %v2981_v54  ;;  %v3078_v53 = vld [vmem:[%s4463_s1 + $0x5f0] ss:$8 sps:$4 sm:$0xff]   ;;  %v3083_v54 = vld [vmem:[%s4463_s1 + $0x4e4] ss:$8 sps:$4 sm:$0xff]  }
  0x6d   :  { %2147 = vmatprep.subr.bf16.mxu1 %v2984_v55  ;;  %v3086_v55 = vld [vmem:[%s4463_s1 + $0x5e4] ss:$8 sps:$4 sm:$0xff]  }
  0x6f   :  { %2095 = vmatpush2.bf16.msra.mxu0 %v2979_v56  ;;  %v3081_v56 = vld [vmem:[%s4463_s1 + $0x4e0] ss:$8 sps:$4 sm:$0xff]  }
  0x70   :  { %2148 = vmatpush2.bf16.msra.mxu1 %v2982_v57  ;;  %2096 = vmatprep.subr.bf16.mxu0 %v2989_v58  ;;  %v3084_v57 = vld [vmem:[%s4463_s1 + $0x5e0] ss:$8 sps:$4 sm:$0xff]   ;;  %v3089_v58 = vld [vmem:[%s4463_s1 + $0x4d4] ss:$8 sps:$4 sm:$0xff]  }
  0x71   :  { %2149 = vmatprep.subr.bf16.mxu1 %v2992_v59  ;;  %v3092_v59 = vld [vmem:[%s4463_s1 + $0x5d4] ss:$8 sps:$4 sm:$0xff]  }
  0x73   :  { %2097 = vmatpush2.bf16.msra.mxu0 %v2987_v60  ;;  %v3087_v60 = vld [vmem:[%s4463_s1 + $0x4d0] ss:$8 sps:$4 sm:$0xff]  }
  0x74   :  { %2150 = vmatpush2.bf16.msra.mxu1 %v2990_v61  ;;  %2098 = vmatprep.subr.bf16.mxu0 %v2999_v62  ;;  %v3090_v61 = vld [vmem:[%s4463_s1 + $0x5d0] ss:$8 sps:$4 sm:$0xff]   ;;  %v3095_v62 = vld [vmem:[%s4463_s1 + $0x4c4] ss:$8 sps:$4 sm:$0xff]  }
  0x75   :  { %2151 = vmatprep.subr.bf16.mxu1 %v3002_v63  ;;  %v3098_v63 = vld [vmem:[%s4463_s1 + $0x5c4] ss:$8 sps:$4 sm:$0xff]  }
  0x77   :  { %2099 = vmatpush2.bf16.msra.mxu0 %v2997_v0  ;;  %v3093_v0 = vld [vmem:[%s4463_s1 + $0x4c0] ss:$8 sps:$4 sm:$0xff]  }
  0x78   :  { %2152 = vmatpush2.bf16.msra.mxu1 %v3000_v1  ;;  %2100 = vmatprep.subr.bf16.mxu0 %v3005_v2  ;;  %v3096_v1 = vld [vmem:[%s4463_s1 + $0x5c0] ss:$8 sps:$4 sm:$0xff]   ;;  %v3101_v2 = vld [vmem:[%s4463_s1 + $0x4b4] ss:$8 sps:$4 sm:$0xff]  }
  0x79   :  { %2153 = vmatprep.subr.bf16.mxu1 %v3008_v3  ;;  %v3104_v3 = vld [vmem:[%s4463_s1 + $0x5b4] ss:$8 sps:$4 sm:$0xff]  }
  0x7b   :  { %2101 = vmatpush2.bf16.msra.mxu0 %v3003_v4  ;;  %v3099_v4 = vld [vmem:[%s4463_s1 + $0x4b0] ss:$8 sps:$4 sm:$0xff]  }
  0x7c   :  { %2154 = vmatpush2.bf16.msra.mxu1 %v3006_v5  ;;  %2102 = vmatprep.subr.bf16.mxu0 %v3011_v6  ;;  %v3102_v5 = vld [vmem:[%s4463_s1 + $0x5b0] ss:$8 sps:$4 sm:$0xff]   ;;  %v3107_v6 = vld [vmem:[%s4463_s1 + $0x4a4] ss:$8 sps:$4 sm:$0xff]  }
  0x7d   :  { %2155 = vmatprep.subr.bf16.mxu1 %v3014_v7  ;;  %v3110_v7 = vld [vmem:[%s4463_s1 + $0x5a4] ss:$8 sps:$4 sm:$0xff]  }
  0x7f   :  { %2103 = vmatpush2.bf16.msra.mxu0 %v3009_v8  ;;  %v3105_v8 = vld [vmem:[%s4463_s1 + $0x4a0] ss:$8 sps:$4 sm:$0xff]  }
  0x80   :  { %2156 = vmatpush2.bf16.msra.mxu1 %v3012_v9  ;;  %2178 = vmatprep.subr.bf16.mxu0 %v3023_v10  ;;  %v3108_v9 = vld [vmem:[%s4463_s1 + $0x5a0] ss:$8 sps:$4 sm:$0xff]   ;;  %v3113_v10 = vld [vmem:[%s4463_s1 + $0x494] ss:$8 sps:$4 sm:$0xff]  }
  0x81   :  { %2231 = vmatprep.subr.bf16.mxu1 %v3026_v11  ;;  %v3116_v11 = vld [vmem:[%s4463_s1 + $0x594] ss:$8 sps:$4 sm:$0xff]  }
  0x82   :  { %2105 = vmatmul.mubr.bf16.vlgmr.msra.gmra.mxu0 %v3015_v12  ;;  %v3111_v12 = vld [vmem:[%s4463_s1 + $0x490] ss:$8 sps:$4 sm:$0xff]  }
  0x83   :  { %2158 = vmatmul.mubr.bf16.vlgmr.msra.gmra.mxu1 %v3018_v13  ;;  %2179 = vmatpush1.bf16.msra.mxu0 %v3021_v14  ;;  %v3114_v13 = vld [vmem:[%s4463_s1 + $0x590] ss:$8 sps:$4 sm:$0xff]   ;;  %v3119_v14 = vld [vmem:[%s4463_s1 + $0x484] ss:$8 sps:$4 sm:$0xff]  }
  0x84   :  { %2232 = vmatpush1.bf16.msra.mxu1 %v3024_v15  ;;  %2180 = vmatprep.subr.bf16.mxu0 %v3029_v16  ;;  %v3122_v15 = vld [vmem:[%s4463_s1 + $0x584] ss:$8 sps:$4 sm:$0xff]   ;;  %v3117_v16 = vld [vmem:[%s4463_s1 + $0x480] ss:$8 sps:$4 sm:$0xff]  }
  0x85   :  { %2233 = vmatprep.subr.bf16.mxu1 %v3032_v17  ;;  %2114 = vmatprep.mubr.bf16.mxu0 %v3033_v18  ;;  %v3120_v17 = vld [vmem:[%s4463_s1 + $0x580] ss:$8 sps:$4 sm:$0xff]   ;;  %v3131_v18 = vld [vmem:[%s4463_s1 + $0x674] ss:$8 sps:$4 sm:$0xff]  }
  0x86   :  { %2167 = vmatprep.mubr.bf16.mxu1 %v3042_v19  ;;  %v3134_v19 = vld [vmem:[%s4463_s1 + $0x774] ss:$8 sps:$4 sm:$0xff]  }
  0x87   :  { %2181 = vmatpush1.bf16.msra.mxu0 %v3027_v20  ;;  %v3123_v20 = vld [vmem:[%s4464_s0 + $0x20] ss:$72 sps:$4 sm:$0xff]  }
  0x88   :  { %2234 = vmatpush1.bf16.msra.mxu1 %v3030_v21  ;;  %2182 = vmatprep.subr.bf16.mxu0 %v3038_v22  ;;  %v3126_v21 = vld [vmem:[%s4464_s0 + $0x28] ss:$72 sps:$4 sm:$0xff]  }
  0x89   :  { %2235 = vmatprep.subr.bf16.mxu1 %v3041_v23  ;;  %v3129_v22 = vld [vmem:[%s4463_s1 + $0x670] ss:$8 sps:$4 sm:$0xff]  }
  0x8a   :  { %2115 = vmatmul.mubr.bf16.gmra.mxu0 %v3035_v24  ;;  %v3132_v23 = vld [vmem:[%s4463_s1 + $0x770] ss:$8 sps:$4 sm:$0xff]   ;;  %v3137_v24 = vld [vmem:[%s4463_s1 + $0x664] ss:$8 sps:$4 sm:$0xff]  }
  0x8b   :  { %2168 = vmatmul.mubr.bf16.gmra.mxu1 %v3044_v27  ;;  %2183 = vmatpush1.bf16.msra.mxu0 %v3036_v25  ;;  %v3140_v25 = vld [vmem:[%s4463_s1 + $0x764] ss:$8 sps:$4 sm:$0xff]  }
  0x8c   :  { %2236 = vmatpush1.bf16.msra.mxu1 %v3039_v26  ;;  %2184 = vmatprep.subr.bf16.mxu0 %v3047_v28  ;;  %v3141_v26 = vld [vmem:[%s4464_s0 + $0xb4] ss:$72 sps:$4 sm:$0xff]   ;;  %v3135_v28 = vld [vmem:[%s4463_s1 + $0x660] ss:$8 sps:$4 sm:$0xff]  }
  0x8d   :  { %2237 = vmatprep.subr.bf16.mxu1 %v3050_v29  ;;  %2210 = vmatprep.mubr.bf16.mxu0 %v3125_v33  ;;  %v3150_v27 = vld [vmem:[%s4464_s0 + $0xbc] ss:$72 sps:$4 sm:$0xff]   ;;  %v3138_v29 = vld [vmem:[%s4463_s1 + $0x760] ss:$8 sps:$4 sm:$0xff]   ;;  %v3144_v33 = vld [vmem:[%s4463_s1 + $0x650] ss:$8 sps:$4 sm:$0xff]  }
  0x8e   :  { %2263 = vmatprep.mubr.bf16.mxu1 %v3128_v35  ;;  %v3152_v35 = vld [vmem:[%s4464_s0 + $0xb8] ss:$72 sps:$4 sm:$0xff]  }
  0x8f   :  { %2185 = vmatpush1.bf16.msra.mxu0 %v3045_v30  ;;  %v3146_v30 = vld [vmem:[%s4463_s1 + $0x654] ss:$8 sps:$4 sm:$0xff]  }
  0x90   :  { %2238 = vmatpush1.bf16.msra.mxu1 %v3048_v31  ;;  %2186 = vmatprep.subr.bf16.mxu0 %v3053_v32  ;;  %v3149_v31 = vld [vmem:[%s4463_s1 + $0x754] ss:$8 sps:$4 sm:$0xff]   ;;  %v3143_v32 = vld [vmem:[%s4464_s0 + $0xb0] ss:$72 sps:$4 sm:$0xff]  }
  0x91   :  { %2239 = vmatprep.subr.bf16.mxu1 %v3056_v34  ;;  %v3147_v34 = vld [vmem:[%s4463_s1 + $0x750] ss:$8 sps:$4 sm:$0xff]  }
  0x93   :  { %2187 = vmatpush1.bf16.msra.mxu0 %v3051_v36  ;;  %v3155_v36 = vld [vmem:[%s4463_s1 + $0x644] ss:$8 sps:$4 sm:$0xff]  }
  0x94   :  { %2240 = vmatpush1.bf16.msra.mxu1 %v3054_v37  ;;  %2188 = vmatprep.subr.bf16.mxu0 %v3059_v38  ;;  %v3158_v37 = vld [vmem:[%s4463_s1 + $0x744] ss:$8 sps:$4 sm:$0xff]   ;;  %v3233_v38 = vld [vmem:[%s4464_s0 + $0x34] ss:$72 sps:$4 sm:$0xff]  }
  0x95   :  { %2241 = vmatprep.subr.bf16.mxu1 %v3062_v39  ;;  %v3236_v39 = vld [vmem:[%s4464_s0 + $0x3c] ss:$72 sps:$4 sm:$0xff]  }
  0x97   :  { %2189 = vmatpush1.bf16.msra.mxu0 %v3057_v40  ;;  %v3153_v40 = vld [vmem:[%s4463_s1 + $0x640] ss:$8 sps:$4 sm:$0xff]  }
  0x98   :  { %2242 = vmatpush1.bf16.msra.mxu1 %v3060_v41  ;;  %2190 = vmatprep.subr.bf16.mxu0 %v3065_v42  ;;  %v3156_v41 = vld [vmem:[%s4463_s1 + $0x740] ss:$8 sps:$4 sm:$0xff]   ;;  %v3161_v42 = vld [vmem:[%s4463_s1 + $0x634] ss:$8 sps:$4 sm:$0xff]  }
  0x99   :  { %2243 = vmatprep.subr.bf16.mxu1 %v3068_v43  ;;  %v3164_v43 = vld [vmem:[%s4463_s1 + $0x734] ss:$8 sps:$4 sm:$0xff]  }
  0x9b   :  { %2191 = vmatpush1.bf16.msra.mxu0 %v3063_v44  ;;  %v3159_v44 = vld [vmem:[%s4463_s1 + $0x630] ss:$8 sps:$4 sm:$0xff]  }
  0x9c   :  { %2244 = vmatpush1.bf16.msra.mxu1 %v3066_v45  ;;  %2192 = vmatprep.subr.bf16.mxu0 %v3071_v46  ;;  %v3162_v45 = vld [vmem:[%s4463_s1 + $0x730] ss:$8 sps:$4 sm:$0xff]   ;;  %v3167_v46 = vld [vmem:[%s4463_s1 + $0x624] ss:$8 sps:$4 sm:$0xff]  }
  0x9d   :  { %2245 = vmatprep.subr.bf16.mxu1 %v3074_v47  ;;  %v3170_v47 = vld [vmem:[%s4463_s1 + $0x724] ss:$8 sps:$4 sm:$0xff]  }
  0x9f   :  { %2193 = vmatpush1.bf16.msra.mxu0 %v3069_v48  ;;  %v3165_v48 = vld [vmem:[%s4463_s1 + $0x620] ss:$8 sps:$4 sm:$0xff]  }
  0xa0   :  { %2246 = vmatpush1.bf16.msra.mxu1 %v3072_v49  ;;  %2194 = vmatprep.subr.bf16.mxu0 %v3077_v50  ;;  %v3168_v49 = vld [vmem:[%s4463_s1 + $0x720] ss:$8 sps:$4 sm:$0xff]   ;;  %v3173_v50 = vld [vmem:[%s4463_s1 + $0x614] ss:$8 sps:$4 sm:$0xff]  }
  0xa1   :  { %2247 = vmatprep.subr.bf16.mxu1 %v3080_v51  ;;  %v3176_v51 = vld [vmem:[%s4463_s1 + $0x714] ss:$8 sps:$4 sm:$0xff]  }
  0xa3   :  { %2195 = vmatpush2.bf16.msra.mxu0 %v3075_v52  ;;  %v3171_v52 = vld [vmem:[%s4463_s1 + $0x610] ss:$8 sps:$4 sm:$0xff]  }
  0xa4   :  { %2248 = vmatpush2.bf16.msra.mxu1 %v3078_v53  ;;  %2196 = vmatprep.subr.bf16.mxu0 %v3083_v54  ;;  %v3174_v53 = vld [vmem:[%s4463_s1 + $0x710] ss:$8 sps:$4 sm:$0xff]   ;;  %v3179_v54 = vld [vmem:[%s4463_s1 + $0x604] ss:$8 sps:$4 sm:$0xff]  }
  0xa5   :  { %2249 = vmatprep.subr.bf16.mxu1 %v3086_v55  ;;  %v3182_v55 = vld [vmem:[%s4463_s1 + $0x704] ss:$8 sps:$4 sm:$0xff]  }
  0xa7   :  { %2197 = vmatpush2.bf16.msra.mxu0 %v3081_v56  ;;  %v3177_v56 = vld [vmem:[%s4463_s1 + $0x600] ss:$8 sps:$4 sm:$0xff]  }
  0xa8   :  { %2250 = vmatpush2.bf16.msra.mxu1 %v3084_v57  ;;  %2198 = vmatprep.subr.bf16.mxu0 %v3089_v58  ;;  %v3180_v57 = vld [vmem:[%s4463_s1 + $0x700] ss:$8 sps:$4 sm:$0xff]   ;;  %v3185_v58 = vld [vmem:[%s4463_s1 + $0x6f4] ss:$8 sps:$4 sm:$0xff]  }
  0xa9   :  { %2251 = vmatprep.subr.bf16.mxu1 %v3092_v59  ;;  %v3188_v59 = vld [vmem:[%s4463_s1 + $0x7f4] ss:$8 sps:$4 sm:$0xff]  }
  0xab   :  { %2199 = vmatpush2.bf16.msra.mxu0 %v3087_v60  ;;  %v3183_v60 = vld [vmem:[%s4463_s1 + $0x6f0] ss:$8 sps:$4 sm:$0xff]  }
  0xac   :  { %2252 = vmatpush2.bf16.msra.mxu1 %v3090_v61  ;;  %2200 = vmatprep.subr.bf16.mxu0 %v3095_v62  ;;  %v3186_v61 = vld [vmem:[%s4463_s1 + $0x7f0] ss:$8 sps:$4 sm:$0xff]   ;;  %v3191_v62 = vld [vmem:[%s4463_s1 + $0x6e4] ss:$8 sps:$4 sm:$0xff]  }
  0xad   :  { %2253 = vmatprep.subr.bf16.mxu1 %v3098_v63  ;;  %v3194_v63 = vld [vmem:[%s4463_s1 + $0x7e4] ss:$8 sps:$4 sm:$0xff]  }
  0xaf   :  { %2201 = vmatpush2.bf16.msra.mxu0 %v3093_v0  ;;  %v3189_v0 = vld [vmem:[%s4463_s1 + $0x6e0] ss:$8 sps:$4 sm:$0xff]  }
  0xb0   :  { %2254 = vmatpush2.bf16.msra.mxu1 %v3096_v1  ;;  %2202 = vmatprep.subr.bf16.mxu0 %v3101_v2  ;;  %v3192_v1 = vld [vmem:[%s4463_s1 + $0x7e0] ss:$8 sps:$4 sm:$0xff]   ;;  %v3197_v2 = vld [vmem:[%s4463_s1 + $0x6d4] ss:$8 sps:$4 sm:$0xff]  }
  0xb1   :  { %2255 = vmatprep.subr.bf16.mxu1 %v3104_v3  ;;  %v3200_v3 = vld [vmem:[%s4463_s1 + $0x7d4] ss:$8 sps:$4 sm:$0xff]  }
  0xb3   :  { %2203 = vmatpush2.bf16.msra.mxu0 %v3099_v4  ;;  %v3195_v4 = vld [vmem:[%s4463_s1 + $0x6d0] ss:$8 sps:$4 sm:$0xff]  }
  0xb4   :  { %2256 = vmatpush2.bf16.msra.mxu1 %v3102_v5  ;;  %2204 = vmatprep.subr.bf16.mxu0 %v3107_v6  ;;  %v3198_v5 = vld [vmem:[%s4463_s1 + $0x7d0] ss:$8 sps:$4 sm:$0xff]   ;;  %v3203_v6 = vld [vmem:[%s4463_s1 + $0x6c4] ss:$8 sps:$4 sm:$0xff]  }
  0xb5   :  { %2257 = vmatprep.subr.bf16.mxu1 %v3110_v7  ;;  %v3206_v7 = vld [vmem:[%s4463_s1 + $0x7c4] ss:$8 sps:$4 sm:$0xff]  }
  0xb7   :  { %2205 = vmatpush2.bf16.msra.mxu0 %v3105_v8  ;;  %v3201_v8 = vld [vmem:[%s4463_s1 + $0x6c0] ss:$8 sps:$4 sm:$0xff]  }
  0xb8   :  { %2258 = vmatpush2.bf16.msra.mxu1 %v3108_v9  ;;  %2206 = vmatprep.subr.bf16.mxu0 %v3113_v10  ;;  %v3204_v9 = vld [vmem:[%s4463_s1 + $0x7c0] ss:$8 sps:$4 sm:$0xff]   ;;  %v3209_v10 = vld [vmem:[%s4463_s1 + $0x6b4] ss:$8 sps:$4 sm:$0xff]  }
  0xb9   :  { %2259 = vmatprep.subr.bf16.mxu1 %v3116_v11  ;;  %v3212_v11 = vld [vmem:[%s4463_s1 + $0x7b4] ss:$8 sps:$4 sm:$0xff]  }
  0xbb   :  { %2207 = vmatpush2.bf16.msra.mxu0 %v3111_v12  ;;  %v3207_v12 = vld [vmem:[%s4463_s1 + $0x6b0] ss:$8 sps:$4 sm:$0xff]  }
  0xbc   :  { %2260 = vmatpush2.bf16.msra.mxu1 %v3114_v13  ;;  %2208 = vmatprep.subr.bf16.mxu0 %v3119_v14  ;;  %v3210_v13 = vld [vmem:[%s4463_s1 + $0x7b0] ss:$8 sps:$4 sm:$0xff]   ;;  %v3215_v14 = vld [vmem:[%s4463_s1 + $0x6a4] ss:$8 sps:$4 sm:$0xff]  }
  0xbd   :  { %2261 = vmatprep.subr.bf16.mxu1 %v3122_v15  ;;  %v3218_v15 = vld [vmem:[%s4463_s1 + $0x7a4] ss:$8 sps:$4 sm:$0xff]  }
  0xbf   :  { %2209 = vmatpush2.bf16.msra.mxu0 %v3117_v16  ;;  %v3213_v16 = vld [vmem:[%s4463_s1 + $0x6a0] ss:$8 sps:$4 sm:$0xff]  }
  0xc0   :  { %2262 = vmatpush2.bf16.msra.mxu1 %v3120_v17  ;;  %2284 = vmatprep.subr.bf16.mxu0 %v3131_v18  ;;  %v3216_v17 = vld [vmem:[%s4463_s1 + $0x7a0] ss:$8 sps:$4 sm:$0xff]   ;;  %v3221_v18 = vld [vmem:[%s4463_s1 + $0x694] ss:$8 sps:$4 sm:$0xff]  }
  0xc1   :  { %2337 = vmatprep.subr.bf16.mxu1 %v3134_v19  ;;  %v3224_v19 = vld [vmem:[%s4463_s1 + $0x794] ss:$8 sps:$4 sm:$0xff]  }
  0xc2   :  { %2211 = vmatmul.mubr.bf16.vlgmr.msra.gmra.mxu0 %v3123_v20  ;;  %v3219_v20 = vld [vmem:[%s4463_s1 + $0x690] ss:$8 sps:$4 sm:$0xff]  }
  0xc3   :  { %2264 = vmatmul.mubr.bf16.vlgmr.msra.gmra.mxu1 %v3126_v21  ;;  %2285 = vmatpush1.bf16.msra.mxu0 %v3129_v22  ;;  %v3222_v21 = vld [vmem:[%s4463_s1 + $0x790] ss:$8 sps:$4 sm:$0xff]   ;;  %v3227_v22 = vld [vmem:[%s4463_s1 + $0x684] ss:$8 sps:$4 sm:$0xff]  }
  0xc4   :  { %2338 = vmatpush1.bf16.msra.mxu1 %v3132_v23  ;;  %2286 = vmatprep.subr.bf16.mxu0 %v3137_v24  ;;  %v3230_v23 = vld [vmem:[%s4463_s1 + $0x784] ss:$8 sps:$4 sm:$0xff]   ;;  %v3225_v24 = vld [vmem:[%s4463_s1 + $0x680] ss:$8 sps:$4 sm:$0xff]  }
  0xc5   :  { %2339 = vmatprep.subr.bf16.mxu1 %v3140_v25  ;;  %2220 = vmatprep.mubr.bf16.mxu0 %v3141_v26  ;;  %v3228_v25 = vld [vmem:[%s4463_s1 + $0x780] ss:$8 sps:$4 sm:$0xff]   ;;  %v3239_v26 = vld [vmem:[%s4463_s1 + $0x874] ss:$8 sps:$4 sm:$0xff]  }
  0xc6   :  { %2273 = vmatprep.mubr.bf16.mxu1 %v3150_v27  ;;  %v3231_v27 = vld [vmem:[%s4464_s0 + $0x30] ss:$72 sps:$4 sm:$0xff]  }
  0xc7   :  { %2287 = vmatpush1.bf16.msra.mxu0 %v3135_v28  ;;  %v3234_v28 = vld [vmem:[%s4464_s0 + $0x38] ss:$72 sps:$4 sm:$0xff]  }
  0xc8   :  { %2340 = vmatpush1.bf16.msra.mxu1 %v3138_v29  ;;  %2288 = vmatprep.subr.bf16.mxu0 %v3146_v30  ;;  %v3237_v29 = vld [vmem:[%s4463_s1 + $0x870] ss:$8 sps:$4 sm:$0xff]   ;;  %v3242_v30 = vld [vmem:[%s4463_s1 + $0x864] ss:$8 sps:$4 sm:$0xff]  }
  0xc9   :  { %2341 = vmatprep.subr.bf16.mxu1 %v3149_v31  ;;  %v3243_v31 = vld [vmem:[%s4464_s0 + $0xc4] ss:$72 sps:$4 sm:$0xff]  }
  0xca   :  { %2221 = vmatmul.mubr.bf16.gmra.mxu0 %v3143_v32  ;;  %v3249_v32 = vld [vmem:[%s4464_s0 + $0xcc] ss:$72 sps:$4 sm:$0xff]  }
  0xcb   :  { %2274 = vmatmul.mubr.bf16.gmra.mxu1 %v3152_v35  ;;  %2289 = vmatpush1.bf16.msra.mxu0 %v3144_v33  ;;  %v3240_v33 = vld [vmem:[%s4463_s1 + $0x860] ss:$8 sps:$4 sm:$0xff]  }
  0xcc   :  { %2342 = vmatpush1.bf16.msra.mxu1 %v3147_v34  ;;  %2290 = vmatprep.subr.bf16.mxu0 %v3155_v36  ;;  %v3248_v34 = vld [vmem:[%s4463_s1 + $0x854] ss:$8 sps:$4 sm:$0xff]   ;;  %v3245_v35 = vld [vmem:[%s4464_s0 + $0xc0] ss:$72 sps:$4 sm:$0xff]  }
  0xcd   :  { %2343 = vmatprep.subr.bf16.mxu1 %v3158_v37  ;;  %2316 = vmatprep.mubr.bf16.mxu0 %v3233_v38  ;;  %v3251_v36 = vld [vmem:[%s4464_s0 + $0xc8] ss:$72 sps:$4 sm:$0xff]   ;;  %v3254_v38 = vld [vmem:[%s4463_s1 + $0x844] ss:$8 sps:$4 sm:$0xff]  }
  0xce   :  { %2369 = vmatprep.mubr.bf16.mxu1 %v3236_v39  ;;  %v3246_v37 = vld [vmem:[%s4463_s1 + $0x850] ss:$8 sps:$4 sm:$0xff]   ;;  %v3293_v39 = vld [vmem:[%s4464_s0 + $0x44] ss:$72 sps:$4 sm:$0xff]  }
  0xcf   :  { %2291 = vmatpush1.bf16.msra.mxu0 %v3153_v40  ;;  %v3296_v40 = vld [vmem:[%s4464_s0 + $0xd4] ss:$72 sps:$4 sm:$0xff]  }
  0xd0   :  { %2344 = vmatpush1.bf16.msra.mxu1 %v3156_v41  ;;  %2292 = vmatprep.subr.bf16.mxu0 %v3161_v42  ;;  %v3252_v41 = vld [vmem:[%s4463_s1 + $0x840] ss:$8 sps:$4 sm:$0xff]   ;;  %v3257_v42 = vld [vmem:[%s4463_s1 + $0x834] ss:$8 sps:$4 sm:$0xff]  }
  0xd1   :  { %2345 = vmatprep.subr.bf16.mxu1 %v3164_v43  ;;  %v3255_v43 = vld [vmem:[%s4463_s1 + $0x830] ss:$8 sps:$4 sm:$0xff]  }
  0xd3   :  { %2293 = vmatpush1.bf16.msra.mxu0 %v3159_v44  ;;  %v3260_v44 = vld [vmem:[%s4463_s1 + $0x824] ss:$8 sps:$4 sm:$0xff]  }
  0xd4   :  { %2346 = vmatpush1.bf16.msra.mxu1 %v3162_v45  ;;  %2294 = vmatprep.subr.bf16.mxu0 %v3167_v46  ;;  %v3258_v45 = vld [vmem:[%s4463_s1 + $0x820] ss:$8 sps:$4 sm:$0xff]   ;;  %v3263_v46 = vld [vmem:[%s4463_s1 + $0x814] ss:$8 sps:$4 sm:$0xff]  }
  0xd5   :  { %2347 = vmatprep.subr.bf16.mxu1 %v3170_v47  ;;  %v3261_v47 = vld [vmem:[%s4463_s1 + $0x810] ss:$8 sps:$4 sm:$0xff]  }
  0xd7   :  { %2295 = vmatpush1.bf16.msra.mxu0 %v3165_v48  ;;  %v3266_v48 = vld [vmem:[%s4463_s1 + $0x804] ss:$8 sps:$4 sm:$0xff]  }
  0xd8   :  { %2348 = vmatpush1.bf16.msra.mxu1 %v3168_v49  ;;  %2296 = vmatprep.subr.bf16.mxu0 %v3173_v50  ;;  %v3264_v49 = vld [vmem:[%s4463_s1 + $0x800] ss:$8 sps:$4 sm:$0xff]   ;;  %v3269_v50 = vld [vmem:[%s4463_s1 + $0x8f4] ss:$8 sps:$4 sm:$0xff]  }
  0xd9   :  { %2349 = vmatprep.subr.bf16.mxu1 %v3176_v51  ;;  %v3267_v51 = vld [vmem:[%s4463_s1 + $0x8f0] ss:$8 sps:$4 sm:$0xff]  }
  0xdb   :  { %2297 = vmatpush1.bf16.msra.mxu0 %v3171_v52  ;;  %v3272_v52 = vld [vmem:[%s4463_s1 + $0x8e4] ss:$8 sps:$4 sm:$0xff]  }
  0xdc   :  { %2350 = vmatpush1.bf16.msra.mxu1 %v3174_v53  ;;  %2298 = vmatprep.subr.bf16.mxu0 %v3179_v54  ;;  %v3270_v53 = vld [vmem:[%s4463_s1 + $0x8e0] ss:$8 sps:$4 sm:$0xff]   ;;  %v3275_v54 = vld [vmem:[%s4463_s1 + $0x8d4] ss:$8 sps:$4 sm:$0xff]  }
  0xdd   :  { %2351 = vmatprep.subr.bf16.mxu1 %v3182_v55  ;;  %v3273_v55 = vld [vmem:[%s4463_s1 + $0x8d0] ss:$8 sps:$4 sm:$0xff]  }
  0xdf   :  { %2299 = vmatpush1.bf16.msra.mxu0 %v3177_v56  ;;  %v3278_v56 = vld [vmem:[%s4463_s1 + $0x8c4] ss:$8 sps:$4 sm:$0xff]  }
  0xe0   :  { %2352 = vmatpush1.bf16.msra.mxu1 %v3180_v57  ;;  %2300 = vmatprep.subr.bf16.mxu0 %v3185_v58  ;;  %v3276_v57 = vld [vmem:[%s4463_s1 + $0x8c0] ss:$8 sps:$4 sm:$0xff]   ;;  %v3281_v58 = vld [vmem:[%s4463_s1 + $0x8b4] ss:$8 sps:$4 sm:$0xff]  }
  0xe1   :  { %2353 = vmatprep.subr.bf16.mxu1 %v3188_v59  ;;  %v3279_v59 = vld [vmem:[%s4463_s1 + $0x8b0] ss:$8 sps:$4 sm:$0xff]  }
  0xe3   :  { %2301 = vmatpush2.bf16.msra.mxu0 %v3183_v60  ;;  %v3284_v60 = vld [vmem:[%s4463_s1 + $0x8a4] ss:$8 sps:$4 sm:$0xff]  }
  0xe4   :  { %2354 = vmatpush2.bf16.msra.mxu1 %v3186_v61  ;;  %2302 = vmatprep.subr.bf16.mxu0 %v3191_v62  ;;  %v3282_v61 = vld [vmem:[%s4463_s1 + $0x8a0] ss:$8 sps:$4 sm:$0xff]   ;;  %v3287_v62 = vld [vmem:[%s4463_s1 + $0x894] ss:$8 sps:$4 sm:$0xff]  }
  0xe5   :  { %2355 = vmatprep.subr.bf16.mxu1 %v3194_v63  ;;  %v3285_v63 = vld [vmem:[%s4463_s1 + $0x890] ss:$8 sps:$4 sm:$0xff]  }
  0xe7   :  { %2303 = vmatpush2.bf16.msra.mxu0 %v3189_v0  ;;  %v3290_v0 = vld [vmem:[%s4463_s1 + $0x884] ss:$8 sps:$4 sm:$0xff]  }
  0xe8   :  { %2356 = vmatpush2.bf16.msra.mxu1 %v3192_v1  ;;  %2304 = vmatprep.subr.bf16.mxu0 %v3197_v2  ;;  %v3288_v1 = vld [vmem:[%s4463_s1 + $0x880] ss:$8 sps:$4 sm:$0xff]  }
  0xe9   :  { %2357 = vmatprep.subr.bf16.mxu1 %v3200_v3  ;;  %v3291_v2 = vld [vmem:[%s4464_s0 + $0x40] ss:$72 sps:$4 sm:$0xff]   ;;  %v3294_v3 = vld [vmem:[%s4464_s0 + $0xd0] ss:$72 sps:$4 sm:$0xff]  }
  0xeb   :  { %2305 = vmatpush2.bf16.msra.mxu0 %v3195_v4 }
  0xec   :  { %2358 = vmatpush2.bf16.msra.mxu1 %v3198_v5  ;;  %2306 = vmatprep.subr.bf16.mxu0 %v3203_v6 }
  0xed   :  { %2359 = vmatprep.subr.bf16.mxu1 %v3206_v7 }
  0xef   :  { %2307 = vmatpush2.bf16.msra.mxu0 %v3201_v8 }
  0xf0   :  { %2360 = vmatpush2.bf16.msra.mxu1 %v3204_v9  ;;  %2308 = vmatprep.subr.bf16.mxu0 %v3209_v10 }
  0xf1   :  { %2361 = vmatprep.subr.bf16.mxu1 %v3212_v11 }
  0xf3   :  { %2309 = vmatpush2.bf16.msra.mxu0 %v3207_v12 }
  0xf4   :  { %2362 = vmatpush2.bf16.msra.mxu1 %v3210_v13  ;;  %2310 = vmatprep.subr.bf16.mxu0 %v3215_v14 }
  0xf5   :  { %2363 = vmatprep.subr.bf16.mxu1 %v3218_v15 }
  0xf7   :  { %2311 = vmatpush2.bf16.msra.mxu0 %v3213_v16 }
  0xf8   :  { %2364 = vmatpush2.bf16.msra.mxu1 %v3216_v17  ;;  %2312 = vmatprep.subr.bf16.mxu0 %v3221_v18 }
  0xf9   :  { %2365 = vmatprep.subr.bf16.mxu1 %v3224_v19 }
  0xfb   :  { %2313 = vmatpush2.bf16.msra.mxu0 %v3219_v20 }
  0xfc   :  { %2366 = vmatpush2.bf16.msra.mxu1 %v3222_v21  ;;  %2314 = vmatprep.subr.bf16.mxu0 %v3227_v22 }
  0xfd   :  { %2367 = vmatprep.subr.bf16.mxu1 %v3230_v23 }
  0xff   :  { %2315 = vmatpush2.bf16.msra.mxu0 %v3225_v24 }
 0x100   :  { %2368 = vmatpush2.bf16.msra.mxu1 %v3228_v25  ;;  %2390 = vmatprep.subr.bf16.mxu0 %v3239_v26 }
 0x101   :  { %2779 = vmatprep.subr.bf16.mxu1 %v3239_v26 }
 0x102   :  { %2317 = vmatmul.mubr.bf16.vlgmr.msra.gmra.mxu0 %v3231_v27  ;;  %v2000_v4 = vpop.f32.mrf.mxu0 }
 0x103   :  { %2370 = vmatmul.mubr.bf16.vlgmr.msra.gmra.mxu1 %v3234_v28  ;;  %2391 = vmatpush1.bf16.msra.mxu0 %v3237_v29  ;;  %v4289_v6 = vpop.f32.mrf.mxu1 }
 0x104   :  { %2795 = vmatpush1.bf16.msra.mxu1 %v3237_v29  ;;  %2392 = vmatprep.subr.bf16.mxu0 %v3242_v30  ;;  %v2002_v5 = vpop.f32.mrf.mxu0 }
 0x105   :  { %2780 = vmatprep.subr.bf16.mxu1 %v3242_v30  ;;  %2326 = vmatprep.mubr.bf16.mxu0 %v3243_v31  ;;  %v4293_v8 = vpop.f32.mrf.mxu1 }
 0x106   :  { %2379 = vmatprep.mubr.bf16.mxu1 %v3249_v32  ;;  %v4291_v7 = vpop.f32.mrf.mxu0 }
 0x107   :  { %2393 = vmatpush1.bf16.msra.mxu0 %v3240_v33  ;;  %v4297_v10 = vpop.f32.mrf.mxu1 }
 0x108   :  { %2796 = vmatpush1.bf16.msra.mxu1 %v3240_v33  ;;  %2394 = vmatprep.subr.bf16.mxu0 %v3248_v34  ;;  %v4295_v9 = vpop.f32.mrf.mxu0 }
 0x109   :  { %2781 = vmatprep.subr.bf16.mxu1 %v3248_v34  ;;  %v4299_v12 = vpop.f32.mrf.mxu1 }
 0x10a   :  { %2327 = vmatmul.mubr.bf16.gmra.mxu0 %v3245_v35  ;;  %v2010_v11 = vpop.f32.mrf.mxu0 }
 0x10b   :  { %2380 = vmatmul.mubr.bf16.gmra.mxu1 %v3251_v36  ;;  %2395 = vmatpush1.bf16.msra.mxu0 %v3246_v37  ;;  %v2063_v14 = vpop.f32.mrf.mxu1 }
 0x10c   :  { %2797 = vmatpush1.bf16.msra.mxu1 %v3246_v37  ;;  %2396 = vmatprep.subr.bf16.mxu0 %v3254_v38  ;;  %v2012_v13 = vpop.f32.mrf.mxu0 }
 0x10d   :  { %2782 = vmatprep.subr.bf16.mxu1 %v3254_v38  ;;  %2422 = vmatprep.mubr.bf16.mxu0 %v3293_v39  ;;  %v4301_v16 = vpop.f32.mrf.mxu1 }
 0x10e   :  { %2432 = vmatprep.mubr.bf16.mxu1 %v3296_v40  ;;  %v2014_v15 = vpop.f32.mrf.mxu0 }
 0x10f   :  { %2397 = vmatpush1.bf16.msra.mxu0 %v3252_v41  ;;  %v4303_v18 = vpop.f32.mrf.mxu1 }
 0x110   :  { %2798 = vmatpush1.bf16.msra.mxu1 %v3252_v41  ;;  %2398 = vmatprep.subr.bf16.mxu0 %v3257_v42  ;;  %v2016_v17 = vpop.f32.mrf.mxu0 }
 0x111   :  { %2783 = vmatprep.subr.bf16.mxu1 %v3257_v42  ;;  %v4305_v20 = vpop.f32.mrf.mxu1 }
 0x113   :  { %2399 = vmatpush1.bf16.msra.mxu0 %v3255_v43 }
 0x114   :  { %2799 = vmatpush1.bf16.msra.mxu1 %v3255_v43  ;;  %2400 = vmatprep.subr.bf16.mxu0 %v3260_v44 }
 0x115   :  { %2784 = vmatprep.subr.bf16.mxu1 %v3260_v44 }
 0x117   :  { %2401 = vmatpush1.bf16.msra.mxu0 %v3258_v45 }
 0x118   :  { %2800 = vmatpush1.bf16.msra.mxu1 %v3258_v45  ;;  %2402 = vmatprep.subr.bf16.mxu0 %v3263_v46 }
 0x119   :  { %2785 = vmatprep.subr.bf16.mxu1 %v3263_v46 }
 0x11b   :  { %2403 = vmatpush1.bf16.msra.mxu0 %v3261_v47 }
 0x11c   :  { %2801 = vmatpush1.bf16.msra.mxu1 %v3261_v47  ;;  %2404 = vmatprep.subr.bf16.mxu0 %v3266_v48 }
 0x11d   :  { %2786 = vmatprep.subr.bf16.mxu1 %v3266_v48 }
 0x11f   :  { %2405 = vmatpush1.bf16.msra.mxu0 %v3264_v49 }
 0x120   :  { %2802 = vmatpush1.bf16.msra.mxu1 %v3264_v49  ;;  %2406 = vmatprep.subr.bf16.mxu0 %v3269_v50 }
 0x121   :  { %2787 = vmatprep.subr.bf16.mxu1 %v3269_v50 }
 0x123   :  { %2407 = vmatpush2.bf16.msra.mxu0 %v3267_v51 }
 0x124   :  { %2803 = vmatpush2.bf16.msra.mxu1 %v3267_v51  ;;  %2408 = vmatprep.subr.bf16.mxu0 %v3272_v52 }
 0x125   :  { %2788 = vmatprep.subr.bf16.mxu1 %v3272_v52 }
 0x127   :  { %2409 = vmatpush2.bf16.msra.mxu0 %v3270_v53 }
 0x128   :  { %2804 = vmatpush2.bf16.msra.mxu1 %v3270_v53  ;;  %2410 = vmatprep.subr.bf16.mxu0 %v3275_v54 }
 0x129   :  { %2789 = vmatprep.subr.bf16.mxu1 %v3275_v54  ;;  %v338_v54 = vld [vmem:[%s4465_s2] sm:$0xff] }
 0x12b   :  { %2411 = vmatpush2.bf16.msra.mxu0 %v3273_v55 }
 0x12c   :  { %2805 = vmatpush2.bf16.msra.mxu1 %v3273_v55  ;;  %2412 = vmatprep.subr.bf16.mxu0 %v3278_v56  ;;  %v342_v55 = vld [vmem:[%s4465_s2 + $0x20] sm:$0xff] }
 0x12d   :  { %2790 = vmatprep.subr.bf16.mxu1 %v3278_v56 }
 0x12f   :  { %2413 = vmatpush2.bf16.msra.mxu0 %v3276_v57 }
 0x130   :  { %2806 = vmatpush2.bf16.msra.mxu1 %v3276_v57  ;;  %2414 = vmatprep.subr.bf16.mxu0 %v3281_v58  ;;  %v339_v57 = vld [vmem:[%s4465_s2 + $0x8] sm:$0xff] }
 0x131   :  { %2791 = vmatprep.subr.bf16.mxu1 %v3281_v58  ;;  %v343_v58 = vld [vmem:[%s4465_s2 + $0x28] sm:$0xff] }
 0x133   :  { %2415 = vmatpush2.bf16.msra.mxu0 %v3279_v59 }
 0x134   :  { %2807 = vmatpush2.bf16.msra.mxu1 %v3279_v59  ;;  %2416 = vmatprep.subr.bf16.mxu0 %v3284_v60 }
 0x135   :  { %2792 = vmatprep.subr.bf16.mxu1 %v3284_v60  ;;  %v2001_v60 = vadd.f32 %v2000_v4, %v338_v54  ;;  %v345_v4 = vld [vmem:[%s4465_s2 + $0x38] sm:$0xff] }
 0x137   :  { %2417 = vmatpush2.bf16.msra.mxu0 %v3282_v61 }
 0x138   :  { %2808 = vmatpush2.bf16.msra.mxu1 %v3282_v61  ;;  %2418 = vmatprep.subr.bf16.mxu0 %v3287_v62  ;;  %v2011_v61 = vadd.f32 %v2010_v11, %v342_v55  ;;  %v2054_v11 = vadd.f32 %v4289_v6, %v2001_v60 }
 0x139   :  { %2793 = vmatprep.subr.bf16.mxu1 %v3287_v62  ;;  %v2003_v62 = vadd.f32 %v2002_v5, %v339_v57 }
 0x13a   :  { %v2064_v55 = vadd.f32 %v2063_v14, %v2011_v61 }
 0x13b   :  { %2419 = vmatpush2.bf16.msra.mxu0 %v3285_v63 }
 0x13c   :  { %2809 = vmatpush2.bf16.msra.mxu1 %v3285_v63  ;;  %2420 = vmatprep.subr.bf16.mxu0 %v3290_v0  ;;  %v340_v63 = vld [vmem:[%s4465_s2 + $0x10] sm:$0xff] }
 0x13d   :  { %2794 = vmatprep.subr.bf16.mxu1 %v3290_v0  ;;  %v344_v0 = vld [vmem:[%s4465_s2 + $0x30] sm:$0xff]  ;;  %v2005_v54 = vadd.f32 %v4291_v7, %v340_v63 }
 0x13e   :  { %v2015_v57 = vadd.f32 %v2014_v15, %v344_v0 }
 0x13f   :  { %2421 = vmatpush2.bf16.msra.mxu0 %v3288_v1 }
 0x140   :  { %2810 = vmatpush2.bf16.msra.mxu1 %v3288_v1  ;;  %v2068_v6 = vadd.f32 %v4303_v18, %v2015_v57 }
 0x142   :  { %2423 = vmatmul.mubr.bf16.vlgmr.msra.gmra.mxu0 %v3291_v2  ;;  %v2106_v19 = vpop.f32.mrf.mxu0  ;;  %v341_v2 = vld [vmem:[%s4465_s2 + $0x18] sm:$0xff] }
 0x143   :  { %2433 = vmatmul.mubr.bf16.vlgmr.msra.gmra.mxu1 %v3294_v3  ;;  %v4307_v22 = vpop.f32.mrf.mxu1  ;;  %v2013_v3 = vadd.f32 %v2012_v13, %v343_v58  ;;  %v2107_v58 = vadd.f32 %v2106_v19, %v2054_v11 }
 0x144   :  { %v2108_v21 = vpop.f32.mrf.mxu0 }
 0x145   :  { %v4311_v24 = vpop.f32.mrf.mxu1  ;;  %v2066_v13 = vadd.f32 %v4301_v16, %v2013_v3 }
 0x146   :  { %v4309_v23 = vpop.f32.mrf.mxu0 }
 0x147   :  { %v4315_v26 = vpop.f32.mrf.mxu1 }
 0x148   :  { %v4313_v25 = vpop.f32.mrf.mxu0 }
 0x149   :  { %v4317_v28 = vpop.f32.mrf.mxu1 }
 0x14a   :  { %v2116_v27 = vpop.f32.mrf.mxu0 }
 0x14b   :  { %v4319_v30 = vpop.f32.mrf.mxu1 }
 0x14c   :  { %v2118_v29 = vpop.f32.mrf.mxu0 }
 0x14d   :  { %v4323_v32 = vpop.f32.mrf.mxu1  ;;  %v2119_v7 = vadd.f32 %v2118_v29, %v2066_v13 }
 0x14e   :  { %v4321_v31 = vpop.f32.mrf.mxu0 }
 0x14f   :  { %v4327_v34 = vpop.f32.mrf.mxu1 }
 0x150   :  { %v4325_v33 = vpop.f32.mrf.mxu0 }
 0x151   :  { %v4331_v36 = vpop.f32.mrf.mxu1 }
 0x182   :  { %v4329_v35 = vpop.f32.mrf.mxu0 }
 0x183   :  { %v4333_v37 = vpop.f32.mrf.mxu1 }
 0x184   :  { %v4335_v38 = vpop.f32.mrf.mxu0 }
 0x185   :  { %v4337_v39 = vpop.f32.mrf.mxu1 }
 0x186   :  { %v4339_v40 = vpop.f32.mrf.mxu0 }
 0x187   :  { %v4341_v41 = vpop.f32.mrf.mxu1 }
 0x188   :  { %4467 = vst [vmem:[#allocation2_spill] sm:$0xff] %v4341_v41  ;;  %v4343_v42 = vpop.f32.mrf.mxu0 }
 0x189   :  { %v4345_v43 = vpop.f32.mrf.mxu1 }
 0x18a   :  { %4468 = vst [vmem:[#allocation3_spill] sm:$0xff] %v4345_v43  ;;  %v2222_v44 = vpop.f32.mrf.mxu0  ;;  %v2117_v43 = vadd.f32 %v2116_v27, %v2064_v55 }
 0x18b   :  { %v4347_v45 = vpop.f32.mrf.mxu1 }
 0x18c   :  { %v2224_v46 = vpop.f32.mrf.mxu0  ;;  %v2170_v19 = vadd.f32 %v4319_v30, %v2117_v43 }
 0x18d   :  { %v4349_v47 = vpop.f32.mrf.mxu1 }
 0x18e   :  { %v4351_v48 = vpop.f32.mrf.mxu0  ;;  %v2223_v29 = vadd.f32 %v2222_v44, %v2170_v19 }
 0x18f   :  { %v4353_v49 = vpop.f32.mrf.mxu1 }
 0x190   :  { %4469 = vst [vmem:[#allocation4_spill] sm:$0xff] %v4353_v49  ;;  %v4355_v50 = vpop.f32.mrf.mxu0 }
 0x191   :  { %v4357_v51 = vpop.f32.mrf.mxu1 }
 0x192   :  { %4470 = vst [vmem:[#allocation5_spill] sm:$0xff] %v4357_v51 }
 0x199   :  { %v4478_v63 = vld [vmem:[#allocation5_spill] sm:$0xff] }
 0x1c2   :  { %v4359_v52 = vpop.f32.mrf.mxu0 }
 0x1c3   :  { %v4361_v53 = vpop.f32.mrf.mxu1 }
 0x1c4   :  { %4471 = vst [vmem:[#allocation6_spill] sm:$0xff] %v4361_v53  ;;  %v4369_v56 = vpop.f32.mrf.mxu0  ;;  %v2017_v53 = vadd.f32 %v2016_v17, %v345_v4  ;;  %v2160_v17 = vadd.f32 %v4307_v22, %v2107_v58 }
 0x1c5   :  { %v4377_v59 = vpop.f32.mrf.mxu1 }
 0x1c6   :  { %4472 = vst [vmem:[#allocation7_spill] sm:$0xff] %v4377_v59  ;;  %v4385_v1 = vpop.f32.mrf.mxu0  ;;  %v2056_v59 = vadd.f32 %v4293_v8, %v2003_v62  ;;  %v2070_v8 = vadd.f32 %v4305_v20, %v2017_v53  ;;  %v2213_v20 = vadd.f32 %v4329_v35, %v2160_v17  ;;  %v2276_v35 = vadd.f32 %v4347_v45, %v2223_v29  ;;  %v4476_v45 = vld [vmem:[#allocation4_spill] sm:$0xff]  ;;  %v4477_v62 = vld [vmem:[#allocation3_spill] sm:$0xff] }
 0x1c7   :  { %4473 = vst [vmem:[#allocation8_spill] sm:$0xff] %v4385_v1  ;;  %v4393_v5 = vpop.f32.mrf.mxu1  ;;  %v2007_v1 = vadd.f32 %v4295_v9, %v341_v2 }
 0x1c8   :  { %4474 = vst [vmem:[#allocation9_spill] sm:$0xff] %v4393_v5  ;;  %v2324_v51 = vpop.f32.mrf.mxu0  ;;  %v2109_v49 = vadd.f32 %v2108_v21, %v2056_v59  ;;  %v2058_v5 = vadd.f32 %v4297_v10, %v2005_v54  ;;  %v2121_v21 = vadd.f32 %v4321_v31, %v2068_v6  ;;  %v2123_v18 = vadd.f32 %v4325_v33, %v2070_v8 }
 0x1c9   :  { %v4400_v41 = vpop.f32.mrf.mxu1  ;;  %v2060_v14 = vadd.f32 %v4299_v12, %v2007_v1  ;;  %v2172_v12 = vadd.f32 %v4323_v32, %v2119_v7  ;;  %v2266_v33 = vadd.f32 %v4333_v37, %v2213_v20 }
 0x1ca   :  { %v2328_v15 = vpop.f32.mrf.mxu0  ;;  %v2111_v16 = vadd.f32 %v4309_v23, %v2058_v5  ;;  %v2162_v27 = vadd.f32 %v4311_v24, %v2109_v49  ;;  %v2174_v30 = vadd.f32 %v4327_v34, %v2121_v21 }
 0x1cb   :  { %v2381_v9 = vpop.f32.mrf.mxu1  ;;  %v2113_v10 = vadd.f32 %v4313_v25, %v2060_v14  ;;  %v2225_v31 = vadd.f32 %v2224_v46, %v2172_v12  ;;  %v2176_v25 = vadd.f32 %v4331_v36, %v2123_v18  ;;  %v2319_v36 = vadd.f32 %v4359_v52, %v2266_v33  ;;  %v4479_v1 = vld [vmem:[#allocation6_spill] sm:$0xff] }
 0x1cc   :  { %v2215_v53 = vadd.f32 %v4335_v38, %v2162_v27  ;;  %v2330_v22 = vpop.f32.mrf.mxu0  ;;  %v2164_v23 = vadd.f32 %v4315_v26, %v2111_v16  ;;  %v2227_v43 = vadd.f32 %v4351_v48, %v2174_v30  ;;  %v2329_v49 = vadd.f32 %v2328_v15, %v2276_v35 }
 0x1cd   :  { %v2383_v59 = vpop.f32.mrf.mxu1  ;;  %v2166_v24 = vadd.f32 %v4317_v28, %v2113_v10  ;;  %v2229_v26 = vadd.f32 %v4355_v50, %v2176_v25  ;;  %v2278_v28 = vadd.f32 %v4349_v47, %v2225_v31  ;;  %v2372_v2 = vadd.f32 %v4479_v1, %v2319_v36  ;;  %v4481_v5 = vld [vmem:[#allocation7_spill] sm:$0xff] }
 0x1ce   :  { %v2217_v32 = vadd.f32 %v4339_v40, %v2164_v23  ;;  %v2268_v38 = vadd.f32 %v4337_v39, %v2215_v53  ;;  %v2332_v34 = vpop.f32.mrf.mxu0  ;;  %v4475_v40 = vld [vmem:[#allocation2_spill] sm:$0xff]  ;;  %v2280_v61 = vadd.f32 %v4476_v45, %v2227_v43  ;;  %v4480_v3 = vld [vmem:[#allocation8_spill] sm:$0xff]  ;;  %v2382_v4 = vadd.f32 %v2381_v9, %v2329_v49 }
 0x1cf   :  { %v2219_v44 = vadd.f32 %v4343_v42, %v2166_v24  ;;  %v2385_v46 = vpop.f32.mrf.mxu1  ;;  %v2331_v48 = vadd.f32 %v2330_v22, %v2278_v28  ;;  %v2282_v42 = vadd.f32 %v4478_v63, %v2229_v26  ;;  %v4482_v8 = vld [vmem:[#allocation9_spill] sm:$0xff] }
 0x1d0   :  { %v2321_v37 = vadd.f32 %v4369_v56, %v2268_v38  ;;  %v2270_v60 = vadd.f32 %v4475_v40, %v2217_v32  ;;  %v2334_v0 = vpop.f32.mrf.mxu0  ;;  %v2333_v52 = vadd.f32 %v2332_v34, %v2280_v61 }
 0x1d1   :  { %v2272_v39 = vadd.f32 %v4477_v62, %v2219_v44  ;;  %v2387_v50 = vpop.f32.mrf.mxu1  ;;  %v2384_v57 = vadd.f32 %v2383_v59, %v2331_v48  ;;  %v2335_v13 = vadd.f32 %v2334_v0, %v2282_v42 }
 0x1d2   :  { %v2323_v47 = vadd.f32 %v4480_v3, %v2270_v60  ;;  %v2374_v11 = vadd.f32 %v4481_v5, %v2321_v37  ;;  %v2386_v17 = vadd.f32 %v2385_v46, %v2333_v52 }
 0x1d3   :  { %v2325_v56 = vadd.f32 %v2324_v51, %v2272_v39  ;;  %v2388_v27 = vadd.f32 %v2387_v50, %v2335_v13 }
 0x1d4   :  { %v2376_v15 = vadd.f32 %v4482_v8, %v2323_v47 }
 0x1d5   :  { %v2378_v21 = vadd.f32 %v4400_v41, %v2325_v56 }
 0x202   :  { %v2424_v54 = vpop.f32.mrf.mxu0 }
 0x203   :  { %v2434_v55 = vpop.f32.mrf.mxu1  ;;  %v2425_v58 = vadd.f32 %v2424_v54, %v2372_v2 }
 0x204   :  { %v2435_v6 = vadd.f32 %v2434_v55, %v2382_v4  ;;  %v2426_v7 = vpop.f32.mrf.mxu0 }
 0x205   :  { %v2436_v14 = vpop.f32.mrf.mxu1  ;;  %2443 = vst [vmem:[%s4466_s3] sm:$0xff] %v2425_v58  ;;  %v2427_v51 = vadd.f32 %v2426_v7, %v2374_v11 }
 0x206   :  { %2447 = vst [vmem:[%s4466_s3 + $0x20] sm:$0xff] %v2435_v6  ;;  %v2437_v9 = vadd.f32 %v2436_v14, %v2384_v57  ;;  %v2428_v16 = vpop.f32.mrf.mxu0 }
 0x207   :  { %v2438_v19 = vpop.f32.mrf.mxu1  ;;  %2444 = vst [vmem:[%s4466_s3 + $0x8] sm:$0xff] %v2427_v51  ;;  %v2429_v10 = vadd.f32 %v2428_v16, %v2376_v15 }
 0x208   :  { %2448 = vst [vmem:[%s4466_s3 + $0x28] sm:$0xff] %v2437_v9  ;;  %v2439_v18 = vadd.f32 %v2438_v19, %v2386_v17  ;;  %v2430_v12 = vpop.f32.mrf.mxu0 }
 0x209   :  { %v2440_v20 = vpop.f32.mrf.mxu1  ;;  %2445 = vst [vmem:[%s4466_s3 + $0x10] sm:$0xff] %v2429_v10  ;;  %v2431_v41 = vadd.f32 %v2430_v12, %v2378_v21 }
 0x20a   :  { %2449 = vst [vmem:[%s4466_s3 + $0x30] sm:$0xff] %v2439_v18  ;;  %v2441_v29 = vadd.f32 %v2440_v20, %v2388_v27 }
 0x20b   :  { %2446 = vst [vmem:[%s4466_s3 + $0x18] sm:$0xff] %v2431_v41 }
 0x20c   :  { %2450 = vst [vmem:[%s4466_s3 + $0x38] sm:$0xff] %v2441_v29 }

// kernel: forward.73
= control target key start
LH: loop header
LB: loop body
LE: loop exit
PB: predicated region body
PF: predicated region fallthrough
CT: control target
= control target key end

     0   :  { %s4425_s1 = inlined_call_operand.vmem [shape: bf16[2304,256], index: 1, kind: input, shape index: {}]   ;;  %s4426_s0 = inlined_call_operand.vmem [shape: bf16[32,2304], index: 0, kind: input, shape index: {}]   ;;  %s4427_s2 = inlined_call_operand.vmem [shape: f32[1,256], index: 2, kind: input, shape index: {}]   ;;  %s4428_s3 = inlined_call_operand.vmem [shape: f32[1,256], index: 3, kind: input, shape index: {}]   ;;  %s4429_s4 = inlined_call_operand.vmem [shape: bf16[32,256], index: 4, kind: output, shape index: {}]  }
   0x1   :  { %v2882_v0 = vld [vmem:[%s4425_s1 + $0x74] ss:$8 sps:$4 sm:$0xff]   ;;  %v2886_v2 = vld [vmem:[%s4425_s1 + $0x70] ss:$8 sps:$4 sm:$0xff]   ;;  %v2888_v4 = vld [vmem:[%s4425_s1 + $0x64] ss:$8 sps:$4 sm:$0xff]  }
   0x2   :  { %v2884_v1 = vld [vmem:[%s4425_s1 + $0x174] ss:$8 sps:$4 sm:$0xff]   ;;  %1961 = vmatprep.subr.bf16.mxu0 %v2882_v0  ;;  %v2887_v3 = vld [vmem:[%s4425_s1 + $0x170] ss:$8 sps:$4 sm:$0xff]   ;;  %v2890_v5 = vld [vmem:[%s4425_s1 + $0x164] ss:$8 sps:$4 sm:$0xff]  }
   0x3   :  { %2014 = vmatprep.subr.bf16.mxu1 %v2884_v1  ;;  %1962 = vmatpush1.bf16.msra.mxu0 %v2886_v2  ;;  %v2892_v6 = vld [vmem:[%s4425_s1 + $0x60] ss:$8 sps:$4 sm:$0xff]   ;;  %v2894_v8 = vld [vmem:[%s4425_s1 + $0x54] ss:$8 sps:$4 sm:$0xff]   ;;  %v2898_v10 = vld [vmem:[%s4425_s1 + $0x50] ss:$8 sps:$4 sm:$0xff]  }
   0x4   :  { %2015 = vmatpush1.bf16.msra.mxu1 %v2887_v3  ;;  %1963 = vmatprep.subr.bf16.mxu0 %v2888_v4  ;;  %v2893_v7 = vld [vmem:[%s4425_s1 + $0x160] ss:$8 sps:$4 sm:$0xff]   ;;  %v2896_v9 = vld [vmem:[%s4425_s1 + $0x154] ss:$8 sps:$4 sm:$0xff]   ;;  %v2899_v11 = vld [vmem:[%s4425_s1 + $0x150] ss:$8 sps:$4 sm:$0xff]  }
   0x5   :  { %2016 = vmatprep.subr.bf16.mxu1 %v2890_v5  ;;  %v2900_v12 = vld [vmem:[%s4425_s1 + $0x44] ss:$8 sps:$4 sm:$0xff]   ;;  %v2904_v14 = vld [vmem:[%s4425_s1 + $0x40] ss:$8 sps:$4 sm:$0xff]   ;;  %v2906_v16 = vld [vmem:[%s4425_s1 + $0x34] ss:$8 sps:$4 sm:$0xff]  }
   0x6   :  { %v2902_v13 = vld [vmem:[%s4425_s1 + $0x144] ss:$8 sps:$4 sm:$0xff]   ;;  %v2905_v15 = vld [vmem:[%s4425_s1 + $0x140] ss:$8 sps:$4 sm:$0xff]   ;;  %v2908_v17 = vld [vmem:[%s4425_s1 + $0x134] ss:$8 sps:$4 sm:$0xff]  }
   0x7   :  { %1964 = vmatpush1.bf16.msra.mxu0 %v2892_v6  ;;  %v2910_v18 = vld [vmem:[%s4425_s1 + $0x30] ss:$8 sps:$4 sm:$0xff]   ;;  %v2912_v20 = vld [vmem:[%s4425_s1 + $0x24] ss:$8 sps:$4 sm:$0xff]   ;;  %v2916_v22 = vld [vmem:[%s4425_s1 + $0x20] ss:$8 sps:$4 sm:$0xff]  }
   0x8   :  { %2017 = vmatpush1.bf16.msra.mxu1 %v2893_v7  ;;  %1965 = vmatprep.subr.bf16.mxu0 %v2894_v8  ;;  %v2911_v19 = vld [vmem:[%s4425_s1 + $0x130] ss:$8 sps:$4 sm:$0xff]   ;;  %v2914_v21 = vld [vmem:[%s4425_s1 + $0x124] ss:$8 sps:$4 sm:$0xff]   ;;  %v2917_v23 = vld [vmem:[%s4425_s1 + $0x120] ss:$8 sps:$4 sm:$0xff]  }
   0x9   :  { %2018 = vmatprep.subr.bf16.mxu1 %v2896_v9  ;;  %v2918_v24 = vld [vmem:[%s4425_s1 + $0x14] ss:$8 sps:$4 sm:$0xff]   ;;  %v2922_v26 = vld [vmem:[%s4425_s1 + $0x10] ss:$8 sps:$4 sm:$0xff]   ;;  %v2924_v28 = vld [vmem:[%s4425_s1 + $0x4] ss:$8 sps:$4 sm:$0xff]  }
   0xa   :  { %v2920_v25 = vld [vmem:[%s4425_s1 + $0x114] ss:$8 sps:$4 sm:$0xff]   ;;  %v2923_v27 = vld [vmem:[%s4425_s1 + $0x110] ss:$8 sps:$4 sm:$0xff]   ;;  %v2926_v29 = vld [vmem:[%s4425_s1 + $0x104] ss:$8 sps:$4 sm:$0xff]  }
   0xb   :  { %1966 = vmatpush1.bf16.msra.mxu0 %v2898_v10  ;;  %v2928_v30 = vld [vmem:[%s4425_s1] ss:$8 sps:$4 sm:$0xff]   ;;  %v2930_v32 = vld [vmem:[%s4425_s1 + $0xf4] ss:$8 sps:$4 sm:$0xff]   ;;  %v2934_v34 = vld [vmem:[%s4425_s1 + $0xf0] ss:$8 sps:$4 sm:$0xff]  }
   0xc   :  { %2019 = vmatpush1.bf16.msra.mxu1 %v2899_v11  ;;  %1967 = vmatprep.subr.bf16.mxu0 %v2900_v12  ;;  %v2929_v31 = vld [vmem:[%s4425_s1 + $0x100] ss:$8 sps:$4 sm:$0xff]   ;;  %v2932_v33 = vld [vmem:[%s4425_s1 + $0x1f4] ss:$8 sps:$4 sm:$0xff]   ;;  %v2935_v35 = vld [vmem:[%s4425_s1 + $0x1f0] ss:$8 sps:$4 sm:$0xff]  }
   0xd   :  { %2020 = vmatprep.subr.bf16.mxu1 %v2902_v13  ;;  %v2936_v36 = vld [vmem:[%s4425_s1 + $0xe4] ss:$8 sps:$4 sm:$0xff]   ;;  %v2940_v38 = vld [vmem:[%s4425_s1 + $0xe0] ss:$8 sps:$4 sm:$0xff]   ;;  %v2942_v40 = vld [vmem:[%s4425_s1 + $0xd4] ss:$8 sps:$4 sm:$0xff]  }
   0xe   :  { %v2938_v37 = vld [vmem:[%s4425_s1 + $0x1e4] ss:$8 sps:$4 sm:$0xff]   ;;  %v2941_v39 = vld [vmem:[%s4425_s1 + $0x1e0] ss:$8 sps:$4 sm:$0xff]   ;;  %v2944_v41 = vld [vmem:[%s4425_s1 + $0x1d4] ss:$8 sps:$4 sm:$0xff]  }
   0xf   :  { %1968 = vmatpush1.bf16.msra.mxu0 %v2904_v14  ;;  %v2946_v42 = vld [vmem:[%s4425_s1 + $0xd0] ss:$8 sps:$4 sm:$0xff]   ;;  %v2948_v44 = vld [vmem:[%s4425_s1 + $0xc4] ss:$8 sps:$4 sm:$0xff]   ;;  %v2952_v46 = vld [vmem:[%s4425_s1 + $0xc0] ss:$8 sps:$4 sm:$0xff]  }
  0x10   :  { %2021 = vmatpush1.bf16.msra.mxu1 %v2905_v15  ;;  %1969 = vmatprep.subr.bf16.mxu0 %v2906_v16  ;;  %v2947_v43 = vld [vmem:[%s4425_s1 + $0x1d0] ss:$8 sps:$4 sm:$0xff]   ;;  %v2950_v45 = vld [vmem:[%s4425_s1 + $0x1c4] ss:$8 sps:$4 sm:$0xff]   ;;  %v2953_v47 = vld [vmem:[%s4425_s1 + $0x1c0] ss:$8 sps:$4 sm:$0xff]  }
  0x11   :  { %2022 = vmatprep.subr.bf16.mxu1 %v2908_v17  ;;  %v2954_v48 = vld [vmem:[%s4425_s1 + $0xb4] ss:$8 sps:$4 sm:$0xff]   ;;  %v2980_v49 = vld [vmem:[%s4426_s0 + $0x4] ss:$72 sps:$4 sm:$0xff]   ;;  %v2958_v52 = vld [vmem:[%s4425_s1 + $0xb0] ss:$8 sps:$4 sm:$0xff]  }
  0x12   :  { %v2956_v50 = vld [vmem:[%s4425_s1 + $0x1b4] ss:$8 sps:$4 sm:$0xff]   ;;  %1993 = vmatprep.mubr.bf16.mxu0 %v2980_v49  ;;  %v2959_v53 = vld [vmem:[%s4425_s1 + $0x1b0] ss:$8 sps:$4 sm:$0xff]   ;;  %v2960_v54 = vld [vmem:[%s4425_s1 + $0xa4] ss:$8 sps:$4 sm:$0xff]  }
  0x13   :  { %1970 = vmatpush1.bf16.msra.mxu0 %v2910_v18  ;;  %v2983_v51 = vld [vmem:[%s4426_s0 + $0xc] ss:$72 sps:$4 sm:$0xff]   ;;  %v2964_v56 = vld [vmem:[%s4425_s1 + $0xa0] ss:$8 sps:$4 sm:$0xff]   ;;  %v2970_v60 = vld [vmem:[%s4425_s1 + $0x90] ss:$8 sps:$4 sm:$0xff]  }
  0x14   :  { %2023 = vmatpush1.bf16.msra.mxu1 %v2911_v19  ;;  %1971 = vmatprep.subr.bf16.mxu0 %v2912_v20  ;;  %v2962_v55 = vld [vmem:[%s4425_s1 + $0x1a4] ss:$8 sps:$4 sm:$0xff]   ;;  %v2965_v57 = vld [vmem:[%s4425_s1 + $0x1a0] ss:$8 sps:$4 sm:$0xff]   ;;  %v2966_v58 = vld [vmem:[%s4425_s1 + $0x94] ss:$8 sps:$4 sm:$0xff]  }
  0x15   :  { %2024 = vmatprep.subr.bf16.mxu1 %v2914_v21  ;;  %2046 = vmatprep.mubr.bf16.mxu1 %v2983_v51  ;;  %v2968_v59 = vld [vmem:[%s4425_s1 + $0x194] ss:$8 sps:$4 sm:$0xff]   ;;  %v2971_v61 = vld [vmem:[%s4425_s1 + $0x190] ss:$8 sps:$4 sm:$0xff]   ;;  %v2972_v62 = vld [vmem:[%s4425_s1 + $0x84] ss:$8 sps:$4 sm:$0xff]  }
  0x16   :  { %v2974_v63 = vld [vmem:[%s4425_s1 + $0x184] ss:$8 sps:$4 sm:$0xff]   ;;  %v2976_v0 = vld [vmem:[%s4425_s1 + $0x80] ss:$8 sps:$4 sm:$0xff]   ;;  %v2986_v2 = vld [vmem:[%s4425_s1 + $0x274] ss:$8 sps:$4 sm:$0xff]  }
  0x17   :  { %1972 = vmatpush1.bf16.msra.mxu0 %v2916_v22  ;;  %v2977_v1 = vld [vmem:[%s4425_s1 + $0x180] ss:$8 sps:$4 sm:$0xff]   ;;  %v2989_v3 = vld [vmem:[%s4425_s1 + $0x374] ss:$8 sps:$4 sm:$0xff]   ;;  %v2984_v6 = vld [vmem:[%s4425_s1 + $0x270] ss:$8 sps:$4 sm:$0xff]  }
  0x18   :  { %2025 = vmatpush1.bf16.msra.mxu1 %v2917_v23  ;;  %1973 = vmatprep.subr.bf16.mxu0 %v2918_v24  ;;  %v2978_v4 = vld [vmem:[%s4426_s0] ss:$72 sps:$4 sm:$0xff]   ;;  %v2987_v7 = vld [vmem:[%s4425_s1 + $0x370] ss:$8 sps:$4 sm:$0xff]   ;;  %v2992_v8 = vld [vmem:[%s4425_s1 + $0x264] ss:$8 sps:$4 sm:$0xff]  }
  0x19   :  { %2026 = vmatprep.subr.bf16.mxu1 %v2920_v25  ;;  %v2981_v5 = vld [vmem:[%s4426_s0 + $0x8] ss:$72 sps:$4 sm:$0xff]   ;;  %v2995_v9 = vld [vmem:[%s4425_s1 + $0x364] ss:$8 sps:$4 sm:$0xff]   ;;  %v2998_v12 = vld [vmem:[%s4425_s1 + $0x254] ss:$8 sps:$4 sm:$0xff]  }
  0x1a   :  { %v2990_v10 = vld [vmem:[%s4425_s1 + $0x260] ss:$8 sps:$4 sm:$0xff]   ;;  %v3001_v13 = vld [vmem:[%s4425_s1 + $0x354] ss:$8 sps:$4 sm:$0xff]   ;;  %v2996_v14 = vld [vmem:[%s4425_s1 + $0x250] ss:$8 sps:$4 sm:$0xff]  }
  0x1b   :  { %1974 = vmatpush1.bf16.msra.mxu0 %v2922_v26  ;;  %v2993_v11 = vld [vmem:[%s4425_s1 + $0x360] ss:$8 sps:$4 sm:$0xff]   ;;  %v2999_v15 = vld [vmem:[%s4425_s1 + $0x350] ss:$8 sps:$4 sm:$0xff]   ;;  %v3004_v16 = vld [vmem:[%s4425_s1 + $0x244] ss:$8 sps:$4 sm:$0xff]  }
  0x1c   :  { %2027 = vmatpush1.bf16.msra.mxu1 %v2923_v27  ;;  %1975 = vmatprep.subr.bf16.mxu0 %v2924_v28  ;;  %v3007_v17 = vld [vmem:[%s4425_s1 + $0x344] ss:$8 sps:$4 sm:$0xff]   ;;  %v3002_v18 = vld [vmem:[%s4425_s1 + $0x240] ss:$8 sps:$4 sm:$0xff]   ;;  %v3010_v20 = vld [vmem:[%s4425_s1 + $0x234] ss:$8 sps:$4 sm:$0xff]  }
  0x1d   :  { %2028 = vmatprep.subr.bf16.mxu1 %v2926_v29  ;;  %v3005_v19 = vld [vmem:[%s4425_s1 + $0x340] ss:$8 sps:$4 sm:$0xff]   ;;  %v3013_v21 = vld [vmem:[%s4425_s1 + $0x334] ss:$8 sps:$4 sm:$0xff]   ;;  %v3008_v22 = vld [vmem:[%s4425_s1 + $0x230] ss:$8 sps:$4 sm:$0xff]  }
  0x1e   :  { %v3011_v23 = vld [vmem:[%s4425_s1 + $0x330] ss:$8 sps:$4 sm:$0xff]   ;;  %v3016_v24 = vld [vmem:[%s4425_s1 + $0x224] ss:$8 sps:$4 sm:$0xff]   ;;  %v3062_v26 = vld [vmem:[%s4426_s0 + $0x94] ss:$72 sps:$4 sm:$0xff]  }
  0x1f   :  { %1976 = vmatpush1.bf16.msra.mxu0 %v2928_v30  ;;  %v3019_v25 = vld [vmem:[%s4425_s1 + $0x324] ss:$8 sps:$4 sm:$0xff]   ;;  %v3066_v28 = vld [vmem:[%s4426_s0 + $0x90] ss:$72 sps:$4 sm:$0xff]   ;;  %v3014_v30 = vld [vmem:[%s4425_s1 + $0x220] ss:$8 sps:$4 sm:$0xff]  }
  0x20   :  { %2029 = vmatpush1.bf16.msra.mxu1 %v2929_v31  ;;  %1977 = vmatprep.subr.bf16.mxu0 %v2930_v32  ;;  %v3064_v27 = vld [vmem:[%s4426_s0 + $0x9c] ss:$72 sps:$4 sm:$0xff]   ;;  %v3067_v29 = vld [vmem:[%s4426_s0 + $0x98] ss:$72 sps:$4 sm:$0xff]  }
  0x21   :  { %2030 = vmatprep.subr.bf16.mxu1 %v2932_v33  ;;  %v3017_v31 = vld [vmem:[%s4425_s1 + $0x320] ss:$8 sps:$4 sm:$0xff]   ;;  %v3022_v32 = vld [vmem:[%s4425_s1 + $0x214] ss:$8 sps:$4 sm:$0xff]  }
  0x22   :  { %v3025_v33 = vld [vmem:[%s4425_s1 + $0x314] ss:$8 sps:$4 sm:$0xff]   ;;  %v3041_v49 = vld [vmem:[%s4425_s1 + $0x3e0] ss:$8 sps:$4 sm:$0xff]  }
  0x23   :  { %1978 = vmatpush2.bf16.msra.mxu0 %v2934_v34  ;;  %v3020_v34 = vld [vmem:[%s4425_s1 + $0x210] ss:$8 sps:$4 sm:$0xff]   ;;  %v3049_v51 = vld [vmem:[%s4425_s1 + $0x3d4] ss:$8 sps:$4 sm:$0xff]  }
  0x24   :  { %2031 = vmatpush2.bf16.msra.mxu1 %v2935_v35  ;;  %1979 = vmatprep.subr.bf16.mxu0 %v2936_v36  ;;  %v3023_v35 = vld [vmem:[%s4425_s1 + $0x310] ss:$8 sps:$4 sm:$0xff]   ;;  %v3028_v36 = vld [vmem:[%s4425_s1 + $0x204] ss:$8 sps:$4 sm:$0xff]  }
  0x25   :  { %2032 = vmatprep.subr.bf16.mxu1 %v2938_v37  ;;  %v3031_v37 = vld [vmem:[%s4425_s1 + $0x304] ss:$8 sps:$4 sm:$0xff]  }
  0x27   :  { %1980 = vmatpush2.bf16.msra.mxu0 %v2940_v38  ;;  %v3026_v38 = vld [vmem:[%s4425_s1 + $0x200] ss:$8 sps:$4 sm:$0xff]  }
  0x28   :  { %2033 = vmatpush2.bf16.msra.mxu1 %v2941_v39  ;;  %1981 = vmatprep.subr.bf16.mxu0 %v2942_v40  ;;  %v3029_v39 = vld [vmem:[%s4425_s1 + $0x300] ss:$8 sps:$4 sm:$0xff]   ;;  %v3034_v40 = vld [vmem:[%s4425_s1 + $0x2f4] ss:$8 sps:$4 sm:$0xff]  }
  0x29   :  { %2034 = vmatprep.subr.bf16.mxu1 %v2944_v41  ;;  %v3088_v41 = vld [vmem:[%s4426_s0 + $0x14] ss:$72 sps:$4 sm:$0xff]  }
  0x2b   :  { %1982 = vmatpush2.bf16.msra.mxu0 %v2946_v42  ;;  %v3037_v42 = vld [vmem:[%s4425_s1 + $0x3f4] ss:$8 sps:$4 sm:$0xff]  }
  0x2c   :  { %2035 = vmatpush2.bf16.msra.mxu1 %v2947_v43  ;;  %1983 = vmatprep.subr.bf16.mxu0 %v2948_v44  ;;  %v3091_v43 = vld [vmem:[%s4426_s0 + $0x1c] ss:$72 sps:$4 sm:$0xff]   ;;  %v3032_v44 = vld [vmem:[%s4425_s1 + $0x2f0] ss:$8 sps:$4 sm:$0xff]  }
  0x2d   :  { %2036 = vmatprep.subr.bf16.mxu1 %v2950_v45  ;;  %v3035_v45 = vld [vmem:[%s4425_s1 + $0x3f0] ss:$8 sps:$4 sm:$0xff]  }
  0x2f   :  { %1984 = vmatpush2.bf16.msra.mxu0 %v2952_v46  ;;  %v3040_v46 = vld [vmem:[%s4425_s1 + $0x2e4] ss:$8 sps:$4 sm:$0xff]  }
  0x30   :  { %2037 = vmatpush2.bf16.msra.mxu1 %v2953_v47  ;;  %1985 = vmatprep.subr.bf16.mxu0 %v2954_v48  ;;  %v3043_v47 = vld [vmem:[%s4425_s1 + $0x3e4] ss:$8 sps:$4 sm:$0xff]   ;;  %v3038_v48 = vld [vmem:[%s4425_s1 + $0x2e0] ss:$8 sps:$4 sm:$0xff]  }
  0x31   :  { %2038 = vmatprep.subr.bf16.mxu1 %v2956_v50  ;;  %v3046_v50 = vld [vmem:[%s4425_s1 + $0x2d4] ss:$8 sps:$4 sm:$0xff]  }
  0x33   :  { %1986 = vmatpush2.bf16.msra.mxu0 %v2958_v52  ;;  %v3044_v52 = vld [vmem:[%s4425_s1 + $0x2d0] ss:$8 sps:$4 sm:$0xff]  }
  0x34   :  { %2039 = vmatpush2.bf16.msra.mxu1 %v2959_v53  ;;  %1987 = vmatprep.subr.bf16.mxu0 %v2960_v54  ;;  %v3047_v53 = vld [vmem:[%s4425_s1 + $0x3d0] ss:$8 sps:$4 sm:$0xff]   ;;  %v3052_v54 = vld [vmem:[%s4425_s1 + $0x2c4] ss:$8 sps:$4 sm:$0xff]  }
  0x35   :  { %2040 = vmatprep.subr.bf16.mxu1 %v2962_v55  ;;  %v3055_v55 = vld [vmem:[%s4425_s1 + $0x3c4] ss:$8 sps:$4 sm:$0xff]  }
  0x37   :  { %1988 = vmatpush2.bf16.msra.mxu0 %v2964_v56  ;;  %v3050_v56 = vld [vmem:[%s4425_s1 + $0x2c0] ss:$8 sps:$4 sm:$0xff]  }
  0x38   :  { %2041 = vmatpush2.bf16.msra.mxu1 %v2965_v57  ;;  %1989 = vmatprep.subr.bf16.mxu0 %v2966_v58  ;;  %v3053_v57 = vld [vmem:[%s4425_s1 + $0x3c0] ss:$8 sps:$4 sm:$0xff]   ;;  %v3058_v58 = vld [vmem:[%s4425_s1 + $0x2b4] ss:$8 sps:$4 sm:$0xff]  }
  0x39   :  { %2042 = vmatprep.subr.bf16.mxu1 %v2968_v59  ;;  %v3061_v59 = vld [vmem:[%s4425_s1 + $0x3b4] ss:$8 sps:$4 sm:$0xff]  }
  0x3b   :  { %1990 = vmatpush2.bf16.msra.mxu0 %v2970_v60  ;;  %v3056_v60 = vld [vmem:[%s4425_s1 + $0x2b0] ss:$8 sps:$4 sm:$0xff]  }
  0x3c   :  { %2043 = vmatpush2.bf16.msra.mxu1 %v2971_v61  ;;  %1991 = vmatprep.subr.bf16.mxu0 %v2972_v62  ;;  %v3059_v61 = vld [vmem:[%s4425_s1 + $0x3b0] ss:$8 sps:$4 sm:$0xff]   ;;  %v3070_v62 = vld [vmem:[%s4425_s1 + $0x2a4] ss:$8 sps:$4 sm:$0xff]  }
  0x3d   :  { %2044 = vmatprep.subr.bf16.mxu1 %v2974_v63  ;;  %v3073_v63 = vld [vmem:[%s4425_s1 + $0x3a4] ss:$8 sps:$4 sm:$0xff]  }
  0x3f   :  { %1992 = vmatpush2.bf16.msra.mxu0 %v2976_v0  ;;  %v3068_v0 = vld [vmem:[%s4425_s1 + $0x2a0] ss:$8 sps:$4 sm:$0xff]  }
  0x40   :  { %2045 = vmatpush2.bf16.msra.mxu1 %v2977_v1  ;;  %2067 = vmatprep.subr.bf16.mxu0 %v2986_v2  ;;  %v3071_v1 = vld [vmem:[%s4425_s1 + $0x3a0] ss:$8 sps:$4 sm:$0xff]   ;;  %v3076_v2 = vld [vmem:[%s4425_s1 + $0x294] ss:$8 sps:$4 sm:$0xff]  }
  0x41   :  { %2120 = vmatprep.subr.bf16.mxu1 %v2989_v3  ;;  %v3079_v3 = vld [vmem:[%s4425_s1 + $0x394] ss:$8 sps:$4 sm:$0xff]  }
  0x42   :  { %1994 = vmatmul.mubr.bf16.vlgmr.msra.gmra.mxu0 %v2978_v4  ;;  %v3074_v4 = vld [vmem:[%s4425_s1 + $0x290] ss:$8 sps:$4 sm:$0xff]  }
  0x43   :  { %2047 = vmatmul.mubr.bf16.vlgmr.msra.gmra.mxu1 %v2981_v5  ;;  %2068 = vmatpush1.bf16.msra.mxu0 %v2984_v6  ;;  %v3077_v5 = vld [vmem:[%s4425_s1 + $0x390] ss:$8 sps:$4 sm:$0xff]   ;;  %v3082_v6 = vld [vmem:[%s4425_s1 + $0x284] ss:$8 sps:$4 sm:$0xff]  }
  0x44   :  { %2121 = vmatpush1.bf16.msra.mxu1 %v2987_v7  ;;  %2069 = vmatprep.subr.bf16.mxu0 %v2992_v8  ;;  %v3085_v7 = vld [vmem:[%s4425_s1 + $0x384] ss:$8 sps:$4 sm:$0xff]   ;;  %v3080_v8 = vld [vmem:[%s4425_s1 + $0x280] ss:$8 sps:$4 sm:$0xff]  }
  0x45   :  { %2122 = vmatprep.subr.bf16.mxu1 %v2995_v9  ;;  %2003 = vmatprep.mubr.bf16.mxu0 %v3062_v26  ;;  %v3083_v9 = vld [vmem:[%s4425_s1 + $0x380] ss:$8 sps:$4 sm:$0xff]   ;;  %v3110_v26 = vld [vmem:[%s4425_s1 + $0x550] ss:$8 sps:$4 sm:$0xff]  }
  0x46   :  { %2056 = vmatprep.mubr.bf16.mxu1 %v3064_v27  ;;  %v3115_v27 = vld [vmem:[%s4426_s0 + $0xa8] ss:$72 sps:$4 sm:$0xff]  }
  0x47   :  { %2070 = vmatpush1.bf16.msra.mxu0 %v2990_v10  ;;  %v3094_v10 = vld [vmem:[%s4425_s1 + $0x474] ss:$8 sps:$4 sm:$0xff]  }
  0x48   :  { %2123 = vmatpush1.bf16.msra.mxu1 %v2993_v11  ;;  %2071 = vmatprep.subr.bf16.mxu0 %v2998_v12  ;;  %v3097_v11 = vld [vmem:[%s4425_s1 + $0x574] ss:$8 sps:$4 sm:$0xff]   ;;  %v3086_v12 = vld [vmem:[%s4426_s0 + $0x10] ss:$72 sps:$4 sm:$0xff]  }
  0x49   :  { %2124 = vmatprep.subr.bf16.mxu1 %v3001_v13  ;;  %v3089_v13 = vld [vmem:[%s4426_s0 + $0x18] ss:$72 sps:$4 sm:$0xff]  }
  0x4a   :  { %2004 = vmatmul.mubr.bf16.gmra.mxu0 %v3066_v28  ;;  %v3118_v28 = vld [vmem:[%s4425_s1 + $0x444] ss:$8 sps:$4 sm:$0xff]  }
  0x4b   :  { %2072 = vmatpush1.bf16.msra.mxu0 %v2996_v14  ;;  %2057 = vmatmul.mubr.bf16.gmra.mxu1 %v3067_v29  ;;  %v3092_v14 = vld [vmem:[%s4425_s1 + $0x470] ss:$8 sps:$4 sm:$0xff]   ;;  %v3121_v29 = vld [vmem:[%s4425_s1 + $0x544] ss:$8 sps:$4 sm:$0xff]  }
  0x4c   :  { %2125 = vmatpush1.bf16.msra.mxu1 %v2999_v15  ;;  %2073 = vmatprep.subr.bf16.mxu0 %v3004_v16  ;;  %v3095_v15 = vld [vmem:[%s4425_s1 + $0x570] ss:$8 sps:$4 sm:$0xff]   ;;  %v3100_v16 = vld [vmem:[%s4425_s1 + $0x464] ss:$8 sps:$4 sm:$0xff]  }
  0x4d   :  { %2126 = vmatprep.subr.bf16.mxu1 %v3007_v17  ;;  %2099 = vmatprep.mubr.bf16.mxu0 %v3088_v41  ;;  %v3103_v17 = vld [vmem:[%s4425_s1 + $0x564] ss:$8 sps:$4 sm:$0xff]   ;;  %v3131_v41 = vld [vmem:[%s4425_s1 + $0x520] ss:$8 sps:$4 sm:$0xff]  }
  0x4e   :  { %2152 = vmatprep.mubr.bf16.mxu1 %v3091_v43  ;;  %v3139_v43 = vld [vmem:[%s4425_s1 + $0x514] ss:$8 sps:$4 sm:$0xff]  }
  0x4f   :  { %2074 = vmatpush1.bf16.msra.mxu0 %v3002_v18  ;;  %v3104_v18 = vld [vmem:[%s4426_s0 + $0xa4] ss:$72 sps:$4 sm:$0xff]  }
  0x50   :  { %2127 = vmatpush1.bf16.msra.mxu1 %v3005_v19  ;;  %2075 = vmatprep.subr.bf16.mxu0 %v3010_v20  ;;  %v3113_v19 = vld [vmem:[%s4426_s0 + $0xac] ss:$72 sps:$4 sm:$0xff]   ;;  %v3098_v20 = vld [vmem:[%s4425_s1 + $0x460] ss:$8 sps:$4 sm:$0xff]  }
  0x51   :  { %2128 = vmatprep.subr.bf16.mxu1 %v3013_v21  ;;  %v3101_v21 = vld [vmem:[%s4425_s1 + $0x560] ss:$8 sps:$4 sm:$0xff]  }
  0x53   :  { %2076 = vmatpush1.bf16.msra.mxu0 %v3008_v22  ;;  %v3109_v22 = vld [vmem:[%s4425_s1 + $0x454] ss:$8 sps:$4 sm:$0xff]  }
  0x54   :  { %2129 = vmatpush1.bf16.msra.mxu1 %v3011_v23  ;;  %2077 = vmatprep.subr.bf16.mxu0 %v3016_v24  ;;  %v3112_v23 = vld [vmem:[%s4425_s1 + $0x554] ss:$8 sps:$4 sm:$0xff]   ;;  %v3106_v24 = vld [vmem:[%s4426_s0 + $0xa0] ss:$72 sps:$4 sm:$0xff]  }
  0x55   :  { %2130 = vmatprep.subr.bf16.mxu1 %v3019_v25  ;;  %v3107_v25 = vld [vmem:[%s4425_s1 + $0x450] ss:$8 sps:$4 sm:$0xff]  }
  0x57   :  { %2078 = vmatpush1.bf16.msra.mxu0 %v3014_v30  ;;  %v3116_v30 = vld [vmem:[%s4425_s1 + $0x440] ss:$8 sps:$4 sm:$0xff]  }
  0x58   :  { %2131 = vmatpush1.bf16.msra.mxu1 %v3017_v31  ;;  %2079 = vmatprep.subr.bf16.mxu0 %v3022_v32  ;;  %v3119_v31 = vld [vmem:[%s4425_s1 + $0x540] ss:$8 sps:$4 sm:$0xff]   ;;  %v3124_v32 = vld [vmem:[%s4425_s1 + $0x434] ss:$8 sps:$4 sm:$0xff]  }
  0x59   :  { %2132 = vmatprep.subr.bf16.mxu1 %v3025_v33  ;;  %v3196_v33 = vld [vmem:[%s4426_s0 + $0x24] ss:$72 sps:$4 sm:$0xff]  }
  0x5b   :  { %2080 = vmatpush1.bf16.msra.mxu0 %v3020_v34  ;;  %v3127_v34 = vld [vmem:[%s4425_s1 + $0x534] ss:$8 sps:$4 sm:$0xff]  }
  0x5c   :  { %2133 = vmatpush1.bf16.msra.mxu1 %v3023_v35  ;;  %2081 = vmatprep.subr.bf16.mxu0 %v3028_v36  ;;  %v3199_v35 = vld [vmem:[%s4426_s0 + $0x2c] ss:$72 sps:$4 sm:$0xff]   ;;  %v3122_v36 = vld [vmem:[%s4425_s1 + $0x430] ss:$8 sps:$4 sm:$0xff]  }
  0x5d   :  { %2134 = vmatprep.subr.bf16.mxu1 %v3031_v37  ;;  %v3125_v37 = vld [vmem:[%s4425_s1 + $0x530] ss:$8 sps:$4 sm:$0xff]  }
  0x5f   :  { %2082 = vmatpush1.bf16.msra.mxu0 %v3026_v38  ;;  %v3130_v38 = vld [vmem:[%s4425_s1 + $0x424] ss:$8 sps:$4 sm:$0xff]  }
  0x60   :  { %2135 = vmatpush1.bf16.msra.mxu1 %v3029_v39  ;;  %2083 = vmatprep.subr.bf16.mxu0 %v3034_v40  ;;  %v3133_v39 = vld [vmem:[%s4425_s1 + $0x524] ss:$8 sps:$4 sm:$0xff]   ;;  %v3128_v40 = vld [vmem:[%s4425_s1 + $0x420] ss:$8 sps:$4 sm:$0xff]  }
  0x61   :  { %2136 = vmatprep.subr.bf16.mxu1 %v3037_v42  ;;  %v3136_v42 = vld [vmem:[%s4425_s1 + $0x414] ss:$8 sps:$4 sm:$0xff]  }
  0x63   :  { %2084 = vmatpush2.bf16.msra.mxu0 %v3032_v44  ;;  %v3134_v44 = vld [vmem:[%s4425_s1 + $0x410] ss:$8 sps:$4 sm:$0xff]  }
  0x64   :  { %2137 = vmatpush2.bf16.msra.mxu1 %v3035_v45  ;;  %2085 = vmatprep.subr.bf16.mxu0 %v3040_v46  ;;  %v3137_v45 = vld [vmem:[%s4425_s1 + $0x510] ss:$8 sps:$4 sm:$0xff]   ;;  %v3142_v46 = vld [vmem:[%s4425_s1 + $0x404] ss:$8 sps:$4 sm:$0xff]  }
  0x65   :  { %2138 = vmatprep.subr.bf16.mxu1 %v3043_v47  ;;  %v3145_v47 = vld [vmem:[%s4425_s1 + $0x504] ss:$8 sps:$4 sm:$0xff]  }
  0x67   :  { %2086 = vmatpush2.bf16.msra.mxu0 %v3038_v48  ;;  %v3140_v48 = vld [vmem:[%s4425_s1 + $0x400] ss:$8 sps:$4 sm:$0xff]  }
  0x68   :  { %2139 = vmatpush2.bf16.msra.mxu1 %v3041_v49  ;;  %2087 = vmatprep.subr.bf16.mxu0 %v3046_v50  ;;  %v3143_v49 = vld [vmem:[%s4425_s1 + $0x500] ss:$8 sps:$4 sm:$0xff]   ;;  %v3148_v50 = vld [vmem:[%s4425_s1 + $0x4f4] ss:$8 sps:$4 sm:$0xff]  }
  0x69   :  { %2140 = vmatprep.subr.bf16.mxu1 %v3049_v51  ;;  %v3151_v51 = vld [vmem:[%s4425_s1 + $0x5f4] ss:$8 sps:$4 sm:$0xff]  }
  0x6b   :  { %2088 = vmatpush2.bf16.msra.mxu0 %v3044_v52  ;;  %v3146_v52 = vld [vmem:[%s4425_s1 + $0x4f0] ss:$8 sps:$4 sm:$0xff]  }
  0x6c   :  { %2141 = vmatpush2.bf16.msra.mxu1 %v3047_v53  ;;  %2089 = vmatprep.subr.bf16.mxu0 %v3052_v54  ;;  %v3149_v53 = vld [vmem:[%s4425_s1 + $0x5f0] ss:$8 sps:$4 sm:$0xff]   ;;  %v3154_v54 = vld [vmem:[%s4425_s1 + $0x4e4] ss:$8 sps:$4 sm:$0xff]  }
  0x6d   :  { %2142 = vmatprep.subr.bf16.mxu1 %v3055_v55  ;;  %v3157_v55 = vld [vmem:[%s4425_s1 + $0x5e4] ss:$8 sps:$4 sm:$0xff]  }
  0x6f   :  { %2090 = vmatpush2.bf16.msra.mxu0 %v3050_v56  ;;  %v3152_v56 = vld [vmem:[%s4425_s1 + $0x4e0] ss:$8 sps:$4 sm:$0xff]  }
  0x70   :  { %2143 = vmatpush2.bf16.msra.mxu1 %v3053_v57  ;;  %2091 = vmatprep.subr.bf16.mxu0 %v3058_v58  ;;  %v3155_v57 = vld [vmem:[%s4425_s1 + $0x5e0] ss:$8 sps:$4 sm:$0xff]   ;;  %v3160_v58 = vld [vmem:[%s4425_s1 + $0x4d4] ss:$8 sps:$4 sm:$0xff]  }
  0x71   :  { %2144 = vmatprep.subr.bf16.mxu1 %v3061_v59  ;;  %v3163_v59 = vld [vmem:[%s4425_s1 + $0x5d4] ss:$8 sps:$4 sm:$0xff]  }
  0x73   :  { %2092 = vmatpush2.bf16.msra.mxu0 %v3056_v60  ;;  %v3158_v60 = vld [vmem:[%s4425_s1 + $0x4d0] ss:$8 sps:$4 sm:$0xff]  }
  0x74   :  { %2145 = vmatpush2.bf16.msra.mxu1 %v3059_v61  ;;  %2093 = vmatprep.subr.bf16.mxu0 %v3070_v62  ;;  %v3161_v61 = vld [vmem:[%s4425_s1 + $0x5d0] ss:$8 sps:$4 sm:$0xff]   ;;  %v3166_v62 = vld [vmem:[%s4425_s1 + $0x4c4] ss:$8 sps:$4 sm:$0xff]  }
  0x75   :  { %2146 = vmatprep.subr.bf16.mxu1 %v3073_v63  ;;  %v3169_v63 = vld [vmem:[%s4425_s1 + $0x5c4] ss:$8 sps:$4 sm:$0xff]  }
  0x77   :  { %2094 = vmatpush2.bf16.msra.mxu0 %v3068_v0  ;;  %v3164_v0 = vld [vmem:[%s4425_s1 + $0x4c0] ss:$8 sps:$4 sm:$0xff]  }
  0x78   :  { %2147 = vmatpush2.bf16.msra.mxu1 %v3071_v1  ;;  %2095 = vmatprep.subr.bf16.mxu0 %v3076_v2  ;;  %v3167_v1 = vld [vmem:[%s4425_s1 + $0x5c0] ss:$8 sps:$4 sm:$0xff]   ;;  %v3172_v2 = vld [vmem:[%s4425_s1 + $0x4b4] ss:$8 sps:$4 sm:$0xff]  }
  0x79   :  { %2148 = vmatprep.subr.bf16.mxu1 %v3079_v3  ;;  %v3175_v3 = vld [vmem:[%s4425_s1 + $0x5b4] ss:$8 sps:$4 sm:$0xff]  }
  0x7b   :  { %2096 = vmatpush2.bf16.msra.mxu0 %v3074_v4  ;;  %v3170_v4 = vld [vmem:[%s4425_s1 + $0x4b0] ss:$8 sps:$4 sm:$0xff]  }
  0x7c   :  { %2149 = vmatpush2.bf16.msra.mxu1 %v3077_v5  ;;  %2097 = vmatprep.subr.bf16.mxu0 %v3082_v6  ;;  %v3173_v5 = vld [vmem:[%s4425_s1 + $0x5b0] ss:$8 sps:$4 sm:$0xff]   ;;  %v3178_v6 = vld [vmem:[%s4425_s1 + $0x4a4] ss:$8 sps:$4 sm:$0xff]  }
  0x7d   :  { %2150 = vmatprep.subr.bf16.mxu1 %v3085_v7  ;;  %v3181_v7 = vld [vmem:[%s4425_s1 + $0x5a4] ss:$8 sps:$4 sm:$0xff]  }
  0x7f   :  { %2098 = vmatpush2.bf16.msra.mxu0 %v3080_v8  ;;  %v3176_v8 = vld [vmem:[%s4425_s1 + $0x4a0] ss:$8 sps:$4 sm:$0xff]  }
  0x80   :  { %2151 = vmatpush2.bf16.msra.mxu1 %v3083_v9  ;;  %2173 = vmatprep.subr.bf16.mxu0 %v3094_v10  ;;  %v3179_v9 = vld [vmem:[%s4425_s1 + $0x5a0] ss:$8 sps:$4 sm:$0xff]   ;;  %v3184_v10 = vld [vmem:[%s4425_s1 + $0x494] ss:$8 sps:$4 sm:$0xff]  }
  0x81   :  { %2226 = vmatprep.subr.bf16.mxu1 %v3097_v11  ;;  %v3187_v11 = vld [vmem:[%s4425_s1 + $0x594] ss:$8 sps:$4 sm:$0xff]  }
  0x82   :  { %2100 = vmatmul.mubr.bf16.vlgmr.msra.gmra.mxu0 %v3086_v12  ;;  %v3182_v12 = vld [vmem:[%s4425_s1 + $0x490] ss:$8 sps:$4 sm:$0xff]  }
  0x83   :  { %2153 = vmatmul.mubr.bf16.vlgmr.msra.gmra.mxu1 %v3089_v13  ;;  %2174 = vmatpush1.bf16.msra.mxu0 %v3092_v14  ;;  %v3185_v13 = vld [vmem:[%s4425_s1 + $0x590] ss:$8 sps:$4 sm:$0xff]   ;;  %v3190_v14 = vld [vmem:[%s4425_s1 + $0x484] ss:$8 sps:$4 sm:$0xff]  }
  0x84   :  { %2227 = vmatpush1.bf16.msra.mxu1 %v3095_v15  ;;  %2175 = vmatprep.subr.bf16.mxu0 %v3100_v16  ;;  %v3193_v15 = vld [vmem:[%s4425_s1 + $0x584] ss:$8 sps:$4 sm:$0xff]   ;;  %v3188_v16 = vld [vmem:[%s4425_s1 + $0x480] ss:$8 sps:$4 sm:$0xff]  }
  0x85   :  { %2228 = vmatprep.subr.bf16.mxu1 %v3103_v17  ;;  %2109 = vmatprep.mubr.bf16.mxu0 %v3104_v18  ;;  %v3191_v17 = vld [vmem:[%s4425_s1 + $0x580] ss:$8 sps:$4 sm:$0xff]   ;;  %v3202_v18 = vld [vmem:[%s4425_s1 + $0x674] ss:$8 sps:$4 sm:$0xff]  }
  0x86   :  { %2162 = vmatprep.mubr.bf16.mxu1 %v3113_v19  ;;  %v3205_v19 = vld [vmem:[%s4425_s1 + $0x774] ss:$8 sps:$4 sm:$0xff]  }
  0x87   :  { %2176 = vmatpush1.bf16.msra.mxu0 %v3098_v20  ;;  %v3194_v20 = vld [vmem:[%s4426_s0 + $0x20] ss:$72 sps:$4 sm:$0xff]  }
  0x88   :  { %2229 = vmatpush1.bf16.msra.mxu1 %v3101_v21  ;;  %2177 = vmatprep.subr.bf16.mxu0 %v3109_v22  ;;  %v3197_v21 = vld [vmem:[%s4426_s0 + $0x28] ss:$72 sps:$4 sm:$0xff]  }
  0x89   :  { %2230 = vmatprep.subr.bf16.mxu1 %v3112_v23  ;;  %v3200_v22 = vld [vmem:[%s4425_s1 + $0x670] ss:$8 sps:$4 sm:$0xff]  }
  0x8a   :  { %2110 = vmatmul.mubr.bf16.gmra.mxu0 %v3106_v24  ;;  %v3203_v23 = vld [vmem:[%s4425_s1 + $0x770] ss:$8 sps:$4 sm:$0xff]   ;;  %v3208_v24 = vld [vmem:[%s4425_s1 + $0x664] ss:$8 sps:$4 sm:$0xff]  }
  0x8b   :  { %2163 = vmatmul.mubr.bf16.gmra.mxu1 %v3115_v27  ;;  %2178 = vmatpush1.bf16.msra.mxu0 %v3107_v25  ;;  %v3211_v25 = vld [vmem:[%s4425_s1 + $0x764] ss:$8 sps:$4 sm:$0xff]  }
  0x8c   :  { %2231 = vmatpush1.bf16.msra.mxu1 %v3110_v26  ;;  %2179 = vmatprep.subr.bf16.mxu0 %v3118_v28  ;;  %v3212_v26 = vld [vmem:[%s4426_s0 + $0xb4] ss:$72 sps:$4 sm:$0xff]   ;;  %v3206_v28 = vld [vmem:[%s4425_s1 + $0x660] ss:$8 sps:$4 sm:$0xff]  }
  0x8d   :  { %2232 = vmatprep.subr.bf16.mxu1 %v3121_v29  ;;  %2205 = vmatprep.mubr.bf16.mxu0 %v3196_v33  ;;  %v3221_v27 = vld [vmem:[%s4426_s0 + $0xbc] ss:$72 sps:$4 sm:$0xff]   ;;  %v3209_v29 = vld [vmem:[%s4425_s1 + $0x760] ss:$8 sps:$4 sm:$0xff]   ;;  %v3215_v33 = vld [vmem:[%s4425_s1 + $0x650] ss:$8 sps:$4 sm:$0xff]  }
  0x8e   :  { %2258 = vmatprep.mubr.bf16.mxu1 %v3199_v35  ;;  %v3223_v35 = vld [vmem:[%s4426_s0 + $0xb8] ss:$72 sps:$4 sm:$0xff]  }
  0x8f   :  { %2180 = vmatpush1.bf16.msra.mxu0 %v3116_v30  ;;  %v3217_v30 = vld [vmem:[%s4425_s1 + $0x654] ss:$8 sps:$4 sm:$0xff]  }
  0x90   :  { %2233 = vmatpush1.bf16.msra.mxu1 %v3119_v31  ;;  %2181 = vmatprep.subr.bf16.mxu0 %v3124_v32  ;;  %v3220_v31 = vld [vmem:[%s4425_s1 + $0x754] ss:$8 sps:$4 sm:$0xff]   ;;  %v3214_v32 = vld [vmem:[%s4426_s0 + $0xb0] ss:$72 sps:$4 sm:$0xff]  }
  0x91   :  { %2234 = vmatprep.subr.bf16.mxu1 %v3127_v34  ;;  %v3218_v34 = vld [vmem:[%s4425_s1 + $0x750] ss:$8 sps:$4 sm:$0xff]  }
  0x93   :  { %2182 = vmatpush1.bf16.msra.mxu0 %v3122_v36  ;;  %v3226_v36 = vld [vmem:[%s4425_s1 + $0x644] ss:$8 sps:$4 sm:$0xff]  }
  0x94   :  { %2235 = vmatpush1.bf16.msra.mxu1 %v3125_v37  ;;  %2183 = vmatprep.subr.bf16.mxu0 %v3130_v38  ;;  %v3229_v37 = vld [vmem:[%s4425_s1 + $0x744] ss:$8 sps:$4 sm:$0xff]   ;;  %v3304_v38 = vld [vmem:[%s4426_s0 + $0x34] ss:$72 sps:$4 sm:$0xff]  }
  0x95   :  { %2236 = vmatprep.subr.bf16.mxu1 %v3133_v39  ;;  %v3307_v39 = vld [vmem:[%s4426_s0 + $0x3c] ss:$72 sps:$4 sm:$0xff]  }
  0x97   :  { %2184 = vmatpush1.bf16.msra.mxu0 %v3128_v40  ;;  %v3224_v40 = vld [vmem:[%s4425_s1 + $0x640] ss:$8 sps:$4 sm:$0xff]  }
  0x98   :  { %2237 = vmatpush1.bf16.msra.mxu1 %v3131_v41  ;;  %2185 = vmatprep.subr.bf16.mxu0 %v3136_v42  ;;  %v3227_v41 = vld [vmem:[%s4425_s1 + $0x740] ss:$8 sps:$4 sm:$0xff]   ;;  %v3232_v42 = vld [vmem:[%s4425_s1 + $0x634] ss:$8 sps:$4 sm:$0xff]  }
  0x99   :  { %2238 = vmatprep.subr.bf16.mxu1 %v3139_v43  ;;  %v3235_v43 = vld [vmem:[%s4425_s1 + $0x734] ss:$8 sps:$4 sm:$0xff]  }
  0x9b   :  { %2186 = vmatpush1.bf16.msra.mxu0 %v3134_v44  ;;  %v3230_v44 = vld [vmem:[%s4425_s1 + $0x630] ss:$8 sps:$4 sm:$0xff]  }
  0x9c   :  { %2239 = vmatpush1.bf16.msra.mxu1 %v3137_v45  ;;  %2187 = vmatprep.subr.bf16.mxu0 %v3142_v46  ;;  %v3233_v45 = vld [vmem:[%s4425_s1 + $0x730] ss:$8 sps:$4 sm:$0xff]   ;;  %v3238_v46 = vld [vmem:[%s4425_s1 + $0x624] ss:$8 sps:$4 sm:$0xff]  }
  0x9d   :  { %2240 = vmatprep.subr.bf16.mxu1 %v3145_v47  ;;  %v3241_v47 = vld [vmem:[%s4425_s1 + $0x724] ss:$8 sps:$4 sm:$0xff]  }
  0x9f   :  { %2188 = vmatpush1.bf16.msra.mxu0 %v3140_v48  ;;  %v3236_v48 = vld [vmem:[%s4425_s1 + $0x620] ss:$8 sps:$4 sm:$0xff]  }
  0xa0   :  { %2241 = vmatpush1.bf16.msra.mxu1 %v3143_v49  ;;  %2189 = vmatprep.subr.bf16.mxu0 %v3148_v50  ;;  %v3239_v49 = vld [vmem:[%s4425_s1 + $0x720] ss:$8 sps:$4 sm:$0xff]   ;;  %v3244_v50 = vld [vmem:[%s4425_s1 + $0x614] ss:$8 sps:$4 sm:$0xff]  }
  0xa1   :  { %2242 = vmatprep.subr.bf16.mxu1 %v3151_v51  ;;  %v3247_v51 = vld [vmem:[%s4425_s1 + $0x714] ss:$8 sps:$4 sm:$0xff]  }
  0xa3   :  { %2190 = vmatpush2.bf16.msra.mxu0 %v3146_v52  ;;  %v3242_v52 = vld [vmem:[%s4425_s1 + $0x610] ss:$8 sps:$4 sm:$0xff]  }
  0xa4   :  { %2243 = vmatpush2.bf16.msra.mxu1 %v3149_v53  ;;  %2191 = vmatprep.subr.bf16.mxu0 %v3154_v54  ;;  %v3245_v53 = vld [vmem:[%s4425_s1 + $0x710] ss:$8 sps:$4 sm:$0xff]   ;;  %v3250_v54 = vld [vmem:[%s4425_s1 + $0x604] ss:$8 sps:$4 sm:$0xff]  }
  0xa5   :  { %2244 = vmatprep.subr.bf16.mxu1 %v3157_v55  ;;  %v3253_v55 = vld [vmem:[%s4425_s1 + $0x704] ss:$8 sps:$4 sm:$0xff]  }
  0xa7   :  { %2192 = vmatpush2.bf16.msra.mxu0 %v3152_v56  ;;  %v3248_v56 = vld [vmem:[%s4425_s1 + $0x600] ss:$8 sps:$4 sm:$0xff]  }
  0xa8   :  { %2245 = vmatpush2.bf16.msra.mxu1 %v3155_v57  ;;  %2193 = vmatprep.subr.bf16.mxu0 %v3160_v58  ;;  %v3251_v57 = vld [vmem:[%s4425_s1 + $0x700] ss:$8 sps:$4 sm:$0xff]   ;;  %v3256_v58 = vld [vmem:[%s4425_s1 + $0x6f4] ss:$8 sps:$4 sm:$0xff]  }
  0xa9   :  { %2246 = vmatprep.subr.bf16.mxu1 %v3163_v59  ;;  %v3259_v59 = vld [vmem:[%s4425_s1 + $0x7f4] ss:$8 sps:$4 sm:$0xff]  }
  0xab   :  { %2194 = vmatpush2.bf16.msra.mxu0 %v3158_v60  ;;  %v3254_v60 = vld [vmem:[%s4425_s1 + $0x6f0] ss:$8 sps:$4 sm:$0xff]  }
  0xac   :  { %2247 = vmatpush2.bf16.msra.mxu1 %v3161_v61  ;;  %2195 = vmatprep.subr.bf16.mxu0 %v3166_v62  ;;  %v3257_v61 = vld [vmem:[%s4425_s1 + $0x7f0] ss:$8 sps:$4 sm:$0xff]   ;;  %v3262_v62 = vld [vmem:[%s4425_s1 + $0x6e4] ss:$8 sps:$4 sm:$0xff]  }
  0xad   :  { %2248 = vmatprep.subr.bf16.mxu1 %v3169_v63  ;;  %v3265_v63 = vld [vmem:[%s4425_s1 + $0x7e4] ss:$8 sps:$4 sm:$0xff]  }
  0xaf   :  { %2196 = vmatpush2.bf16.msra.mxu0 %v3164_v0  ;;  %v3260_v0 = vld [vmem:[%s4425_s1 + $0x6e0] ss:$8 sps:$4 sm:$0xff]  }
  0xb0   :  { %2249 = vmatpush2.bf16.msra.mxu1 %v3167_v1  ;;  %2197 = vmatprep.subr.bf16.mxu0 %v3172_v2  ;;  %v3263_v1 = vld [vmem:[%s4425_s1 + $0x7e0] ss:$8 sps:$4 sm:$0xff]   ;;  %v3268_v2 = vld [vmem:[%s4425_s1 + $0x6d4] ss:$8 sps:$4 sm:$0xff]  }
  0xb1   :  { %2250 = vmatprep.subr.bf16.mxu1 %v3175_v3  ;;  %v3271_v3 = vld [vmem:[%s4425_s1 + $0x7d4] ss:$8 sps:$4 sm:$0xff]  }
  0xb3   :  { %2198 = vmatpush2.bf16.msra.mxu0 %v3170_v4  ;;  %v3266_v4 = vld [vmem:[%s4425_s1 + $0x6d0] ss:$8 sps:$4 sm:$0xff]  }
  0xb4   :  { %2251 = vmatpush2.bf16.msra.mxu1 %v3173_v5  ;;  %2199 = vmatprep.subr.bf16.mxu0 %v3178_v6  ;;  %v3269_v5 = vld [vmem:[%s4425_s1 + $0x7d0] ss:$8 sps:$4 sm:$0xff]   ;;  %v3274_v6 = vld [vmem:[%s4425_s1 + $0x6c4] ss:$8 sps:$4 sm:$0xff]  }
  0xb5   :  { %2252 = vmatprep.subr.bf16.mxu1 %v3181_v7  ;;  %v3277_v7 = vld [vmem:[%s4425_s1 + $0x7c4] ss:$8 sps:$4 sm:$0xff]  }
  0xb7   :  { %2200 = vmatpush2.bf16.msra.mxu0 %v3176_v8  ;;  %v3272_v8 = vld [vmem:[%s4425_s1 + $0x6c0] ss:$8 sps:$4 sm:$0xff]  }
  0xb8   :  { %2253 = vmatpush2.bf16.msra.mxu1 %v3179_v9  ;;  %2201 = vmatprep.subr.bf16.mxu0 %v3184_v10  ;;  %v3275_v9 = vld [vmem:[%s4425_s1 + $0x7c0] ss:$8 sps:$4 sm:$0xff]   ;;  %v3280_v10 = vld [vmem:[%s4425_s1 + $0x6b4] ss:$8 sps:$4 sm:$0xff]  }
  0xb9   :  { %2254 = vmatprep.subr.bf16.mxu1 %v3187_v11  ;;  %v3283_v11 = vld [vmem:[%s4425_s1 + $0x7b4] ss:$8 sps:$4 sm:$0xff]  }
  0xbb   :  { %2202 = vmatpush2.bf16.msra.mxu0 %v3182_v12  ;;  %v3278_v12 = vld [vmem:[%s4425_s1 + $0x6b0] ss:$8 sps:$4 sm:$0xff]  }
  0xbc   :  { %2255 = vmatpush2.bf16.msra.mxu1 %v3185_v13  ;;  %2203 = vmatprep.subr.bf16.mxu0 %v3190_v14  ;;  %v3281_v13 = vld [vmem:[%s4425_s1 + $0x7b0] ss:$8 sps:$4 sm:$0xff]   ;;  %v3286_v14 = vld [vmem:[%s4425_s1 + $0x6a4] ss:$8 sps:$4 sm:$0xff]  }
  0xbd   :  { %2256 = vmatprep.subr.bf16.mxu1 %v3193_v15  ;;  %v3289_v15 = vld [vmem:[%s4425_s1 + $0x7a4] ss:$8 sps:$4 sm:$0xff]  }
  0xbf   :  { %2204 = vmatpush2.bf16.msra.mxu0 %v3188_v16  ;;  %v3284_v16 = vld [vmem:[%s4425_s1 + $0x6a0] ss:$8 sps:$4 sm:$0xff]  }
  0xc0   :  { %2257 = vmatpush2.bf16.msra.mxu1 %v3191_v17  ;;  %2279 = vmatprep.subr.bf16.mxu0 %v3202_v18  ;;  %v3287_v17 = vld [vmem:[%s4425_s1 + $0x7a0] ss:$8 sps:$4 sm:$0xff]   ;;  %v3292_v18 = vld [vmem:[%s4425_s1 + $0x694] ss:$8 sps:$4 sm:$0xff]  }
  0xc1   :  { %2332 = vmatprep.subr.bf16.mxu1 %v3205_v19  ;;  %v3295_v19 = vld [vmem:[%s4425_s1 + $0x794] ss:$8 sps:$4 sm:$0xff]  }
  0xc2   :  { %2206 = vmatmul.mubr.bf16.vlgmr.msra.gmra.mxu0 %v3194_v20  ;;  %v3290_v20 = vld [vmem:[%s4425_s1 + $0x690] ss:$8 sps:$4 sm:$0xff]  }
  0xc3   :  { %2259 = vmatmul.mubr.bf16.vlgmr.msra.gmra.mxu1 %v3197_v21  ;;  %2280 = vmatpush1.bf16.msra.mxu0 %v3200_v22  ;;  %v3293_v21 = vld [vmem:[%s4425_s1 + $0x790] ss:$8 sps:$4 sm:$0xff]   ;;  %v3298_v22 = vld [vmem:[%s4425_s1 + $0x684] ss:$8 sps:$4 sm:$0xff]  }
  0xc4   :  { %2333 = vmatpush1.bf16.msra.mxu1 %v3203_v23  ;;  %2281 = vmatprep.subr.bf16.mxu0 %v3208_v24  ;;  %v3301_v23 = vld [vmem:[%s4425_s1 + $0x784] ss:$8 sps:$4 sm:$0xff]   ;;  %v3296_v24 = vld [vmem:[%s4425_s1 + $0x680] ss:$8 sps:$4 sm:$0xff]  }
  0xc5   :  { %2334 = vmatprep.subr.bf16.mxu1 %v3211_v25  ;;  %2215 = vmatprep.mubr.bf16.mxu0 %v3212_v26  ;;  %v3299_v25 = vld [vmem:[%s4425_s1 + $0x780] ss:$8 sps:$4 sm:$0xff]   ;;  %v3310_v26 = vld [vmem:[%s4425_s1 + $0x874] ss:$8 sps:$4 sm:$0xff]  }
  0xc6   :  { %2268 = vmatprep.mubr.bf16.mxu1 %v3221_v27  ;;  %v3302_v27 = vld [vmem:[%s4426_s0 + $0x30] ss:$72 sps:$4 sm:$0xff]  }
  0xc7   :  { %2282 = vmatpush1.bf16.msra.mxu0 %v3206_v28  ;;  %v3305_v28 = vld [vmem:[%s4426_s0 + $0x38] ss:$72 sps:$4 sm:$0xff]  }
  0xc8   :  { %2335 = vmatpush1.bf16.msra.mxu1 %v3209_v29  ;;  %2283 = vmatprep.subr.bf16.mxu0 %v3217_v30  ;;  %v3308_v29 = vld [vmem:[%s4425_s1 + $0x870] ss:$8 sps:$4 sm:$0xff]   ;;  %v3313_v30 = vld [vmem:[%s4425_s1 + $0x864] ss:$8 sps:$4 sm:$0xff]  }
  0xc9   :  { %2336 = vmatprep.subr.bf16.mxu1 %v3220_v31  ;;  %v3314_v31 = vld [vmem:[%s4426_s0 + $0xc4] ss:$72 sps:$4 sm:$0xff]  }
  0xca   :  { %2216 = vmatmul.mubr.bf16.gmra.mxu0 %v3214_v32  ;;  %v3320_v32 = vld [vmem:[%s4426_s0 + $0xcc] ss:$72 sps:$4 sm:$0xff]  }
  0xcb   :  { %2269 = vmatmul.mubr.bf16.gmra.mxu1 %v3223_v35  ;;  %2284 = vmatpush1.bf16.msra.mxu0 %v3215_v33  ;;  %v3311_v33 = vld [vmem:[%s4425_s1 + $0x860] ss:$8 sps:$4 sm:$0xff]  }
  0xcc   :  { %2337 = vmatpush1.bf16.msra.mxu1 %v3218_v34  ;;  %2285 = vmatprep.subr.bf16.mxu0 %v3226_v36  ;;  %v3319_v34 = vld [vmem:[%s4425_s1 + $0x854] ss:$8 sps:$4 sm:$0xff]   ;;  %v3316_v35 = vld [vmem:[%s4426_s0 + $0xc0] ss:$72 sps:$4 sm:$0xff]  }
  0xcd   :  { %2338 = vmatprep.subr.bf16.mxu1 %v3229_v37  ;;  %2311 = vmatprep.mubr.bf16.mxu0 %v3304_v38  ;;  %v3322_v36 = vld [vmem:[%s4426_s0 + $0xc8] ss:$72 sps:$4 sm:$0xff]   ;;  %v3325_v38 = vld [vmem:[%s4425_s1 + $0x844] ss:$8 sps:$4 sm:$0xff]  }
  0xce   :  { %2364 = vmatprep.mubr.bf16.mxu1 %v3307_v39  ;;  %v3317_v37 = vld [vmem:[%s4425_s1 + $0x850] ss:$8 sps:$4 sm:$0xff]   ;;  %v3364_v39 = vld [vmem:[%s4426_s0 + $0x44] ss:$72 sps:$4 sm:$0xff]  }
  0xcf   :  { %2286 = vmatpush1.bf16.msra.mxu0 %v3224_v40  ;;  %v3367_v40 = vld [vmem:[%s4426_s0 + $0xd4] ss:$72 sps:$4 sm:$0xff]  }
  0xd0   :  { %2339 = vmatpush1.bf16.msra.mxu1 %v3227_v41  ;;  %2287 = vmatprep.subr.bf16.mxu0 %v3232_v42  ;;  %v3323_v41 = vld [vmem:[%s4425_s1 + $0x840] ss:$8 sps:$4 sm:$0xff]   ;;  %v3328_v42 = vld [vmem:[%s4425_s1 + $0x834] ss:$8 sps:$4 sm:$0xff]  }
  0xd1   :  { %2340 = vmatprep.subr.bf16.mxu1 %v3235_v43  ;;  %v3326_v43 = vld [vmem:[%s4425_s1 + $0x830] ss:$8 sps:$4 sm:$0xff]  }
  0xd3   :  { %2288 = vmatpush1.bf16.msra.mxu0 %v3230_v44  ;;  %v3331_v44 = vld [vmem:[%s4425_s1 + $0x824] ss:$8 sps:$4 sm:$0xff]  }
  0xd4   :  { %2341 = vmatpush1.bf16.msra.mxu1 %v3233_v45  ;;  %2289 = vmatprep.subr.bf16.mxu0 %v3238_v46  ;;  %v3329_v45 = vld [vmem:[%s4425_s1 + $0x820] ss:$8 sps:$4 sm:$0xff]   ;;  %v3334_v46 = vld [vmem:[%s4425_s1 + $0x814] ss:$8 sps:$4 sm:$0xff]  }
  0xd5   :  { %2342 = vmatprep.subr.bf16.mxu1 %v3241_v47  ;;  %v3332_v47 = vld [vmem:[%s4425_s1 + $0x810] ss:$8 sps:$4 sm:$0xff]  }
  0xd7   :  { %2290 = vmatpush1.bf16.msra.mxu0 %v3236_v48  ;;  %v3337_v48 = vld [vmem:[%s4425_s1 + $0x804] ss:$8 sps:$4 sm:$0xff]  }
  0xd8   :  { %2343 = vmatpush1.bf16.msra.mxu1 %v3239_v49  ;;  %2291 = vmatprep.subr.bf16.mxu0 %v3244_v50  ;;  %v3335_v49 = vld [vmem:[%s4425_s1 + $0x800] ss:$8 sps:$4 sm:$0xff]   ;;  %v3340_v50 = vld [vmem:[%s4425_s1 + $0x8f4] ss:$8 sps:$4 sm:$0xff]  }
  0xd9   :  { %2344 = vmatprep.subr.bf16.mxu1 %v3247_v51  ;;  %v3338_v51 = vld [vmem:[%s4425_s1 + $0x8f0] ss:$8 sps:$4 sm:$0xff]  }
  0xdb   :  { %2292 = vmatpush1.bf16.msra.mxu0 %v3242_v52  ;;  %v3343_v52 = vld [vmem:[%s4425_s1 + $0x8e4] ss:$8 sps:$4 sm:$0xff]  }
  0xdc   :  { %2345 = vmatpush1.bf16.msra.mxu1 %v3245_v53  ;;  %2293 = vmatprep.subr.bf16.mxu0 %v3250_v54  ;;  %v3341_v53 = vld [vmem:[%s4425_s1 + $0x8e0] ss:$8 sps:$4 sm:$0xff]   ;;  %v3346_v54 = vld [vmem:[%s4425_s1 + $0x8d4] ss:$8 sps:$4 sm:$0xff]  }
  0xdd   :  { %2346 = vmatprep.subr.bf16.mxu1 %v3253_v55  ;;  %v3344_v55 = vld [vmem:[%s4425_s1 + $0x8d0] ss:$8 sps:$4 sm:$0xff]  }
  0xdf   :  { %2294 = vmatpush1.bf16.msra.mxu0 %v3248_v56  ;;  %v3349_v56 = vld [vmem:[%s4425_s1 + $0x8c4] ss:$8 sps:$4 sm:$0xff]  }
  0xe0   :  { %2347 = vmatpush1.bf16.msra.mxu1 %v3251_v57  ;;  %2295 = vmatprep.subr.bf16.mxu0 %v3256_v58  ;;  %v3347_v57 = vld [vmem:[%s4425_s1 + $0x8c0] ss:$8 sps:$4 sm:$0xff]   ;;  %v3352_v58 = vld [vmem:[%s4425_s1 + $0x8b4] ss:$8 sps:$4 sm:$0xff]  }
  0xe1   :  { %2348 = vmatprep.subr.bf16.mxu1 %v3259_v59  ;;  %v3350_v59 = vld [vmem:[%s4425_s1 + $0x8b0] ss:$8 sps:$4 sm:$0xff]  }
  0xe3   :  { %2296 = vmatpush2.bf16.msra.mxu0 %v3254_v60  ;;  %v3355_v60 = vld [vmem:[%s4425_s1 + $0x8a4] ss:$8 sps:$4 sm:$0xff]  }
  0xe4   :  { %2349 = vmatpush2.bf16.msra.mxu1 %v3257_v61  ;;  %2297 = vmatprep.subr.bf16.mxu0 %v3262_v62  ;;  %v3353_v61 = vld [vmem:[%s4425_s1 + $0x8a0] ss:$8 sps:$4 sm:$0xff]   ;;  %v3358_v62 = vld [vmem:[%s4425_s1 + $0x894] ss:$8 sps:$4 sm:$0xff]  }
  0xe5   :  { %2350 = vmatprep.subr.bf16.mxu1 %v3265_v63  ;;  %v3356_v63 = vld [vmem:[%s4425_s1 + $0x890] ss:$8 sps:$4 sm:$0xff]  }
  0xe7   :  { %2298 = vmatpush2.bf16.msra.mxu0 %v3260_v0  ;;  %v3361_v0 = vld [vmem:[%s4425_s1 + $0x884] ss:$8 sps:$4 sm:$0xff]  }
  0xe8   :  { %2351 = vmatpush2.bf16.msra.mxu1 %v3263_v1  ;;  %2299 = vmatprep.subr.bf16.mxu0 %v3268_v2  ;;  %v3359_v1 = vld [vmem:[%s4425_s1 + $0x880] ss:$8 sps:$4 sm:$0xff]  }
  0xe9   :  { %2352 = vmatprep.subr.bf16.mxu1 %v3271_v3  ;;  %v3362_v2 = vld [vmem:[%s4426_s0 + $0x40] ss:$72 sps:$4 sm:$0xff]   ;;  %v3365_v3 = vld [vmem:[%s4426_s0 + $0xd0] ss:$72 sps:$4 sm:$0xff]  }
  0xeb   :  { %2300 = vmatpush2.bf16.msra.mxu0 %v3266_v4 }
  0xec   :  { %2353 = vmatpush2.bf16.msra.mxu1 %v3269_v5  ;;  %2301 = vmatprep.subr.bf16.mxu0 %v3274_v6 }
  0xed   :  { %2354 = vmatprep.subr.bf16.mxu1 %v3277_v7 }
  0xef   :  { %2302 = vmatpush2.bf16.msra.mxu0 %v3272_v8 }
  0xf0   :  { %2355 = vmatpush2.bf16.msra.mxu1 %v3275_v9  ;;  %2303 = vmatprep.subr.bf16.mxu0 %v3280_v10 }
  0xf1   :  { %2356 = vmatprep.subr.bf16.mxu1 %v3283_v11 }
  0xf3   :  { %2304 = vmatpush2.bf16.msra.mxu0 %v3278_v12 }
  0xf4   :  { %2357 = vmatpush2.bf16.msra.mxu1 %v3281_v13  ;;  %2305 = vmatprep.subr.bf16.mxu0 %v3286_v14 }
  0xf5   :  { %2358 = vmatprep.subr.bf16.mxu1 %v3289_v15 }
  0xf7   :  { %2306 = vmatpush2.bf16.msra.mxu0 %v3284_v16 }
  0xf8   :  { %2359 = vmatpush2.bf16.msra.mxu1 %v3287_v17  ;;  %2307 = vmatprep.subr.bf16.mxu0 %v3292_v18 }
  0xf9   :  { %2360 = vmatprep.subr.bf16.mxu1 %v3295_v19 }
  0xfb   :  { %2308 = vmatpush2.bf16.msra.mxu0 %v3290_v20 }
  0xfc   :  { %2361 = vmatpush2.bf16.msra.mxu1 %v3293_v21  ;;  %2309 = vmatprep.subr.bf16.mxu0 %v3298_v22 }
  0xfd   :  { %2362 = vmatprep.subr.bf16.mxu1 %v3301_v23 }
  0xff   :  { %2310 = vmatpush2.bf16.msra.mxu0 %v3296_v24 }
 0x100   :  { %2363 = vmatpush2.bf16.msra.mxu1 %v3299_v25  ;;  %2385 = vmatprep.subr.bf16.mxu0 %v3310_v26 }
 0x101   :  { %2850 = vmatprep.subr.bf16.mxu1 %v3310_v26 }
 0x102   :  { %2312 = vmatmul.mubr.bf16.vlgmr.msra.gmra.mxu0 %v3302_v27  ;;  %v1995_v4 = vpop.f32.mrf.mxu0 }
 0x103   :  { %2365 = vmatmul.mubr.bf16.vlgmr.msra.gmra.mxu1 %v3305_v28  ;;  %2386 = vmatpush1.bf16.msra.mxu0 %v3308_v29  ;;  %v2048_v6 = vpop.f32.mrf.mxu1 }
 0x104   :  { %2866 = vmatpush1.bf16.msra.mxu1 %v3308_v29  ;;  %2387 = vmatprep.subr.bf16.mxu0 %v3313_v30  ;;  %v1997_v5 = vpop.f32.mrf.mxu0 }
 0x105   :  { %2851 = vmatprep.subr.bf16.mxu1 %v3313_v30  ;;  %2321 = vmatprep.mubr.bf16.mxu0 %v3314_v31  ;;  %v2050_v8 = vpop.f32.mrf.mxu1 }
 0x106   :  { %2374 = vmatprep.mubr.bf16.mxu1 %v3320_v32  ;;  %v1999_v7 = vpop.f32.mrf.mxu0 }
 0x107   :  { %2388 = vmatpush1.bf16.msra.mxu0 %v3311_v33  ;;  %v2052_v10 = vpop.f32.mrf.mxu1 }
 0x108   :  { %2867 = vmatpush1.bf16.msra.mxu1 %v3311_v33  ;;  %2389 = vmatprep.subr.bf16.mxu0 %v3319_v34  ;;  %v2001_v9 = vpop.f32.mrf.mxu0 }
 0x109   :  { %2852 = vmatprep.subr.bf16.mxu1 %v3319_v34  ;;  %v2054_v12 = vpop.f32.mrf.mxu1 }
 0x10a   :  { %2322 = vmatmul.mubr.bf16.gmra.mxu0 %v3316_v35  ;;  %v2005_v11 = vpop.f32.mrf.mxu0 }
 0x10b   :  { %2375 = vmatmul.mubr.bf16.gmra.mxu1 %v3322_v36  ;;  %2390 = vmatpush1.bf16.msra.mxu0 %v3317_v37  ;;  %v2058_v14 = vpop.f32.mrf.mxu1 }
 0x10c   :  { %2868 = vmatpush1.bf16.msra.mxu1 %v3317_v37  ;;  %2391 = vmatprep.subr.bf16.mxu0 %v3325_v38  ;;  %v2007_v13 = vpop.f32.mrf.mxu0 }
 0x10d   :  { %2853 = vmatprep.subr.bf16.mxu1 %v3325_v38  ;;  %2417 = vmatprep.mubr.bf16.mxu0 %v3364_v39  ;;  %v2060_v16 = vpop.f32.mrf.mxu1 }
 0x10e   :  { %2427 = vmatprep.mubr.bf16.mxu1 %v3367_v40  ;;  %v2009_v15 = vpop.f32.mrf.mxu0 }
 0x10f   :  { %2392 = vmatpush1.bf16.msra.mxu0 %v3323_v41  ;;  %v2062_v18 = vpop.f32.mrf.mxu1 }
 0x110   :  { %2869 = vmatpush1.bf16.msra.mxu1 %v3323_v41  ;;  %2393 = vmatprep.subr.bf16.mxu0 %v3328_v42  ;;  %v2011_v17 = vpop.f32.mrf.mxu0 }
 0x111   :  { %2854 = vmatprep.subr.bf16.mxu1 %v3328_v42  ;;  %v2064_v20 = vpop.f32.mrf.mxu1 }
 0x113   :  { %2394 = vmatpush1.bf16.msra.mxu0 %v3326_v43 }
 0x114   :  { %2870 = vmatpush1.bf16.msra.mxu1 %v3326_v43  ;;  %2395 = vmatprep.subr.bf16.mxu0 %v3331_v44 }
 0x115   :  { %2855 = vmatprep.subr.bf16.mxu1 %v3331_v44 }
 0x117   :  { %2396 = vmatpush1.bf16.msra.mxu0 %v3329_v45 }
 0x118   :  { %2871 = vmatpush1.bf16.msra.mxu1 %v3329_v45  ;;  %2397 = vmatprep.subr.bf16.mxu0 %v3334_v46 }
 0x119   :  { %2856 = vmatprep.subr.bf16.mxu1 %v3334_v46 }
 0x11b   :  { %2398 = vmatpush1.bf16.msra.mxu0 %v3332_v47 }
 0x11c   :  { %2872 = vmatpush1.bf16.msra.mxu1 %v3332_v47  ;;  %2399 = vmatprep.subr.bf16.mxu0 %v3337_v48 }
 0x11d   :  { %2857 = vmatprep.subr.bf16.mxu1 %v3337_v48 }
 0x11f   :  { %2400 = vmatpush1.bf16.msra.mxu0 %v3335_v49 }
 0x120   :  { %2873 = vmatpush1.bf16.msra.mxu1 %v3335_v49  ;;  %2401 = vmatprep.subr.bf16.mxu0 %v3340_v50 }
 0x121   :  { %2858 = vmatprep.subr.bf16.mxu1 %v3340_v50 }
 0x123   :  { %2402 = vmatpush2.bf16.msra.mxu0 %v3338_v51 }
 0x124   :  { %2874 = vmatpush2.bf16.msra.mxu1 %v3338_v51  ;;  %2403 = vmatprep.subr.bf16.mxu0 %v3343_v52 }
 0x125   :  { %2859 = vmatprep.subr.bf16.mxu1 %v3343_v52 }
 0x127   :  { %2404 = vmatpush2.bf16.msra.mxu0 %v3341_v53 }
 0x128   :  { %2875 = vmatpush2.bf16.msra.mxu1 %v3341_v53  ;;  %2405 = vmatprep.subr.bf16.mxu0 %v3346_v54 }
 0x129   :  { %2860 = vmatprep.subr.bf16.mxu1 %v3346_v54 }
 0x12b   :  { %2406 = vmatpush2.bf16.msra.mxu0 %v3344_v55 }
 0x12c   :  { %2876 = vmatpush2.bf16.msra.mxu1 %v3344_v55  ;;  %2407 = vmatprep.subr.bf16.mxu0 %v3349_v56 }
 0x12d   :  { %2861 = vmatprep.subr.bf16.mxu1 %v3349_v56 }
 0x12f   :  { %2408 = vmatpush2.bf16.msra.mxu0 %v3347_v57 }
 0x130   :  { %2877 = vmatpush2.bf16.msra.mxu1 %v3347_v57  ;;  %2409 = vmatprep.subr.bf16.mxu0 %v3352_v58 }
 0x131   :  { %2862 = vmatprep.subr.bf16.mxu1 %v3352_v58  ;;  %v2049_v58 = vadd.f32 %v2048_v6, %v1995_v4 }
 0x133   :  { %2410 = vmatpush2.bf16.msra.mxu0 %v3350_v59 }
 0x134   :  { %2878 = vmatpush2.bf16.msra.mxu1 %v3350_v59  ;;  %2411 = vmatprep.subr.bf16.mxu0 %v3355_v60  ;;  %v2059_v59 = vadd.f32 %v2058_v14, %v2005_v11 }
 0x135   :  { %2863 = vmatprep.subr.bf16.mxu1 %v3355_v60  ;;  %v2051_v60 = vadd.f32 %v2050_v8, %v1997_v5 }
 0x137   :  { %2412 = vmatpush2.bf16.msra.mxu0 %v3353_v61 }
 0x138   :  { %2879 = vmatpush2.bf16.msra.mxu1 %v3353_v61  ;;  %2413 = vmatprep.subr.bf16.mxu0 %v3358_v62 }
 0x139   :  { %2864 = vmatprep.subr.bf16.mxu1 %v3358_v62  ;;  %v2061_v62 = vadd.f32 %v2060_v16, %v2007_v13 }
 0x13b   :  { %2414 = vmatpush2.bf16.msra.mxu0 %v3356_v63 }
 0x13c   :  { %2880 = vmatpush2.bf16.msra.mxu1 %v3356_v63  ;;  %2415 = vmatprep.subr.bf16.mxu0 %v3361_v0 }
 0x13d   :  { %2865 = vmatprep.subr.bf16.mxu1 %v3361_v0 }
 0x13f   :  { %2416 = vmatpush2.bf16.msra.mxu0 %v3359_v1 }
 0x140   :  { %2881 = vmatpush2.bf16.msra.mxu1 %v3359_v1 }
 0x142   :  { %2418 = vmatmul.mubr.bf16.vlgmr.msra.gmra.mxu0 %v3362_v2  ;;  %v2101_v19 = vpop.f32.mrf.mxu0 }
 0x143   :  { %2428 = vmatmul.mubr.bf16.vlgmr.msra.gmra.mxu1 %v3365_v3  ;;  %v2154_v22 = vpop.f32.mrf.mxu1  ;;  %v2102_v63 = vadd.f32 %v2101_v19, %v2049_v58 }
 0x144   :  { %v2103_v21 = vpop.f32.mrf.mxu0 }
 0x145   :  { %v2156_v24 = vpop.f32.mrf.mxu1  ;;  %v2104_v1 = vadd.f32 %v2103_v21, %v2051_v60 }
 0x146   :  { %v2105_v23 = vpop.f32.mrf.mxu0 }
 0x147   :  { %v4365_v26 = vpop.f32.mrf.mxu1  ;;  %v2157_v6 = vadd.f32 %v2156_v24, %v2104_v1 }
 0x148   :  { %v2107_v25 = vpop.f32.mrf.mxu0 }
 0x149   :  { %v4367_v28 = vpop.f32.mrf.mxu1 }
 0x14a   :  { %v2111_v27 = vpop.f32.mrf.mxu0 }
 0x14b   :  { %v2164_v30 = vpop.f32.mrf.mxu1  ;;  %v2112_v0 = vadd.f32 %v2111_v27, %v2059_v59 }
 0x14c   :  { %v2113_v29 = vpop.f32.mrf.mxu0 }
 0x14d   :  { %v2166_v32 = vpop.f32.mrf.mxu1  ;;  %v2114_v3 = vadd.f32 %v2113_v29, %v2061_v62  ;;  %v2165_v4 = vadd.f32 %v2164_v30, %v2112_v0 }
 0x14e   :  { %v2115_v31 = vpop.f32.mrf.mxu0 }
 0x14f   :  { %v2168_v34 = vpop.f32.mrf.mxu1  ;;  %v2167_v13 = vadd.f32 %v2166_v32, %v2114_v3 }
 0x150   :  { %v2117_v33 = vpop.f32.mrf.mxu0 }
 0x151   :  { %v2170_v36 = vpop.f32.mrf.mxu1 }
 0x182   :  { %v2207_v35 = vpop.f32.mrf.mxu0 }
 0x183   :  { %v2260_v37 = vpop.f32.mrf.mxu1 }
 0x184   :  { %v2209_v38 = vpop.f32.mrf.mxu0 }
 0x185   :  { %v4369_v39 = vpop.f32.mrf.mxu1 }
 0x186   :  { %v2211_v40 = vpop.f32.mrf.mxu0 }
 0x187   :  { %v4371_v41 = vpop.f32.mrf.mxu1 }
 0x188   :  { %4430 = vst [vmem:[#allocation2_spill] sm:$0xff] %v4371_v41  ;;  %v4373_v42 = vpop.f32.mrf.mxu0  ;;  %v2065_v41 = vadd.f32 %v2064_v20, %v2011_v17 }
 0x189   :  { %v4375_v43 = vpop.f32.mrf.mxu1 }
 0x18a   :  { %4431 = vst [vmem:[#allocation3_spill] sm:$0xff] %v4375_v43  ;;  %v2217_v44 = vpop.f32.mrf.mxu0  ;;  %v2055_v43 = vadd.f32 %v2054_v12, %v2001_v9  ;;  %v2118_v14 = vadd.f32 %v2117_v33, %v2065_v41 }
 0x18b   :  { %v2270_v45 = vpop.f32.mrf.mxu1  ;;  %v2218_v19 = vadd.f32 %v2217_v44, %v2165_v4 }
 0x18c   :  { %v2219_v46 = vpop.f32.mrf.mxu0  ;;  %v2108_v8 = vadd.f32 %v2107_v25, %v2055_v43  ;;  %v2171_v17 = vadd.f32 %v2170_v36, %v2118_v14  ;;  %v2458_v36 = vld [vmem:[%s4428_s3] sm:$0x3] }
 0x18d   :  { %v2272_v47 = vpop.f32.mrf.mxu1  ;;  %v2220_v9 = vadd.f32 %v2219_v46, %v2167_v13  ;;  %v2271_v20 = vadd.f32 %v2270_v45, %v2218_v19 }
 0x18e   :  { %v2221_v48 = vpop.f32.mrf.mxu0 }
 0x18f   :  { %v4377_v49 = vpop.f32.mrf.mxu1  ;;  %v2273_v33 = vadd.f32 %v2272_v47, %v2220_v9  ;;  %v4438_v41 = vld [vmem:[#allocation2_spill] sm:$0xff] }
 0x190   :  { %4432 = vst [vmem:[#allocation4_spill] sm:$0xff] %v4377_v49  ;;  %v2223_v50 = vpop.f32.mrf.mxu0 }
 0x191   :  { %v4379_v51 = vpop.f32.mrf.mxu1 }
 0x192   :  { %4433 = vst [vmem:[#allocation5_spill] sm:$0xff] %v4379_v51  ;;  %v2053_v51 = vadd.f32 %v2052_v10, %v1999_v7  ;;  %v2210_v7 = vadd.f32 %v2209_v38, %v2157_v6 }
 0x194   :  { %v2106_v5 = vadd.f32 %v2105_v23, %v2053_v51  ;;  %v2263_v32 = vadd.f32 %v4369_v39, %v2210_v7 }
 0x196   :  { %v2159_v10 = vadd.f32 %v4365_v26, %v2106_v5  ;;  %v2438_v26 = vld [vmem:[%s4427_s2] sm:$0x3] }
 0x197   :  { %v4439_v44 = vld [vmem:[#allocation4_spill] sm:$0xff] }
 0x1c2   :  { %v2313_v52 = vpop.f32.mrf.mxu0 }
 0x1c3   :  { %v4381_v53 = vpop.f32.mrf.mxu1 }
 0x1c4   :  { %4434 = vst [vmem:[#allocation6_spill] sm:$0xff] %v4381_v53  ;;  %v2315_v54 = vpop.f32.mrf.mxu0  ;;  %v2063_v53 = vadd.f32 %v2062_v18, %v2009_v15  ;;  %v2161_v15 = vadd.f32 %v4367_v28, %v2108_v8 }
 0x1c5   :  { %v4383_v55 = vpop.f32.mrf.mxu1 }
 0x1c6   :  { %4435 = vst [vmem:[#allocation7_spill] sm:$0xff] %v4383_v55  ;;  %v4385_v56 = vpop.f32.mrf.mxu0  ;;  %v2116_v11 = vadd.f32 %v2115_v31, %v2063_v53  ;;  %v2214_v28 = vadd.f32 %v4373_v42, %v2161_v15  ;;  %v4441_v42 = vld [vmem:[#allocation3_spill] sm:$0xff] }
 0x1c7   :  { %4436 = vst [vmem:[#allocation8_spill] sm:$0xff] %v4385_v56  ;;  %v4387_v57 = vpop.f32.mrf.mxu1  ;;  %v2440_v56 = vlaneseq }
 0x1c8   :  { %4437 = vst [vmem:[#allocation9_spill] sm:$0xff] %v4387_v57  ;;  %v4389_v61 = vpop.f32.mrf.mxu0  ;;  %v2155_v57 = vadd.f32 %v2154_v22, %v2102_v63  ;;  %v2169_v12 = vadd.f32 %v2168_v34, %v2116_v11  ;;  %v2212_v22 = vadd.f32 %v2211_v40, %v2159_v10  ;;  %v2224_v34 = vadd.f32 %v2223_v50, %v2171_v17 }
 0x1c9   :  { %v4391_v2 = vpop.f32.mrf.mxu1  ;;  %v2441_v29 = vshrl.u32 %v2440_v56, 7  ;;  %v2267_v50 = vadd.f32 %v4441_v42, %v2214_v28  ;;  %v4442_v56 = vld [vmem:[#allocation5_spill] sm:$0xff] }
 0x1ca   :  { %v2323_v55 = vpop.f32.mrf.mxu0  ;;  %v2208_v16 = vadd.f32 %v2207_v35, %v2155_v57  ;;  %v2222_v23 = vadd.f32 %v2221_v48, %v2169_v12  ;;  %v2265_v43 = vadd.f32 %v4438_v41, %v2212_v22  ;;  %v2277_v57 = vadd.f32 %v4442_v56, %v2224_v34 }
 0x1cb   :  { %v2376_v49 = vpop.f32.mrf.mxu1  ;;  %v2442_v30 = vsub.s32 0, %v2441_v29  ;;  %v2446_v31 = vsub.s32 1, %v2441_v29  ;;  %v2324_v38 = vadd.f32 %v2323_v55, %v2271_v20  ;;  %v4440_v48 = vld [vmem:[#allocation6_spill] sm:$0xff]  ;;  %v2320_v6 = vadd.f32 %v4389_v61, %v2267_v50 }
 0x1cc   :  { %v2325_v21 = vpop.f32.mrf.mxu0  ;;  %v2261_v18 = vadd.f32 %v2260_v37, %v2208_v16  ;;  %v2316_v37 = vadd.f32 %v2315_v54, %v2263_v32  ;;  %v2275_v39 = vadd.f32 %v4439_v44, %v2222_v23 }
 0x1cd   :  { %v2378_v27 = vpop.f32.mrf.mxu1  ;;  %v2326_v40 = vadd.f32 %v2325_v21, %v2273_v33  ;;  %v2443_v47 = vrot.slane %v2438_v26, %v2442_v30  ;;  %v2463_v53 = vrot.slane %v2458_v36, %v2442_v30  ;;  %v2447_v55 = vrot.slane %v2438_v26, %v2446_v31  ;;  %v4444_v63 = vld [vmem:[#allocation7_spill] sm:$0xff] }
 0x1ce   :  { %v2327_v24 = vpop.f32.mrf.mxu0  ;;  %v2314_v35 = vadd.f32 %v2313_v52, %v2261_v18  ;;  %v2377_v52 = vadd.f32 %v2376_v49, %v2324_v38  ;;  %v4443_v58 = vld [vmem:[#allocation8_spill] sm:$0xff]  ;;  %v2369_v0 = vadd.f32 %v4444_v63, %v2316_v37  ;;  %v2467_v8 = vrot.slane %v2458_v36, %v2446_v31 }
 0x1cf   :  { %v2380_v25 = vpop.f32.mrf.mxu1  ;;  %v2318_v59 = vadd.f32 %v4443_v58, %v2265_v43  ;;  %v2328_v54 = vadd.f32 %v2327_v24, %v2275_v39  ;;  %v2379_v1 = vadd.f32 %v2378_v27, %v2326_v40  ;;  %v4445_v21 = vld [vmem:[#allocation9_spill] sm:$0xff]  ;;  %v2373_v18 = vadd.f32 %v4391_v2, %v2320_v6 }
 0x1d0   :  { %v2329_v45 = vpop.f32.mrf.mxu0  ;;  %v2367_v51 = vadd.f32 %v4440_v48, %v2314_v35 }
 0x1d1   :  { %v2382_v46 = vpop.f32.mrf.mxu1  ;;  %v2330_v5 = vadd.f32 %v2329_v45, %v2277_v57  ;;  %v2371_v29 = vadd.f32 %v4445_v21, %v2318_v59  ;;  %v2381_v7 = vadd.f32 %v2380_v25, %v2328_v54 }
 0x1d3   :  { %v2383_v61 = vadd.f32 %v2382_v46, %v2330_v5 }
 0x202   :  { %v2419_v60 = vpop.f32.mrf.mxu0 }
 0x203   :  { %v2429_v62 = vpop.f32.mrf.mxu1  ;;  %v2420_v3 = vadd.f32 %v2419_v60, %v2367_v51 }
 0x204   :  { %v2430_v4 = vadd.f32 %v2429_v62, %v2377_v52  ;;  %v2421_v49 = vpop.f32.mrf.mxu0 }
 0x205   :  { %v2431_v11 = vpop.f32.mrf.mxu1  ;;  %v2450_v13 = vmul.f32 %v2443_v47, %v2420_v3  ;;  %v2422_v16 = vadd.f32 %v2421_v49, %v2369_v0 }
 0x206   :  { %v2454_v14 = vmul.f32 %v2443_v47, %v2430_v4  ;;  %v2432_v19 = vadd.f32 %v2431_v11, %v2379_v1  ;;  %v2423_v9 = vpop.f32.mrf.mxu0 }
 0x207   :  { %v2433_v10 = vpop.f32.mrf.mxu1  ;;  %v2470_v12 = vadd.f32 %v2463_v53, %v2450_v13  ;;  %v2451_v27 = vmul.f32 %v2447_v55, %v2422_v16  ;;  %v2424_v20 = vadd.f32 %v2423_v9, %v2371_v29 }
 0x208   :  { %v2474_v15 = vadd.f32 %v2463_v53, %v2454_v14  ;;  %v2455_v17 = vmul.f32 %v2447_v55, %v2432_v19  ;;  %v2434_v22 = vadd.f32 %v2433_v10, %v2381_v7  ;;  %v2425_v23 = vpop.f32.mrf.mxu0 }
 0x209   :  { %v2435_v24 = vpop.f32.mrf.mxu1  ;;  %v2471_v30 = vadd.f32 %v2467_v8, %v2451_v27  ;;  %v2452_v32 = vmul.f32 %v2443_v47, %v2424_v20  ;;  %v2426_v35 = vadd.f32 %v2425_v23, %v2373_v18  ;;  %v2478_v25 = vmax.f32 %v2470_v12, 0.0 }
 0x20a   :  { %v2475_v31 = vadd.f32 %v2467_v8, %v2455_v17  ;;  %v2456_v33 = vmul.f32 %v2443_v47, %v2434_v22  ;;  %v2436_v38 = vadd.f32 %v2435_v24, %v2383_v61  ;;  %v2482_v26 = vmax.f32 %v2474_v15, 0.0 }
 0x20b   :  { %v2479_v28 = vmax.f32 %v2471_v30, 0.0  ;;  %v2472_v36 = vadd.f32 %v2463_v53, %v2452_v32  ;;  %v2453_v40 = vmul.f32 %v2447_v55, %v2426_v35 }
 0x20c   :  { %v2483_v34 = vmax.f32 %v2475_v31, 0.0  ;;  %v2476_v37 = vadd.f32 %v2463_v53, %v2456_v33  ;;  %v2457_v41 = vmul.f32 %v2447_v55, %v2436_v38 }
 0x20d   :  { %v2846_v2 = vpack.c.bf16 %v2479_v28, %v2478_v25  ;;  %v2473_v44 = vadd.f32 %v2467_v8, %v2453_v40  ;;  %v2480_v45 = vmax.f32 %v2472_v36, 0.0 }
 0x20e   :  { %v2848_v43 = vpack.c.bf16 %v2483_v34, %v2482_v26  ;;  %v2477_v39 = vadd.f32 %v2467_v8, %v2457_v41  ;;  %v2484_v46 = vmax.f32 %v2476_v37, 0.0 }
 0x20f   :  { %2510 = vst [vmem:[%s4429_s4] sm:$0xff] %v2846_v2  ;;  %v2481_v47 = vmax.f32 %v2473_v44, 0.0 }
 0x210   :  { %2512 = vst [vmem:[%s4429_s4 + $0x10] sm:$0xff] %v2848_v43  ;;  %v2485_v48 = vmax.f32 %v2477_v39, 0.0 }
 0x211   :  { %v2847_v51 = vpack.c.bf16 %v2481_v47, %v2480_v45 }
 0x212   :  { %v2849_v52 = vpack.c.bf16 %v2485_v48, %v2484_v46 }
 0x213   :  { %2511 = vst [vmem:[%s4429_s4 + $0x8] sm:$0xff] %v2847_v51 }
 0x214   :  { %2513 = vst [vmem:[%s4429_s4 + $0x18] sm:$0xff] %v2849_v52 }

</bundles_post_ra>
